<compile_context>
chip_gen: v5e
topology: v5e:2x2
jax: 0.10.0
libtpu: 0.0.40
codegen_flags: <defaults>
</compile_context>

<pallas_src>
import functools

import jax
import jax.numpy as jnp
from jax import lax
from jax.experimental import pallas as pl
from jax.experimental.pallas import tpu as pltpu


def _cast(a, dtype):
    return a.astype(dtype)


# ----------------------------- Pallas kernels ------------------------------

def _aff_conv4x4s2_kernel(x_ref, w_ref, b_ref, o_ref, pbuf_ref, *, mxu_dtype):
    """Fused 4x4 / stride-2 / pad-1 conv + bias + LeakyReLU(0.1), channels-last.

    x_ref:    (1, H/2, 2, W/2, 2*Cin)  free reshape of unpadded input:
              x_ref[0, a, p, b, q*Cin+ci] == x[2a+p, 2b+q, ci]
    w_ref:    (16*Cin, Cout)           tap-major weights, row = (4*di+dj)*Cin + ci
    b_ref:    (1, Cout)
    o_ref:    (1, Ho, Wo, Cout)        Ho=H/2, Wo=W/2
    pbuf_ref: VMEM f32 scratch (Ho+1, 2, Wo+1, 2*Cin) = polyphase view of the
              zero-padded input, built in VMEM (no HBM pad / transpose).
    """
    _, Ho, Wo, Cout = o_ref.shape
    Hq, _, Wq, two_cin = pbuf_ref.shape
    Cin = two_cin // 2

    x = x_ref[0]                                                   # (Ho, 2, Wo, 2Cin)

    # Padded polyphase buffer: pbuf[a', p', b', q'*Cin+ci] = xpad[2a'+p', 2b'+q', ci]
    pbuf_ref[...] = jnp.zeros(pbuf_ref.shape, pbuf_ref.dtype)
    pbuf_ref[0:Ho, 1:2, 0:Wo, Cin:2 * Cin] = x[:, 0:1, :, 0:Cin].astype(pbuf_ref.dtype)
    pbuf_ref[0:Ho, 1:2, 1:Wq, 0:Cin] = x[:, 0:1, :, Cin:2 * Cin].astype(pbuf_ref.dtype)
    pbuf_ref[1:Hq, 0:1, 0:Wo, Cin:2 * Cin] = x[:, 1:2, :, 0:Cin].astype(pbuf_ref.dtype)
    pbuf_ref[1:Hq, 0:1, 1:Wq, 0:Cin] = x[:, 1:2, :, Cin:2 * Cin].astype(pbuf_ref.dtype)
    pb = pbuf_ref[...]

    # One MXU matmul: (Ho*Wo, 16*Cin) @ (16*Cin, Cout), f32 accumulation.
    slices = []
    for di in range(4):
        ai, ri = di // 2, di % 2
        for dj in range(4):
            aj, rj = dj // 2, dj % 2
            slices.append(pb[ai:ai + Ho, ri, aj:aj + Wo, rj * Cin:(rj + 1) * Cin])
    patches = jnp.concatenate(slices, axis=-1).reshape(Ho * Wo, 16 * Cin)
    acc = jnp.dot(_cast(patches, mxu_dtype), _cast(w_ref[...], mxu_dtype),
                  preferred_element_type=jnp.float32)
    acc = acc + b_ref[...].astype(jnp.float32)
    acc = jnp.where(acc >= 0, acc, 0.1 * acc)                      # LeakyReLU(0.1)
    o_ref[0] = acc.reshape(Ho, Wo, Cout).astype(o_ref.dtype)


def _norm_qkv_dw_kernel(y_ref, v_ref, wqkv_ref, wdw_ref, o_ref, pad_ref, *, mxu_dtype):
    """InstanceNorm(y) + InstanceNorm(v) + concat + 1x1 qkv conv + depthwise 3x3, fused.

    y_ref: (1, h, w, Cy)   v_ref: (1, h, w, Cx)
    wqkv_ref: (Cy+Cx, 3*Cx)   wdw_ref: (9, 3*Cx)
    o_ref: (1, h, w, 3*Cx)
    pad_ref: VMEM f32 scratch (h+2, w+2, 3*Cx) -- zero-padded qkv for the dwconv.
    """
    _, h, w, c3 = o_ref.shape

    def inorm(t):                                   # per-channel over (h, w), eps=1e-5
        m = jnp.mean(t, axis=(0, 1), keepdims=True)
        tc = t - m
        var = jnp.mean(tc * tc, axis=(0, 1), keepdims=True)
        return tc * lax.rsqrt(var + 1e-5)

    yv = inorm(y_ref[0].astype(jnp.float32))
    vv = inorm(v_ref[0].astype(jnp.float32))
    cat = jnp.concatenate([yv, vv], axis=-1)                        # (h, w, Cy+Cx)
    cin = cat.shape[-1]
    qkv = jnp.dot(_cast(cat.reshape(h * w, cin), mxu_dtype),
                  _cast(wqkv_ref[...], mxu_dtype),
                  preferred_element_type=jnp.float32).reshape(h, w, c3)

    # Depthwise 3x3 (pad 1) on the still-in-VMEM qkv result (channels on lanes).
    pad_ref[...] = jnp.zeros(pad_ref.shape, pad_ref.dtype)
    pad_ref[1:h + 1, 1:w + 1, :] = qkv
    pb = pad_ref[...]
    wd = wdw_ref[...].astype(jnp.float32)                           # (9, 3C)
    acc = jnp.zeros((h, w, c3), jnp.float32)
    for di in range(3):
        for dj in range(3):
            acc = acc + pb[di:di + h, dj:dj + w, :] * wd[3 * di + dj, :][None, None, :]
    o_ref[0] = acc.astype(o_ref.dtype)


def _attn_proj_kernel(qkv_ref, y_ref, t_ref, wp_ref, o_ref, *, num_heads, mxu_dtype):
    """Channel attention (per head, channels-last) + project_out 1x1 conv + residual.

    qkv_ref: (1, n, 3*C)   y_ref: (1, n, Cy)   t_ref: (num_heads, 1)
    wp_ref:  (C, C)  project_out weight transposed to (C_in, C_out)
    o_ref:   (1, n, C)
    """
    _, n, c_dim = o_ref.shape
    hc = c_dim // num_heads
    qkv = qkv_ref[0].astype(jnp.float32)                            # (n, 3C)

    def l2n(a):                                     # F.normalize(dim=-1): over n axis
        s = jnp.sum(a * a, axis=0, keepdims=True)
        return a * lax.rsqrt(jnp.maximum(s, 1e-24))

    acc = jnp.zeros((n, c_dim), jnp.float32)
    for hd in range(num_heads):
        lo = hd * hc
        qh = l2n(qkv[:, lo:lo + hc])
        kh = l2n(qkv[:, c_dim + lo:c_dim + lo + hc])
        vh = qkv[:, 2 * c_dim + lo:2 * c_dim + lo + hc]
        # attn[c, d] = sum_n q[n, c] * k[n, d]   (contract over the large n axis)
        attn = jnp.einsum('nc,nd->cd', _cast(qh, mxu_dtype), _cast(kh, mxu_dtype),
                          preferred_element_type=jnp.float32)
        attn = attn * t_ref[hd:hd + 1, 0:1]
        attn = attn - jnp.max(attn, axis=-1, keepdims=True)
        e = jnp.exp(attn)
        p = e / jnp.sum(e, axis=-1, keepdims=True)                  # exact f32 softmax
        # out[n, c] = sum_d p[c, d] * v[n, d]
        oh = jnp.einsum('nd,cd->nc', _cast(vh, mxu_dtype), _cast(p, mxu_dtype),
                        preferred_element_type=jnp.float32)         # (n, hc)
        # project_out folded per head:  acc += out_h @ Wp^T[head rows]
        acc = acc + jnp.dot(_cast(oh, mxu_dtype),
                            _cast(wp_ref[lo:lo + hc, :], mxu_dtype),
                            preferred_element_type=jnp.float32)
    o_ref[0] = (acc + y_ref[0].astype(jnp.float32)).astype(o_ref.dtype)


# ------------------------------ Pallas wrappers ----------------------------

def pallas_aff_conv(x_cl, w, b, mxu_dtype, act_dtype):
    """x_cl: (B, H, W, Cin) channels-last (H, W even); w: (Cout, Cin, 4, 4); b: (Cout,).
    Returns (B, H//2, W//2, Cout): stride-2, pad-1 conv + bias + LeakyReLU(0.1)."""
    B, H, W, Cin = x_cl.shape
    Cout = w.shape[0]
    Ho, Wo = H // 2, W // 2
    Hq, Wq = Ho + 1, Wo + 1
    # Free (contiguity-preserving) reshape -- no HBM pad or transpose before the kernel.
    x6 = x_cl.reshape(B, Ho, 2, Wo, 2 * Cin)
    wt = jnp.transpose(w, (2, 3, 1, 0)).reshape(16 * Cin, Cout)     # tap-major weights
    kern = functools.partial(_aff_conv4x4s2_kernel, mxu_dtype=mxu_dtype)
    return pl.pallas_call(
        kern,
        out_shape=jax.ShapeDtypeStruct((B, Ho, Wo, Cout), act_dtype),
        grid=(B,),
        in_specs=[
            pl.BlockSpec((1, Ho, 2, Wo, 2 * Cin), lambda i: (i, 0, 0, 0, 0)),
            pl.BlockSpec((16 * Cin, Cout), lambda i: (0, 0)),
            pl.BlockSpec((1, Cout), lambda i: (0, 0)),
        ],
        out_specs=pl.BlockSpec((1, Ho, Wo, Cout), lambda i: (i, 0, 0, 0)),
        scratch_shapes=[pltpu.VMEM((Hq, 2, Wq, 2 * Cin), jnp.float32)],
        compiler_params=pltpu.CompilerParams(dimension_semantics=("parallel",)),
    )(x6, wt, b.reshape(1, Cout))


def pallas_norm_qkv_dw(y_cl, v_cl, wqkv, wdw, mxu_dtype, act_dtype):
    """y_cl: (B, h, w, Cy), v_cl: (B, h, w, Cx), wqkv: (Cy+Cx, 3C), wdw: (9, 3C)."""
    B, h, w, Cy = y_cl.shape
    Cx = v_cl.shape[-1]
    C3 = wqkv.shape[-1]
    kern = functools.partial(_norm_qkv_dw_kernel, mxu_dtype=mxu_dtype)
    return pl.pallas_call(
        kern,
        out_shape=jax.ShapeDtypeStruct((B, h, w, C3), act_dtype),
        grid=(B,),
        in_specs=[
            pl.BlockSpec((1, h, w, Cy), lambda i: (i, 0, 0, 0)),
            pl.BlockSpec((1, h, w, Cx), lambda i: (i, 0, 0, 0)),
            pl.BlockSpec((Cy + Cx, C3), lambda i: (0, 0)),
            pl.BlockSpec((9, C3), lambda i: (0, 0)),
        ],
        out_specs=pl.BlockSpec((1, h, w, C3), lambda i: (i, 0, 0, 0)),
        scratch_shapes=[pltpu.VMEM((h + 2, w + 2, C3), jnp.float32)],
        compiler_params=pltpu.CompilerParams(dimension_semantics=("parallel",)),
    )(y_cl, v_cl, wqkv, wdw)


def pallas_attn_proj(qkv_cl, y_cl, temperature, wp_t, num_heads, mxu_dtype):
    """qkv_cl: (B, n, 3C), y_cl: (B, n, Cy), temperature: (heads, 1), wp_t: (C, C)."""
    B, n, C3 = qkv_cl.shape
    C = C3 // 3
    Cy = y_cl.shape[-1]
    kern = functools.partial(_attn_proj_kernel, num_heads=num_heads, mxu_dtype=mxu_dtype)
    return pl.pallas_call(
        kern,
        out_shape=jax.ShapeDtypeStruct((B, n, C), jnp.float32),
        grid=(B,),
        in_specs=[
            pl.BlockSpec((1, n, C3), lambda i: (i, 0, 0)),
            pl.BlockSpec((1, n, Cy), lambda i: (i, 0, 0)),
            pl.BlockSpec((num_heads, 1), lambda i: (0, 0)),
            pl.BlockSpec((C, C), lambda i: (0, 0)),
        ],
        out_specs=pl.BlockSpec((1, n, C), lambda i: (i, 0, 0)),
        compiler_params=pltpu.CompilerParams(dimension_semantics=("parallel",)),
    )(qkv_cl, y_cl, temperature, wp_t)


# ------------------------------- forward ------------------------------------

def transformer_block2_forward(params, x, y, num_heads,
                               mxu_dtype=jnp.bfloat16, act_dtype=jnp.bfloat16):
    """x: (B, x_dim, Hx, Wx), y: (B, y_dim, Hx/4, Wx/4) NCHW -> (B, x_dim, h, w)."""
    B, x_dim, Hx, Wx = x.shape
    y_dim = y.shape[1]
    assert y_dim == x_dim, "residual y + attn(y, x) requires y_dim == x_dim"
    assert Hx % 4 == 0 and Wx % 4 == 0

    # --- self.aff: two fused (4x4, stride 2, pad 1) convs + LeakyReLU, channels-last
    x_cl = jnp.transpose(x, (0, 2, 3, 1))                            # (B, Hx, Wx, C)
    h1 = pallas_aff_conv(x_cl, params["aff_w1"], params["aff_b1"], mxu_dtype, act_dtype)
    v_cl = pallas_aff_conv(h1, params["aff_w2"], params["aff_b2"], mxu_dtype, act_dtype)
    _, h, w, _ = v_cl.shape
    n = h * w
    assert y.shape[2] == h and y.shape[3] == w

    # --- fused InstanceNorm / concat / 1x1 qkv / depthwise 3x3 (single HBM round trip)
    y_cl = jnp.transpose(y, (0, 2, 3, 1))                            # (B, h, w, Cy) f32
    wqkv = params["qkv_w"].reshape(3 * x_dim, y_dim + x_dim).T       # (Cin, 3C)
    wdw = params["dw_w"].reshape(3 * x_dim, 9).T                     # (9, 3C)
    qkv = pallas_norm_qkv_dw(y_cl, v_cl, wqkv, wdw, mxu_dtype, act_dtype)  # (B,h,w,3C)

    # --- attention + project_out + residual, channels-last (no head-split relayout)
    wp_t = params["proj_w"].reshape(x_dim, x_dim).T                  # (C_in, C_out)
    temp = params["temperature"].reshape(num_heads, 1)
    out_cl = pallas_attn_proj(qkv.reshape(B, n, 3 * x_dim),
                              y_cl.reshape(B, n, y_dim),
                              temp, wp_t, num_heads, mxu_dtype)      # (B, n, C) f32
    return jnp.transpose(out_cl, (0, 2, 1)).reshape(B, x_dim, h, w)


# --------------------------- pure-JAX reference ------------------------------

def ref_forward(params, x, y, num_heads):
    def conv(t, w, b, stride, pad, groups=1):
        out = lax.conv_general_dilated(
            t, w, (stride, stride), ((pad, pad), (pad, pad)),
            dimension_numbers=("NCHW", "OIHW", "NCHW"),
            feature_group_count=groups)
        if b is not None:
            out = out + b[None, :, None, None]
        return out

    lrelu = lambda t: jnp.where(t >= 0, t, 0.1 * t)
    h = lrelu(conv(x, params["aff_w1"], params["aff_b1"], 2, 1))
    v = lrelu(conv(h, params["aff_w2"], params["aff_b2"], 2, 1))

    def inorm(t):
        m = jnp.mean(t, axis=(2, 3), keepdims=True)
        var = jnp.mean((t - m) ** 2, axis=(2, 3), keepdims=True)
        return (t - m) / jnp.sqrt(var + 1e-5)

    cat = jnp.concatenate([inorm(y), inorm(v)], axis=1)
    qkv = conv(cat, params["qkv_w"], None, 1, 0)
    qkv = conv(qkv, params["dw_w"], None, 1, 1, groups=qkv.shape[1])
    q_, k_, v_ = jnp.split(qkv, 3, axis=1)
    B, C, H, W = v_.shape
    hc = C // num_heads
    heads = lambda t: t.reshape(B, num_heads, hc, H * W)
    q_, k_, v_ = heads(q_), heads(k_), heads(v_)

    def l2n(t):
        nn = jnp.sqrt(jnp.sum(t * t, axis=-1, keepdims=True))
        return t / jnp.maximum(nn, 1e-12)

    attn = jnp.einsum("bhcn,bhdn->bhcd", l2n(q_), l2n(k_)) * params["temperature"][None]
    attn = jax.nn.softmax(attn, axis=-1)
    out = jnp.einsum("bhcd,bhdn->bhcn", attn, v_).reshape(B, C, H, W)
    out = conv(out, params["proj_w"], None, 1, 0)
    return y + out


# --------------------------------- main --------------------------------------

def init_params(key, x_dim, y_dim, num_heads):
    ks = jax.random.split(key, 7)
    w = lambda k, s, scale=0.1: jax.random.normal(k, s, jnp.float32) * scale
    return {
        "aff_w1": w(ks[0], (x_dim, x_dim, 4, 4)),
        "aff_b1": w(ks[1], (x_dim,)),
        "aff_w2": w(ks[2], (x_dim, x_dim, 4, 4)),
        "aff_b2": w(ks[3], (x_dim,)),
        "qkv_w": w(ks[4], (3 * x_dim, y_dim + x_dim, 1, 1)),
        "dw_w": w(ks[5], (3 * x_dim, 1, 3, 3)),
        "proj_w": w(ks[6], (x_dim, x_dim, 1, 1)),
        "temperature": jnp.ones((num_heads, 1, 1), jnp.float32),
    }


if __name__ == "__main__":
    B, x_dim, y_dim, num_heads = 2, 32, 32, 4
    Hx = Wx = 32                          # aff downsamples x by 4 -> 8x8, matching y
    key = jax.random.PRNGKey(0)
    kx, ky, kp = jax.random.split(key, 3)
    x = jax.random.normal(kx, (B, x_dim, Hx, Wx), jnp.float32)
    y = jax.random.normal(ky, (B, y_dim, Hx // 4, Wx // 4), jnp.float32)
    params = init_params(kp, x_dim, y_dim, num_heads)

    ref = ref_forward(params, x, y, num_heads)

    # f32 run: tight check that the fused-kernel structure matches the reference.
    fwd_f32 = jax.jit(lambda p, a, b: transformer_block2_forward(
        p, a, b, num_heads, jnp.float32, jnp.float32))
    out32 = jax.block_until_ready(fwd_f32(params, x, y))
    err32 = float(jnp.max(jnp.abs(out32 - ref)))
    assert err32 < 2e-3, f"f32 kernel mismatch vs reference: {err32}"

    # production path: bf16 MXU operands + bf16 inter-kernel activations (f32 accum,
    # f32 elementwise/softmax math, residual add exact in f32).
    fwd_bf16 = jax.jit(lambda p, a, b: transformer_block2_forward(
        p, a, b, num_heads, jnp.bfloat16, jnp.bfloat16))
    outbf = jax.block_until_ready(fwd_bf16(params, x, y))
    errbf = float(jnp.max(jnp.abs(outbf - ref)))
    assert errbf < 5e-2, f"bf16 kernel mismatch vs reference: {errbf}"

    print("KERNEL_OK")
</pallas_src>

<mosaic_0001>
module attributes {stable_mosaic.version = 11 : i64} {
  func.func @_aff_conv4x4s2_kernel(%arg0: i32, %arg1: memref<1x16x2x16x64xf32, #tpu.memory_space<vmem>>, %arg2: memref<512x32xf32, #tpu.memory_space<vmem>>, %arg3: memref<1x32xf32, #tpu.memory_space<vmem>>, %arg4: memref<1x16x16x32xf32, #tpu.memory_space<vmem>>, %arg5: memref<17x2x17x64xf32, #tpu.memory_space<vmem>>) attributes {dimension_semantics = [#tpu.dimension_semantics<parallel>], iteration_bounds = array<i64: 2>, scalar_prefetch = 0 : i64, scratch_operands = 1 : i64, tpu.core_type = #tpu.core_type<tc>, window_params = [{transform_indices = @transform_0, window_bounds = array<i64: 1, 16, 2, 16, 64>}, {pipeline_mode = #tpu.pipeline_mode<synchronous>, transform_indices = @transform_1, window_bounds = array<i64: 512, 32>}, {pipeline_mode = #tpu.pipeline_mode<synchronous>, transform_indices = @transform_2, window_bounds = array<i64: 1, 32>}, {transform_indices = @transform_3, window_bounds = array<i64: 1, 16, 16, 32>}]} {
    %c0 = arith.constant 0 : index
    %c0_0 = arith.constant 0 : index
    %c0_1 = arith.constant 0 : index
    %c0_2 = arith.constant 0 : index
    %c0_3 = arith.constant 0 : index
    %0 = vector.load %arg1[%c0, %c0_0, %c0_1, %c0_2, %c0_3] : memref<1x16x2x16x64xf32, #tpu.memory_space<vmem>>, vector<1x16x2x16x64xf32>
    %1 = vector.shape_cast %0 : vector<1x16x2x16x64xf32> to vector<16x2x16x64xf32>
    %cst = arith.constant 0.000000e+00 : f32
    %2 = vector.broadcast %cst : f32 to vector<17x2x17x64xf32>
    %c0_4 = arith.constant 0 : index
    %c0_5 = arith.constant 0 : index
    %c0_6 = arith.constant 0 : index
    %c0_7 = arith.constant 0 : index
    %3 = vector.load %arg5[%c0_4, %c0_5, %c0_6, %c0_7] : memref<17x2x17x64xf32, #tpu.memory_space<vmem>>, vector<17x2x17x64xf32>
    tpu.vector_store %arg5[%c0_4, %c0_5, %c0_6, %c0_7], %2 {strides = array<i32>} : memref<17x2x17x64xf32, #tpu.memory_space<vmem>>, vector<17x2x17x64xf32>,
    %4 = vector.extract_strided_slice %1 {offsets = [0, 0, 0, 0], sizes = [16, 1, 16, 32], strides = [1, 1, 1, 1]} : vector<16x2x16x64xf32> to vector<16x1x16x32xf32>
    %c0_8 = arith.constant 0 : index
    %c1 = arith.constant 1 : index
    %c0_9 = arith.constant 0 : index
    %c32 = arith.constant 32 : index
    %5 = vector.load %arg5[%c0_8, %c1, %c0_9, %c32] : memref<17x2x17x64xf32, #tpu.memory_space<vmem>>, vector<16x1x16x32xf32>
    tpu.vector_store %arg5[%c0_8, %c1, %c0_9, %c32], %4 {strides = array<i32>} : memref<17x2x17x64xf32, #tpu.memory_space<vmem>>, vector<16x1x16x32xf32>,
    %6 = vector.extract_strided_slice %1 {offsets = [0, 0, 0, 32], sizes = [16, 1, 16, 32], strides = [1, 1, 1, 1]} : vector<16x2x16x64xf32> to vector<16x1x16x32xf32>
    %c0_10 = arith.constant 0 : index
    %c1_11 = arith.constant 1 : index
    %c1_12 = arith.constant 1 : index
    %c0_13 = arith.constant 0 : index
    %7 = vector.load %arg5[%c0_10, %c1_11, %c1_12, %c0_13] : memref<17x2x17x64xf32, #tpu.memory_space<vmem>>, vector<16x1x16x32xf32>
    tpu.vector_store %arg5[%c0_10, %c1_11, %c1_12, %c0_13], %6 {strides = array<i32>} : memref<17x2x17x64xf32, #tpu.memory_space<vmem>>, vector<16x1x16x32xf32>,
    %8 = vector.extract_strided_slice %1 {offsets = [0, 1, 0, 0], sizes = [16, 1, 16, 32], strides = [1, 1, 1, 1]} : vector<16x2x16x64xf32> to vector<16x1x16x32xf32>
    %c1_14 = arith.constant 1 : index
    %c0_15 = arith.constant 0 : index
    %c0_16 = arith.constant 0 : index
    %c32_17 = arith.constant 32 : index
    %9 = vector.load %arg5[%c1_14, %c0_15, %c0_16, %c32_17] : memref<17x2x17x64xf32, #tpu.memory_space<vmem>>, vector<16x1x16x32xf32>
    tpu.vector_store %arg5[%c1_14, %c0_15, %c0_16, %c32_17], %8 {strides = array<i32>} : memref<17x2x17x64xf32, #tpu.memory_space<vmem>>, vector<16x1x16x32xf32>,
    %10 = vector.extract_strided_slice %1 {offsets = [0, 1, 0, 32], sizes = [16, 1, 16, 32], strides = [1, 1, 1, 1]} : vector<16x2x16x64xf32> to vector<16x1x16x32xf32>
    %c1_18 = arith.constant 1 : index
    %c0_19 = arith.constant 0 : index
    %c1_20 = arith.constant 1 : index
    %c0_21 = arith.constant 0 : index
    %11 = vector.load %arg5[%c1_18, %c0_19, %c1_20, %c0_21] : memref<17x2x17x64xf32, #tpu.memory_space<vmem>>, vector<16x1x16x32xf32>
    tpu.vector_store %arg5[%c1_18, %c0_19, %c1_20, %c0_21], %10 {strides = array<i32>} : memref<17x2x17x64xf32, #tpu.memory_space<vmem>>, vector<16x1x16x32xf32>,
    %c0_22 = arith.constant 0 : index
    %c0_23 = arith.constant 0 : index
    %c0_24 = arith.constant 0 : index
    %c0_25 = arith.constant 0 : index
    %12 = vector.load %arg5[%c0_22, %c0_23, %c0_24, %c0_25] : memref<17x2x17x64xf32, #tpu.memory_space<vmem>>, vector<17x2x17x64xf32>
    %13 = vector.extract_strided_slice %12 {offsets = [0, 0, 0, 0], sizes = [16, 1, 16, 32], strides = [1, 1, 1, 1]} : vector<17x2x17x64xf32> to vector<16x1x16x32xf32>
    %14 = vector.shape_cast %13 : vector<16x1x16x32xf32> to vector<16x16x32xf32>
    %15 = vector.extract_strided_slice %12 {offsets = [0, 0, 0, 32], sizes = [16, 1, 16, 32], strides = [1, 1, 1, 1]} : vector<17x2x17x64xf32> to vector<16x1x16x32xf32>
    %16 = vector.shape_cast %15 : vector<16x1x16x32xf32> to vector<16x16x32xf32>
    %17 = vector.extract_strided_slice %12 {offsets = [0, 0, 1, 0], sizes = [16, 1, 16, 32], strides = [1, 1, 1, 1]} : vector<17x2x17x64xf32> to vector<16x1x16x32xf32>
    %18 = vector.shape_cast %17 : vector<16x1x16x32xf32> to vector<16x16x32xf32>
    %19 = vector.extract_strided_slice %12 {offsets = [0, 0, 1, 32], sizes = [16, 1, 16, 32], strides = [1, 1, 1, 1]} : vector<17x2x17x64xf32> to vector<16x1x16x32xf32>
    %20 = vector.shape_cast %19 : vector<16x1x16x32xf32> to vector<16x16x32xf32>
    %21 = vector.extract_strided_slice %12 {offsets = [0, 1, 0, 0], sizes = [16, 1, 16, 32], strides = [1, 1, 1, 1]} : vector<17x2x17x64xf32> to vector<16x1x16x32xf32>
    %22 = vector.shape_cast %21 : vector<16x1x16x32xf32> to vector<16x16x32xf32>
    %23 = vector.extract_strided_slice %12 {offsets = [0, 1, 0, 32], sizes = [16, 1, 16, 32], strides = [1, 1, 1, 1]} : vector<17x2x17x64xf32> to vector<16x1x16x32xf32>
    %24 = vector.shape_cast %23 : vector<16x1x16x32xf32> to vector<16x16x32xf32>
    %25 = vector.extract_strided_slice %12 {offsets = [0, 1, 1, 0], sizes = [16, 1, 16, 32], strides = [1, 1, 1, 1]} : vector<17x2x17x64xf32> to vector<16x1x16x32xf32>
    %26 = vector.shape_cast %25 : vector<16x1x16x32xf32> to vector<16x16x32xf32>
    %27 = vector.extract_strided_slice %12 {offsets = [0, 1, 1, 32], sizes = [16, 1, 16, 32], strides = [1, 1, 1, 1]} : vector<17x2x17x64xf32> to vector<16x1x16x32xf32>
    %28 = vector.shape_cast %27 : vector<16x1x16x32xf32> to vector<16x16x32xf32>
    %29 = vector.extract_strided_slice %12 {offsets = [1, 0, 0, 0], sizes = [16, 1, 16, 32], strides = [1, 1, 1, 1]} : vector<17x2x17x64xf32> to vector<16x1x16x32xf32>
    %30 = vector.shape_cast %29 : vector<16x1x16x32xf32> to vector<16x16x32xf32>
    %31 = vector.extract_strided_slice %12 {offsets = [1, 0, 0, 32], sizes = [16, 1, 16, 32], strides = [1, 1, 1, 1]} : vector<17x2x17x64xf32> to vector<16x1x16x32xf32>
    %32 = vector.shape_cast %31 : vector<16x1x16x32xf32> to vector<16x16x32xf32>
    %33 = vector.extract_strided_slice %12 {offsets = [1, 0, 1, 0], sizes = [16, 1, 16, 32], strides = [1, 1, 1, 1]} : vector<17x2x17x64xf32> to vector<16x1x16x32xf32>
    %34 = vector.shape_cast %33 : vector<16x1x16x32xf32> to vector<16x16x32xf32>
    %35 = vector.extract_strided_slice %12 {offsets = [1, 0, 1, 32], sizes = [16, 1, 16, 32], strides = [1, 1, 1, 1]} : vector<17x2x17x64xf32> to vector<16x1x16x32xf32>
    %36 = vector.shape_cast %35 : vector<16x1x16x32xf32> to vector<16x16x32xf32>
    %37 = vector.extract_strided_slice %12 {offsets = [1, 1, 0, 0], sizes = [16, 1, 16, 32], strides = [1, 1, 1, 1]} : vector<17x2x17x64xf32> to vector<16x1x16x32xf32>
    %38 = vector.shape_cast %37 : vector<16x1x16x32xf32> to vector<16x16x32xf32>
    %39 = vector.extract_strided_slice %12 {offsets = [1, 1, 0, 32], sizes = [16, 1, 16, 32], strides = [1, 1, 1, 1]} : vector<17x2x17x64xf32> to vector<16x1x16x32xf32>
    %40 = vector.shape_cast %39 : vector<16x1x16x32xf32> to vector<16x16x32xf32>
    %41 = vector.extract_strided_slice %12 {offsets = [1, 1, 1, 0], sizes = [16, 1, 16, 32], strides = [1, 1, 1, 1]} : vector<17x2x17x64xf32> to vector<16x1x16x32xf32>
    %42 = vector.shape_cast %41 : vector<16x1x16x32xf32> to vector<16x16x32xf32>
    %43 = vector.extract_strided_slice %12 {offsets = [1, 1, 1, 32], sizes = [16, 1, 16, 32], strides = [1, 1, 1, 1]} : vector<17x2x17x64xf32> to vector<16x1x16x32xf32>
    %44 = vector.shape_cast %43 : vector<16x1x16x32xf32> to vector<16x16x32xf32>
    %45 = tpu.concatenate %14, %16, %18, %20, %22, %24, %26, %28, %30, %32, %34, %36, %38, %40, %42, %44 in 2 : vector<16x16x32xf32>, vector<16x16x32xf32>, vector<16x16x32xf32>, vector<16x16x32xf32>, vector<16x16x32xf32>, vector<16x16x32xf32>, vector<16x16x32xf32>, vector<16x16x32xf32>, vector<16x16x32xf32>, vector<16x16x32xf32>, vector<16x16x32xf32>, vector<16x16x32xf32>, vector<16x16x32xf32>, vector<16x16x32xf32>, vector<16x16x32xf32>, vector<16x16x32xf32> -> vector<16x16x512xf32>
    %46 = vector.shape_cast %45 : vector<16x16x512xf32> to vector<256x512xf32>
    %c0_26 = arith.constant 0 : index
    %c0_27 = arith.constant 0 : index
    %47 = vector.load %arg2[%c0_26, %c0_27] : memref<512x32xf32, #tpu.memory_space<vmem>>, vector<512x32xf32>
    %cst_28 = arith.constant dense<0.000000e+00> : vector<256x32xf32>
    %48 = tpu.matmul %46, %47, %cst_28 {dimension_numbers = #tpu.dot_dimension_numbers<[1], [0], [0], [1], [0, 0, 1, 1], [], []>} : vector<256x512xf32>, vector<512x32xf32>, vector<256x32xf32> -> vector<256x32xf32>
    %c0_29 = arith.constant 0 : index
    %c0_30 = arith.constant 0 : index
    %49 = vector.load %arg3[%c0_29, %c0_30] : memref<1x32xf32, #tpu.memory_space<vmem>>, vector<1x32xf32>
    %50 = vector.broadcast %49 : vector<1x32xf32> to vector<256x32xf32>
    %51 = arith.addf %48, %50 : vector<256x32xf32>
    %cst_31 = arith.constant 0.000000e+00 : f32
    %52 = vector.broadcast %cst_31 : f32 to vector<256x32xf32>
    %53 = arith.cmpf oge, %51, %52 : vector<256x32xf32>
    %cst_32 = arith.constant 1.000000e-01 : f32
    %54 = vector.broadcast %cst_32 : f32 to vector<256x32xf32>
    %55 = arith.mulf %54, %51 : vector<256x32xf32>
    %56 = arith.select %53, %51, %55 : vector<256x32xi1>, vector<256x32xf32>
    %57 = vector.shape_cast %56 : vector<256x32xf32> to vector<16x16x32xf32>
    %c0_33 = arith.constant 0 : index
    %c0_34 = arith.constant 0 : index
    %c0_35 = arith.constant 0 : index
    %c0_36 = arith.constant 0 : index
    %58 = vector.load %arg4[%c0_33, %c0_34, %c0_35, %c0_36] : memref<1x16x16x32xf32, #tpu.memory_space<vmem>>, vector<1x16x16x32xf32>
    %59 = vector.shape_cast %58 : vector<1x16x16x32xf32> to vector<16x16x32xf32>
    %60 = vector.shape_cast %57 : vector<16x16x32xf32> to vector<1x16x16x32xf32>
    tpu.vector_store %arg4[%c0_33, %c0_34, %c0_35, %c0_36], %60 {strides = array<i32>} : memref<1x16x16x32xf32, #tpu.memory_space<vmem>>, vector<1x16x16x32xf32>,
    return
  }
  func.func @transform_0(%arg0: i32) -> (i32, i32, i32, i32, i32) {
    %c0_i32 = arith.constant 0 : i32
    %c0_i32_0 = arith.constant 0 : i32
    %c0_i32_1 = arith.constant 0 : i32
    %c0_i32_2 = arith.constant 0 : i32
    %c0_i32_3 = arith.constant 0 : i32
    return %arg0, %c0_i32, %c0_i32_0, %c0_i32_1, %c0_i32_2 : i32, i32, i32, i32, i32
  }
  func.func @transform_1(%arg0: i32) -> (i32, i32) {
    %c0_i32 = arith.constant 0 : i32
    %c0_i32_0 = arith.constant 0 : i32
    %c0_i32_1 = arith.constant 0 : i32
    return %c0_i32, %c0_i32_0 : i32, i32
  }
  func.func @transform_2(%arg0: i32) -> (i32, i32) {
    %c0_i32 = arith.constant 0 : i32
    %c0_i32_0 = arith.constant 0 : i32
    %c0_i32_1 = arith.constant 0 : i32
    return %c0_i32, %c0_i32_0 : i32, i32
  }
  func.func @transform_3(%arg0: i32) -> (i32, i32, i32, i32) {
    %c0_i32 = arith.constant 0 : i32
    %c0_i32_0 = arith.constant 0 : i32
    %c0_i32_1 = arith.constant 0 : i32
    %c0_i32_2 = arith.constant 0 : i32
    return %arg0, %c0_i32, %c0_i32_0, %c0_i32_1 : i32, i32, i32, i32
  }
}

module attributes {stable_mosaic.version = 11 : i64} {
  func.func @_aff_conv4x4s2_kernel(%arg0: i32, %arg1: memref<1x8x2x8x64xf32, #tpu.memory_space<vmem>>, %arg2: memref<512x32xf32, #tpu.memory_space<vmem>>, %arg3: memref<1x32xf32, #tpu.memory_space<vmem>>, %arg4: memref<1x8x8x32xf32, #tpu.memory_space<vmem>>, %arg5: memref<9x2x9x64xf32, #tpu.memory_space<vmem>>) attributes {dimension_semantics = [#tpu.dimension_semantics<parallel>], iteration_bounds = array<i64: 2>, scalar_prefetch = 0 : i64, scratch_operands = 1 : i64, tpu.core_type = #tpu.core_type<tc>, window_params = [{transform_indices = @transform_0, window_bounds = array<i64: 1, 8, 2, 8, 64>}, {pipeline_mode = #tpu.pipeline_mode<synchronous>, transform_indices = @transform_1, window_bounds = array<i64: 512, 32>}, {pipeline_mode = #tpu.pipeline_mode<synchronous>, transform_indices = @transform_2, window_bounds = array<i64: 1, 32>}, {transform_indices = @transform_3, window_bounds = array<i64: 1, 8, 8, 32>}]} {
    %c0 = arith.constant 0 : index
    %c0_0 = arith.constant 0 : index
    %c0_1 = arith.constant 0 : index
    %c0_2 = arith.constant 0 : index
    %c0_3 = arith.constant 0 : index
    %0 = vector.load %arg1[%c0, %c0_0, %c0_1, %c0_2, %c0_3] : memref<1x8x2x8x64xf32, #tpu.memory_space<vmem>>, vector<1x8x2x8x64xf32>
    %1 = vector.shape_cast %0 : vector<1x8x2x8x64xf32> to vector<8x2x8x64xf32>
    %cst = arith.constant 0.000000e+00 : f32
    %2 = vector.broadcast %cst : f32 to vector<9x2x9x64xf32>
    %c0_4 = arith.constant 0 : index
    %c0_5 = arith.constant 0 : index
    %c0_6 = arith.constant 0 : index
    %c0_7 = arith.constant 0 : index
    %3 = vector.load %arg5[%c0_4, %c0_5, %c0_6, %c0_7] : memref<9x2x9x64xf32, #tpu.memory_space<vmem>>, vector<9x2x9x64xf32>
    tpu.vector_store %arg5[%c0_4, %c0_5, %c0_6, %c0_7], %2 {strides = array<i32>} : memref<9x2x9x64xf32, #tpu.memory_space<vmem>>, vector<9x2x9x64xf32>,
    %4 = vector.extract_strided_slice %1 {offsets = [0, 0, 0, 0], sizes = [8, 1, 8, 32], strides = [1, 1, 1, 1]} : vector<8x2x8x64xf32> to vector<8x1x8x32xf32>
    %c0_8 = arith.constant 0 : index
    %c1 = arith.constant 1 : index
    %c0_9 = arith.constant 0 : index
    %c32 = arith.constant 32 : index
    %5 = vector.load %arg5[%c0_8, %c1, %c0_9, %c32] : memref<9x2x9x64xf32, #tpu.memory_space<vmem>>, vector<8x1x8x32xf32>
    tpu.vector_store %arg5[%c0_8, %c1, %c0_9, %c32], %4 {strides = array<i32>} : memref<9x2x9x64xf32, #tpu.memory_space<vmem>>, vector<8x1x8x32xf32>,
    %6 = vector.extract_strided_slice %1 {offsets = [0, 0, 0, 32], sizes = [8, 1, 8, 32], strides = [1, 1, 1, 1]} : vector<8x2x8x64xf32> to vector<8x1x8x32xf32>
    %c0_10 = arith.constant 0 : index
    %c1_11 = arith.constant 1 : index
    %c1_12 = arith.constant 1 : index
    %c0_13 = arith.constant 0 : index
    %7 = vector.load %arg5[%c0_10, %c1_11, %c1_12, %c0_13] : memref<9x2x9x64xf32, #tpu.memory_space<vmem>>, vector<8x1x8x32xf32>
    tpu.vector_store %arg5[%c0_10, %c1_11, %c1_12, %c0_13], %6 {strides = array<i32>} : memref<9x2x9x64xf32, #tpu.memory_space<vmem>>, vector<8x1x8x32xf32>,
    %8 = vector.extract_strided_slice %1 {offsets = [0, 1, 0, 0], sizes = [8, 1, 8, 32], strides = [1, 1, 1, 1]} : vector<8x2x8x64xf32> to vector<8x1x8x32xf32>
    %c1_14 = arith.constant 1 : index
    %c0_15 = arith.constant 0 : index
    %c0_16 = arith.constant 0 : index
    %c32_17 = arith.constant 32 : index
    %9 = vector.load %arg5[%c1_14, %c0_15, %c0_16, %c32_17] : memref<9x2x9x64xf32, #tpu.memory_space<vmem>>, vector<8x1x8x32xf32>
    tpu.vector_store %arg5[%c1_14, %c0_15, %c0_16, %c32_17], %8 {strides = array<i32>} : memref<9x2x9x64xf32, #tpu.memory_space<vmem>>, vector<8x1x8x32xf32>,
    %10 = vector.extract_strided_slice %1 {offsets = [0, 1, 0, 32], sizes = [8, 1, 8, 32], strides = [1, 1, 1, 1]} : vector<8x2x8x64xf32> to vector<8x1x8x32xf32>
    %c1_18 = arith.constant 1 : index
    %c0_19 = arith.constant 0 : index
    %c1_20 = arith.constant 1 : index
    %c0_21 = arith.constant 0 : index
    %11 = vector.load %arg5[%c1_18, %c0_19, %c1_20, %c0_21] : memref<9x2x9x64xf32, #tpu.memory_space<vmem>>, vector<8x1x8x32xf32>
    tpu.vector_store %arg5[%c1_18, %c0_19, %c1_20, %c0_21], %10 {strides = array<i32>} : memref<9x2x9x64xf32, #tpu.memory_space<vmem>>, vector<8x1x8x32xf32>,
    %c0_22 = arith.constant 0 : index
    %c0_23 = arith.constant 0 : index
    %c0_24 = arith.constant 0 : index
    %c0_25 = arith.constant 0 : index
    %12 = vector.load %arg5[%c0_22, %c0_23, %c0_24, %c0_25] : memref<9x2x9x64xf32, #tpu.memory_space<vmem>>, vector<9x2x9x64xf32>
    %13 = vector.extract_strided_slice %12 {offsets = [0, 0, 0, 0], sizes = [8, 1, 8, 32], strides = [1, 1, 1, 1]} : vector<9x2x9x64xf32> to vector<8x1x8x32xf32>
    %14 = vector.shape_cast %13 : vector<8x1x8x32xf32> to vector<8x8x32xf32>
    %15 = vector.extract_strided_slice %12 {offsets = [0, 0, 0, 32], sizes = [8, 1, 8, 32], strides = [1, 1, 1, 1]} : vector<9x2x9x64xf32> to vector<8x1x8x32xf32>
    %16 = vector.shape_cast %15 : vector<8x1x8x32xf32> to vector<8x8x32xf32>
    %17 = vector.extract_strided_slice %12 {offsets = [0, 0, 1, 0], sizes = [8, 1, 8, 32], strides = [1, 1, 1, 1]} : vector<9x2x9x64xf32> to vector<8x1x8x32xf32>
    %18 = vector.shape_cast %17 : vector<8x1x8x32xf32> to vector<8x8x32xf32>
    %19 = vector.extract_strided_slice %12 {offsets = [0, 0, 1, 32], sizes = [8, 1, 8, 32], strides = [1, 1, 1, 1]} : vector<9x2x9x64xf32> to vector<8x1x8x32xf32>
    %20 = vector.shape_cast %19 : vector<8x1x8x32xf32> to vector<8x8x32xf32>
    %21 = vector.extract_strided_slice %12 {offsets = [0, 1, 0, 0], sizes = [8, 1, 8, 32], strides = [1, 1, 1, 1]} : vector<9x2x9x64xf32> to vector<8x1x8x32xf32>
    %22 = vector.shape_cast %21 : vector<8x1x8x32xf32> to vector<8x8x32xf32>
    %23 = vector.extract_strided_slice %12 {offsets = [0, 1, 0, 32], sizes = [8, 1, 8, 32], strides = [1, 1, 1, 1]} : vector<9x2x9x64xf32> to vector<8x1x8x32xf32>
    %24 = vector.shape_cast %23 : vector<8x1x8x32xf32> to vector<8x8x32xf32>
    %25 = vector.extract_strided_slice %12 {offsets = [0, 1, 1, 0], sizes = [8, 1, 8, 32], strides = [1, 1, 1, 1]} : vector<9x2x9x64xf32> to vector<8x1x8x32xf32>
    %26 = vector.shape_cast %25 : vector<8x1x8x32xf32> to vector<8x8x32xf32>
    %27 = vector.extract_strided_slice %12 {offsets = [0, 1, 1, 32], sizes = [8, 1, 8, 32], strides = [1, 1, 1, 1]} : vector<9x2x9x64xf32> to vector<8x1x8x32xf32>
    %28 = vector.shape_cast %27 : vector<8x1x8x32xf32> to vector<8x8x32xf32>
    %29 = vector.extract_strided_slice %12 {offsets = [1, 0, 0, 0], sizes = [8, 1, 8, 32], strides = [1, 1, 1, 1]} : vector<9x2x9x64xf32> to vector<8x1x8x32xf32>
    %30 = vector.shape_cast %29 : vector<8x1x8x32xf32> to vector<8x8x32xf32>
    %31 = vector.extract_strided_slice %12 {offsets = [1, 0, 0, 32], sizes = [8, 1, 8, 32], strides = [1, 1, 1, 1]} : vector<9x2x9x64xf32> to vector<8x1x8x32xf32>
    %32 = vector.shape_cast %31 : vector<8x1x8x32xf32> to vector<8x8x32xf32>
    %33 = vector.extract_strided_slice %12 {offsets = [1, 0, 1, 0], sizes = [8, 1, 8, 32], strides = [1, 1, 1, 1]} : vector<9x2x9x64xf32> to vector<8x1x8x32xf32>
    %34 = vector.shape_cast %33 : vector<8x1x8x32xf32> to vector<8x8x32xf32>
    %35 = vector.extract_strided_slice %12 {offsets = [1, 0, 1, 32], sizes = [8, 1, 8, 32], strides = [1, 1, 1, 1]} : vector<9x2x9x64xf32> to vector<8x1x8x32xf32>
    %36 = vector.shape_cast %35 : vector<8x1x8x32xf32> to vector<8x8x32xf32>
    %37 = vector.extract_strided_slice %12 {offsets = [1, 1, 0, 0], sizes = [8, 1, 8, 32], strides = [1, 1, 1, 1]} : vector<9x2x9x64xf32> to vector<8x1x8x32xf32>
    %38 = vector.shape_cast %37 : vector<8x1x8x32xf32> to vector<8x8x32xf32>
    %39 = vector.extract_strided_slice %12 {offsets = [1, 1, 0, 32], sizes = [8, 1, 8, 32], strides = [1, 1, 1, 1]} : vector<9x2x9x64xf32> to vector<8x1x8x32xf32>
    %40 = vector.shape_cast %39 : vector<8x1x8x32xf32> to vector<8x8x32xf32>
    %41 = vector.extract_strided_slice %12 {offsets = [1, 1, 1, 0], sizes = [8, 1, 8, 32], strides = [1, 1, 1, 1]} : vector<9x2x9x64xf32> to vector<8x1x8x32xf32>
    %42 = vector.shape_cast %41 : vector<8x1x8x32xf32> to vector<8x8x32xf32>
    %43 = vector.extract_strided_slice %12 {offsets = [1, 1, 1, 32], sizes = [8, 1, 8, 32], strides = [1, 1, 1, 1]} : vector<9x2x9x64xf32> to vector<8x1x8x32xf32>
    %44 = vector.shape_cast %43 : vector<8x1x8x32xf32> to vector<8x8x32xf32>
    %45 = tpu.concatenate %14, %16, %18, %20, %22, %24, %26, %28, %30, %32, %34, %36, %38, %40, %42, %44 in 2 : vector<8x8x32xf32>, vector<8x8x32xf32>, vector<8x8x32xf32>, vector<8x8x32xf32>, vector<8x8x32xf32>, vector<8x8x32xf32>, vector<8x8x32xf32>, vector<8x8x32xf32>, vector<8x8x32xf32>, vector<8x8x32xf32>, vector<8x8x32xf32>, vector<8x8x32xf32>, vector<8x8x32xf32>, vector<8x8x32xf32>, vector<8x8x32xf32>, vector<8x8x32xf32> -> vector<8x8x512xf32>
    %46 = vector.shape_cast %45 : vector<8x8x512xf32> to vector<64x512xf32>
    %c0_26 = arith.constant 0 : index
    %c0_27 = arith.constant 0 : index
    %47 = vector.load %arg2[%c0_26, %c0_27] : memref<512x32xf32, #tpu.memory_space<vmem>>, vector<512x32xf32>
    %cst_28 = arith.constant dense<0.000000e+00> : vector<64x32xf32>
    %48 = tpu.matmul %46, %47, %cst_28 {dimension_numbers = #tpu.dot_dimension_numbers<[1], [0], [0], [1], [0, 0, 1, 1], [], []>} : vector<64x512xf32>, vector<512x32xf32>, vector<64x32xf32> -> vector<64x32xf32>
    %c0_29 = arith.constant 0 : index
    %c0_30 = arith.constant 0 : index
    %49 = vector.load %arg3[%c0_29, %c0_30] : memref<1x32xf32, #tpu.memory_space<vmem>>, vector<1x32xf32>
    %50 = vector.broadcast %49 : vector<1x32xf32> to vector<64x32xf32>
    %51 = arith.addf %48, %50 : vector<64x32xf32>
    %cst_31 = arith.constant 0.000000e+00 : f32
    %52 = vector.broadcast %cst_31 : f32 to vector<64x32xf32>
    %53 = arith.cmpf oge, %51, %52 : vector<64x32xf32>
    %cst_32 = arith.constant 1.000000e-01 : f32
    %54 = vector.broadcast %cst_32 : f32 to vector<64x32xf32>
    %55 = arith.mulf %54, %51 : vector<64x32xf32>
    %56 = arith.select %53, %51, %55 : vector<64x32xi1>, vector<64x32xf32>
    %57 = vector.shape_cast %56 : vector<64x32xf32> to vector<8x8x32xf32>
    %c0_33 = arith.constant 0 : index
    %c0_34 = arith.constant 0 : index
    %c0_35 = arith.constant 0 : index
    %c0_36 = arith.constant 0 : index
    %58 = vector.load %arg4[%c0_33, %c0_34, %c0_35, %c0_36] : memref<1x8x8x32xf32, #tpu.memory_space<vmem>>, vector<1x8x8x32xf32>
    %59 = vector.shape_cast %58 : vector<1x8x8x32xf32> to vector<8x8x32xf32>
    %60 = vector.shape_cast %57 : vector<8x8x32xf32> to vector<1x8x8x32xf32>
    tpu.vector_store %arg4[%c0_33, %c0_34, %c0_35, %c0_36], %60 {strides = array<i32>} : memref<1x8x8x32xf32, #tpu.memory_space<vmem>>, vector<1x8x8x32xf32>,
    return
  }
  func.func @transform_0(%arg0: i32) -> (i32, i32, i32, i32, i32) {
    %c0_i32 = arith.constant 0 : i32
    %c0_i32_0 = arith.constant 0 : i32
    %c0_i32_1 = arith.constant 0 : i32
    %c0_i32_2 = arith.constant 0 : i32
    %c0_i32_3 = arith.constant 0 : i32
    return %arg0, %c0_i32, %c0_i32_0, %c0_i32_1, %c0_i32_2 : i32, i32, i32, i32, i32
  }
  func.func @transform_1(%arg0: i32) -> (i32, i32) {
    %c0_i32 = arith.constant 0 : i32
    %c0_i32_0 = arith.constant 0 : i32
    %c0_i32_1 = arith.constant 0 : i32
    return %c0_i32, %c0_i32_0 : i32, i32
  }
  func.func @transform_2(%arg0: i32) -> (i32, i32) {
    %c0_i32 = arith.constant 0 : i32
    %c0_i32_0 = arith.constant 0 : i32
    %c0_i32_1 = arith.constant 0 : i32
    return %c0_i32, %c0_i32_0 : i32, i32
  }
  func.func @transform_3(%arg0: i32) -> (i32, i32, i32, i32) {
    %c0_i32 = arith.constant 0 : i32
    %c0_i32_0 = arith.constant 0 : i32
    %c0_i32_1 = arith.constant 0 : i32
    %c0_i32_2 = arith.constant 0 : i32
    return %arg0, %c0_i32, %c0_i32_0, %c0_i32_1 : i32, i32, i32, i32
  }
}

module attributes {stable_mosaic.version = 11 : i64} {
  func.func @_norm_qkv_dw_kernel(%arg0: i32, %arg1: memref<1x8x8x32xf32, #tpu.memory_space<vmem>>, %arg2: memref<1x8x8x32xf32, #tpu.memory_space<vmem>>, %arg3: memref<64x96xf32, #tpu.memory_space<vmem>>, %arg4: memref<9x96xf32, #tpu.memory_space<vmem>>, %arg5: memref<1x8x8x96xf32, #tpu.memory_space<vmem>>, %arg6: memref<10x10x96xf32, #tpu.memory_space<vmem>>) attributes {dimension_semantics = [#tpu.dimension_semantics<parallel>], iteration_bounds = array<i64: 2>, scalar_prefetch = 0 : i64, scratch_operands = 1 : i64, tpu.core_type = #tpu.core_type<tc>, window_params = [{transform_indices = @transform_0, window_bounds = array<i64: 1, 8, 8, 32>}, {transform_indices = @transform_1, window_bounds = array<i64: 1, 8, 8, 32>}, {pipeline_mode = #tpu.pipeline_mode<synchronous>, transform_indices = @transform_2, window_bounds = array<i64: 64, 96>}, {pipeline_mode = #tpu.pipeline_mode<synchronous>, transform_indices = @transform_3, window_bounds = array<i64: 9, 96>}, {transform_indices = @transform_4, window_bounds = array<i64: 1, 8, 8, 96>}]} {
    %c0 = arith.constant 0 : index
    %c0_0 = arith.constant 0 : index
    %c0_1 = arith.constant 0 : index
    %c0_2 = arith.constant 0 : index
    %0 = vector.load %arg1[%c0, %c0_0, %c0_1, %c0_2] : memref<1x8x8x32xf32, #tpu.memory_space<vmem>>, vector<1x8x8x32xf32>
    %1 = vector.shape_cast %0 : vector<1x8x8x32xf32> to vector<8x8x32xf32>
    %cst = arith.constant dense<0.000000e+00> : vector<32xf32>
    %2 = vector.multi_reduction <add>, %1, %cst [0, 1] : vector<8x8x32xf32> to vector<32xf32>
    %3 = vector.shape_cast %2 : vector<32xf32> to vector<1x1x32xf32>
    %cst_3 = arith.constant 6.400000e+01 : f32
    %4 = vector.broadcast %cst_3 : f32 to vector<1x1x32xf32>
    %5 = arith.divf %3, %4 : vector<1x1x32xf32>
    %6 = vector.broadcast %5 : vector<1x1x32xf32> to vector<8x8x32xf32>
    %7 = arith.subf %1, %6 : vector<8x8x32xf32>
    %8 = arith.mulf %7, %7 : vector<8x8x32xf32>
    %cst_4 = arith.constant dense<0.000000e+00> : vector<32xf32>
    %9 = vector.multi_reduction <add>, %8, %cst_4 [0, 1] : vector<8x8x32xf32> to vector<32xf32>
    %10 = vector.shape_cast %9 : vector<32xf32> to vector<1x1x32xf32>
    %cst_5 = arith.constant 6.400000e+01 : f32
    %11 = vector.broadcast %cst_5 : f32 to vector<1x1x32xf32>
    %12 = arith.divf %10, %11 : vector<1x1x32xf32>
    %cst_6 = arith.constant 9.99999974E-6 : f32
    %13 = vector.broadcast %cst_6 : f32 to vector<1x1x32xf32>
    %14 = arith.addf %12, %13 : vector<1x1x32xf32>
    %15 = math.rsqrt %14 : vector<1x1x32xf32>
    %16 = vector.broadcast %15 : vector<1x1x32xf32> to vector<8x8x32xf32>
    %17 = arith.mulf %7, %16 : vector<8x8x32xf32>
    %c0_7 = arith.constant 0 : index
    %c0_8 = arith.constant 0 : index
    %c0_9 = arith.constant 0 : index
    %c0_10 = arith.constant 0 : index
    %18 = vector.load %arg2[%c0_7, %c0_8, %c0_9, %c0_10] : memref<1x8x8x32xf32, #tpu.memory_space<vmem>>, vector<1x8x8x32xf32>
    %19 = vector.shape_cast %18 : vector<1x8x8x32xf32> to vector<8x8x32xf32>
    %cst_11 = arith.constant dense<0.000000e+00> : vector<32xf32>
    %20 = vector.multi_reduction <add>, %19, %cst_11 [0, 1] : vector<8x8x32xf32> to vector<32xf32>
    %21 = vector.shape_cast %20 : vector<32xf32> to vector<1x1x32xf32>
    %cst_12 = arith.constant 6.400000e+01 : f32
    %22 = vector.broadcast %cst_12 : f32 to vector<1x1x32xf32>
    %23 = arith.divf %21, %22 : vector<1x1x32xf32>
    %24 = vector.broadcast %23 : vector<1x1x32xf32> to vector<8x8x32xf32>
    %25 = arith.subf %19, %24 : vector<8x8x32xf32>
    %26 = arith.mulf %25, %25 : vector<8x8x32xf32>
    %cst_13 = arith.constant dense<0.000000e+00> : vector<32xf32>
    %27 = vector.multi_reduction <add>, %26, %cst_13 [0, 1] : vector<8x8x32xf32> to vector<32xf32>
    %28 = vector.shape_cast %27 : vector<32xf32> to vector<1x1x32xf32>
    %cst_14 = arith.constant 6.400000e+01 : f32
    %29 = vector.broadcast %cst_14 : f32 to vector<1x1x32xf32>
    %30 = arith.divf %28, %29 : vector<1x1x32xf32>
    %cst_15 = arith.constant 9.99999974E-6 : f32
    %31 = vector.broadcast %cst_15 : f32 to vector<1x1x32xf32>
    %32 = arith.addf %30, %31 : vector<1x1x32xf32>
    %33 = math.rsqrt %32 : vector<1x1x32xf32>
    %34 = vector.broadcast %33 : vector<1x1x32xf32> to vector<8x8x32xf32>
    %35 = arith.mulf %25, %34 : vector<8x8x32xf32>
    %36 = tpu.concatenate %17, %35 in 2 : vector<8x8x32xf32>, vector<8x8x32xf32> -> vector<8x8x64xf32>
    %37 = vector.shape_cast %36 : vector<8x8x64xf32> to vector<64x64xf32>
    %c0_16 = arith.constant 0 : index
    %c0_17 = arith.constant 0 : index
    %38 = vector.load %arg3[%c0_16, %c0_17] : memref<64x96xf32, #tpu.memory_space<vmem>>, vector<64x96xf32>
    %cst_18 = arith.constant dense<0.000000e+00> : vector<64x96xf32>
    %39 = tpu.matmul %37, %38, %cst_18 {dimension_numbers = #tpu.dot_dimension_numbers<[1], [0], [0], [1], [0, 0, 1, 1], [], []>} : vector<64x64xf32>, vector<64x96xf32>, vector<64x96xf32> -> vector<64x96xf32>
    %40 = vector.shape_cast %39 : vector<64x96xf32> to vector<8x8x96xf32>
    %cst_19 = arith.constant 0.000000e+00 : f32
    %41 = vector.broadcast %cst_19 : f32 to vector<10x10x96xf32>
    %c0_20 = arith.constant 0 : index
    %c0_21 = arith.constant 0 : index
    %c0_22 = arith.constant 0 : index
    %42 = vector.load %arg6[%c0_20, %c0_21, %c0_22] : memref<10x10x96xf32, #tpu.memory_space<vmem>>, vector<10x10x96xf32>
    tpu.vector_store %arg6[%c0_20, %c0_21, %c0_22], %41 {strides = array<i32>} : memref<10x10x96xf32, #tpu.memory_space<vmem>>, vector<10x10x96xf32>,
    %c1 = arith.constant 1 : index
    %c1_23 = arith.constant 1 : index
    %c0_24 = arith.constant 0 : index
    %43 = vector.load %arg6[%c1, %c1_23, %c0_24] : memref<10x10x96xf32, #tpu.memory_space<vmem>>, vector<8x8x96xf32>
    tpu.vector_store %arg6[%c1, %c1_23, %c0_24], %40 {strides = array<i32>} : memref<10x10x96xf32, #tpu.memory_space<vmem>>, vector<8x8x96xf32>,
    %c0_25 = arith.constant 0 : index
    %c0_26 = arith.constant 0 : index
    %c0_27 = arith.constant 0 : index
    %44 = vector.load %arg6[%c0_25, %c0_26, %c0_27] : memref<10x10x96xf32, #tpu.memory_space<vmem>>, vector<10x10x96xf32>
    %c0_28 = arith.constant 0 : index
    %c0_29 = arith.constant 0 : index
    %45 = vector.load %arg4[%c0_28, %c0_29] : memref<9x96xf32, #tpu.memory_space<vmem>>, vector<9x96xf32>
    %cst_30 = arith.constant 0.000000e+00 : f32
    %46 = vector.broadcast %cst_30 : f32 to vector<8x8x96xf32>
    %47 = vector.extract_strided_slice %44 {offsets = [0, 0, 0], sizes = [8, 8, 96], strides = [1, 1, 1]} : vector<10x10x96xf32> to vector<8x8x96xf32>
    %48 = vector.extract_strided_slice %45 {offsets = [0, 0], sizes = [1, 96], strides = [1, 1]} : vector<9x96xf32> to vector<1x96xf32>
    %49 = vector.shape_cast %48 : vector<1x96xf32> to vector<96xf32>
    %50 = vector.shape_cast %49 : vector<96xf32> to vector<1x1x96xf32>
    %51 = vector.broadcast %50 : vector<1x1x96xf32> to vector<8x8x96xf32>
    %52 = arith.mulf %47, %51 : vector<8x8x96xf32>
    %53 = arith.addf %46, %52 : vector<8x8x96xf32>
    %54 = vector.extract_strided_slice %44 {offsets = [0, 1, 0], sizes = [8, 8, 96], strides = [1, 1, 1]} : vector<10x10x96xf32> to vector<8x8x96xf32>
    %55 = vector.extract_strided_slice %45 {offsets = [1, 0], sizes = [1, 96], strides = [1, 1]} : vector<9x96xf32> to vector<1x96xf32>
    %56 = vector.shape_cast %55 : vector<1x96xf32> to vector<96xf32>
    %57 = vector.shape_cast %56 : vector<96xf32> to vector<1x1x96xf32>
    %58 = vector.broadcast %57 : vector<1x1x96xf32> to vector<8x8x96xf32>
    %59 = arith.mulf %54, %58 : vector<8x8x96xf32>
    %60 = arith.addf %53, %59 : vector<8x8x96xf32>
    %61 = vector.extract_strided_slice %44 {offsets = [0, 2, 0], sizes = [8, 8, 96], strides = [1, 1, 1]} : vector<10x10x96xf32> to vector<8x8x96xf32>
    %62 = vector.extract_strided_slice %45 {offsets = [2, 0], sizes = [1, 96], strides = [1, 1]} : vector<9x96xf32> to vector<1x96xf32>
    %63 = vector.shape_cast %62 : vector<1x96xf32> to vector<96xf32>
    %64 = vector.shape_cast %63 : vector<96xf32> to vector<1x1x96xf32>
    %65 = vector.broadcast %64 : vector<1x1x96xf32> to vector<8x8x96xf32>
    %66 = arith.mulf %61, %65 : vector<8x8x96xf32>
    %67 = arith.addf %60, %66 : vector<8x8x96xf32>
    %68 = vector.extract_strided_slice %44 {offsets = [1, 0, 0], sizes = [8, 8, 96], strides = [1, 1, 1]} : vector<10x10x96xf32> to vector<8x8x96xf32>
    %69 = vector.extract_strided_slice %45 {offsets = [3, 0], sizes = [1, 96], strides = [1, 1]} : vector<9x96xf32> to vector<1x96xf32>
    %70 = vector.shape_cast %69 : vector<1x96xf32> to vector<96xf32>
    %71 = vector.shape_cast %70 : vector<96xf32> to vector<1x1x96xf32>
    %72 = vector.broadcast %71 : vector<1x1x96xf32> to vector<8x8x96xf32>
    %73 = arith.mulf %68, %72 : vector<8x8x96xf32>
    %74 = arith.addf %67, %73 : vector<8x8x96xf32>
    %75 = vector.extract_strided_slice %44 {offsets = [1, 1, 0], sizes = [8, 8, 96], strides = [1, 1, 1]} : vector<10x10x96xf32> to vector<8x8x96xf32>
    %76 = vector.extract_strided_slice %45 {offsets = [4, 0], sizes = [1, 96], strides = [1, 1]} : vector<9x96xf32> to vector<1x96xf32>
    %77 = vector.shape_cast %76 : vector<1x96xf32> to vector<96xf32>
    %78 = vector.shape_cast %77 : vector<96xf32> to vector<1x1x96xf32>
    %79 = vector.broadcast %78 : vector<1x1x96xf32> to vector<8x8x96xf32>
    %80 = arith.mulf %75, %79 : vector<8x8x96xf32>
    %81 = arith.addf %74, %80 : vector<8x8x96xf32>
    %82 = vector.extract_strided_slice %44 {offsets = [1, 2, 0], sizes = [8, 8, 96], strides = [1, 1, 1]} : vector<10x10x96xf32> to vector<8x8x96xf32>
    %83 = vector.extract_strided_slice %45 {offsets = [5, 0], sizes = [1, 96], strides = [1, 1]} : vector<9x96xf32> to vector<1x96xf32>
    %84 = vector.shape_cast %83 : vector<1x96xf32> to vector<96xf32>
    %85 = vector.shape_cast %84 : vector<96xf32> to vector<1x1x96xf32>
    %86 = vector.broadcast %85 : vector<1x1x96xf32> to vector<8x8x96xf32>
    %87 = arith.mulf %82, %86 : vector<8x8x96xf32>
    %88 = arith.addf %81, %87 : vector<8x8x96xf32>
    %89 = vector.extract_strided_slice %44 {offsets = [2, 0, 0], sizes = [8, 8, 96], strides = [1, 1, 1]} : vector<10x10x96xf32> to vector<8x8x96xf32>
    %90 = vector.extract_strided_slice %45 {offsets = [6, 0], sizes = [1, 96], strides = [1, 1]} : vector<9x96xf32> to vector<1x96xf32>
    %91 = vector.shape_cast %90 : vector<1x96xf32> to vector<96xf32>
    %92 = vector.shape_cast %91 : vector<96xf32> to vector<1x1x96xf32>
    %93 = vector.broadcast %92 : vector<1x1x96xf32> to vector<8x8x96xf32>
    %94 = arith.mulf %89, %93 : vector<8x8x96xf32>
    %95 = arith.addf %88, %94 : vector<8x8x96xf32>
    %96 = vector.extract_strided_slice %44 {offsets = [2, 1, 0], sizes = [8, 8, 96], strides = [1, 1, 1]} : vector<10x10x96xf32> to vector<8x8x96xf32>
    %97 = vector.extract_strided_slice %45 {offsets = [7, 0], sizes = [1, 96], strides = [1, 1]} : vector<9x96xf32> to vector<1x96xf32>
    %98 = vector.shape_cast %97 : vector<1x96xf32> to vector<96xf32>
    %99 = vector.shape_cast %98 : vector<96xf32> to vector<1x1x96xf32>
    %100 = vector.broadcast %99 : vector<1x1x96xf32> to vector<8x8x96xf32>
    %101 = arith.mulf %96, %100 : vector<8x8x96xf32>
    %102 = arith.addf %95, %101 : vector<8x8x96xf32>
    %103 = vector.extract_strided_slice %44 {offsets = [2, 2, 0], sizes = [8, 8, 96], strides = [1, 1, 1]} : vector<10x10x96xf32> to vector<8x8x96xf32>
    %104 = vector.extract_strided_slice %45 {offsets = [8, 0], sizes = [1, 96], strides = [1, 1]} : vector<9x96xf32> to vector<1x96xf32>
    %105 = vector.shape_cast %104 : vector<1x96xf32> to vector<96xf32>
    %106 = vector.shape_cast %105 : vector<96xf32> to vector<1x1x96xf32>
    %107 = vector.broadcast %106 : vector<1x1x96xf32> to vector<8x8x96xf32>
    %108 = arith.mulf %103, %107 : vector<8x8x96xf32>
    %109 = arith.addf %102, %108 : vector<8x8x96xf32>
    %c0_31 = arith.constant 0 : index
    %c0_32 = arith.constant 0 : index
    %c0_33 = arith.constant 0 : index
    %c0_34 = arith.constant 0 : index
    %110 = vector.load %arg5[%c0_31, %c0_32, %c0_33, %c0_34] : memref<1x8x8x96xf32, #tpu.memory_space<vmem>>, vector<1x8x8x96xf32>
    %111 = vector.shape_cast %110 : vector<1x8x8x96xf32> to vector<8x8x96xf32>
    %112 = vector.shape_cast %109 : vector<8x8x96xf32> to vector<1x8x8x96xf32>
    tpu.vector_store %arg5[%c0_31, %c0_32, %c0_33, %c0_34], %112 {strides = array<i32>} : memref<1x8x8x96xf32, #tpu.memory_space<vmem>>, vector<1x8x8x96xf32>,
    return
  }
  func.func @transform_0(%arg0: i32) -> (i32, i32, i32, i32) {
    %c0_i32 = arith.constant 0 : i32
    %c0_i32_0 = arith.constant 0 : i32
    %c0_i32_1 = arith.constant 0 : i32
    %c0_i32_2 = arith.constant 0 : i32
    return %arg0, %c0_i32, %c0_i32_0, %c0_i32_1 : i32, i32, i32, i32
  }
  func.func @transform_1(%arg0: i32) -> (i32, i32, i32, i32) {
    %c0_i32 = arith.constant 0 : i32
    %c0_i32_0 = arith.constant 0 : i32
    %c0_i32_1 = arith.constant 0 : i32
    %c0_i32_2 = arith.constant 0 : i32
    return %arg0, %c0_i32, %c0_i32_0, %c0_i32_1 : i32, i32, i32, i32
  }
  func.func @transform_2(%arg0: i32) -> (i32, i32) {
    %c0_i32 = arith.constant 0 : i32
    %c0_i32_0 = arith.constant 0 : i32
    %c0_i32_1 = arith.constant 0 : i32
    return %c0_i32, %c0_i32_0 : i32, i32
  }
  func.func @transform_3(%arg0: i32) -> (i32, i32) {
    %c0_i32 = arith.constant 0 : i32
    %c0_i32_0 = arith.constant 0 : i32
    %c0_i32_1 = arith.constant 0 : i32
    return %c0_i32, %c0_i32_0 : i32, i32
  }
  func.func @transform_4(%arg0: i32) -> (i32, i32, i32, i32) {
    %c0_i32 = arith.constant 0 : i32
    %c0_i32_0 = arith.constant 0 : i32
    %c0_i32_1 = arith.constant 0 : i32
    %c0_i32_2 = arith.constant 0 : i32
    return %arg0, %c0_i32, %c0_i32_0, %c0_i32_1 : i32, i32, i32, i32
  }
}

module attributes {stable_mosaic.version = 11 : i64} {
  func.func @_attn_proj_kernel(%arg0: i32, %arg1: memref<1x64x96xf32, #tpu.memory_space<vmem>>, %arg2: memref<1x64x32xf32, #tpu.memory_space<vmem>>, %arg3: memref<4x1xf32, #tpu.memory_space<vmem>>, %arg4: memref<32x32xf32, #tpu.memory_space<vmem>>, %arg5: memref<1x64x32xf32, #tpu.memory_space<vmem>>) attributes {dimension_semantics = [#tpu.dimension_semantics<parallel>], iteration_bounds = array<i64: 2>, scalar_prefetch = 0 : i64, scratch_operands = 0 : i64, tpu.core_type = #tpu.core_type<tc>, window_params = [{transform_indices = @transform_0, window_bounds = array<i64: 1, 64, 96>}, {transform_indices = @transform_1, window_bounds = array<i64: 1, 64, 32>}, {pipeline_mode = #tpu.pipeline_mode<synchronous>, transform_indices = @transform_2, window_bounds = array<i64: 4, 1>}, {pipeline_mode = #tpu.pipeline_mode<synchronous>, transform_indices = @transform_3, window_bounds = array<i64: 32, 32>}, {transform_indices = @transform_4, window_bounds = array<i64: 1, 64, 32>}]} {
    %c0 = arith.constant 0 : index
    %c0_0 = arith.constant 0 : index
    %c0_1 = arith.constant 0 : index
    %0 = vector.load %arg1[%c0, %c0_0, %c0_1] : memref<1x64x96xf32, #tpu.memory_space<vmem>>, vector<1x64x96xf32>
    %1 = vector.shape_cast %0 : vector<1x64x96xf32> to vector<64x96xf32>
    %cst = arith.constant 0.000000e+00 : f32
    %2 = vector.broadcast %cst : f32 to vector<64x32xf32>
    %3 = vector.extract_strided_slice %1 {offsets = [0, 0], sizes = [64, 8], strides = [1, 1]} : vector<64x96xf32> to vector<64x8xf32>
    %4 = arith.mulf %3, %3 : vector<64x8xf32>
    %cst_2 = arith.constant dense<0.000000e+00> : vector<8xf32>
    %5 = vector.multi_reduction <add>, %4, %cst_2 [0] : vector<64x8xf32> to vector<8xf32>
    %6 = vector.shape_cast %5 : vector<8xf32> to vector<1x8xf32>
    %cst_3 = arith.constant 1.000000e-24 : f32
    %7 = vector.broadcast %cst_3 : f32 to vector<1x8xf32>
    %8 = arith.maximumf %6, %7 : vector<1x8xf32>
    %9 = math.rsqrt %8 : vector<1x8xf32>
    %10 = vector.broadcast %9 : vector<1x8xf32> to vector<64x8xf32>
    %11 = arith.mulf %3, %10 : vector<64x8xf32>
    %12 = vector.extract_strided_slice %1 {offsets = [0, 32], sizes = [64, 8], strides = [1, 1]} : vector<64x96xf32> to vector<64x8xf32>
    %13 = arith.mulf %12, %12 : vector<64x8xf32>
    %cst_4 = arith.constant dense<0.000000e+00> : vector<8xf32>
    %14 = vector.multi_reduction <add>, %13, %cst_4 [0] : vector<64x8xf32> to vector<8xf32>
    %15 = vector.shape_cast %14 : vector<8xf32> to vector<1x8xf32>
    %cst_5 = arith.constant 1.000000e-24 : f32
    %16 = vector.broadcast %cst_5 : f32 to vector<1x8xf32>
    %17 = arith.maximumf %15, %16 : vector<1x8xf32>
    %18 = math.rsqrt %17 : vector<1x8xf32>
    %19 = vector.broadcast %18 : vector<1x8xf32> to vector<64x8xf32>
    %20 = arith.mulf %12, %19 : vector<64x8xf32>
    %21 = vector.extract_strided_slice %1 {offsets = [0, 64], sizes = [64, 8], strides = [1, 1]} : vector<64x96xf32> to vector<64x8xf32>
    "tpu.trace_start"() <{level = 10 : i32, message = "nc,nd->cd"}> : () -> ()
    %cst_6 = arith.constant dense<0.000000e+00> : vector<8x8xf32>
    %22 = tpu.matmul %11, %20, %cst_6 {dimension_numbers = #tpu.dot_dimension_numbers<[0], [0], [1], [1], [0, 1, 1, 1], [], []>} : vector<64x8xf32>, vector<64x8xf32>, vector<8x8xf32> -> vector<8x8xf32>
    "tpu.trace_stop"() : () -> ()
    %c0_7 = arith.constant 0 : index
    %c0_8 = arith.constant 0 : index
    %23 = vector.load %arg3[%c0_7, %c0_8] : memref<4x1xf32, #tpu.memory_space<vmem>>, vector<1x1xf32>
    %24 = vector.broadcast %23 : vector<1x1xf32> to vector<8x8xf32>
    %25 = arith.mulf %22, %24 : vector<8x8xf32>
    %cst_9 = arith.constant dense<0xFF800000> : vector<8xf32>
    %26 = vector.multi_reduction <maximumf>, %25, %cst_9 [1] : vector<8x8xf32> to vector<8xf32>
    %27 = vector.shape_cast %26 : vector<8xf32> to vector<8x1xf32>
    %28 = vector.broadcast %27 : vector<8x1xf32> to vector<8x8xf32>
    %29 = arith.subf %25, %28 : vector<8x8xf32>
    %30 = math.exp %29 : vector<8x8xf32>
    %cst_10 = arith.constant dense<0.000000e+00> : vector<8xf32>
    %31 = vector.multi_reduction <add>, %30, %cst_10 [1] : vector<8x8xf32> to vector<8xf32>
    %32 = vector.shape_cast %31 : vector<8xf32> to vector<8x1xf32>
    %33 = vector.broadcast %32 : vector<8x1xf32> to vector<8x8xf32>
    %34 = arith.divf %30, %33 : vector<8x8xf32>
    "tpu.trace_start"() <{level = 10 : i32, message = "nd,cd->nc"}> : () -> ()
    %cst_11 = arith.constant dense<0.000000e+00> : vector<64x8xf32>
    %35 = tpu.matmul %21, %34, %cst_11 {dimension_numbers = #tpu.dot_dimension_numbers<[1], [1], [0], [0], [0, 0, 1, 0], [], []>} : vector<64x8xf32>, vector<8x8xf32>, vector<64x8xf32> -> vector<64x8xf32>
    "tpu.trace_stop"() : () -> ()
    %c0_12 = arith.constant 0 : index
    %c0_13 = arith.constant 0 : index
    %36 = vector.load %arg4[%c0_12, %c0_13] : memref<32x32xf32, #tpu.memory_space<vmem>>, vector<8x32xf32>
    %cst_14 = arith.constant dense<0.000000e+00> : vector<64x32xf32>
    %37 = tpu.matmul %35, %36, %cst_14 {dimension_numbers = #tpu.dot_dimension_numbers<[1], [0], [0], [1], [0, 0, 1, 1], [], []>} : vector<64x8xf32>, vector<8x32xf32>, vector<64x32xf32> -> vector<64x32xf32>
    %38 = arith.addf %2, %37 : vector<64x32xf32>
    %39 = vector.extract_strided_slice %1 {offsets = [0, 8], sizes = [64, 8], strides = [1, 1]} : vector<64x96xf32> to vector<64x8xf32>
    %40 = arith.mulf %39, %39 : vector<64x8xf32>
    %cst_15 = arith.constant dense<0.000000e+00> : vector<8xf32>
    %41 = vector.multi_reduction <add>, %40, %cst_15 [0] : vector<64x8xf32> to vector<8xf32>
    %42 = vector.shape_cast %41 : vector<8xf32> to vector<1x8xf32>
    %cst_16 = arith.constant 1.000000e-24 : f32
    %43 = vector.broadcast %cst_16 : f32 to vector<1x8xf32>
    %44 = arith.maximumf %42, %43 : vector<1x8xf32>
    %45 = math.rsqrt %44 : vector<1x8xf32>
    %46 = vector.broadcast %45 : vector<1x8xf32> to vector<64x8xf32>
    %47 = arith.mulf %39, %46 : vector<64x8xf32>
    %48 = vector.extract_strided_slice %1 {offsets = [0, 40], sizes = [64, 8], strides = [1, 1]} : vector<64x96xf32> to vector<64x8xf32>
    %49 = arith.mulf %48, %48 : vector<64x8xf32>
    %cst_17 = arith.constant dense<0.000000e+00> : vector<8xf32>
    %50 = vector.multi_reduction <add>, %49, %cst_17 [0] : vector<64x8xf32> to vector<8xf32>
    %51 = vector.shape_cast %50 : vector<8xf32> to vector<1x8xf32>
    %cst_18 = arith.constant 1.000000e-24 : f32
    %52 = vector.broadcast %cst_18 : f32 to vector<1x8xf32>
    %53 = arith.maximumf %51, %52 : vector<1x8xf32>
    %54 = math.rsqrt %53 : vector<1x8xf32>
    %55 = vector.broadcast %54 : vector<1x8xf32> to vector<64x8xf32>
    %56 = arith.mulf %48, %55 : vector<64x8xf32>
    %57 = vector.extract_strided_slice %1 {offsets = [0, 72], sizes = [64, 8], strides = [1, 1]} : vector<64x96xf32> to vector<64x8xf32>
    "tpu.trace_start"() <{level = 10 : i32, message = "nc,nd->cd"}> : () -> ()
    %cst_19 = arith.constant dense<0.000000e+00> : vector<8x8xf32>
    %58 = tpu.matmul %47, %56, %cst_19 {dimension_numbers = #tpu.dot_dimension_numbers<[0], [0], [1], [1], [0, 1, 1, 1], [], []>} : vector<64x8xf32>, vector<64x8xf32>, vector<8x8xf32> -> vector<8x8xf32>
    "tpu.trace_stop"() : () -> ()
    %c1 = arith.constant 1 : index
    %c0_20 = arith.constant 0 : index
    %59 = vector.load %arg3[%c1, %c0_20] : memref<4x1xf32, #tpu.memory_space<vmem>>, vector<1x1xf32>
    %60 = vector.broadcast %59 : vector<1x1xf32> to vector<8x8xf32>
    %61 = arith.mulf %58, %60 : vector<8x8xf32>
    %cst_21 = arith.constant dense<0xFF800000> : vector<8xf32>
    %62 = vector.multi_reduction <maximumf>, %61, %cst_21 [1] : vector<8x8xf32> to vector<8xf32>
    %63 = vector.shape_cast %62 : vector<8xf32> to vector<8x1xf32>
    %64 = vector.broadcast %63 : vector<8x1xf32> to vector<8x8xf32>
    %65 = arith.subf %61, %64 : vector<8x8xf32>
    %66 = math.exp %65 : vector<8x8xf32>
    %cst_22 = arith.constant dense<0.000000e+00> : vector<8xf32>
    %67 = vector.multi_reduction <add>, %66, %cst_22 [1] : vector<8x8xf32> to vector<8xf32>
    %68 = vector.shape_cast %67 : vector<8xf32> to vector<8x1xf32>
    %69 = vector.broadcast %68 : vector<8x1xf32> to vector<8x8xf32>
    %70 = arith.divf %66, %69 : vector<8x8xf32>
    "tpu.trace_start"() <{level = 10 : i32, message = "nd,cd->nc"}> : () -> ()
    %cst_23 = arith.constant dense<0.000000e+00> : vector<64x8xf32>
    %71 = tpu.matmul %57, %70, %cst_23 {dimension_numbers = #tpu.dot_dimension_numbers<[1], [1], [0], [0], [0, 0, 1, 0], [], []>} : vector<64x8xf32>, vector<8x8xf32>, vector<64x8xf32> -> vector<64x8xf32>
    "tpu.trace_stop"() : () -> ()
    %c8 = arith.constant 8 : index
    %c0_24 = arith.constant 0 : index
    %72 = vector.load %arg4[%c8, %c0_24] : memref<32x32xf32, #tpu.memory_space<vmem>>, vector<8x32xf32>
    %cst_25 = arith.constant dense<0.000000e+00> : vector<64x32xf32>
    %73 = tpu.matmul %71, %72, %cst_25 {dimension_numbers = #tpu.dot_dimension_numbers<[1], [0], [0], [1], [0, 0, 1, 1], [], []>} : vector<64x8xf32>, vector<8x32xf32>, vector<64x32xf32> -> vector<64x32xf32>
    %74 = arith.addf %38, %73 : vector<64x32xf32>
    %75 = vector.extract_strided_slice %1 {offsets = [0, 16], sizes = [64, 8], strides = [1, 1]} : vector<64x96xf32> to vector<64x8xf32>
    %76 = arith.mulf %75, %75 : vector<64x8xf32>
    %cst_26 = arith.constant dense<0.000000e+00> : vector<8xf32>
    %77 = vector.multi_reduction <add>, %76, %cst_26 [0] : vector<64x8xf32> to vector<8xf32>
    %78 = vector.shape_cast %77 : vector<8xf32> to vector<1x8xf32>
    %cst_27 = arith.constant 1.000000e-24 : f32
    %79 = vector.broadcast %cst_27 : f32 to vector<1x8xf32>
    %80 = arith.maximumf %78, %79 : vector<1x8xf32>
    %81 = math.rsqrt %80 : vector<1x8xf32>
    %82 = vector.broadcast %81 : vector<1x8xf32> to vector<64x8xf32>
    %83 = arith.mulf %75, %82 : vector<64x8xf32>
    %84 = vector.extract_strided_slice %1 {offsets = [0, 48], sizes = [64, 8], strides = [1, 1]} : vector<64x96xf32> to vector<64x8xf32>
    %85 = arith.mulf %84, %84 : vector<64x8xf32>
    %cst_28 = arith.constant dense<0.000000e+00> : vector<8xf32>
    %86 = vector.multi_reduction <add>, %85, %cst_28 [0] : vector<64x8xf32> to vector<8xf32>
    %87 = vector.shape_cast %86 : vector<8xf32> to vector<1x8xf32>
    %cst_29 = arith.constant 1.000000e-24 : f32
    %88 = vector.broadcast %cst_29 : f32 to vector<1x8xf32>
    %89 = arith.maximumf %87, %88 : vector<1x8xf32>
    %90 = math.rsqrt %89 : vector<1x8xf32>
    %91 = vector.broadcast %90 : vector<1x8xf32> to vector<64x8xf32>
    %92 = arith.mulf %84, %91 : vector<64x8xf32>
    %93 = vector.extract_strided_slice %1 {offsets = [0, 80], sizes = [64, 8], strides = [1, 1]} : vector<64x96xf32> to vector<64x8xf32>
    "tpu.trace_start"() <{level = 10 : i32, message = "nc,nd->cd"}> : () -> ()
    %cst_30 = arith.constant dense<0.000000e+00> : vector<8x8xf32>
    %94 = tpu.matmul %83, %92, %cst_30 {dimension_numbers = #tpu.dot_dimension_numbers<[0], [0], [1], [1], [0, 1, 1, 1], [], []>} : vector<64x8xf32>, vector<64x8xf32>, vector<8x8xf32> -> vector<8x8xf32>
    "tpu.trace_stop"() : () -> ()
    %c2 = arith.constant 2 : index
    %c0_31 = arith.constant 0 : index
    %95 = vector.load %arg3[%c2, %c0_31] : memref<4x1xf32, #tpu.memory_space<vmem>>, vector<1x1xf32>
    %96 = vector.broadcast %95 : vector<1x1xf32> to vector<8x8xf32>
    %97 = arith.mulf %94, %96 : vector<8x8xf32>
    %cst_32 = arith.constant dense<0xFF800000> : vector<8xf32>
    %98 = vector.multi_reduction <maximumf>, %97, %cst_32 [1] : vector<8x8xf32> to vector<8xf32>
    %99 = vector.shape_cast %98 : vector<8xf32> to vector<8x1xf32>
    %100 = vector.broadcast %99 : vector<8x1xf32> to vector<8x8xf32>
    %101 = arith.subf %97, %100 : vector<8x8xf32>
    %102 = math.exp %101 : vector<8x8xf32>
    %cst_33 = arith.constant dense<0.000000e+00> : vector<8xf32>
    %103 = vector.multi_reduction <add>, %102, %cst_33 [1] : vector<8x8xf32> to vector<8xf32>
    %104 = vector.shape_cast %103 : vector<8xf32> to vector<8x1xf32>
    %105 = vector.broadcast %104 : vector<8x1xf32> to vector<8x8xf32>
    %106 = arith.divf %102, %105 : vector<8x8xf32>
    "tpu.trace_start"() <{level = 10 : i32, message = "nd,cd->nc"}> : () -> ()
    %cst_34 = arith.constant dense<0.000000e+00> : vector<64x8xf32>
    %107 = tpu.matmul %93, %106, %cst_34 {dimension_numbers = #tpu.dot_dimension_numbers<[1], [1], [0], [0], [0, 0, 1, 0], [], []>} : vector<64x8xf32>, vector<8x8xf32>, vector<64x8xf32> -> vector<64x8xf32>
    "tpu.trace_stop"() : () -> ()
    %c16 = arith.constant 16 : index
    %c0_35 = arith.constant 0 : index
    %108 = vector.load %arg4[%c16, %c0_35] : memref<32x32xf32, #tpu.memory_space<vmem>>, vector<8x32xf32>
    %cst_36 = arith.constant dense<0.000000e+00> : vector<64x32xf32>
    %109 = tpu.matmul %107, %108, %cst_36 {dimension_numbers = #tpu.dot_dimension_numbers<[1], [0], [0], [1], [0, 0, 1, 1], [], []>} : vector<64x8xf32>, vector<8x32xf32>, vector<64x32xf32> -> vector<64x32xf32>
    %110 = arith.addf %74, %109 : vector<64x32xf32>
    %111 = vector.extract_strided_slice %1 {offsets = [0, 24], sizes = [64, 8], strides = [1, 1]} : vector<64x96xf32> to vector<64x8xf32>
    %112 = arith.mulf %111, %111 : vector<64x8xf32>
    %cst_37 = arith.constant dense<0.000000e+00> : vector<8xf32>
    %113 = vector.multi_reduction <add>, %112, %cst_37 [0] : vector<64x8xf32> to vector<8xf32>
    %114 = vector.shape_cast %113 : vector<8xf32> to vector<1x8xf32>
    %cst_38 = arith.constant 1.000000e-24 : f32
    %115 = vector.broadcast %cst_38 : f32 to vector<1x8xf32>
    %116 = arith.maximumf %114, %115 : vector<1x8xf32>
    %117 = math.rsqrt %116 : vector<1x8xf32>
    %118 = vector.broadcast %117 : vector<1x8xf32> to vector<64x8xf32>
    %119 = arith.mulf %111, %118 : vector<64x8xf32>
    %120 = vector.extract_strided_slice %1 {offsets = [0, 56], sizes = [64, 8], strides = [1, 1]} : vector<64x96xf32> to vector<64x8xf32>
    %121 = arith.mulf %120, %120 : vector<64x8xf32>
    %cst_39 = arith.constant dense<0.000000e+00> : vector<8xf32>
    %122 = vector.multi_reduction <add>, %121, %cst_39 [0] : vector<64x8xf32> to vector<8xf32>
    %123 = vector.shape_cast %122 : vector<8xf32> to vector<1x8xf32>
    %cst_40 = arith.constant 1.000000e-24 : f32
    %124 = vector.broadcast %cst_40 : f32 to vector<1x8xf32>
    %125 = arith.maximumf %123, %124 : vector<1x8xf32>
    %126 = math.rsqrt %125 : vector<1x8xf32>
    %127 = vector.broadcast %126 : vector<1x8xf32> to vector<64x8xf32>
    %128 = arith.mulf %120, %127 : vector<64x8xf32>
    %129 = vector.extract_strided_slice %1 {offsets = [0, 88], sizes = [64, 8], strides = [1, 1]} : vector<64x96xf32> to vector<64x8xf32>
    "tpu.trace_start"() <{level = 10 : i32, message = "nc,nd->cd"}> : () -> ()
    %cst_41 = arith.constant dense<0.000000e+00> : vector<8x8xf32>
    %130 = tpu.matmul %119, %128, %cst_41 {dimension_numbers = #tpu.dot_dimension_numbers<[0], [0], [1], [1], [0, 1, 1, 1], [], []>} : vector<64x8xf32>, vector<64x8xf32>, vector<8x8xf32> -> vector<8x8xf32>
    "tpu.trace_stop"() : () -> ()
    %c3 = arith.constant 3 : index
    %c0_42 = arith.constant 0 : index
    %131 = vector.load %arg3[%c3, %c0_42] : memref<4x1xf32, #tpu.memory_space<vmem>>, vector<1x1xf32>
    %132 = vector.broadcast %131 : vector<1x1xf32> to vector<8x8xf32>
    %133 = arith.mulf %130, %132 : vector<8x8xf32>
    %cst_43 = arith.constant dense<0xFF800000> : vector<8xf32>
    %134 = vector.multi_reduction <maximumf>, %133, %cst_43 [1] : vector<8x8xf32> to vector<8xf32>
    %135 = vector.shape_cast %134 : vector<8xf32> to vector<8x1xf32>
    %136 = vector.broadcast %135 : vector<8x1xf32> to vector<8x8xf32>
    %137 = arith.subf %133, %136 : vector<8x8xf32>
    %138 = math.exp %137 : vector<8x8xf32>
    %cst_44 = arith.constant dense<0.000000e+00> : vector<8xf32>
    %139 = vector.multi_reduction <add>, %138, %cst_44 [1] : vector<8x8xf32> to vector<8xf32>
    %140 = vector.shape_cast %139 : vector<8xf32> to vector<8x1xf32>
    %141 = vector.broadcast %140 : vector<8x1xf32> to vector<8x8xf32>
    %142 = arith.divf %138, %141 : vector<8x8xf32>
    "tpu.trace_start"() <{level = 10 : i32, message = "nd,cd->nc"}> : () -> ()
    %cst_45 = arith.constant dense<0.000000e+00> : vector<64x8xf32>
    %143 = tpu.matmul %129, %142, %cst_45 {dimension_numbers = #tpu.dot_dimension_numbers<[1], [1], [0], [0], [0, 0, 1, 0], [], []>} : vector<64x8xf32>, vector<8x8xf32>, vector<64x8xf32> -> vector<64x8xf32>
    "tpu.trace_stop"() : () -> ()
    %c24 = arith.constant 24 : index
    %c0_46 = arith.constant 0 : index
    %144 = vector.load %arg4[%c24, %c0_46] : memref<32x32xf32, #tpu.memory_space<vmem>>, vector<8x32xf32>
    %cst_47 = arith.constant dense<0.000000e+00> : vector<64x32xf32>
    %145 = tpu.matmul %143, %144, %cst_47 {dimension_numbers = #tpu.dot_dimension_numbers<[1], [0], [0], [1], [0, 0, 1, 1], [], []>} : vector<64x8xf32>, vector<8x32xf32>, vector<64x32xf32> -> vector<64x32xf32>
    %146 = arith.addf %110, %145 : vector<64x32xf32>
    %c0_48 = arith.constant 0 : index
    %c0_49 = arith.constant 0 : index
    %c0_50 = arith.constant 0 : index
    %147 = vector.load %arg2[%c0_48, %c0_49, %c0_50] : memref<1x64x32xf32, #tpu.memory_space<vmem>>, vector<1x64x32xf32>
    %148 = vector.shape_cast %147 : vector<1x64x32xf32> to vector<64x32xf32>
    %149 = arith.addf %146, %148 : vector<64x32xf32>
    %c0_51 = arith.constant 0 : index
    %c0_52 = arith.constant 0 : index
    %c0_53 = arith.constant 0 : index
    %150 = vector.load %arg5[%c0_51, %c0_52, %c0_53] : memref<1x64x32xf32, #tpu.memory_space<vmem>>, vector<1x64x32xf32>
    %151 = vector.shape_cast %150 : vector<1x64x32xf32> to vector<64x32xf32>
    %152 = vector.shape_cast %149 : vector<64x32xf32> to vector<1x64x32xf32>
    tpu.vector_store %arg5[%c0_51, %c0_52, %c0_53], %152 {strides = array<i32>} : memref<1x64x32xf32, #tpu.memory_space<vmem>>, vector<1x64x32xf32>,
    return
  }
  func.func @transform_0(%arg0: i32) -> (i32, i32, i32) {
    %c0_i32 = arith.constant 0 : i32
    %c0_i32_0 = arith.constant 0 : i32
    %c0_i32_1 = arith.constant 0 : i32
    return %arg0, %c0_i32, %c0_i32_0 : i32, i32, i32
  }
  func.func @transform_1(%arg0: i32) -> (i32, i32, i32) {
    %c0_i32 = arith.constant 0 : i32
    %c0_i32_0 = arith.constant 0 : i32
    %c0_i32_1 = arith.constant 0 : i32
    return %arg0, %c0_i32, %c0_i32_0 : i32, i32, i32
  }
  func.func @transform_2(%arg0: i32) -> (i32, i32) {
    %c0_i32 = arith.constant 0 : i32
    %c0_i32_0 = arith.constant 0 : i32
    %c0_i32_1 = arith.constant 0 : i32
    return %c0_i32, %c0_i32_0 : i32, i32
  }
  func.func @transform_3(%arg0: i32) -> (i32, i32) {
    %c0_i32 = arith.constant 0 : i32
    %c0_i32_0 = arith.constant 0 : i32
    %c0_i32_1 = arith.constant 0 : i32
    return %c0_i32, %c0_i32_0 : i32, i32
  }
  func.func @transform_4(%arg0: i32) -> (i32, i32, i32) {
    %c0_i32 = arith.constant 0 : i32
    %c0_i32_0 = arith.constant 0 : i32
    %c0_i32_1 = arith.constant 0 : i32
    return %arg0, %c0_i32, %c0_i32_0 : i32, i32, i32
  }
}

</mosaic_0001>

<bundles_post_ra>
// kernel: _lambda_.5
= control target key start
LH: loop header
LB: loop body
LE: loop exit
PB: predicated region body
PF: predicated region fallthrough
CT: control target
= control target key end

     0   :  { %s1013_s12 = smov 0   ;;  %s1510_s0 = inlined_call_operand.vmem [shape: f32[2,8,2,8,64], index: 0, kind: input, shape index: {}]   ;;  %s1511_s1 = inlined_call_operand.vmem [shape: f32[512,32], index: 1, kind: input, shape index: {}]   ;;  %s1512_s2 = inlined_call_operand.vmem [shape: f32[1,32], index: 2, kind: input, shape index: {}]   ;;  %s1513_s3 = inlined_call_operand.vmem [shape: f32[2,8,8,32], index: 3, kind: output, shape index: {}]  }
   0x1 LB: > { %s910_s13 = sadd.s32 4294967295, %s987_s12   ;;  %p914_p0 = scmp.ge.s32.totalorder %s987_s12, 1  ;;  %s987_s12 = sphi %s1013_s12, %s13_s12  }
   0x2   : > { %p137_p1 = scmp.lt.s32.totalorder %s987_s12, 3 }
   0x4   : > { %p138_p2 = pnand %p914_p0, %p137_p1 }
   0x5   : > { %p161_p3 = scmp.lt.s32.totalorder (!%p138_p2), %s910_s13, 1  ;;  %s989_s18 = smov (!%p138_p2), 32  }
   0x6   : > { %141 = sbr.rel (%p138_p2) target bundleno = 548 (0x224), region = 32  ;;  %s990_s19 = smov (!%p138_p2), 96  }
   0x7   : > { %s992_s20 = smov (!%p138_p2), 64  }
   0xb   : > { %s1515_s13 = smov (!%p161_p3, %s910_s13), 1  ;;  %vm187_vm0 = vcmask 523264   ;;  %v991_v9 = vmov 0.0   ;;  %vm189_vm1 = vcmask 516096   ;;  %vm258_vm2 = vcmask 523520  }
   0xc   : > { %s921_s14 = sshll.u32 %s1515_s13, 7  ;;  %195 = vst.msk [vmem:[#allocation2 + $0x30] sm:$0xff] %vm187_vm0, %v991_v9  ;;  %vm291_vm3 = vcmask 261120   ;;  %vm425_vm4 = vcmask 1046528   ;;  %vm562_vm5 = vcmask 785408   ;;  %s922_s30 = sshll.u32 %s1515_s13, 6 }
   0xd   : > { %s1027_s17 = scalar_lea.vmem %s1510_s0, %s921_s14  ;;  %188 = vst.msk [vmem:[#allocation2] sm:$0xff] %vm187_vm0, %v991_v9  ;;  %s1480_s6 = scalar_lea.vmem %s1513_s3, %s922_s30 }
   0xe   : > { %v173_v0 = vld [vmem:[%s1027_s17 + $0x10] sm:$0xff]  ;;  %v172_v1 = vld [vmem:[%s1027_s17 + $0x8] sm:$0xff]  ;;  %v171_v2 = vld [vmem:[%s1027_s17] sm:$0xff]  ;;  %191 = vst.msk [vmem:[#allocation2 + $0x10] sm:$0xff] %vm187_vm0, %v991_v9 }
   0xf   : > { %235 = vrot.lane.b32.xlu1 %v173_v0, %s989_s18  ;;  %308 = vrot.lane.b32.xlu0 %v172_v1, %s989_s18  ;;  %v174_v3 = vld [vmem:[%s1027_s17 + $0x18] sm:$0xff]  ;;  %v175_v4 = vld [vmem:[%s1027_s17 + $0x20] sm:$0xff]  ;;  %193 = vst.msk [vmem:[#allocation2 + $0x20] sm:$0xff] %vm187_vm0, %v991_v9 }
  0x10   : > { %233 = vrot.lane.b32.xlu2 %v171_v2, %s989_s18  ;;  %v176_v5 = vld [vmem:[%s1027_s17 + $0x28] sm:$0xff]  ;;  %v177_v6 = vld [vmem:[%s1027_s17 + $0x30] sm:$0xff]  ;;  %v178_v7 = vld [vmem:[%s1027_s17 + $0x38] sm:$0xff]  ;;  %197 = vst.msk [vmem:[#allocation2 + $0x40] sm:$0xff] %vm187_vm0, %v991_v9 }
  0x11   : > { %v179_v8 = vld [vmem:[%s1027_s17 + $0x40] sm:$0xff]  ;;  %v180_v10 = vld [vmem:[%s1027_s17 + $0x48] sm:$0xff]  ;;  %199 = vst.msk [vmem:[#allocation2 + $0x50] sm:$0xff] %vm187_vm0, %v991_v9  ;;  %v181_v11 = vld [vmem:[%s1027_s17 + $0x50] sm:$0xff] }
  0x12   : > { %201 = vst.msk [vmem:[#allocation2 + $0x60] sm:$0xff] %vm187_vm0, %v991_v9  ;;  %v182_v12 = vld [vmem:[%s1027_s17 + $0x58] sm:$0xff]  ;;  %v183_v13 = vld [vmem:[%s1027_s17 + $0x60] sm:$0xff]  ;;  %v184_v14 = vld [vmem:[%s1027_s17 + $0x68] sm:$0xff] }
  0x13   : > { %203 = vst.msk [vmem:[#allocation2 + $0x70] sm:$0xff] %vm187_vm0, %v991_v9  ;;  %v185_v15 = vld [vmem:[%s1027_s17 + $0x70] sm:$0xff]  ;;  %v186_v19 = vld [vmem:[%s1027_s17 + $0x78] sm:$0xff] }
  0x14   : > { %205 = vst.msk [vmem:[#allocation2 + $0x80] sm:$0xff] %vm187_vm0, %v991_v9  ;;  %v1121_v28 = vld [vmem:[#allocation2] sm:$0xff] }
  0x15   : > { %207 = vst.msk [vmem:[#allocation2 + $0x90] sm:$0xff] %vm187_vm0, %v991_v9  ;;  %v426_v32 = vrot.slane %v1121_v28, 1 }
  0x16   : > { %209 = vst.msk [vmem:[#allocation2 + $0xa0] sm:$0xff] %vm187_vm0, %v991_v9 }
  0x17   : > { %269 = vrot.lane.b32.xlu1 %v173_v0, %s990_s19  ;;  %341 = vrot.lane.b32.xlu0 %v172_v1, %s990_s19  ;;  %211 = vst.msk [vmem:[#allocation2 + $0xb0] sm:$0xff] %vm187_vm0, %v991_v9 }
  0x18   : > { %267 = vrot.lane.b32.xlu2 %v171_v2, %s990_s19  ;;  %213 = vst.msk [vmem:[#allocation2 + $0xc0] sm:$0xff] %vm187_vm0, %v991_v9 }
  0x19   : > { %215 = vst.msk [vmem:[#allocation2 + $0xd0] sm:$0xff] %vm187_vm0, %v991_v9 }
  0x1a   : > { %217 = vst.msk [vmem:[#allocation2 + $0xe0] sm:$0xff] %vm187_vm0, %v991_v9 }
  0x1b   : > { %219 = vst.msk [vmem:[#allocation2 + $0xf0] sm:$0xff] %vm187_vm0, %v991_v9 }
  0x1c   : > { %221 = vst.msk [vmem:[#allocation2 + $0x100] sm:$0xff] %vm187_vm0, %v991_v9 }
  0x1d   : > { %223 = vst.msk [vmem:[#allocation2 + $0x110] sm:$0xff] %vm187_vm0, %v991_v9 }
  0x1e   : > { %196 = vst.msk [vmem:[#allocation2 + $0x38] sm:$0x1] %vm189_vm1, %v991_v9 }
  0x1f   : > { %343 = vrot.lane.b32.xlu1 %v174_v3, %s990_s19  ;;  %310 = vrot.lane.b32.xlu0 %v174_v3, %s989_s18  ;;  %190 = vst.msk [vmem:[#allocation2 + $0x8] sm:$0x1] %vm189_vm1, %v991_v9 }
  0x20   : > { %237 = vrot.lane.b32.xlu2 %v175_v4, %s989_s18  ;;  %192 = vst.msk [vmem:[#allocation2 + $0x18] sm:$0x1] %vm189_vm1, %v991_v9 }
  0x21   : > { %194 = vst.msk [vmem:[#allocation2 + $0x28] sm:$0x1] %vm189_vm1, %v991_v9 }
  0x22   : > { %198 = vst.msk [vmem:[#allocation2 + $0x48] sm:$0x1] %vm189_vm1, %v991_v9 }
  0x23   : > { %200 = vst.msk [vmem:[#allocation2 + $0x58] sm:$0x1] %vm189_vm1, %v991_v9 }
  0x24   : > { %202 = vst.msk [vmem:[#allocation2 + $0x68] sm:$0x1] %vm189_vm1, %v991_v9 }
  0x25   : > { %204 = vst.msk [vmem:[#allocation2 + $0x78] sm:$0x1] %vm189_vm1, %v991_v9 }
  0x26   : > { %206 = vst.msk [vmem:[#allocation2 + $0x88] sm:$0x1] %vm189_vm1, %v991_v9  ;;  %v374_v29 = vld [vmem:[#allocation2 + $0x8] sm:$0x1] }
  0x27   : > { %312 = vrot.lane.b32.xlu1 %v176_v5, %s989_s18  ;;  %271 = vrot.lane.b32.xlu0 %v175_v4, %s990_s19  ;;  %208 = vst.msk [vmem:[#allocation2 + $0x98] sm:$0x1] %vm189_vm1, %v991_v9  ;;  %v427_v33 = vrot.slane %v374_v29, 1 }
  0x28   : > { %345 = vrot.lane.b32.xlu2 %v176_v5, %s990_s19  ;;  %210 = vst.msk [vmem:[#allocation2 + $0xa8] sm:$0x1] %vm189_vm1, %v991_v9 }
  0x29   : > { %212 = vst.msk [vmem:[#allocation2 + $0xb8] sm:$0x1] %vm189_vm1, %v991_v9  ;;  %v428_v43 = vsel %vm425_vm4, %v426_v32, %v427_v33 }
  0x2a   : > { %214 = vst.msk [vmem:[#allocation2 + $0xc8] sm:$0x1] %vm189_vm1, %v991_v9 }
  0x2b   : > { %216 = vst.msk [vmem:[#allocation2 + $0xd8] sm:$0x1] %vm189_vm1, %v991_v9 }
  0x2c   : > { %218 = vst.msk [vmem:[#allocation2 + $0xe8] sm:$0x1] %vm189_vm1, %v991_v9 }
  0x2d   : > { %220 = vst.msk [vmem:[#allocation2 + $0xf8] sm:$0x1] %vm189_vm1, %v991_v9 }
  0x2e   : > { %222 = vst.msk [vmem:[#allocation2 + $0x108] sm:$0x1] %vm189_vm1, %v991_v9 }
  0x2f   : > { %273 = vrot.lane.b32.xlu1 %v177_v6, %s990_s19  ;;  %239 = vrot.lane.b32.xlu0 %v177_v6, %s989_s18  ;;  %224 = vst.msk [vmem:[#allocation2 + $0x118] sm:$0x1] %vm189_vm1, %v991_v9 }
  0x30   : > { %314 = vrot.lane.b32.xlu2 %v178_v7, %s989_s18 }
  0x37   : > { %241 = vrot.lane.b32.xlu1 %v179_v8, %s989_s18  ;;  %347 = vrot.lane.b32.xlu0 %v178_v7, %s990_s19 }
  0x38   : > { %275 = vrot.lane.b32.xlu2 %v179_v8, %s990_s19 }
  0x3f   : > { %349 = vrot.lane.b32.xlu1 %v180_v10, %s990_s19  ;;  %316 = vrot.lane.b32.xlu0 %v180_v10, %s989_s18 }
  0x40   : > { %243 = vrot.lane.b32.xlu2 %v181_v11, %s989_s18 }
  0x47   : > { %318 = vrot.lane.b32.xlu1 %v182_v12, %s989_s18  ;;  %277 = vrot.lane.b32.xlu0 %v181_v11, %s990_s19 }
  0x48   : > { %351 = vrot.lane.b32.xlu2 %v182_v12, %s990_s19 }
  0x4f   : > { %279 = vrot.lane.b32.xlu1 %v183_v13, %s990_s19  ;;  %245 = vrot.lane.b32.xlu0 %v183_v13, %s989_s18 }
  0x50   : > { %320 = vrot.lane.b32.xlu2 %v184_v14, %s989_s18 }
  0x57   : > { %247 = vrot.lane.b32.xlu1 %v185_v15, %s989_s18  ;;  %353 = vrot.lane.b32.xlu0 %v184_v14, %s990_s19 }
  0x58   : > { %281 = vrot.lane.b32.xlu2 %v185_v15, %s990_s19 }
  0x60   : > { %322 = vrot.lane.b32.xlu2 %v186_v19, %s989_s18 }
  0x6a   : > { %v234_v16 = vpop.permute.xlu2 %233 }
  0x6b   : > { %259 = vst.msk [vmem:[#allocation2 + $0x10] sm:$0xff] %vm258_vm2, %v234_v16 }
  0x72   : > { %v268_v17 = vpop.permute.xlu2 %267 }
  0x73   : > { %292 = vst.msk [vmem:[#allocation2 + $0x11] sm:$0xff] %vm291_vm3, %v268_v17 }
  0x7a   : > { %v238_v18 = vpop.permute.xlu2 %237  ;;  %v1119_v25 = vld [vmem:[#allocation2 + $0x10] sm:$0xff]  ;;  %v376_v26 = vld [vmem:[#allocation2 + $0x18] sm:$0x1] }
  0x7b   : > { %261 = vst.msk [vmem:[#allocation2 + $0x50] sm:$0xff] %vm258_vm2, %v238_v18  ;;  %v490_v30 = vrot.slane %v1119_v25, 1  ;;  %v491_v31 = vrot.slane %v376_v26, 1 }
  0x7d   : > { %v492_v40 = vsel %vm425_vm4, %v490_v30, %v491_v31 }
  0x81   : > { %v236_v20 = vpop.permute.xlu1 %235  ;;  %v309_v21 = vpop.permute.xlu0 %308 }
  0x82   : > { %260 = vst.msk [vmem:[#allocation2 + $0x30] sm:$0xff] %vm258_vm2, %v236_v20  ;;  %v346_v22 = vpop.permute.xlu2 %345 }
  0x83   : > { %333 = vst.msk [vmem:[#allocation2 + $0x20] sm:$0xff] %vm258_vm2, %v309_v21 }
  0x89   : > { %v270_v23 = vpop.permute.xlu1 %269  ;;  %v342_v24 = vpop.permute.xlu0 %341 }
  0x8a   : > { %293 = vst.msk [vmem:[#allocation2 + $0x31] sm:$0xff] %vm291_vm3, %v270_v23  ;;  %v315_v27 = vpop.permute.xlu2 %314 }
  0x8b   : > { %365 = vst.msk [vmem:[#allocation2 + $0x21] sm:$0xff] %vm291_vm3, %v342_v24 }
  0x8c   : > { %336 = vst.msk [vmem:[#allocation2 + $0x80] sm:$0xff] %vm258_vm2, %v315_v27 }
  0x91   : > { %v344_v34 = vpop.permute.xlu1 %343  ;;  %v311_v35 = vpop.permute.xlu0 %310  ;;  %v1126_v36 = vld [vmem:[#allocation2 + $0x30] sm:$0xff]  ;;  %v380_v37 = vld [vmem:[#allocation2 + $0x38] sm:$0x1] }
  0x92   : > { %334 = vst.msk [vmem:[#allocation2 + $0x40] sm:$0xff] %vm258_vm2, %v311_v35  ;;  %v1129_v38 = vld [vmem:[#allocation2 + $0x20] sm:$0xff]  ;;  %v378_v39 = vld [vmem:[#allocation2 + $0x28] sm:$0x1]  ;;  %v493_v41 = vrot.slane %v1126_v36, 1  ;;  %v494_v42 = vrot.slane %v380_v37, 1  ;;  %v276_v46 = vpop.permute.xlu2 %275 }
  0x93   : > { %366 = vst.msk [vmem:[#allocation2 + $0x41] sm:$0xff] %vm291_vm3, %v344_v34  ;;  %v429_v44 = vrot.slane %v1129_v38, 1  ;;  %v430_v45 = vrot.slane %v378_v39, 1  ;;  %v606_v35 = vld [vmem:[%s1511_s1 + $0x78] sm:$0xff] }
  0x94   : > { %v495_v47 = vsel %vm425_vm4, %v493_v41, %v494_v42  ;;  %v622_v37 = vld [vmem:[%s1511_s1 + $0xf8] sm:$0xff]  ;;  %659 = vmatpush.msra.mxu0 %v606_v35 }
  0x95   : > { %v431_v48 = vsel %vm425_vm4, %v429_v44, %v430_v45  ;;  %v940_v49 = vpack.i.bf16 %v492_v40, %v495_v47  ;;  %v638_v39 = vld [vmem:[%s1511_s1 + $0x178] sm:$0xff]  ;;  %700 = vmatpush.msra.mxu1 %v622_v37  ;;  %v621_v44 = vld [vmem:[%s1511_s1 + $0xf0] sm:$0xff]  ;;  %v604_v47 = vld [vmem:[%s1511_s1 + $0x68] sm:$0xff] }
  0x96   : > { %v935_v50 = vpack.i.bf16 %v428_v43, %v431_v48  ;;  %v654_v42 = vld [vmem:[%s1511_s1 + $0x1f8] sm:$0xff]  ;;  %741 = vmatpush.msra.mxu2 %v638_v39  ;;  %v605_v43 = vld [vmem:[%s1511_s1 + $0x70] sm:$0xff]  ;;  %v620_v48 = vld [vmem:[%s1511_s1 + $0xe8] sm:$0xff] }
  0x97   : > { %941 = vrot.lane.b32.xlu1 %v940_v49, %s992_s20  ;;  %782 = vmatpush.msra.mxu3 %v654_v42  ;;  %v637_v45 = vld [vmem:[%s1511_s1 + $0x170] sm:$0xff]  ;;  %v636_v49 = vld [vmem:[%s1511_s1 + $0x168] sm:$0xff]  ;;  %v646_v37 = vld [vmem:[%s1511_s1 + $0x1b8] sm:$0xff] }
  0x98   : > { %936 = vrot.lane.b32.xlu0 %v935_v50, %s992_s20  ;;  %660 = vmatpush.msra.mxu0 %v605_v43  ;;  %v652_v50 = vld [vmem:[%s1511_s1 + $0x1e8] sm:$0xff]  ;;  %v597_v39 = vld [vmem:[%s1511_s1 + $0x30] sm:$0xff] }
  0x99   : > { %v313_v51 = vpop.permute.xlu1 %312  ;;  %v272_v52 = vpop.permute.xlu0 %271  ;;  %701 = vmatpush.msra.mxu1 %v621_v44  ;;  %742 = vmatpush.msra.mxu2 %v637_v45  ;;  %v629_v44 = vld [vmem:[%s1511_s1 + $0x130] sm:$0xff] }
  0x9a   : > { %335 = vst.msk [vmem:[#allocation2 + $0x60] sm:$0xff] %vm258_vm2, %v313_v51  ;;  %v244_v53 = vpop.permute.xlu2 %243  ;;  %v1143_v54 = vld [vmem:[#allocation2 + $0x40] sm:$0xff]  ;;  %v382_v55 = vld [vmem:[#allocation2 + $0x48] sm:$0x1]  ;;  %661 = vmatpush.msra.mxu0 %v604_v47 }
  0x9b   : > { %294 = vst.msk [vmem:[#allocation2 + $0x51] sm:$0xff] %vm291_vm3, %v272_v52  ;;  %v432_v56 = vrot.slane %v1143_v54, 1  ;;  %v433_v57 = vrot.slane %v382_v55, 1  ;;  %v603_v51 = vld [vmem:[%s1511_s1 + $0x60] sm:$0xff]  ;;  %702 = vmatpush.msra.mxu1 %v620_v48  ;;  %743 = vmatpush.msra.mxu2 %v636_v49  ;;  %v645_v48 = vld [vmem:[%s1511_s1 + $0x1b0] sm:$0xff]  ;;  %v596_v49 = vld [vmem:[%s1511_s1 + $0x28] sm:$0xff] }
  0x9c   : > { %367 = vst.msk [vmem:[#allocation2 + $0x61] sm:$0xff] %vm291_vm3, %v346_v22  ;;  %v619_v52 = vld [vmem:[%s1511_s1 + $0xe0] sm:$0xff]  ;;  %662 = vmatpush.msra.mxu0 %v603_v51  ;;  %v628_v51 = vld [vmem:[%s1511_s1 + $0x128] sm:$0xff] }
  0x9d   : > { %264 = vst.msk [vmem:[#allocation2 + $0xb0] sm:$0xff] %vm258_vm2, %v244_v53  ;;  %v434_v62 = vsel %vm425_vm4, %v432_v56, %v433_v57  ;;  %v635_v53 = vld [vmem:[%s1511_s1 + $0x160] sm:$0xff]  ;;  %703 = vmatpush.msra.mxu1 %v619_v52 }
  0x9e   : > { %v651_v55 = vld [vmem:[%s1511_s1 + $0x1e0] sm:$0xff]  ;;  %744 = vmatpush.msra.mxu2 %v635_v53  ;;  %v644_v53 = vld [vmem:[%s1511_s1 + $0x1a8] sm:$0xff] }
  0xa0   : > { %355 = vrot.lane.b32.xlu0 %v186_v19, %s990_s19 }
  0xa1   : > { %v274_v58 = vpop.permute.xlu1 %273  ;;  %v240_v59 = vpop.permute.xlu0 %239 }
  0xa2   : > { %262 = vst.msk [vmem:[#allocation2 + $0x70] sm:$0xff] %vm258_vm2, %v240_v59  ;;  %v1149_v60 = vld [vmem:[#allocation2 + $0x50] sm:$0xff]  ;;  %v384_v61 = vld [vmem:[#allocation2 + $0x58] sm:$0x1]  ;;  %v352_v1 = vpop.permute.xlu2 %351 }
  0xa3   : > { %295 = vst.msk [vmem:[#allocation2 + $0x71] sm:$0xff] %vm291_vm3, %v274_v58  ;;  %v496_v63 = vrot.slane %v1149_v60, 1  ;;  %v497_v0 = vrot.slane %v384_v61, 1  ;;  %v1154_v2 = vld [vmem:[#allocation2 + $0x60] sm:$0xff]  ;;  %v386_v3 = vld [vmem:[#allocation2 + $0x68] sm:$0x1] }
  0xa4   : > { %v435_v6 = vrot.slane %v1154_v2, 1  ;;  %v436_v7 = vrot.slane %v386_v3, 1  ;;  %v602_v58 = vld [vmem:[%s1511_s1 + $0x58] sm:$0xff]  ;;  %v617_v3 = vld [vmem:[%s1511_s1 + $0xd0] sm:$0xff] }
  0xa5   : > { %v498_v4 = vsel %vm425_vm4, %v496_v63, %v497_v0  ;;  %v618_v59 = vld [vmem:[%s1511_s1 + $0xd8] sm:$0xff]  ;;  %663 = vmatpush.msra.mxu0 %v602_v58  ;;  %v627_v58 = vld [vmem:[%s1511_s1 + $0x120] sm:$0xff] }
  0xa6   : > { %v945_v5 = vpack.i.bf16 %v498_v4, %v434_v62  ;;  %v437_v12 = vsel %vm425_vm4, %v435_v6, %v436_v7  ;;  %v634_v61 = vld [vmem:[%s1511_s1 + $0x158] sm:$0xff]  ;;  %v633_v4 = vld [vmem:[%s1511_s1 + $0x150] sm:$0xff]  ;;  %704 = vmatpush.msra.mxu1 %v618_v59  ;;  %v643_v59 = vld [vmem:[%s1511_s1 + $0x1a0] sm:$0xff] }
  0xa7   : > { %v650_v62 = vld [vmem:[%s1511_s1 + $0x1d8] sm:$0xff]  ;;  %v649_v7 = vld [vmem:[%s1511_s1 + $0x1d0] sm:$0xff]  ;;  %745 = vmatpush.msra.mxu2 %v634_v61 }
  0xa8   : > { %946 = vrot.lane.b32.xlu1 %v945_v5, %s992_s20  ;;  %705 = vmatpush.msra.mxu1 %v617_v3  ;;  %v594_v61 = vld [vmem:[%s1511_s1 + $0x18] sm:$0xff]  ;;  %v609_v3 = vld [vmem:[%s1511_s1 + $0x90] sm:$0xff] }
  0xa9   : > { %v242_v8 = vpop.permute.xlu1 %241  ;;  %v348_v9 = vpop.permute.xlu0 %347  ;;  %746 = vmatpush.msra.mxu2 %v633_v4 }
  0xaa   : > { %263 = vst.msk [vmem:[#allocation2 + $0x90] sm:$0xff] %vm258_vm2, %v242_v8  ;;  %v1160_v10 = vld [vmem:[#allocation2 + $0x70] sm:$0xff]  ;;  %v388_v11 = vld [vmem:[#allocation2 + $0x78] sm:$0x1]  ;;  %v321_v15 = vpop.permute.xlu2 %320 }
  0xab   : > { %368 = vst.msk [vmem:[#allocation2 + $0x81] sm:$0xff] %vm291_vm3, %v348_v9  ;;  %v499_v13 = vrot.slane %v1160_v10, 1  ;;  %v500_v14 = vrot.slane %v388_v11, 1 }
  0xac   : > { %296 = vst.msk [vmem:[#allocation2 + $0x91] sm:$0xff] %vm291_vm3, %v276_v46  ;;  %v653_v46 = vld [vmem:[%s1511_s1 + $0x1f0] sm:$0xff] }
  0xad   : > { %v501_v16 = vsel %vm425_vm4, %v499_v13, %v500_v14  ;;  %339 = vst.msk [vmem:[#allocation2 + $0xe0] sm:$0xff] %vm258_vm2, %v321_v15  ;;  %783 = vmatpush.msra.mxu3 %v653_v46  ;;  %v600_v13 = vld [vmem:[%s1511_s1 + $0x48] sm:$0xff] }
  0xae   : > { %v950_v17 = vpack.i.bf16 %v501_v16, %v437_v12  ;;  %v616_v14 = vld [vmem:[%s1511_s1 + $0xc8] sm:$0xff] }
  0xaf   : > { %784 = vmatpush.msra.mxu3 %v652_v50  ;;  %v632_v16 = vld [vmem:[%s1511_s1 + $0x148] sm:$0xff]  ;;  %706 = vmatpush.msra.mxu1 %v616_v14  ;;  %v641_v14 = vld [vmem:[%s1511_s1 + $0x190] sm:$0xff] }
  0xb0   : > { %951 = vrot.lane.b32.xlu2 %v950_v17, %s992_s20  ;;  %v648_v17 = vld [vmem:[%s1511_s1 + $0x1c8] sm:$0xff]  ;;  %747 = vmatpush.msra.mxu2 %v632_v16 }
  0xb1   : > { %v350_v18 = vpop.permute.xlu1 %349  ;;  %v317_v19 = vpop.permute.xlu0 %316  ;;  %785 = vmatpush.msra.mxu3 %v651_v55  ;;  %v612_v50 = vld [vmem:[%s1511_s1 + $0xa8] sm:$0xff] }
  0xb2   : > { %337 = vst.msk [vmem:[#allocation2 + $0xa0] sm:$0xff] %vm258_vm2, %v317_v19  ;;  %v1170_v20 = vld [vmem:[#allocation2 + $0x80] sm:$0xff]  ;;  %v390_v21 = vld [vmem:[#allocation2 + $0x88] sm:$0x1] }
  0xb3   : > { %369 = vst.msk [vmem:[#allocation2 + $0xa1] sm:$0xff] %vm291_vm3, %v350_v18  ;;  %v1173_v22 = vld [vmem:[#allocation2 + $0x90] sm:$0xff]  ;;  %v392_v23 = vld [vmem:[#allocation2 + $0x98] sm:$0x1]  ;;  %v438_v24 = vrot.slane %v1170_v20, 1  ;;  %v439_v26 = vrot.slane %v390_v21, 1  ;;  %786 = vmatpush.msra.mxu3 %v650_v62 }
  0xb4   : > { %v502_v27 = vrot.slane %v1173_v22, 1  ;;  %v503_v29 = vrot.slane %v392_v23, 1  ;;  %v599_v19 = vld [vmem:[%s1511_s1 + $0x40] sm:$0xff]  ;;  %v610_v62 = vld [vmem:[%s1511_s1 + $0x98] sm:$0xff] }
  0xb5   : > { %v440_v30 = vsel %vm425_vm4, %v438_v24, %v439_v26  ;;  %787 = vmatpush.msra.mxu3 %v649_v7  ;;  %v615_v23 = vld [vmem:[%s1511_s1 + $0xc0] sm:$0xff]  ;;  %v625_v7 = vld [vmem:[%s1511_s1 + $0x110] sm:$0xff] }
  0xb6   : > { %v504_v31 = vsel %vm425_vm4, %v502_v27, %v503_v29  ;;  %v631_v24 = vld [vmem:[%s1511_s1 + $0x140] sm:$0xff]  ;;  %707 = vmatpush.msra.mxu1 %v615_v23  ;;  %v592_v23 = vld [vmem:[%s1511_s1 + $0x8] sm:$0xff] }
  0xb7   : > { %v955_v32 = vpack.i.bf16 %v504_v31, %v440_v30  ;;  %788 = vmatpush.msra.mxu3 %v648_v17  ;;  %v647_v29 = vld [vmem:[%s1511_s1 + $0x1c0] sm:$0xff]  ;;  %v598_v30 = vld [vmem:[%s1511_s1 + $0x38] sm:$0xff]  ;;  %v282_v31 = vpop.permute.xlu2 %281  ;;  %748 = vmatpush.msra.mxu2 %v631_v24  ;;  %v608_v24 = vld [vmem:[%s1511_s1 + $0x88] sm:$0xff] }
  0xb9   : > { %956 = vrot.lane.b32.xlu0 %v955_v32, %s992_s20  ;;  %v319_v33 = vpop.permute.xlu1 %318  ;;  %v278_v34 = vpop.permute.xlu0 %277  ;;  %v614_v32 = vld [vmem:[%s1511_s1 + $0xb8] sm:$0xff]  ;;  %789 = vmatpush.msra.mxu3 %v647_v29  ;;  %v591_v29 = vld [vmem:[%s1511_s1] sm:$0xff] }
  0xba   : > { %338 = vst.msk [vmem:[#allocation2 + $0xc0] sm:$0xff] %vm258_vm2, %v319_v33  ;;  %v1190_v40 = vld [vmem:[#allocation2 + $0xa0] sm:$0xff]  ;;  %v394_v41 = vld [vmem:[#allocation2 + $0xa8] sm:$0x1]  ;;  %v630_v33 = vld [vmem:[%s1511_s1 + $0x138] sm:$0xff]  ;;  %708 = vmatpush.msra.mxu1 %v614_v32 }
  0xbb   : > { %297 = vst.msk [vmem:[#allocation2 + $0xb1] sm:$0xff] %vm291_vm3, %v278_v34  ;;  %v441_v56 = vrot.slane %v1190_v40, 1  ;;  %v442_v57 = vrot.slane %v394_v41, 1  ;;  %v613_v41 = vld [vmem:[%s1511_s1 + $0xb0] sm:$0xff]  ;;  %749 = vmatpush.msra.mxu2 %v630_v33  ;;  %790 = vmatpush.msra.mxu3 %v646_v37  ;;  %v639_v32 = vld [vmem:[%s1511_s1 + $0x180] sm:$0xff] }
  0xbc   : > { %370 = vst.msk [vmem:[#allocation2 + $0xc1] sm:$0xff] %vm291_vm3, %v352_v1  ;;  %v601_v1 = vld [vmem:[%s1511_s1 + $0x50] sm:$0xff]  ;;  %709 = vmatpush.msra.mxu1 %v613_v41 }
  0xbd   : > { %v443_v8 = vsel %vm425_vm4, %v441_v56, %v442_v57  ;;  %664 = vmatpush.msra.mxu0 %v601_v1  ;;  %750 = vmatpush.msra.mxu2 %v629_v44  ;;  %v595_v56 = vld [vmem:[%s1511_s1 + $0x20] sm:$0xff]  ;;  %v593_v1 = vld [vmem:[%s1511_s1 + $0x10] sm:$0xff] }
  0xbe   : > { %791 = vmatpush.msra.mxu3 %v645_v48  ;;  %v611_v57 = vld [vmem:[%s1511_s1 + $0xa0] sm:$0xff]  ;;  %710 = vmatpush.msra.mxu1 %v612_v50 }
  0xbf   : > { %665 = vmatpush.msra.mxu0 %v600_v13  ;;  %751 = vmatpush.msra.mxu2 %v628_v51 }
  0xc0   : > { %792 = vmatpush.msra.mxu3 %v644_v53  ;;  %711 = vmatpush.msra.mxu1 %v611_v57 }
  0xc1   : > { %v280_v63 = vpop.permute.xlu1 %279  ;;  %v246_v0 = vpop.permute.xlu0 %245  ;;  %666 = vmatpush.msra.mxu0 %v599_v19  ;;  %752 = vmatpush.msra.mxu2 %v627_v58 }
  0xc2   : > { %265 = vst.msk [vmem:[#allocation2 + $0xd0] sm:$0xff] %vm258_vm2, %v246_v0  ;;  %v1256_v5 = vld [vmem:[#allocation2 + $0xb0] sm:$0xff]  ;;  %v396_v6 = vld [vmem:[#allocation2 + $0xb8] sm:$0x1]  ;;  %793 = vmatpush.msra.mxu3 %v643_v59  ;;  %712 = vmatpush.msra.mxu1 %v610_v62 }
  0xc3   : > { %298 = vst.msk [vmem:[#allocation2 + $0xd1] sm:$0xff] %vm291_vm3, %v280_v63  ;;  %v505_v9 = vrot.slane %v1256_v5, 1  ;;  %v506_v11 = vrot.slane %v396_v6, 1  ;;  %v1264_v12 = vld [vmem:[#allocation2 + $0xc0] sm:$0xff]  ;;  %v398_v15 = vld [vmem:[#allocation2 + $0xc8] sm:$0x1]  ;;  %667 = vmatpush.msra.mxu0 %v598_v30 }
  0xc4   : > { %v444_v26 = vrot.slane %v1264_v12, 1  ;;  %v445_v27 = vrot.slane %v398_v15, 1  ;;  %v626_v63 = vld [vmem:[%s1511_s1 + $0x118] sm:$0xff]  ;;  %713 = vmatpush.msra.mxu1 %v609_v3  ;;  %v607_v30 = vld [vmem:[%s1511_s1 + $0x80] sm:$0xff] }
  0xc5   : > { %v507_v18 = vsel %vm425_vm4, %v505_v9, %v506_v11  ;;  %668 = vmatpush.msra.mxu0 %v597_v39  ;;  %v642_v0 = vld [vmem:[%s1511_s1 + $0x198] sm:$0xff]  ;;  %753 = vmatpush.msra.mxu2 %v626_v63 }
  0xc6   : > { %v960_v21 = vpack.i.bf16 %v507_v18, %v443_v8  ;;  %v446_v45 = vsel %vm425_vm4, %v444_v26, %v445_v27  ;;  %794 = vmatpush.msra.mxu3 %v642_v0  ;;  %v624_v26 = vld [vmem:[%s1511_s1 + $0x108] sm:$0xff]  ;;  %714 = vmatpush.msra.mxu1 %v608_v24 }
  0xc7   : > { %669 = vmatpush.msra.mxu0 %v596_v49  ;;  %754 = vmatpush.msra.mxu2 %v625_v7  ;;  %v640_v27 = vld [vmem:[%s1511_s1 + $0x188] sm:$0xff] }
  0xc8   : > { %961 = vrot.lane.b32.xlu1 %v960_v21, %s992_s20  ;;  %795 = vmatpush.msra.mxu3 %v641_v14  ;;  %v323_v21 = vpop.permute.xlu2 %322 }
  0xc9   : > { %v248_v34 = vpop.permute.xlu1 %247  ;;  %v354_v35 = vpop.permute.xlu0 %353  ;;  %670 = vmatpush.msra.mxu0 %v595_v56  ;;  %340 = vst.msk [vmem:[#allocation2 + $0x100] sm:$0xff] %vm258_vm2, %v323_v21  ;;  %755 = vmatpush.msra.mxu2 %v624_v26 }
  0xca   : > { %266 = vst.msk [vmem:[#allocation2 + $0xf0] sm:$0xff] %vm258_vm2, %v248_v34  ;;  %v1312_v42 = vld [vmem:[#allocation2 + $0xd0] sm:$0xff]  ;;  %v400_v43 = vld [vmem:[#allocation2 + $0xd8] sm:$0x1]  ;;  %796 = vmatpush.msra.mxu3 %v640_v27  ;;  %715 = vmatpush.msra.mxu1 %v607_v30 }
  0xcb   : > { %371 = vst.msk [vmem:[#allocation2 + $0xe1] sm:$0xff] %vm291_vm3, %v354_v35  ;;  %v508_v46 = vrot.slane %v1312_v42, 1  ;;  %v509_v47 = vrot.slane %v400_v43, 1  ;;  %671 = vmatpush.msra.mxu0 %v594_v61 }
  0xcc   : > { %299 = vst.msk [vmem:[#allocation2 + $0xf1] sm:$0xff] %vm291_vm3, %v282_v31  ;;  %v623_v31 = vld [vmem:[%s1511_s1 + $0x100] sm:$0xff]  ;;  %797 = vmatpush.msra.mxu3 %v639_v32 }
  0xcd   : > { %v510_v52 = vsel %vm425_vm4, %v508_v46, %v509_v47  ;;  %672 = vmatpush.msra.mxu0 %v593_v1  ;;  %756 = vmatpush.msra.mxu2 %v623_v31 }
  0xce   : > { %v965_v55 = vpack.i.bf16 %v510_v52, %v446_v45 }
  0xcf   : > { %673 = vmatpush.msra.mxu0 %v592_v23 }
  0xd0   : > { %966 = vrot.lane.b32.xlu2 %v965_v55, %s992_s20 }
  0xd1   : > { %674 = vmatpush.msra.mxu0 %v591_v29 }
  0xd2   : > { %v1368_v4 = vld [vmem:[#allocation2 + $0xe0] sm:$0xff]  ;;  %v402_v6 = vld [vmem:[#allocation2 + $0xe8] sm:$0x1] }
  0xd3   : > { %v1373_v8 = vld [vmem:[#allocation2 + $0xf0] sm:$0xff]  ;;  %v404_v9 = vld [vmem:[#allocation2 + $0xf8] sm:$0x1]  ;;  %v447_v11 = vrot.slane %v1368_v4, 1  ;;  %v448_v13 = vrot.slane %v402_v6, 1 }
  0xd4   : > { %v511_v15 = vrot.slane %v1373_v8, 1  ;;  %v512_v16 = vrot.slane %v404_v9, 1 }
  0xd5   : > { %v449_v17 = vsel %vm425_vm4, %v447_v11, %v448_v13 }
  0xd6   : > { %v513_v18 = vsel %vm425_vm4, %v511_v15, %v512_v16 }
  0xd7   : > { %v970_v19 = vpack.i.bf16 %v513_v18, %v449_v17 }
  0xd9   : > { %971 = vrot.lane.b32.xlu0 %v970_v19, %s992_s20 }
 0x109   : > { %v942_v33 = vpop.permute.xlu1 %941 }
 0x10a   : > { %v937_v34 = vpop.permute.xlu0 %936  ;;  %v944_v35 = vunpack.i.h.bf16 %v942_v33  ;;  %v943_v37 = vunpack.i.l.bf16 %v942_v33  ;;  %v952_v62 = vpop.permute.xlu2 %951 }
 0x10b   : > { %v939_v39 = vunpack.i.h.bf16 %v937_v34  ;;  %v938_v41 = vunpack.i.l.bf16 %v937_v34  ;;  %v954_v9 = vunpack.i.h.bf16 %v952_v62  ;;  %v953_v11 = vunpack.i.l.bf16 %v952_v62 }
 0x10c   : > { %v571_v43 = vsel %vm187_vm0, %v1119_v25, %v944_v35  ;;  %v572_v44 = vsel %vm187_vm0, %v1126_v36, %v943_v37  ;;  %v1421_v36 = vld [vmem:[#allocation2 + $0x110] sm:$0xff] }
 0x10d   : > { %v554_v45 = vsel %vm187_vm0, %v1121_v28, %v939_v39  ;;  %v579_v46 = vsel %vm562_vm5, %v571_v43, %v944_v35  ;;  %v555_v47 = vsel %vm187_vm0, %v1129_v38, %v938_v41  ;;  %v580_v48 = vsel %vm562_vm5, %v572_v44, %v943_v37  ;;  %v408_v28 = vld [vmem:[#allocation2 + $0x118] sm:$0x1]  ;;  %v1469_v43 = vld [vmem:[%s1512_s2] ss:$0 sm:$0xff] }
 0x10e   : > { %v563_v49 = vsel %vm562_vm5, %v554_v45, %v939_v39  ;;  %716 = vmatmul.f32.vlgmr.msra.gmra.mxu1 %v579_v46  ;;  %v564_v50 = vsel %vm562_vm5, %v555_v47, %v938_v41  ;;  %798 = vmatmul.f32.vlgmr.msra.gmra.mxu3 %v580_v48  ;;  %v548_v51 = vrot.slane %v1421_v36, 1  ;;  %v549_v38 = vrot.slane %v408_v28, 1 }
 0x10f   : > { %675 = vmatmul.f32.vlgmr.msra.gmra.mxu0 %v563_v49  ;;  %757 = vmatmul.f32.vlgmr.msra.gmra.mxu2 %v564_v50 }
 0x110   : > { %v550_v56 = vsel %vm425_vm4, %v548_v51, %v549_v38 }
 0x112   : > { %v356_v25 = vpop.permute.xlu0 %355 }
 0x113   : > { %372 = vst.msk [vmem:[#allocation2 + $0x101] sm:$0xff] %vm291_vm3, %v356_v25 }
 0x116   : > { %719 = vmatmul.f32.gmra.mxu1 %v580_v48 }
 0x117   : > { %678 = vmatmul.f32.gmra.mxu0 %v564_v50 }
 0x11a   : > { %v947_v52 = vpop.permute.xlu1 %946  ;;  %v1424_v53 = vld [vmem:[#allocation2 + $0x100] sm:$0xff]  ;;  %v406_v55 = vld [vmem:[#allocation2 + $0x108] sm:$0x1] }
 0x11b   : > { %v949_v57 = vunpack.i.h.bf16 %v947_v52  ;;  %v948_v58 = vunpack.i.l.bf16 %v947_v52  ;;  %v540_v59 = vrot.slane %v1424_v53, 1  ;;  %v541_v61 = vrot.slane %v406_v55, 1 }
 0x11d   : > { %v556_v63 = vsel %vm187_vm0, %v1143_v54, %v948_v58  ;;  %v573_v0 = vsel %vm187_vm0, %v1149_v60, %v949_v57  ;;  %v542_v1 = vsel %vm425_vm4, %v540_v59, %v541_v61  ;;  %v557_v54 = vsel %vm187_vm0, %v1154_v2, %v953_v11 }
 0x11e   : > { %v565_v3 = vsel %vm562_vm5, %v556_v63, %v948_v58  ;;  %v581_v6 = vsel %vm562_vm5, %v573_v0, %v949_v57  ;;  %v975_v7 = vpack.i.bf16 %v550_v56, %v542_v1  ;;  %v574_v60 = vsel %vm187_vm0, %v1160_v10, %v954_v9 }
 0x11f   : > { %681 = vmatmul.f32.gmra.mxu0 %v565_v3  ;;  %722 = vmatmul.f32.gmra.mxu1 %v581_v6  ;;  %v566_v13 = vsel %vm562_vm5, %v557_v54, %v953_v11  ;;  %v582_v14 = vsel %vm562_vm5, %v574_v60, %v954_v9 }
 0x120   : > { %760 = vmatmul.f32.gmra.mxu2 %v565_v3  ;;  %801 = vmatmul.f32.gmra.mxu3 %v581_v6 }
 0x121   : > { %976 = vrot.lane.b32.xlu1 %v975_v7, %s992_s20 }
 0x127   : > { %684 = vmatmul.f32.gmra.mxu0 %v566_v13  ;;  %725 = vmatmul.f32.gmra.mxu1 %v582_v14 }
 0x128   : > { %763 = vmatmul.f32.gmra.mxu2 %v566_v13  ;;  %804 = vmatmul.f32.gmra.mxu3 %v582_v14 }
 0x12a   : > { %v967_v26 = vpop.permute.xlu2 %966 }
 0x12b   : > { %v957_v15 = vpop.permute.xlu0 %956  ;;  %v969_v30 = vunpack.i.h.bf16 %v967_v26  ;;  %v968_v31 = vunpack.i.l.bf16 %v967_v26 }
 0x12c   : > { %v959_v16 = vunpack.i.h.bf16 %v957_v15  ;;  %v958_v17 = vunpack.i.l.bf16 %v957_v15 }
 0x12d   : > { %v560_v32 = vsel %vm187_vm0, %v1264_v12, %v968_v31  ;;  %v577_v33 = vsel %vm187_vm0, %v1312_v42, %v969_v30 }
 0x12e   : > { %v558_v18 = vsel %vm187_vm0, %v1170_v20, %v958_v17  ;;  %v575_v2 = vsel %vm187_vm0, %v1173_v22, %v959_v16 }
 0x12f   : > { %v567_v19 = vsel %vm562_vm5, %v558_v18, %v958_v17  ;;  %v583_v10 = vsel %vm562_vm5, %v575_v2, %v959_v16 }
 0x130   : > { %687 = vmatmul.f32.gmra.mxu0 %v567_v19  ;;  %728 = vmatmul.f32.gmra.mxu1 %v583_v10 }
 0x131   : > { %766 = vmatmul.f32.gmra.mxu2 %v567_v19  ;;  %807 = vmatmul.f32.gmra.mxu3 %v583_v10 }
 0x13a   : > { %v962_v21 = vpop.permute.xlu1 %961 }
 0x13b   : > { %v964_v23 = vunpack.i.h.bf16 %v962_v21  ;;  %v963_v24 = vunpack.i.l.bf16 %v962_v21 }
 0x13d   : > { %v559_v27 = vsel %vm187_vm0, %v1190_v40, %v963_v24  ;;  %v576_v20 = vsel %vm187_vm0, %v1256_v5, %v964_v23  ;;  %v569_v40 = vsel %vm562_vm5, %v560_v32, %v968_v31  ;;  %v585_v5 = vsel %vm562_vm5, %v577_v33, %v969_v30 }
 0x13e   : > { %v568_v22 = vsel %vm562_vm5, %v559_v27, %v963_v24  ;;  %v584_v29 = vsel %vm562_vm5, %v576_v20, %v964_v23 }
 0x13f   : > { %690 = vmatmul.f32.gmra.mxu0 %v568_v22  ;;  %731 = vmatmul.f32.gmra.mxu1 %v584_v29 }
 0x140   : > { %769 = vmatmul.f32.gmra.mxu2 %v568_v22  ;;  %810 = vmatmul.f32.gmra.mxu3 %v584_v29 }
 0x147   : > { %693 = vmatmul.f32.gmra.mxu0 %v569_v40  ;;  %734 = vmatmul.f32.gmra.mxu1 %v585_v5 }
 0x148   : > { %772 = vmatmul.f32.gmra.mxu2 %v569_v40  ;;  %813 = vmatmul.f32.gmra.mxu3 %v585_v5 }
 0x14b   : > { %v972_v34 = vpop.permute.xlu0 %971 }
 0x14c   : > { %v974_v35 = vunpack.i.h.bf16 %v972_v34  ;;  %v973_v37 = vunpack.i.l.bf16 %v972_v34 }
 0x14e   : > { %v561_v39 = vsel %vm187_vm0, %v1368_v4, %v973_v37  ;;  %v578_v12 = vsel %vm187_vm0, %v1373_v8, %v974_v35 }
 0x14f   : > { %v570_v42 = vsel %vm562_vm5, %v561_v39, %v973_v37  ;;  %v586_v41 = vsel %vm562_vm5, %v578_v12, %v974_v35 }
 0x150   : > { %696 = vmatmul.f32.gmra.mxu0 %v570_v42  ;;  %737 = vmatmul.f32.gmra.mxu1 %v586_v41 }
 0x151   : > { %775 = vmatmul.f32.gmra.mxu2 %v570_v42  ;;  %816 = vmatmul.f32.gmra.mxu3 %v586_v41 }
 0x18b   : > { %v717_v45 = vpop.f32.mrf.mxu1 }
 0x18c   : > { %v676_v44 = vpop.f32.mrf.mxu0 }
 0x18d   : > { %v677_v4 = vadd.f32 %v1469_v43, %v676_v44 }
 0x18f   : > { %v718_v46 = vadd.f32 %v717_v45, %v677_v4 }
 0x191   : > { %v799_v49 = vpop.f32.mrf.mxu3 }
 0x192   : > { %v758_v47 = vpop.f32.mrf.mxu2 }
 0x193   : > { %v759_v8 = vadd.f32 %v758_v47, %v718_v46  ;;  %v977_v48 = vpop.permute.xlu1 %976 }
 0x194   : > { %v979_v50 = vunpack.i.h.bf16 %v977_v48  ;;  %v978_v25 = vunpack.i.l.bf16 %v977_v48  ;;  %v679_v56 = vpop.f32.mrf.mxu0 }
 0x195   : > { %v800_v28 = vadd.f32 %v799_v49, %v759_v8 }
 0x196   : > { %v587_v51 = vsel %vm187_vm0, %v1424_v53, %v978_v25  ;;  %v589_v38 = vsel %vm187_vm0, %v1421_v36, %v979_v50  ;;  %v680_v36 = vadd.f32 %v1469_v43, %v679_v56  ;;  %v720_v53 = vpop.f32.mrf.mxu1 }
 0x197   : > { %vm823_vm6 = vcmp.ge.f32.partialorder %v800_v28, 0.0  ;;  %v831_v52 = vmul.f32 0.1, %v800_v28  ;;  %v588_v55 = vsel %vm562_vm5, %v587_v51, %v978_v25  ;;  %v590_v57 = vsel %vm562_vm5, %v589_v38, %v979_v50 }
 0x198   : > { %778 = vmatmul.f32.gmra.mxu2 %v588_v55  ;;  %819 = vmatmul.f32.gmra.mxu3 %v590_v57  ;;  %v721_v59 = vadd.f32 %v720_v53, %v680_v36 }
 0x199   : > { %v839_v58 = vsel %vm823_vm6, %v800_v28, %v831_v52 }
 0x19a   : > { %847 = vst.msk [vmem:[%s1480_s6] sm:$0xff] %vm291_vm3, %v839_v58 }
 0x19c   : > { %v682_v61 = vpop.f32.mrf.mxu0 }
 0x19d   : > { %v683_v1 = vadd.f32 %v1469_v43, %v682_v61 }
 0x19e   : > { %v723_v6 = vpop.f32.mrf.mxu1 }
 0x19f   : > { %v724_v9 = vadd.f32 %v723_v6, %v683_v1 }
 0x1a3   : > { %v761_v62 = vpop.f32.mrf.mxu2  ;;  %v802_v63 = vpop.f32.mrf.mxu3 }
 0x1a4   : > { %v762_v0 = vadd.f32 %v761_v62, %v721_v59  ;;  %v685_v60 = vpop.f32.mrf.mxu0 }
 0x1a5   : > { %v686_v16 = vadd.f32 %v1469_v43, %v685_v60 }
 0x1a6   : > { %v803_v3 = vadd.f32 %v802_v63, %v762_v0  ;;  %v726_v18 = vpop.f32.mrf.mxu1 }
 0x1a7   : > { %v727_v19 = vadd.f32 %v726_v18, %v686_v16 }
 0x1a8   : > { %vm824_vm7 = vcmp.ge.f32.partialorder %v803_v3, 0.0  ;;  %v832_v7 = vmul.f32 0.1, %v803_v3 }
 0x1aa   : > { %v840_v11 = vsel %vm824_vm7, %v803_v3, %v832_v7 }
 0x1ab   : > { %848 = vst.msk [vmem:[%s1480_s6 + $0x8] sm:$0xff] %vm291_vm3, %v840_v11  ;;  %v764_v54 = vpop.f32.mrf.mxu2  ;;  %v805_v14 = vpop.f32.mrf.mxu3 }
 0x1ac   : > { %v765_v13 = vadd.f32 %v764_v54, %v724_v9 }
 0x1ad   : > { %v688_v27 = vpop.f32.mrf.mxu0 }
 0x1ae   : > { %v806_v15 = vadd.f32 %v805_v14, %v765_v13  ;;  %v689_v22 = vadd.f32 %v1469_v43, %v688_v27  ;;  %v729_v29 = vpop.f32.mrf.mxu1 }
 0x1b0   : > { %vm825_vm8 = vcmp.ge.f32.partialorder %v806_v15, 0.0  ;;  %v833_v17 = vmul.f32 0.1, %v806_v15  ;;  %v730_v30 = vadd.f32 %v729_v29, %v689_v22 }
 0x1b2   : > { %v841_v2 = vsel %vm825_vm8, %v806_v15, %v833_v17 }
 0x1b3   : > { %849 = vst.msk [vmem:[%s1480_s6 + $0x10] sm:$0xff] %vm291_vm3, %v841_v2 }
 0x1b4   : > { %v767_v10 = vpop.f32.mrf.mxu2  ;;  %v808_v23 = vpop.f32.mrf.mxu3 }
 0x1b5   : > { %v768_v21 = vadd.f32 %v767_v10, %v727_v19 }
 0x1b7   : > { %v809_v24 = vadd.f32 %v808_v23, %v768_v21 }
 0x1b9   : > { %vm826_vm9 = vcmp.ge.f32.partialorder %v809_v24, 0.0  ;;  %v834_v26 = vmul.f32 0.1, %v809_v24 }
 0x1bb   : > { %v842_v20 = vsel %vm826_vm9, %v809_v24, %v834_v26 }
 0x1bc   : > { %850 = vst.msk [vmem:[%s1480_s6 + $0x18] sm:$0xff] %vm291_vm3, %v842_v20  ;;  %v691_v31 = vpop.f32.mrf.mxu0  ;;  %v732_v35 = vpop.f32.mrf.mxu1 }
 0x1bd   : > { %v692_v5 = vadd.f32 %v1469_v43, %v691_v31 }
 0x1bf   : > { %v733_v39 = vadd.f32 %v732_v35, %v692_v5 }
 0x1c3   : > { %v770_v32 = vpop.f32.mrf.mxu2  ;;  %v811_v33 = vpop.f32.mrf.mxu3 }
 0x1c4   : > { %v771_v40 = vadd.f32 %v770_v32, %v730_v30  ;;  %v694_v41 = vpop.f32.mrf.mxu0  ;;  %v735_v8 = vpop.f32.mrf.mxu1 }
 0x1c5   : > { %v695_v46 = vadd.f32 %v1469_v43, %v694_v41 }
 0x1c6   : > { %v812_v34 = vadd.f32 %v811_v33, %v771_v40 }
 0x1c7   : > { %v736_v49 = vadd.f32 %v735_v8, %v695_v46 }
 0x1c8   : > { %vm827_vm10 = vcmp.ge.f32.partialorder %v812_v34, 0.0  ;;  %v835_v37 = vmul.f32 0.1, %v812_v34 }
 0x1ca   : > { %v843_v12 = vsel %vm827_vm10, %v812_v34, %v835_v37 }
 0x1cb   : > { %851 = vst.msk [vmem:[%s1480_s6 + $0x20] sm:$0xff] %vm291_vm3, %v843_v12  ;;  %v773_v42 = vpop.f32.mrf.mxu2  ;;  %v814_v4 = vpop.f32.mrf.mxu3 }
 0x1cc   : > { %v774_v44 = vadd.f32 %v773_v42, %v733_v39 }
 0x1cd   : > { %v697_v55 = vpop.f32.mrf.mxu0  ;;  %v738_v57 = vpop.f32.mrf.mxu1 }
 0x1ce   : > { %v815_v45 = vadd.f32 %v814_v4, %v774_v44  ;;  %v698_v56 = vadd.f32 %v1469_v43, %v697_v55 }
 0x1d0   : > { %vm828_vm11 = vcmp.ge.f32.partialorder %v815_v45, 0.0  ;;  %v836_v47 = vmul.f32 0.1, %v815_v45  ;;  %v739_v58 = vadd.f32 %v738_v57, %v698_v56 }
 0x1d2   : > { %v844_v48 = vsel %vm828_vm11, %v815_v45, %v836_v47 }
 0x1d3   : > { %852 = vst.msk [vmem:[%s1480_s6 + $0x28] sm:$0xff] %vm291_vm3, %v844_v48 }
 0x1d4   : > { %v776_v50 = vpop.f32.mrf.mxu2  ;;  %v817_v28 = vpop.f32.mrf.mxu3 }
 0x1d5   : > { %v777_v25 = vadd.f32 %v776_v50, %v736_v49 }
 0x1d7   : > { %v818_v51 = vadd.f32 %v817_v28, %v777_v25 }
 0x1d9   : > { %vm829_vm12 = vcmp.ge.f32.partialorder %v818_v51, 0.0  ;;  %v837_v38 = vmul.f32 0.1, %v818_v51 }
 0x1db   : > { %v845_v52 = vsel %vm829_vm12, %v818_v51, %v837_v38 }
 0x1dc   : > { %853 = vst.msk [vmem:[%s1480_s6 + $0x30] sm:$0xff] %vm291_vm3, %v845_v52 }
 0x21b   : > { %v779_v36 = vpop.f32.mrf.mxu2  ;;  %v820_v59 = vpop.f32.mrf.mxu3 }
 0x21c   : > { %v780_v53 = vadd.f32 %v779_v36, %v739_v58 }
 0x21e   : > { %v821_v61 = vadd.f32 %v820_v59, %v780_v53 }
 0x220   : > { %vm830_vm13 = vcmp.ge.f32.partialorder %v821_v61, 0.0  ;;  %v838_v62 = vmul.f32 0.1, %v821_v61 }
 0x222   : > { %v846_v63 = vsel %vm830_vm13, %v821_v61, %v838_v62 }
 0x223   : > { %854 = vst.msk [vmem:[%s1480_s6 + $0x38] sm:$0xff] %vm291_vm3, %v846_v63 }
 0x224 PF: > { %s13_s12 = sadd.s32 1, %s987_s12  }
 0x225   : > { %p10_p4 = scmp.ge.s32.totalorder %s13_s12, 4  }
 0x227   :  { %12 = sbr.rel (!%p10_p4) target bundleno = 1 (0x1), region = 64 }

// kernel: _lambda_.6
= control target key start
LH: loop header
LB: loop body
LE: loop exit
PB: predicated region body
PF: predicated region fallthrough
CT: control target
= control target key end

     0   :  { %s1235_s15 = smov 0   ;;  %s1741_s0 = inlined_call_operand.vmem [shape: f32[2,8,8,32], index: 0, kind: input, shape index: {}]   ;;  %s1742_s1 = inlined_call_operand.vmem [shape: f32[2,8,8,32], index: 1, kind: input, shape index: {}]   ;;  %s1743_s2 = inlined_call_operand.vmem [shape: f32[64,96], index: 2, kind: input, shape index: {}]   ;;  %s1744_s3 = inlined_call_operand.vmem [shape: f32[9,96], index: 3, kind: input, shape index: {}]   ;;  %s1745_s4 = inlined_call_operand.vmem [shape: f32[2,8,8,96], index: 4, kind: output, shape index: {}]  }
   0x1 LB: > { %s1133_s16 = sadd.s32 4294967295, %s1205_s15   ;;  %p1137_p0 = scmp.ge.s32.totalorder %s1205_s15, 1  ;;  %s1205_s15 = sphi %s1235_s15, %s14_s15  }
   0x2   : > { %p172_p1 = scmp.lt.s32.totalorder %s1205_s15, 3 }
   0x4   : > { %p173_p2 = pnand %p1137_p0, %p172_p1 }
   0x5   : > { %p203_p3 = scmp.lt.s32.totalorder (!%p173_p2), %s1133_s16, 1  ;;  %s1208_s12 = smov (!%p173_p2), 32  }
   0x6   : > { %176 = sbr.rel (%p173_p2) target bundleno = 432 (0x1b0), region = 36 }
   0xb   : > { %s1747_s16 = smov (!%p203_p3, %s1133_s16), 1  ;;  %vm226_vm0 = vcmask 261120   ;;  %v1207_v0 = vmov 64.0   ;;  %vm448_vm8 = vcmask 523264   ;;  %vm514_vm9 = vcmask 785408  }
   0xc   : > { %s1243_s17 = sshll.u32 %s1747_s16, 6  ;;  %1193 = vrcp.f32 %v1207_v0  ;;  %vm516_vm10 = vcmask 779264   ;;  %vm617_vm11 = vcmask 1046528   ;;  %vm691_vm12 = vcmask 1045504  }
   0xd   : > { %s212_s20 = scalar_lea.vmem %s1742_s1, %s1243_s17  ;;  %s1326_s11 = scalar_lea.vmem %s1741_s0, %s1243_s17 }
   0xe   : > { %v313_v1 = vld [vmem:[%s212_s20] sm:$0xff]  ;;  %v314_v2 = vld [vmem:[%s212_s20 + $0x8] sm:$0xff]  ;;  %v315_v3 = vld [vmem:[%s212_s20 + $0x10] sm:$0xff]  ;;  %s1632_s23 = scalar_lea.vmem %s1745_s4, %s1243_s17 }
   0xf   : > { %v316_v4 = vld [vmem:[%s212_s20 + $0x18] sm:$0xff]  ;;  %v321_v5 = vsel %vm226_vm0, %v313_v1, 0.0  ;;  %v322_v6 = vsel %vm226_vm0, %v314_v2, 0.0  ;;  %v324_v7 = vsel %vm226_vm0, %v315_v3, 0.0  ;;  %v317_v8 = vld [vmem:[%s212_s20 + $0x20] sm:$0xff]  ;;  %v318_v11 = vld [vmem:[%s212_s20 + $0x28] sm:$0xff] }
  0x10   : > { %v323_v9 = vadd.f32 %v322_v6, %v321_v5  ;;  %v326_v10 = vsel %vm226_vm0, %v316_v4, 0.0  ;;  %v328_v13 = vsel %vm226_vm0, %v317_v8, 0.0  ;;  %v319_v15 = vld [vmem:[%s212_s20 + $0x30] sm:$0xff]  ;;  %v330_v17 = vsel %vm226_vm0, %v318_v11, 0.0  ;;  %v320_v18 = vld [vmem:[%s212_s20 + $0x38] sm:$0xff] }
  0x11   : > { %v332_v21 = vsel %vm226_vm0, %v319_v15, 0.0  ;;  %v334_v23 = vsel %vm226_vm0, %v320_v18, 0.0 }
  0x12   : > { %v325_v12 = vadd.f32 %v324_v7, %v323_v9  ;;  %v1194_v14 = vpop.eup %1193 }
  0x13   : > { %v249_v20 = vmul.f32 64.0, %v1194_v14  ;;  %vm253_vm1 = vweird.f32 %v1194_v14 }
  0x14   : > { %v327_v16 = vadd.f32 %v326_v10, %v325_v12  ;;  %v447_v12 = vld [vmem:[%s1743_s2 + $0x38] sm:$0xff] }
  0x15   : > { %v250_v25 = vsub.f32 1.0, %v249_v20  ;;  %1157 = vmatpush.msra.mxu1 %v447_v12  ;;  %1158 = vmatpush.msra.mxu2 %v447_v12 }
  0x16   : > { %v329_v19 = vadd.f32 %v328_v13, %v327_v16  ;;  %v446_v13 = vld [vmem:[%s1743_s2 + $0x30] sm:$0xff]  ;;  %481 = vmatpush.msra.mxu0 %v447_v12  ;;  %1159 = vmatpush.msra.mxu3 %v447_v12 }
  0x17   : > { %v251_v28 = vmul.f32 %v1194_v14, %v250_v25  ;;  %1160 = vmatpush.msra.mxu1 %v446_v13  ;;  %1161 = vmatpush.msra.mxu2 %v446_v13 }
  0x18   : > { %v331_v22 = vadd.f32 %v330_v17, %v329_v19  ;;  %v444_v17 = vld [vmem:[%s1743_s2 + $0x20] sm:$0xff]  ;;  %482 = vmatpush.msra.mxu0 %v446_v13  ;;  %1162 = vmatpush.msra.mxu3 %v446_v13  ;;  %v443_v19 = vld [vmem:[%s1743_s2 + $0x18] sm:$0xff] }
  0x19   : > { %v252_v31 = vadd.f32 %v1194_v14, %v251_v28  ;;  %v218_v28 = vld [vmem:[%s1326_s11] sm:$0xff] }
  0x1a   : > { %v333_v24 = vadd.f32 %v332_v21, %v331_v22  ;;  %v442_v21 = vld [vmem:[%s1743_s2 + $0x10] sm:$0xff] }
  0x1b   : > { %v1257_v34 = vsel %vm253_vm1, %v1194_v14, %v252_v31  ;;  %v220_v31 = vld [vmem:[%s1326_s11 + $0x10] sm:$0xff] }
  0x1c   : > { %v335_v26 = vadd.f32 %v334_v23, %v333_v24  ;;  %v441_v23 = vld [vmem:[%s1743_s2 + $0x8] sm:$0xff] }
  0x1e   : > { %v336_v27 = vrot.slane %v335_v26, 4 }
  0x20   : > { %v337_v29 = vadd.f32 %v336_v27, %v335_v26 }
  0x22   : > { %v338_v30 = vrot.slane %v337_v29, 2 }
  0x24   : > { %v339_v32 = vadd.f32 %v338_v30, %v337_v29  ;;  %v219_v29 = vld [vmem:[%s1326_s11 + $0x8] sm:$0xff] }
  0x26   : > { %v340_v33 = vrot.slane %v339_v32, 1 }
  0x28   : > { %v341_v35 = vadd.f32 %v340_v33, %v339_v32  ;;  %v227_v32 = vsel %vm226_vm0, %v218_v28, 0.0  ;;  %v228_v33 = vsel %vm226_vm0, %v219_v29, 0.0 }
  0x2a   : > { %v342_v36 = vmul.f32 %v341_v35, %v1257_v34  ;;  %v229_v35 = vadd.f32 %v228_v33, %v227_v32 }
  0x2c   : > { %v1260_v37 = vsub.f32 %v313_v1, %v342_v36  ;;  %v1262_v38 = vsub.f32 %v314_v2, %v342_v36  ;;  %v1264_v39 = vsub.f32 %v315_v3, %v342_v36  ;;  %v1266_v40 = vsub.f32 %v316_v4, %v342_v36 }
  0x2d   : > { %v1268_v41 = vsub.f32 %v317_v8, %v342_v36  ;;  %v1270_v42 = vsub.f32 %v318_v11, %v342_v36  ;;  %v1280_v47 = vsub.f32 %v319_v15, %v342_v36  ;;  %v1287_v53 = vsub.f32 %v320_v18, %v342_v36  ;;  %v445_v15 = vld [vmem:[%s1743_s2 + $0x28] sm:$0xff] }
  0x2e   : > { %v351_v43 = vmul.f32 %v1260_v37, %v1260_v37  ;;  %v352_v44 = vmul.f32 %v1262_v38, %v1262_v38  ;;  %v353_v45 = vmul.f32 %v1264_v39, %v1264_v39  ;;  %v354_v46 = vmul.f32 %v1266_v40, %v1266_v40  ;;  %1163 = vmatpush.msra.mxu1 %v445_v15 }
  0x2f   : > { %v355_v48 = vmul.f32 %v1268_v41, %v1268_v41  ;;  %v356_v54 = vmul.f32 %v1270_v42, %v1270_v42  ;;  %v357_v57 = vmul.f32 %v1280_v47, %v1280_v47  ;;  %v358_v60 = vmul.f32 %v1287_v53, %v1287_v53  ;;  %1164 = vmatpush.msra.mxu2 %v445_v15 }
  0x30   : > { %v359_v49 = vsel %vm226_vm0, %v351_v43, 0.0  ;;  %v360_v50 = vsel %vm226_vm0, %v352_v44, 0.0  ;;  %v362_v51 = vsel %vm226_vm0, %v353_v45, 0.0  ;;  %v364_v55 = vsel %vm226_vm0, %v354_v46, 0.0  ;;  %483 = vmatpush.msra.mxu0 %v445_v15  ;;  %1165 = vmatpush.msra.mxu3 %v445_v15  ;;  %v222_v45 = vld [vmem:[%s1326_s11 + $0x20] sm:$0xff] }
  0x31   : > { %v361_v52 = vadd.f32 %v360_v50, %v359_v49  ;;  %v366_v58 = vsel %vm226_vm0, %v355_v48, 0.0  ;;  %v368_v61 = vsel %vm226_vm0, %v356_v54, 0.0  ;;  %v370_v63 = vsel %vm226_vm0, %v357_v57, 0.0  ;;  %1166 = vmatpush.msra.mxu1 %v444_v17  ;;  %1167 = vmatpush.msra.mxu2 %v444_v17  ;;  %v223_v50 = vld [vmem:[%s1326_s11 + $0x28] sm:$0xff]  ;;  %v224_v54 = vld [vmem:[%s1326_s11 + $0x30] sm:$0xff] }
  0x32   : > { %v372_v1 = vsel %vm226_vm0, %v358_v60, 0.0  ;;  %484 = vmatpush.msra.mxu0 %v444_v17  ;;  %1168 = vmatpush.msra.mxu3 %v444_v17  ;;  %v230_v36 = vsel %vm226_vm0, %v220_v31, 0.0  ;;  %v234_v49 = vsel %vm226_vm0, %v222_v45, 0.0 }
  0x33   : > { %v363_v56 = vadd.f32 %v362_v51, %v361_v52  ;;  %1169 = vmatpush.msra.mxu1 %v443_v19  ;;  %1170 = vmatpush.msra.mxu2 %v443_v19  ;;  %v236_v52 = vsel %vm226_vm0, %v223_v50, 0.0 }
  0x34   : > { %485 = vmatpush.msra.mxu0 %v443_v19  ;;  %1171 = vmatpush.msra.mxu3 %v443_v19 }
  0x35   : > { %v365_v59 = vadd.f32 %v364_v55, %v363_v56  ;;  %1172 = vmatpush.msra.mxu1 %v442_v21  ;;  %1173 = vmatpush.msra.mxu2 %v442_v21  ;;  %v225_v55 = vld [vmem:[%s1326_s11 + $0x38] sm:$0xff] }
  0x36   : > { %486 = vmatpush.msra.mxu0 %v442_v21  ;;  %1174 = vmatpush.msra.mxu3 %v442_v21 }
  0x37   : > { %v367_v62 = vadd.f32 %v366_v58, %v365_v59  ;;  %1175 = vmatpush.msra.mxu1 %v441_v23  ;;  %1176 = vmatpush.msra.mxu2 %v441_v23 }
  0x38   : > { %487 = vmatpush.msra.mxu0 %v441_v23  ;;  %1177 = vmatpush.msra.mxu3 %v441_v23 }
  0x39   : > { %v369_v0 = vadd.f32 %v368_v61, %v367_v62 }
  0x3b   : > { %v371_v2 = vadd.f32 %v370_v63, %v369_v0 }
  0x3d   : > { %v373_v3 = vadd.f32 %v372_v1, %v371_v2 }
  0x3f   : > { %v374_v4 = vrot.slane %v373_v3, 4 }
  0x41   : > { %v375_v5 = vadd.f32 %v374_v4, %v373_v3 }
  0x43   : > { %v376_v6 = vrot.slane %v375_v5, 2 }
  0x45   : > { %v377_v7 = vadd.f32 %v376_v6, %v375_v5 }
  0x47   : > { %v378_v8 = vrot.slane %v377_v7, 1 }
  0x49   : > { %v379_v9 = vadd.f32 %v378_v8, %v377_v7 }
  0x4b   : > { %v380_v10 = vmul.f32 %v379_v9, %v1257_v34 }
  0x4d   : > { %v381_v11 = vadd.f32 1e-05, %v380_v10 }
  0x4f   : > { %1195 = vrsqrt.f32 %v381_v11  ;;  %vm388_vm2 = vweird.f32 %v381_v11 }
  0x55   : > { %v1196_v14 = vpop.eup %1195 }
  0x56   : > { %v383_v16 = vmul.f32 %v1196_v14, %v381_v11  ;;  %vm389_vm3 = vweird.f32 %v1196_v14 }
  0x57   : > { %vm390_vm4 = vmor %vm388_vm2, %vm389_vm3 }
  0x58   : > { %v384_v18 = vmul.f32 %v1196_v14, %v383_v16 }
  0x5a   : > { %v385_v20 = vmul.f32 0.5, %v384_v18 }
  0x5c   : > { %v386_v22 = vsub.f32 1.5, %v385_v20 }
  0x5e   : > { %v387_v24 = vmul.f32 %v1196_v14, %v386_v22 }
  0x60   : > { %v391_v25 = vsel %vm390_vm4, %v1196_v14, %v387_v24 }
  0x61   : > { %v396_v26 = vmul.f32 %v391_v25, %v1268_v41  ;;  %v394_v27 = vmul.f32 %v391_v25, %v1264_v39  ;;  %v397_v30 = vmul.f32 %v391_v25, %v1270_v42  ;;  %v221_v39 = vld [vmem:[%s1326_s11 + $0x18] sm:$0xff]  ;;  %v231_v41 = vadd.f32 %v230_v36, %v229_v35 }
  0x62   : > { %v232_v42 = vsel %vm226_vm0, %v221_v39, 0.0  ;;  %v398_v43 = vmul.f32 %v391_v25, %v1280_v47  ;;  %v392_v44 = vmul.f32 %v391_v25, %v1260_v37  ;;  %v393_v46 = vmul.f32 %v391_v25, %v1262_v38 }
  0x63   : > { %416 = vrot.lane.b32.xlu0 %v396_v26, %s1208_s12  ;;  %412 = vrot.lane.b32.xlu1 %v394_v27, %s1208_s12  ;;  %v233_v48 = vadd.f32 %v232_v42, %v231_v41  ;;  %v238_v37 = vsel %vm226_vm0, %v224_v54, 0.0  ;;  %v240_v38 = vsel %vm226_vm0, %v225_v55, 0.0  ;;  %v399_v57 = vmul.f32 %v391_v25, %v1287_v53 }
  0x64   : > { %418 = vrot.lane.b32.xlu2 %v397_v30, %s1208_s12  ;;  %v395_v58 = vmul.f32 %v391_v25, %v1266_v40 }
  0x65   : > { %v235_v51 = vadd.f32 %v234_v49, %v233_v48  ;;  %v440_v48 = vld [vmem:[%s1743_s2] sm:$0xff] }
  0x66   : > { %1178 = vmatpush.msra.mxu1 %v440_v48  ;;  %1179 = vmatpush.msra.mxu2 %v440_v48 }
  0x67   : > { %v237_v47 = vadd.f32 %v236_v52, %v235_v51  ;;  %488 = vmatpush.msra.mxu0 %v440_v48  ;;  %1180 = vmatpush.msra.mxu3 %v440_v48 }
  0x69   : > { %v239_v56 = vadd.f32 %v238_v37, %v237_v47 }
  0x6b   : > { %420 = vrot.lane.b32.xlu1 %v398_v43, %s1208_s12  ;;  %408 = vrot.lane.b32.xlu0 %v392_v44, %s1208_s12  ;;  %v241_v59 = vadd.f32 %v240_v38, %v239_v56 }
  0x6c   : > { %410 = vrot.lane.b32.xlu2 %v393_v46, %s1208_s12 }
  0x6d   : > { %v242_v60 = vrot.slane %v241_v59, 4 }
  0x6f   : > { %v243_v61 = vadd.f32 %v242_v60, %v241_v59 }
  0x71   : > { %v244_v62 = vrot.slane %v243_v61, 2 }
  0x73   : > { %422 = vrot.lane.b32.xlu1 %v399_v57, %s1208_s12  ;;  %414 = vrot.lane.b32.xlu0 %v395_v58, %s1208_s12  ;;  %v245_v63 = vadd.f32 %v244_v62, %v243_v61 }
  0x75   : > { %v246_v0 = vrot.slane %v245_v63, 1 }
  0x77   : > { %v247_v1 = vadd.f32 %v246_v0, %v245_v63 }
  0x79   : > { %v255_v2 = vmul.f32 %v1257_v34, %v247_v1 }
  0x7b   : > { %v1361_v3 = vsub.f32 %v218_v28, %v255_v2  ;;  %v1363_v4 = vsub.f32 %v219_v29, %v255_v2  ;;  %v258_v53 = vsub.f32 %v220_v31, %v255_v2  ;;  %v259_v6 = vsub.f32 %v221_v39, %v255_v2 }
  0x7c   : > { %v260_v10 = vsub.f32 %v222_v45, %v255_v2  ;;  %v261_v14 = vsub.f32 %v223_v50, %v255_v2  ;;  %v262_v18 = vsub.f32 %v224_v54, %v255_v2  ;;  %v263_v22 = vsub.f32 %v225_v55, %v255_v2 }
  0x7d   : > { %v264_v40 = vmul.f32 %v1361_v3, %v1361_v3  ;;  %v265_v5 = vmul.f32 %v1363_v4, %v1363_v4  ;;  %v266_v7 = vmul.f32 %v258_v53, %v258_v53  ;;  %v267_v11 = vmul.f32 %v259_v6, %v259_v6 }
  0x7e   : > { %v268_v15 = vmul.f32 %v260_v10, %v260_v10  ;;  %v269_v19 = vmul.f32 %v261_v14, %v261_v14  ;;  %v270_v23 = vmul.f32 %v262_v18, %v262_v18  ;;  %v271_v26 = vmul.f32 %v263_v22, %v263_v22 }
  0x7f   : > { %v272_v8 = vsel %vm226_vm0, %v264_v40, 0.0  ;;  %v273_v9 = vsel %vm226_vm0, %v265_v5, 0.0  ;;  %v275_v13 = vsel %vm226_vm0, %v266_v7, 0.0  ;;  %v277_v17 = vsel %vm226_vm0, %v267_v11, 0.0 }
  0x80   : > { %v274_v12 = vadd.f32 %v273_v9, %v272_v8  ;;  %v279_v21 = vsel %vm226_vm0, %v268_v15, 0.0  ;;  %v281_v25 = vsel %vm226_vm0, %v269_v19, 0.0  ;;  %v283_v28 = vsel %vm226_vm0, %v270_v23, 0.0 }
  0x81   : > { %v285_v30 = vsel %vm226_vm0, %v271_v26, 0.0  ;;  %v1209_v9 = vmov 0.0  }
  0x82   : > { %v276_v16 = vadd.f32 %v275_v13, %v274_v12  ;;  %517 = vst.msk [vmem:[#allocation2 + $0x8] sm:$0x3] %vm516_vm10, %v1209_v9 }
  0x83   : > { %522 = vst.msk [vmem:[#allocation2 + $0x30] sm:$0xff] %vm514_vm9, %v1209_v9 }
  0x84   : > { %v278_v20 = vadd.f32 %v277_v17, %v276_v16  ;;  %523 = vst.msk [vmem:[#allocation2 + $0x38] sm:$0x3] %vm516_vm10, %v1209_v9 }
  0x85   : > { %535 = vst.msk [vmem:[#allocation2 + $0x98] sm:$0x3] %vm516_vm10, %v1209_v9 }
  0x86   : > { %v280_v24 = vadd.f32 %v279_v21, %v278_v20  ;;  %515 = vst.msk [vmem:[#allocation2] sm:$0xff] %vm514_vm9, %v1209_v9 }
  0x87   : > { %518 = vst.msk [vmem:[#allocation2 + $0x10] sm:$0xff] %vm514_vm9, %v1209_v9 }
  0x88   : > { %v282_v27 = vadd.f32 %v281_v25, %v280_v24  ;;  %519 = vst.msk [vmem:[#allocation2 + $0x18] sm:$0x3] %vm516_vm10, %v1209_v9 }
  0x89   : > { %520 = vst.msk [vmem:[#allocation2 + $0x20] sm:$0xff] %vm514_vm9, %v1209_v9  ;;  %v546_v12 = vld [vmem:[#allocation2 + $0x8] sm:$0x3] }
  0x8a   : > { %v284_v29 = vadd.f32 %v283_v28, %v282_v27  ;;  %521 = vst.msk [vmem:[#allocation2 + $0x28] sm:$0x3] %vm516_vm10, %v1209_v9 }
  0x8b   : > { %524 = vst.msk [vmem:[#allocation2 + $0x40] sm:$0xff] %vm514_vm9, %v1209_v9 }
  0x8c   : > { %v286_v31 = vadd.f32 %v285_v30, %v284_v29  ;;  %525 = vst.msk [vmem:[#allocation2 + $0x48] sm:$0x3] %vm516_vm10, %v1209_v9 }
  0x8d   : > { %526 = vst.msk [vmem:[#allocation2 + $0x50] sm:$0xff] %vm514_vm9, %v1209_v9  ;;  %v545_v11 = vld [vmem:[#allocation2] sm:$0xff] }
  0x8e   : > { %v287_v32 = vrot.slane %v286_v31, 4  ;;  %527 = vst.msk [vmem:[#allocation2 + $0x58] sm:$0x3] %vm516_vm10, %v1209_v9 }
  0x8f   : > { %528 = vst.msk [vmem:[#allocation2 + $0x60] sm:$0xff] %vm514_vm9, %v1209_v9 }
  0x90   : > { %v288_v33 = vadd.f32 %v287_v32, %v286_v31  ;;  %529 = vst.msk [vmem:[#allocation2 + $0x68] sm:$0x3] %vm516_vm10, %v1209_v9 }
  0x91   : > { %530 = vst.msk [vmem:[#allocation2 + $0x70] sm:$0xff] %vm514_vm9, %v1209_v9 }
  0x92   : > { %v289_v35 = vrot.slane %v288_v33, 2  ;;  %531 = vst.msk [vmem:[#allocation2 + $0x78] sm:$0x3] %vm516_vm10, %v1209_v9 }
  0x93   : > { %532 = vst.msk [vmem:[#allocation2 + $0x80] sm:$0xff] %vm514_vm9, %v1209_v9 }
  0x94   : > { %v290_v36 = vadd.f32 %v289_v35, %v288_v33  ;;  %533 = vst.msk [vmem:[#allocation2 + $0x88] sm:$0x3] %vm516_vm10, %v1209_v9 }
  0x95   : > { %534 = vst.msk [vmem:[#allocation2 + $0x90] sm:$0xff] %vm514_vm9, %v1209_v9 }
  0x96   : > { %v291_v39 = vrot.slane %v290_v36, 1 }
  0x98   : > { %v292_v41 = vadd.f32 %v291_v39, %v290_v36 }
  0x9a   : > { %v293_v42 = vmul.f32 %v292_v41, %v1257_v34 }
  0x9c   : > { %v294_v43 = vadd.f32 1e-05, %v293_v42 }
  0x9e   : > { %1197 = vrsqrt.f32 %v294_v43  ;;  %vm301_vm5 = vweird.f32 %v294_v43 }
  0xa4   : > { %v1198_v44 = vpop.eup %1197 }
  0xa5   : > { %v296_v45 = vmul.f32 %v1198_v44, %v294_v43  ;;  %vm302_vm6 = vweird.f32 %v1198_v44 }
  0xa6   : > { %vm303_vm7 = vmor %vm301_vm5, %vm302_vm6 }
  0xa7   : > { %v297_v46 = vmul.f32 %v1198_v44, %v296_v45 }
  0xa9   : > { %v298_v49 = vmul.f32 0.5, %v297_v46 }
  0xab   : > { %v299_v50 = vsub.f32 1.5, %v298_v49 }
  0xad   : > { %v300_v51 = vmul.f32 %v1198_v44, %v299_v50 }
  0xaf   : > { %v304_v34 = vsel %vm303_vm7, %v1198_v44, %v300_v51  ;;  %v1468_v51 = vld [vmem:[%s1744_s3 + $0x8] ss:$0 sm:$0xff] }
  0xb0   : > { %v308_v52 = vmul.f32 %v304_v34, %v259_v6  ;;  %v307_v54 = vmul.f32 %v304_v34, %v258_v53  ;;  %v309_v47 = vmul.f32 %v304_v34, %v260_v10  ;;  %v310_v58 = vmul.f32 %v304_v34, %v261_v14 }
  0xb1   : > { %v305_v59 = vmul.f32 %v304_v34, %v1361_v3  ;;  %v311_v60 = vmul.f32 %v304_v34, %v262_v18  ;;  %v306_v2 = vmul.f32 %v304_v34, %v1363_v4  ;;  %v312_v40 = vmul.f32 %v304_v34, %v263_v22  ;;  %v565_v4 = vld [vmem:[%s1744_s3] sm:$0xff] }
  0xb2   : > { %v1422_v10 = vperm.slane %v565_v4, 1  ;;  %v1426_v15 = vperm.slane %v565_v4, 2  ;;  %v1430_v20 = vperm.slane %v565_v4, 0  ;;  %v1436_v28 = vperm.slane %v565_v4, 4 }
  0xb3   : > { %v1438_v29 = vperm.slane %v565_v4, 5  ;;  %v1443_v33 = vperm.slane %v565_v4, 7  ;;  %v1447_v39 = vperm.slane %v565_v4, 3  ;;  %v1449_v41 = vperm.slane %v565_v4, 6 }
  0xb4   : > { %v585_v13 = vmul.f32 %v1422_v10, %v545_v11  ;;  %v586_v14 = vmul.f32 %v1422_v10, %v546_v12  ;;  %v659_v18 = vmul.f32 %v1426_v15, %v545_v11  ;;  %v660_v19 = vmul.f32 %v1426_v15, %v546_v12 }
  0xb5   : > { %v568_v22 = vmul.f32 %v1430_v20, %v545_v11 }
  0xb6   : > { %v618_v16 = vrot.slane %v585_v13, 1  ;;  %v619_v17 = vrot.slane %v586_v14, 1  ;;  %v692_v24 = vrot.slane %v659_v18, 2  ;;  %v693_v25 = vrot.slane %v660_v19, 2 }
  0xb8   : > { %v620_v23 = vsel %vm617_vm11, %v618_v16, %v619_v17  ;;  %v694_v27 = vsel %vm691_vm12, %v692_v24, %v693_v25 }
  0xb9   : > { %v650_v26 = vadd.f32 %v620_v23, %v568_v22 }
  0xbb   : > { %v1445_v36 = vadd.f32 %v694_v27, %v650_v26 }
  0xbe   : > { %v419_v57 = vpop.permute.xlu2 %418 }
  0xbf   : > { %v437_v61 = vsel %vm226_vm0, %v310_v58, %v419_v57 }
  0xc6   : > { %v411_v53 = vpop.permute.xlu2 %410 }
  0xc7   : > { %v433_v3 = vsel %vm226_vm0, %v306_v2, %v411_v53 }
  0xd5   : > { %v417_v37 = vpop.permute.xlu0 %416  ;;  %v413_v55 = vpop.permute.xlu1 %412 }
  0xd6   : > { %v434_v56 = vsel %vm226_vm0, %v307_v54, %v413_v55  ;;  %v436_v38 = vsel %vm226_vm0, %v309_v47, %v417_v37 }
  0xd7   : > { %1146 = vmatmul.msk.f32.vlgmr.msra.gmra.mxu1 %vm448_vm8, %v434_v56  ;;  %1148 = vmatmul.msk.f32.vlgmr.msra.gmra.mxu2 %vm448_vm8, %v436_v38 }
  0xdd   : > { %v421_v62 = vpop.permute.xlu1 %420  ;;  %v409_v63 = vpop.permute.xlu0 %408 }
  0xde   : > { %v432_v0 = vsel %vm226_vm0, %v305_v59, %v409_v63  ;;  %v438_v1 = vsel %vm226_vm0, %v311_v60, %v421_v62 }
  0xdf   : > { %1144 = vmatmul.msk.f32.vlgmr.msra.gmra.mxu0 %vm448_vm8, %v432_v0  ;;  %1149 = vmatmul.msk.f32.gmra.mxu2 %vm448_vm8, %v437_v61 }
  0xe0   : > { %1150 = vmatmul.msk.f32.vlgmr.msra.gmra.mxu3 %vm448_vm8, %v438_v1 }
  0xe5   : > { %v423_v5 = vpop.permute.xlu1 %422  ;;  %v415_v6 = vpop.permute.xlu0 %414 }
  0xe6   : > { %v435_v7 = vsel %vm226_vm0, %v308_v52, %v415_v6  ;;  %v439_v8 = vsel %vm226_vm0, %v312_v40, %v423_v5 }
  0xe7   : > { %1145 = vmatmul.msk.f32.gmra.mxu0 %vm448_vm8, %v433_v3  ;;  %1147 = vmatmul.msk.f32.gmra.mxu1 %vm448_vm8, %v435_v7 }
  0xe8   : > { %1151 = vmatmul.msk.f32.gmra.mxu3 %vm448_vm8, %v439_v8 }
 0x154   : > { %v496_v21 = vpop.f32.mrf.mxu1 }
 0x155   : > { %539 = vst.msk [vmem:[#allocation2 + $0x31] sm:$0xff] %vm514_vm9, %v496_v21 }
 0x15a   : > { %v502_v30 = vpop.f32.mrf.mxu2 }
 0x15b   : > { %541 = vst.msk [vmem:[#allocation2 + $0x51] sm:$0xff] %vm514_vm9, %v502_v30 }
 0x15c   : > { %v1441_v31 = vld [vmem:[#allocation2 + $0x30] sm:$0xff]  ;;  %v552_v32 = vld [vmem:[#allocation2 + $0x38] sm:$0x3]  ;;  %v490_v35 = vpop.f32.mrf.mxu0 }
 0x15d   : > { %v571_v42 = vmul.f32 %v1430_v20, %v1441_v31  ;;  %v591_v43 = vmul.f32 %v1422_v10, %v1441_v31  ;;  %v592_v44 = vmul.f32 %v1422_v10, %v552_v32  ;;  %v665_v45 = vmul.f32 %v1426_v15, %v1441_v31  ;;  %537 = vst.msk [vmem:[#allocation2 + $0x11] sm:$0xff] %vm514_vm9, %v490_v35 }
 0x15e   : > { %v666_v46 = vmul.f32 %v1426_v15, %v552_v32  ;;  %v754_v48 = vmul.f32 %v1436_v28, %v1441_v31  ;;  %v755_v49 = vmul.f32 %v1436_v28, %v552_v32  ;;  %v827_v50 = vmul.f32 %v1438_v29, %v1441_v31 }
 0x15f   : > { %v627_v34 = vrot.slane %v591_v43, 1  ;;  %v628_v52 = vrot.slane %v592_v44, 1  ;;  %v701_v54 = vrot.slane %v665_v45, 2  ;;  %v828_v47 = vmul.f32 %v1438_v29, %v552_v32 }
 0x160   : > { %v702_v37 = vrot.slane %v666_v46, 2  ;;  %v788_v55 = vrot.slane %v754_v48, 1  ;;  %v789_v56 = vrot.slane %v755_v49, 1  ;;  %v861_v38 = vrot.slane %v827_v50, 2 }
 0x161   : > { %v629_v57 = vsel %vm617_vm11, %v627_v34, %v628_v52  ;;  %v862_v58 = vrot.slane %v828_v47, 2  ;;  %v915_v59 = vmul.f32 %v1443_v33, %v1441_v31  ;;  %v916_v60 = vmul.f32 %v1443_v33, %v552_v32 }
 0x162   : > { %v653_v61 = vadd.f32 %v629_v57, %v571_v42  ;;  %v703_v62 = vsel %vm691_vm12, %v701_v54, %v702_v37  ;;  %v1477_v63 = vsel %vm617_vm11, %v788_v55, %v789_v56  ;;  %v988_v0 = vmul.f32 %v1468_v51, %v1441_v31  ;;  %v1481_v1 = vld [vmem:[#allocation2 + $0x50] sm:$0xff]  ;;  %v556_v2 = vld [vmem:[#allocation2 + $0x58] sm:$0x3]  ;;  %v505_v53 = vpop.f32.mrf.mxu2 }
 0x163   : > { %v1484_v40 = vsel %vm691_vm12, %v861_v38, %v862_v58  ;;  %v948_v3 = vrot.slane %v915_v59, 1  ;;  %v949_v5 = vrot.slane %v916_v60, 1  ;;  %v989_v6 = vmul.f32 %v1468_v51, %v552_v32  ;;  %542 = vst.msk [vmem:[#allocation2 + $0x61] sm:$0xff] %vm514_vm9, %v505_v53  ;;  %v508_v7 = vpop.f32.mrf.mxu3 }
 0x164   : > { %v1488_v8 = vadd.f32 %v703_v62, %v653_v61  ;;  %v1021_v9 = vrot.slane %v988_v0, 2  ;;  %v573_v4 = vmul.f32 %v1430_v20, %v1481_v1  ;;  %v595_v11 = vmul.f32 %v1422_v10, %v1481_v1  ;;  %543 = vst.msk [vmem:[#allocation2 + $0x71] sm:$0xff] %vm514_vm9, %v508_v7  ;;  %v493_v12 = vpop.f32.mrf.mxu0  ;;  %v547_v46 = vld [vmem:[#allocation2 + $0x10] sm:$0xff]  ;;  %v548_v52 = vld [vmem:[#allocation2 + $0x18] sm:$0x3] }
 0x165   : > { %v1496_v13 = vsel %vm617_vm11, %v948_v3, %v949_v5  ;;  %v1022_v14 = vrot.slane %v989_v6, 2  ;;  %v596_v16 = vmul.f32 %v1422_v10, %v556_v2  ;;  %v669_v17 = vmul.f32 %v1426_v15, %v1481_v1  ;;  %538 = vst.msk [vmem:[#allocation2 + $0x21] sm:$0xff] %vm514_vm9, %v493_v12 }
 0x166   : > { %v633_v18 = vrot.slane %v595_v11, 1  ;;  %v670_v19 = vmul.f32 %v1426_v15, %v556_v2  ;;  %v758_v21 = vmul.f32 %v1436_v28, %v1481_v1  ;;  %v759_v22 = vmul.f32 %v1436_v28, %v556_v2 }
 0x167   : > { %v1507_v23 = vsel %vm691_vm12, %v1021_v9, %v1022_v14  ;;  %v634_v24 = vrot.slane %v596_v16, 1  ;;  %v707_v25 = vrot.slane %v669_v17, 2  ;;  %v831_v26 = vmul.f32 %v1438_v29, %v1481_v1 }
 0x168   : > { %v708_v27 = vrot.slane %v670_v19, 2  ;;  %v794_v30 = vrot.slane %v758_v21, 1  ;;  %v795_v32 = vrot.slane %v759_v22, 1  ;;  %v832_v35 = vmul.f32 %v1438_v29, %v556_v2 }
 0x169   : > { %v635_v42 = vsel %vm617_vm11, %v633_v18, %v634_v24  ;;  %v867_v43 = vrot.slane %v831_v26, 2  ;;  %v919_v44 = vmul.f32 %v1443_v33, %v1481_v1  ;;  %v920_v45 = vmul.f32 %v1443_v33, %v556_v2  ;;  %v499_v24 = vpop.f32.mrf.mxu1 }
 0x16a   : > { %v655_v48 = vadd.f32 %v635_v42, %v573_v4  ;;  %v709_v49 = vsel %vm691_vm12, %v707_v25, %v708_v27  ;;  %v1518_v50 = vsel %vm617_vm11, %v794_v30, %v795_v32  ;;  %v868_v34 = vrot.slane %v832_v35, 2  ;;  %v557_v4 = vld [vmem:[#allocation2 + $0x60] sm:$0xff]  ;;  %v558_v17 = vld [vmem:[#allocation2 + $0x68] sm:$0x3]  ;;  %540 = vst.msk [vmem:[#allocation2 + $0x41] sm:$0xff] %vm514_vm9, %v499_v24 }
 0x16b   : > { %v954_v54 = vrot.slane %v919_v44, 1  ;;  %v955_v47 = vrot.slane %v920_v45, 1  ;;  %v992_v37 = vmul.f32 %v1468_v51, %v1481_v1  ;;  %v993_v55 = vmul.f32 %v1468_v51, %v556_v2 }
 0x16c   : > { %v729_v56 = vadd.f32 %v709_v49, %v655_v48  ;;  %v1524_v38 = vsel %vm691_vm12, %v867_v43, %v868_v34  ;;  %v569_v57 = vmul.f32 %v1430_v20, %v547_v46  ;;  %v587_v58 = vmul.f32 %v1422_v10, %v547_v46 }
 0x16d   : > { %v1529_v59 = vsel %vm617_vm11, %v954_v54, %v955_v47  ;;  %v1027_v60 = vrot.slane %v992_v37, 2  ;;  %v1028_v61 = vrot.slane %v993_v55, 2  ;;  %v588_v62 = vmul.f32 %v1422_v10, %v548_v52 }
 0x16e   : > { %v621_v0 = vrot.slane %v587_v58, 1  ;;  %v661_v53 = vmul.f32 %v1426_v15, %v547_v46  ;;  %v662_v2 = vmul.f32 %v1426_v15, %v548_v52  ;;  %v733_v3 = vmul.f32 %v1447_v39, %v547_v46 }
 0x16f   : > { %v1536_v5 = vsel %vm691_vm12, %v1027_v60, %v1028_v61  ;;  %v622_v6 = vrot.slane %v588_v62, 1  ;;  %v750_v7 = vmul.f32 %v1436_v28, %v547_v46  ;;  %v751_v9 = vmul.f32 %v1436_v28, %v548_v52 }
 0x170   : > { %v695_v11 = vrot.slane %v661_v53, 2  ;;  %v696_v12 = vrot.slane %v662_v2, 2  ;;  %v741_v14 = vadd.f32 %v733_v3, %v1445_v36  ;;  %v823_v16 = vmul.f32 %v1438_v29, %v547_v46  ;;  %v1564_v3 = vld [vmem:[#allocation2 + $0x70] sm:$0xff] }
 0x171   : > { %v623_v18 = vsel %vm617_vm11, %v621_v0, %v622_v6  ;;  %v782_v19 = vrot.slane %v750_v7, 1  ;;  %v783_v21 = vrot.slane %v751_v9, 1  ;;  %v824_v22 = vmul.f32 %v1438_v29, %v548_v52 }
 0x172   : > { %v651_v25 = vadd.f32 %v623_v18, %v569_v57  ;;  %v697_v26 = vsel %vm691_vm12, %v695_v11, %v696_v12  ;;  %v855_v27 = vrot.slane %v823_v16, 2  ;;  %v574_v30 = vmul.f32 %v1430_v20, %v557_v4  ;;  %v560_v18 = vld [vmem:[#allocation2 + $0x78] sm:$0x3] }
 0x173   : > { %v784_v36 = vsel %vm617_vm11, %v782_v19, %v783_v21  ;;  %v856_v32 = vrot.slane %v824_v22, 2  ;;  %v597_v35 = vmul.f32 %v1422_v10, %v557_v4  ;;  %v598_v42 = vmul.f32 %v1422_v10, %v558_v17 }
 0x174   : > { %v1550_v43 = vadd.f32 %v697_v26, %v651_v25  ;;  %v814_v44 = vadd.f32 %v784_v36, %v741_v14  ;;  %v671_v45 = vmul.f32 %v1426_v15, %v557_v4  ;;  %v672_v46 = vmul.f32 %v1426_v15, %v558_v17 }
 0x175   : > { %v857_v48 = vsel %vm691_vm12, %v855_v27, %v856_v32  ;;  %v636_v49 = vrot.slane %v597_v35, 1  ;;  %v637_v34 = vrot.slane %v598_v42, 1  ;;  %v738_v52 = vmul.f32 %v1447_v39, %v557_v4 }
 0x176   : > { %v1556_v54 = vadd.f32 %v857_v48, %v814_v44  ;;  %v710_v47 = vrot.slane %v671_v45, 2  ;;  %v711_v37 = vrot.slane %v672_v46, 2  ;;  %v760_v55 = vmul.f32 %v1436_v28, %v557_v4  ;;  %v511_v46 = vpop.f32.mrf.mxu3 }
 0x177   : > { %v638_v57 = vsel %vm617_vm11, %v636_v49, %v637_v34  ;;  %v746_v58 = vadd.f32 %v738_v52, %v729_v56  ;;  %v761_v60 = vmul.f32 %v1436_v28, %v558_v17  ;;  %v833_v61 = vmul.f32 %v1438_v29, %v557_v4  ;;  %544 = vst.msk [vmem:[#allocation2 + $0x81] sm:$0xff] %vm514_vm9, %v511_v46 }
 0x178   : > { %v656_v62 = vadd.f32 %v638_v57, %v574_v30  ;;  %v712_v0 = vsel %vm691_vm12, %v710_v47, %v711_v37  ;;  %v797_v53 = vrot.slane %v760_v55, 1  ;;  %v834_v2 = vmul.f32 %v1438_v29, %v558_v17 }
 0x179   : > { %v798_v6 = vrot.slane %v761_v60, 1  ;;  %v870_v7 = vrot.slane %v833_v61, 2  ;;  %v1567_v9 = vmul.f32 %v1449_v41, %v557_v4  ;;  %v921_v11 = vmul.f32 %v1443_v33, %v557_v4 }
 0x17a   : > { %v1570_v56 = vadd.f32 %v712_v0, %v656_v62  ;;  %v871_v12 = vrot.slane %v834_v2, 2  ;;  %v922_v14 = vmul.f32 %v1443_v33, %v558_v17  ;;  %v994_v16 = vmul.f32 %v1468_v51, %v557_v4 }
 0x17b   : > { %v799_v19 = vsel %vm617_vm11, %v797_v53, %v798_v6  ;;  %v957_v21 = vrot.slane %v921_v11, 1  ;;  %v995_v22 = vmul.f32 %v1468_v51, %v558_v17  ;;  %v599_v24 = vmul.f32 %v1422_v10, %v1564_v3  ;;  %v550_v53 = vld [vmem:[#allocation2 + $0x28] sm:$0x3] }
 0x17c   : > { %v819_v25 = vadd.f32 %v799_v19, %v746_v58  ;;  %v872_v26 = vsel %vm691_vm12, %v870_v7, %v871_v12  ;;  %v958_v27 = vrot.slane %v922_v14, 1  ;;  %v1030_v30 = vrot.slane %v994_v16, 2  ;;  %v549_v58 = vld [vmem:[#allocation2 + $0x20] sm:$0xff] }
 0x17d   : > { %v1031_v36 = vrot.slane %v995_v22, 2  ;;  %v600_v32 = vmul.f32 %v1422_v10, %v560_v18  ;;  %v639_v35 = vrot.slane %v599_v24, 1  ;;  %v1581_v4 = vmul.f32 %v1426_v15, %v560_v18 }
 0x17e   : > { %v892_v42 = vadd.f32 %v872_v26, %v819_v25  ;;  %v1584_v44 = vsel %vm617_vm11, %v957_v21, %v958_v27  ;;  %v762_v17 = vmul.f32 %v1436_v28, %v1564_v3  ;;  %v763_v45 = vmul.f32 %v1436_v28, %v560_v18 }
 0x17f   : > { %v1590_v48 = vsel %vm691_vm12, %v1030_v30, %v1031_v36  ;;  %v640_v49 = vrot.slane %v600_v32, 1  ;;  %v714_v34 = vrot.slane %v1581_v4, 2  ;;  %v1594_v52 = vmul.f32 %v1438_v29, %v560_v18 }
 0x180   : > { %v800_v47 = vrot.slane %v762_v17, 1  ;;  %v801_v37 = vrot.slane %v763_v45, 1  ;;  %v901_v55 = vmul.f32 %v1449_v41, %v1564_v3  ;;  %v923_v57 = vmul.f32 %v1443_v33, %v1564_v3 }
 0x181   : > { %v1602_v60 = vsel %vm617_vm11, %v639_v35, %v640_v49  ;;  %v874_v61 = vrot.slane %v1594_v52, 2  ;;  %v924_v62 = vmul.f32 %v1443_v33, %v560_v18  ;;  %v996_v0 = vmul.f32 %v1468_v51, %v1564_v3 }
 0x182   : > { %v1609_v2 = vsel %vm617_vm11, %v800_v47, %v801_v37  ;;  %v909_v6 = vadd.f32 %v901_v55, %v892_v42  ;;  %v960_v7 = vrot.slane %v923_v57, 1  ;;  %v997_v11 = vmul.f32 %v1468_v51, %v560_v18 }
 0x183   : > { %v961_v12 = vrot.slane %v924_v62, 1  ;;  %v1033_v14 = vrot.slane %v996_v0, 2  ;;  %v570_v16 = vmul.f32 %v1430_v20, %v549_v58  ;;  %v589_v19 = vmul.f32 %v1422_v10, %v549_v58 }
 0x184   : > { %v1034_v21 = vrot.slane %v997_v11, 2  ;;  %v590_v22 = vmul.f32 %v1422_v10, %v550_v53  ;;  %v663_v24 = vmul.f32 %v1426_v15, %v549_v58  ;;  %v664_v25 = vmul.f32 %v1426_v15, %v550_v53 }
 0x185   : > { %v962_v26 = vsel %vm617_vm11, %v960_v7, %v961_v12  ;;  %v624_v27 = vrot.slane %v589_v19, 1  ;;  %v734_v30 = vmul.f32 %v1447_v39, %v549_v58  ;;  %v735_v18 = vmul.f32 %v1447_v39, %v1441_v31 }
 0x186   : > { %v982_v36 = vadd.f32 %v962_v26, %v909_v6  ;;  %v1035_v32 = vsel %vm691_vm12, %v1033_v14, %v1034_v21  ;;  %v625_v35 = vrot.slane %v590_v22, 1  ;;  %v698_v42 = vrot.slane %v663_v24, 2  ;;  %v553_v24 = vld [vmem:[#allocation2 + $0x40] sm:$0xff] }
 0x187   : > { %v699_v17 = vrot.slane %v664_v25, 2  ;;  %v742_v45 = vadd.f32 %v734_v30, %v1550_v43  ;;  %v752_v46 = vmul.f32 %v1436_v28, %v549_v58  ;;  %v753_v49 = vmul.f32 %v1436_v28, %v550_v53 }
 0x188   : > { %v1055_v47 = vadd.f32 %v1035_v32, %v982_v36  ;;  %v626_v37 = vsel %vm617_vm11, %v624_v27, %v625_v35  ;;  %v825_v55 = vmul.f32 %v1438_v29, %v549_v58  ;;  %v826_v57 = vmul.f32 %v1438_v29, %v550_v53  ;;  %v554_v36 = vld [vmem:[#allocation2 + $0x48] sm:$0x3] }
 0x189   : > { %v652_v62 = vadd.f32 %v626_v37, %v570_v16  ;;  %v700_v43 = vsel %vm691_vm12, %v698_v42, %v699_v17  ;;  %v785_v0 = vrot.slane %v752_v46, 1  ;;  %v786_v6 = vrot.slane %v753_v49, 1 }
 0x18a   : > { %1063 = vst.msk [vmem:[%s1632_s23 + $0x28] sm:$0xff] %vm514_vm9, %v1055_v47  ;;  %v858_v7 = vrot.slane %v825_v55, 2  ;;  %v859_v11 = vrot.slane %v826_v57, 2  ;;  %v896_v12 = vmul.f32 %v1449_v41, %v549_v58  ;;  %v897_v14 = vmul.f32 %v1449_v41, %v1441_v31 }
 0x18b   : > { %v726_v19 = vadd.f32 %v700_v43, %v652_v62  ;;  %v787_v21 = vsel %vm617_vm11, %v785_v0, %v786_v6  ;;  %v913_v22 = vmul.f32 %v1443_v33, %v549_v58  ;;  %v914_v16 = vmul.f32 %v1443_v33, %v550_v53 }
 0x18c   : > { %v815_v25 = vadd.f32 %v787_v21, %v742_v45  ;;  %v860_v26 = vsel %vm691_vm12, %v858_v7, %v859_v11  ;;  %v904_v27 = vadd.f32 %v896_v12, %v1556_v54  ;;  %v986_v30 = vmul.f32 %v1468_v51, %v549_v58 }
 0x18d   : > { %v743_v32 = vadd.f32 %v735_v18, %v726_v19  ;;  %v945_v35 = vrot.slane %v913_v22, 1  ;;  %v946_v42 = vrot.slane %v914_v16, 1  ;;  %v987_v31 = vmul.f32 %v1468_v51, %v550_v53 }
 0x18e   : > { %v888_v17 = vadd.f32 %v860_v26, %v815_v25  ;;  %v1018_v46 = vrot.slane %v986_v30, 2  ;;  %v572_v49 = vmul.f32 %v1430_v20, %v553_v24  ;;  %v593_v47 = vmul.f32 %v1422_v10, %v553_v24 }
 0x18f   : > { %v816_v45 = vadd.f32 %v1477_v63, %v743_v32  ;;  %v947_v37 = vsel %vm617_vm11, %v945_v35, %v946_v42  ;;  %v1019_v55 = vrot.slane %v987_v31, 2  ;;  %v594_v54 = vmul.f32 %v1422_v10, %v554_v36 }
 0x190   : > { %v905_v58 = vadd.f32 %v897_v14, %v888_v17  ;;  %v977_v57 = vadd.f32 %v947_v37, %v904_v27  ;;  %v630_v18 = vrot.slane %v593_v47, 1  ;;  %v667_v62 = vmul.f32 %v1426_v15, %v553_v24 }
 0x191   : > { %v1020_v53 = vsel %vm691_vm12, %v1018_v46, %v1019_v55  ;;  %v631_v43 = vrot.slane %v594_v54, 1  ;;  %v668_v0 = vmul.f32 %v1426_v15, %v554_v36  ;;  %v736_v6 = vmul.f32 %v1447_v39, %v553_v24 }
 0x192   : > { %v978_v63 = vadd.f32 %v1496_v13, %v905_v58  ;;  %v1050_v7 = vadd.f32 %v1020_v53, %v977_v57  ;;  %v704_v11 = vrot.slane %v667_v62, 2  ;;  %v737_v10 = vmul.f32 %v1447_v39, %v1481_v1  ;;  %v561_v53 = vld [vmem:[#allocation2 + $0x80] sm:$0xff] }
 0x193   : > { %v632_v12 = vsel %vm617_vm11, %v630_v18, %v631_v43  ;;  %v705_v14 = vrot.slane %v668_v0, 2  ;;  %v744_v19 = vadd.f32 %v736_v6, %v1488_v8  ;;  %v756_v21 = vmul.f32 %v1436_v28, %v553_v24 }
 0x194   : > { %v1051_v22 = vadd.f32 %v1507_v23, %v978_v63  ;;  %1058 = vst.msk [vmem:[%s1632_s23] sm:$0xff] %vm514_vm9, %v1050_v7  ;;  %v654_v16 = vadd.f32 %v632_v12, %v572_v49  ;;  %v757_v13 = vmul.f32 %v1436_v28, %v554_v36  ;;  %v829_v25 = vmul.f32 %v1438_v29, %v553_v24  ;;  %v562_v63 = vld [vmem:[#allocation2 + $0x88] sm:$0x3] }
 0x195   : > { %v706_v26 = vsel %vm691_vm12, %v704_v11, %v705_v14  ;;  %v791_v27 = vrot.slane %v756_v21, 1  ;;  %v830_v30 = vmul.f32 %v1438_v29, %v554_v36  ;;  %v889_v32 = vadd.f32 %v1484_v40, %v816_v45 }
 0x196   : > { %1059 = vst.msk [vmem:[%s1632_s23 + $0x8] sm:$0xff] %vm514_vm9, %v1051_v22  ;;  %v728_v8 = vadd.f32 %v706_v26, %v654_v16  ;;  %v792_v35 = vrot.slane %v757_v13, 1  ;;  %v864_v42 = vrot.slane %v829_v25, 2  ;;  %v898_v23 = vmul.f32 %v1449_v41, %v553_v24  ;;  %v563_v25 = vld [vmem:[#allocation2 + $0x90] sm:$0xff] }
 0x197   : > { %v865_v31 = vrot.slane %v830_v30, 2  ;;  %v899_v17 = vmul.f32 %v1449_v41, %v1481_v1  ;;  %v917_v46 = vmul.f32 %v1443_v33, %v553_v24  ;;  %v918_v49 = vmul.f32 %v1443_v33, %v554_v36 }
 0x198   : > { %v745_v47 = vadd.f32 %v737_v10, %v728_v8  ;;  %v793_v37 = vsel %vm617_vm11, %v791_v27, %v792_v35  ;;  %v906_v55 = vadd.f32 %v898_v23, %v889_v32  ;;  %v990_v40 = vmul.f32 %v1468_v51, %v553_v24 }
 0x199   : > { %v817_v45 = vadd.f32 %v793_v37, %v744_v19  ;;  %v866_v54 = vsel %vm691_vm12, %v864_v42, %v865_v31  ;;  %v951_v58 = vrot.slane %v917_v46, 1  ;;  %v952_v57 = vrot.slane %v918_v49, 1 }
 0x19a   : > { %v818_v18 = vadd.f32 %v1518_v50, %v745_v47  ;;  %v991_v62 = vmul.f32 %v1468_v51, %v554_v36  ;;  %v1024_v1 = vrot.slane %v990_v40, 2  ;;  %v575_v43 = vmul.f32 %v1430_v20, %v1564_v3 }
 0x19b   : > { %v890_v0 = vadd.f32 %v866_v54, %v817_v45  ;;  %v953_v6 = vsel %vm617_vm11, %v951_v58, %v952_v57  ;;  %v673_v24 = vmul.f32 %v1426_v15, %v1564_v3  ;;  %v739_v7 = vmul.f32 %v1447_v39, %v1564_v3 }
 0x19c   : > { %v891_v11 = vadd.f32 %v1524_v38, %v818_v18  ;;  %v979_v50 = vadd.f32 %v953_v6, %v906_v55  ;;  %v1025_v10 = vrot.slane %v991_v62, 2  ;;  %v657_v36 = vadd.f32 %v1602_v60, %v575_v43 }
 0x19d   : > { %v907_v12 = vadd.f32 %v899_v17, %v890_v0  ;;  %v713_v14 = vrot.slane %v673_v24, 2  ;;  %v740_v20 = vmul.f32 %v1447_v39, %v561_v53  ;;  %v747_v19 = vadd.f32 %v739_v7, %v1570_v56 }
 0x19e   : > { %v908_v21 = vadd.f32 %v1567_v9, %v891_v11  ;;  %v1026_v15 = vsel %vm691_vm12, %v1024_v1, %v1025_v10  ;;  %v764_v22 = vmul.f32 %v1436_v28, %v561_v53  ;;  %v765_v16 = vmul.f32 %v1436_v28, %v562_v63 }
 0x19f   : > { %v980_v38 = vadd.f32 %v1529_v59, %v907_v12  ;;  %v1052_v13 = vadd.f32 %v1026_v15, %v979_v50  ;;  %v715_v60 = vsel %vm691_vm12, %v713_v14, %v714_v34  ;;  %v820_v39 = vadd.f32 %v1609_v2, %v747_v19  ;;  %v564_v2 = vld [vmem:[#allocation2 + $0x98] sm:$0x3] }
 0x1a0   : > { %v981_v56 = vadd.f32 %v1584_v44, %v908_v21  ;;  %v731_v9 = vadd.f32 %v715_v60, %v657_v36  ;;  %v803_v26 = vrot.slane %v764_v22, 1  ;;  %v804_v27 = vrot.slane %v765_v16, 1 }
 0x1a1   : > { %v1053_v30 = vadd.f32 %v1536_v5, %v980_v38  ;;  %1060 = vst.msk [vmem:[%s1632_s23 + $0x10] sm:$0xff] %vm514_vm9, %v1052_v13  ;;  %v835_v28 = vmul.f32 %v1438_v29, %v1564_v3  ;;  %v837_v59 = vmul.f32 %v1438_v29, %v561_v53  ;;  %v838_v4 = vmul.f32 %v1438_v29, %v562_v63 }
 0x1a2   : > { %v1054_v34 = vadd.f32 %v1590_v48, %v981_v56  ;;  %v748_v44 = vadd.f32 %v740_v20, %v731_v9  ;;  %v805_v32 = vsel %vm617_vm11, %v803_v26, %v804_v27  ;;  %v902_v8 = vmul.f32 %v1449_v41, %v561_v53 }
 0x1a3   : > { %1061 = vst.msk [vmem:[%s1632_s23 + $0x18] sm:$0xff] %vm514_vm9, %v1053_v30  ;;  %v873_v5 = vrot.slane %v835_v28, 2  ;;  %v876_v35 = vrot.slane %v837_v59, 2  ;;  %v877_v42 = vrot.slane %v838_v4, 2  ;;  %v903_v23 = vmul.f32 %v1449_v41, %v563_v25 }
 0x1a4   : > { %1062 = vst.msk [vmem:[%s1632_s23 + $0x20] sm:$0xff] %vm514_vm9, %v1054_v34  ;;  %v821_v3 = vadd.f32 %v805_v32, %v748_v44  ;;  %v925_v29 = vmul.f32 %v1443_v33, %v561_v53  ;;  %v926_v48 = vmul.f32 %v1443_v33, %v562_v63  ;;  %v927_v31 = vmul.f32 %v1443_v33, %v563_v25 }
 0x1a5   : > { %v875_v17 = vsel %vm691_vm12, %v873_v5, %v874_v61  ;;  %v878_v46 = vsel %vm691_vm12, %v876_v35, %v877_v42  ;;  %v928_v49 = vmul.f32 %v1443_v33, %v564_v2  ;;  %v998_v47 = vmul.f32 %v1468_v51, %v561_v53 }
 0x1a6   : > { %v893_v41 = vadd.f32 %v875_v17, %v820_v39  ;;  %v894_v37 = vadd.f32 %v878_v46, %v821_v3  ;;  %v963_v55 = vrot.slane %v925_v29, 1  ;;  %v964_v40 = vrot.slane %v926_v48, 1 }
 0x1a7   : > { %v966_v45 = vrot.slane %v927_v31, 1  ;;  %v967_v54 = vrot.slane %v928_v49, 1  ;;  %v999_v58 = vmul.f32 %v1468_v51, %v562_v63  ;;  %v1000_v57 = vmul.f32 %v1468_v51, %v563_v25 }
 0x1a8   : > { %v910_v52 = vadd.f32 %v902_v8, %v893_v41  ;;  %v911_v61 = vadd.f32 %v903_v23, %v894_v37  ;;  %v965_v18 = vsel %vm617_vm11, %v963_v55, %v964_v40  ;;  %v1001_v33 = vmul.f32 %v1468_v51, %v564_v2 }
 0x1a9   : > { %v968_v62 = vsel %vm617_vm11, %v966_v45, %v967_v54  ;;  %v1036_v1 = vrot.slane %v998_v47, 2  ;;  %v1037_v53 = vrot.slane %v999_v58, 2  ;;  %v1039_v43 = vrot.slane %v1000_v57, 2 }
 0x1aa   : > { %v983_v0 = vadd.f32 %v965_v18, %v910_v52  ;;  %v984_v6 = vadd.f32 %v968_v62, %v911_v61  ;;  %v1040_v24 = vrot.slane %v1001_v33, 2 }
 0x1ab   : > { %v1038_v63 = vsel %vm691_vm12, %v1036_v1, %v1037_v53 }
 0x1ac   : > { %v1041_v7 = vsel %vm691_vm12, %v1039_v43, %v1040_v24  ;;  %v1056_v11 = vadd.f32 %v1038_v63, %v983_v0 }
 0x1ad   : > { %v1057_v50 = vadd.f32 %v1041_v7, %v984_v6 }
 0x1ae   : > { %1064 = vst.msk [vmem:[%s1632_s23 + $0x30] sm:$0xff] %vm514_vm9, %v1056_v11 }
 0x1af   : > { %1065 = vst.msk [vmem:[%s1632_s23 + $0x38] sm:$0xff] %vm514_vm9, %v1057_v50 }
 0x1b0 PF: > { %s14_s15 = sadd.s32 1, %s1205_s15  }
 0x1b1   : > { %p11_p4 = scmp.ge.s32.totalorder %s14_s15, 4  }
 0x1b3   :  { %13 = sbr.rel (!%p11_p4) target bundleno = 1 (0x1), region = 70 }

// kernel: _lambda_.4
= control target key start
LH: loop header
LB: loop body
LE: loop exit
PB: predicated region body
PF: predicated region fallthrough
CT: control target
= control target key end

     0   :  { %s2583_s12 = smov 0   ;;  %s4068_s0 = inlined_call_operand.vmem [shape: f32[2,16,2,16,64], index: 0, kind: input, shape index: {}]   ;;  %s4069_s1 = inlined_call_operand.vmem [shape: f32[512,32], index: 1, kind: input, shape index: {}]   ;;  %s4070_s2 = inlined_call_operand.vmem [shape: f32[1,32], index: 2, kind: input, shape index: {}]   ;;  %s4071_s3 = inlined_call_operand.vmem [shape: f32[2,16,16,32], index: 3, kind: output, shape index: {}]  }
   0x1 LB: > { %s2338_s13 = sadd.s32 4294967295, %s2557_s12   ;;  %p2342_p0 = scmp.ge.s32.totalorder %s2557_s12, 1  ;;  %s2557_s12 = sphi %s2583_s12, %s13_s12  }
   0x2   : > { %p137_p1 = scmp.lt.s32.totalorder %s2557_s12, 3 }
   0x4   : > { %p138_p2 = pnand %p2342_p0, %p137_p1 }
   0x5   : > { %p161_p3 = scmp.lt.s32.totalorder (!%p138_p2), %s2338_s13, 1  ;;  %s2559_s18 = smov (!%p138_p2), 32  }
   0x6   : > { %141 = sbr.rel (%p138_p2) target bundleno = 1018 (0x3fa), region = 32  ;;  %s2561_s19 = smov (!%p138_p2), 96  }
   0x7   : > { %s2562_s20 = smov (!%p138_p2), 64  }
   0xb   : > { %s4073_s13 = smov (!%p161_p3, %s2338_s13), 1  ;;  %vm235_vm0 = vcmask 523264   ;;  %v2560_v24 = vmov 0.0   ;;  %vm468_vm1 = vcmask 523520   ;;  %vm238_vm2 = vcmask 516096  }
   0xc   : > { %s2349_s14 = sshll.u32 %s4073_s13, 9  ;;  %252 = vst.msk [vmem:[#allocation2 + $0x78] sm:$0xff] %vm235_vm0, %v2560_v24  ;;  %vm597_vm3 = vcmask 261120   ;;  %vm1069_vm4 = vcmask 1046528   ;;  %vm1530_vm5 = vcmask 785408   ;;  %s2350_s25 = sshll.u32 %s4073_s13, 8 }
   0xd   : > { %s2597_s17 = scalar_lea.vmem %s4068_s0, %s2349_s14  ;;  %236 = vst.msk [vmem:[#allocation2] sm:$0xff] %vm235_vm0, %v2560_v24  ;;  %s3576_s28 = scalar_lea.vmem %s4071_s3, %s2350_s25 }
   0xe   : > { %v2600_v0 = vld [vmem:[%s2597_s17 + $0x40] sm:$0xff]  ;;  %v2615_v3 = vld [vmem:[%s2597_s17 + $0x48] sm:$0xff]  ;;  %237 = vst.msk [vmem:[#allocation2 + $0x8] sm:$0xff] %vm235_vm0, %v2560_v24  ;;  %v173_v34 = vld [vmem:[%s2597_s17 + $0x10] sm:$0xff] }
   0xf   : > { %v2603_v1 = vld [vmem:[%s2597_s17 + $0x20] sm:$0xff]  ;;  %379 = vrot.lane.b32.xlu2 %v2600_v0, %s2559_s18  ;;  %v2618_v4 = vld [vmem:[%s2597_s17 + $0x28] sm:$0xff]  ;;  %240 = vst.msk [vmem:[#allocation2 + $0x18] sm:$0xff] %vm235_vm0, %v2560_v24  ;;  %v174_v35 = vld [vmem:[%s2597_s17 + $0x18] sm:$0xff] }
  0x10   : > { %v2606_v2 = vld [vmem:[%s2597_s17] sm:$0xff]  ;;  %375 = vrot.lane.b32.xlu1 %v2603_v1, %s2559_s18  ;;  %v2621_v5 = vld [vmem:[%s2597_s17 + $0x8] sm:$0xff]  ;;  %241 = vst.msk [vmem:[#allocation2 + $0x20] sm:$0xff] %vm235_vm0, %v2560_v24  ;;  %v178_v38 = vld [vmem:[%s2597_s17 + $0x38] sm:$0xff] }
  0x11   : > { %371 = vrot.lane.b32.xlu0 %v2606_v2, %s2559_s18  ;;  %v2630_v6 = vld [vmem:[%s2597_s17 + $0x80] sm:$0xff]  ;;  %v2633_v7 = vld [vmem:[%s2597_s17 + $0x68] sm:$0xff]  ;;  %243 = vst.msk [vmem:[#allocation2 + $0x30] sm:$0xff] %vm235_vm0, %v2560_v24  ;;  %v177_v39 = vld [vmem:[%s2597_s17 + $0x30] sm:$0xff] }
  0x12   : > { %v2636_v8 = vld [vmem:[%s2597_s17 + $0x60] sm:$0xff]  ;;  %v2645_v9 = vld [vmem:[%s2597_s17 + $0xa8] sm:$0xff]  ;;  %244 = vst.msk [vmem:[#allocation2 + $0x38] sm:$0xff] %vm235_vm0, %v2560_v24  ;;  %v181_v43 = vld [vmem:[%s2597_s17 + $0x50] sm:$0xff] }
  0x13   : > { %v2648_v10 = vld [vmem:[%s2597_s17 + $0xa0] sm:$0xff]  ;;  %v2651_v11 = vld [vmem:[%s2597_s17 + $0x88] sm:$0xff]  ;;  %246 = vst.msk [vmem:[#allocation2 + $0x48] sm:$0xff] %vm235_vm0, %v2560_v24  ;;  %v182_v47 = vld [vmem:[%s2597_s17 + $0x58] sm:$0xff] }
  0x14   : > { %v2660_v12 = vld [vmem:[%s2597_s17 + $0xe0] sm:$0xff]  ;;  %v2663_v13 = vld [vmem:[%s2597_s17 + $0xc8] sm:$0xff]  ;;  %247 = vst.msk [vmem:[#allocation2 + $0x50] sm:$0xff] %vm235_vm0, %v2560_v24  ;;  %v185_v51 = vld [vmem:[%s2597_s17 + $0x70] sm:$0xff] }
  0x15   : > { %v2666_v14 = vld [vmem:[%s2597_s17 + $0xc0] sm:$0xff]  ;;  %v204_v15 = vld [vmem:[%s2597_s17 + $0x108] sm:$0xff]  ;;  %249 = vst.msk [vmem:[#allocation2 + $0x60] sm:$0xff] %vm235_vm0, %v2560_v24  ;;  %v186_v55 = vld [vmem:[%s2597_s17 + $0x78] sm:$0xff] }
  0x16   : > { %v203_v16 = vld [vmem:[%s2597_s17 + $0x100] sm:$0xff]  ;;  %v2677_v17 = vld [vmem:[%s2597_s17 + $0xe8] sm:$0xff]  ;;  %250 = vst.msk [vmem:[#allocation2 + $0x68] sm:$0xff] %vm235_vm0, %v2560_v24 }
  0x17   : > { %381 = vrot.lane.b32.xlu2 %v2615_v3, %s2559_s18  ;;  %v211_v18 = vld [vmem:[%s2597_s17 + $0x140] sm:$0xff]  ;;  %v208_v19 = vld [vmem:[%s2597_s17 + $0x128] sm:$0xff]  ;;  %253 = vst.msk [vmem:[#allocation2 + $0x80] sm:$0xff] %vm235_vm0, %v2560_v24 }
  0x18   : > { %377 = vrot.lane.b32.xlu1 %v2618_v4, %s2559_s18  ;;  %v207_v20 = vld [vmem:[%s2597_s17 + $0x120] sm:$0xff]  ;;  %v216_v21 = vld [vmem:[%s2597_s17 + $0x168] sm:$0xff]  ;;  %255 = vst.msk [vmem:[#allocation2 + $0x90] sm:$0xff] %vm235_vm0, %v2560_v24 }
  0x19   : > { %373 = vrot.lane.b32.xlu0 %v2621_v5, %s2559_s18  ;;  %v215_v22 = vld [vmem:[%s2597_s17 + $0x160] sm:$0xff]  ;;  %v212_v23 = vld [vmem:[%s2597_s17 + $0x148] sm:$0xff]  ;;  %256 = vst.msk [vmem:[#allocation2 + $0x98] sm:$0xff] %vm235_vm0, %v2560_v24 }
  0x1a   : > { %v223_v25 = vld [vmem:[%s2597_s17 + $0x1a0] sm:$0xff]  ;;  %v220_v26 = vld [vmem:[%s2597_s17 + $0x188] sm:$0xff]  ;;  %258 = vst.msk [vmem:[#allocation2 + $0xa8] sm:$0xff] %vm235_vm0, %v2560_v24 }
  0x1b   : > { %v219_v27 = vld [vmem:[%s2597_s17 + $0x180] sm:$0xff]  ;;  %v228_v28 = vld [vmem:[%s2597_s17 + $0x1c8] sm:$0xff]  ;;  %259 = vst.msk [vmem:[#allocation2 + $0xb0] sm:$0xff] %vm235_vm0, %v2560_v24 }
  0x1c   : > { %v227_v29 = vld [vmem:[%s2597_s17 + $0x1c0] sm:$0xff]  ;;  %v224_v30 = vld [vmem:[%s2597_s17 + $0x1a8] sm:$0xff]  ;;  %261 = vst.msk [vmem:[#allocation2 + $0xc0] sm:$0xff] %vm235_vm0, %v2560_v24 }
  0x1d   : > { %262 = vst.msk [vmem:[#allocation2 + $0xc8] sm:$0xff] %vm235_vm0, %v2560_v24  ;;  %v232_v31 = vld [vmem:[%s2597_s17 + $0x1e8] sm:$0xff]  ;;  %v231_v32 = vld [vmem:[%s2597_s17 + $0x1e0] sm:$0xff] }
  0x1e   : > { %264 = vst.msk [vmem:[#allocation2 + $0xd8] sm:$0xff] %vm235_vm0, %v2560_v24 }
  0x1f   : > { %387 = vrot.lane.b32.xlu2 %v2630_v6, %s2559_s18  ;;  %265 = vst.msk [vmem:[#allocation2 + $0xe0] sm:$0xff] %vm235_vm0, %v2560_v24 }
  0x20   : > { %385 = vrot.lane.b32.xlu1 %v2633_v7, %s2559_s18  ;;  %267 = vst.msk [vmem:[#allocation2 + $0xf0] sm:$0xff] %vm235_vm0, %v2560_v24 }
  0x21   : > { %383 = vrot.lane.b32.xlu0 %v2636_v8, %s2559_s18  ;;  %268 = vst.msk [vmem:[#allocation2 + $0xf8] sm:$0xff] %vm235_vm0, %v2560_v24 }
  0x22   : > { %270 = vst.msk [vmem:[#allocation2 + $0x108] sm:$0xff] %vm235_vm0, %v2560_v24 }
  0x23   : > { %271 = vst.msk [vmem:[#allocation2 + $0x110] sm:$0xff] %vm235_vm0, %v2560_v24 }
  0x24   : > { %273 = vst.msk [vmem:[#allocation2 + $0x120] sm:$0xff] %vm235_vm0, %v2560_v24 }
  0x25   : > { %274 = vst.msk [vmem:[#allocation2 + $0x128] sm:$0xff] %vm235_vm0, %v2560_v24 }
  0x26   : > { %276 = vst.msk [vmem:[#allocation2 + $0x138] sm:$0xff] %vm235_vm0, %v2560_v24 }
  0x27   : > { %393 = vrot.lane.b32.xlu2 %v2645_v9, %s2559_s18  ;;  %277 = vst.msk [vmem:[#allocation2 + $0x140] sm:$0xff] %vm235_vm0, %v2560_v24 }
  0x28   : > { %391 = vrot.lane.b32.xlu1 %v2648_v10, %s2559_s18  ;;  %279 = vst.msk [vmem:[#allocation2 + $0x150] sm:$0xff] %vm235_vm0, %v2560_v24 }
  0x29   : > { %389 = vrot.lane.b32.xlu0 %v2651_v11, %s2559_s18  ;;  %280 = vst.msk [vmem:[#allocation2 + $0x158] sm:$0xff] %vm235_vm0, %v2560_v24 }
  0x2a   : > { %282 = vst.msk [vmem:[#allocation2 + $0x168] sm:$0xff] %vm235_vm0, %v2560_v24 }
  0x2b   : > { %283 = vst.msk [vmem:[#allocation2 + $0x170] sm:$0xff] %vm235_vm0, %v2560_v24 }
  0x2c   : > { %285 = vst.msk [vmem:[#allocation2 + $0x180] sm:$0xff] %vm235_vm0, %v2560_v24 }
  0x2d   : > { %286 = vst.msk [vmem:[#allocation2 + $0x188] sm:$0xff] %vm235_vm0, %v2560_v24 }
  0x2e   : > { %288 = vst.msk [vmem:[#allocation2 + $0x198] sm:$0xff] %vm235_vm0, %v2560_v24 }
  0x2f   : > { %399 = vrot.lane.b32.xlu2 %v2660_v12, %s2559_s18  ;;  %289 = vst.msk [vmem:[#allocation2 + $0x1a0] sm:$0xff] %vm235_vm0, %v2560_v24 }
  0x30   : > { %397 = vrot.lane.b32.xlu1 %v2663_v13, %s2559_s18  ;;  %291 = vst.msk [vmem:[#allocation2 + $0x1b0] sm:$0xff] %vm235_vm0, %v2560_v24 }
  0x31   : > { %395 = vrot.lane.b32.xlu0 %v2666_v14, %s2559_s18  ;;  %292 = vst.msk [vmem:[#allocation2 + $0x1b8] sm:$0xff] %vm235_vm0, %v2560_v24 }
  0x32   : > { %294 = vst.msk [vmem:[#allocation2 + $0x1c8] sm:$0xff] %vm235_vm0, %v2560_v24 }
  0x33   : > { %295 = vst.msk [vmem:[#allocation2 + $0x1d0] sm:$0xff] %vm235_vm0, %v2560_v24 }
  0x34   : > { %297 = vst.msk [vmem:[#allocation2 + $0x1e0] sm:$0xff] %vm235_vm0, %v2560_v24 }
  0x35   : > { %298 = vst.msk [vmem:[#allocation2 + $0x1e8] sm:$0xff] %vm235_vm0, %v2560_v24 }
  0x36   : > { %300 = vst.msk [vmem:[#allocation2 + $0x1f8] sm:$0xff] %vm235_vm0, %v2560_v24 }
  0x37   : > { %405 = vrot.lane.b32.xlu2 %v204_v15, %s2559_s18  ;;  %301 = vst.msk [vmem:[#allocation2 + $0x200] sm:$0xff] %vm235_vm0, %v2560_v24 }
  0x38   : > { %403 = vrot.lane.b32.xlu1 %v203_v16, %s2559_s18  ;;  %303 = vst.msk [vmem:[#allocation2 + $0x210] sm:$0xff] %vm235_vm0, %v2560_v24 }
  0x39   : > { %401 = vrot.lane.b32.xlu0 %v2677_v17, %s2559_s18  ;;  %304 = vst.msk [vmem:[#allocation2 + $0x218] sm:$0xff] %vm235_vm0, %v2560_v24 }
  0x3a   : > { %306 = vst.msk [vmem:[#allocation2 + $0x228] sm:$0xff] %vm235_vm0, %v2560_v24 }
  0x3b   : > { %307 = vst.msk [vmem:[#allocation2 + $0x230] sm:$0xff] %vm235_vm0, %v2560_v24 }
  0x3c   : > { %309 = vst.msk [vmem:[#allocation2 + $0x240] sm:$0xff] %vm235_vm0, %v2560_v24 }
  0x3d   : > { %310 = vst.msk [vmem:[#allocation2 + $0x248] sm:$0xff] %vm235_vm0, %v2560_v24 }
  0x3e   : > { %312 = vst.msk [vmem:[#allocation2 + $0x258] sm:$0xff] %vm235_vm0, %v2560_v24 }
  0x3f   : > { %411 = vrot.lane.b32.xlu2 %v211_v18, %s2559_s18  ;;  %313 = vst.msk [vmem:[#allocation2 + $0x260] sm:$0xff] %vm235_vm0, %v2560_v24 }
  0x40   : > { %409 = vrot.lane.b32.xlu1 %v208_v19, %s2559_s18  ;;  %315 = vst.msk [vmem:[#allocation2 + $0x270] sm:$0xff] %vm235_vm0, %v2560_v24 }
  0x41   : > { %407 = vrot.lane.b32.xlu0 %v207_v20, %s2559_s18  ;;  %316 = vst.msk [vmem:[#allocation2 + $0x278] sm:$0xff] %vm235_vm0, %v2560_v24 }
  0x42   : > { %318 = vst.msk [vmem:[#allocation2 + $0x288] sm:$0xff] %vm235_vm0, %v2560_v24 }
  0x43   : > { %319 = vst.msk [vmem:[#allocation2 + $0x290] sm:$0xff] %vm235_vm0, %v2560_v24 }
  0x44   : > { %321 = vst.msk [vmem:[#allocation2 + $0x2a0] sm:$0xff] %vm235_vm0, %v2560_v24 }
  0x45   : > { %322 = vst.msk [vmem:[#allocation2 + $0x2a8] sm:$0xff] %vm235_vm0, %v2560_v24 }
  0x46   : > { %324 = vst.msk [vmem:[#allocation2 + $0x2b8] sm:$0xff] %vm235_vm0, %v2560_v24 }
  0x47   : > { %417 = vrot.lane.b32.xlu2 %v216_v21, %s2559_s18  ;;  %325 = vst.msk [vmem:[#allocation2 + $0x2c0] sm:$0xff] %vm235_vm0, %v2560_v24 }
  0x48   : > { %415 = vrot.lane.b32.xlu1 %v215_v22, %s2559_s18  ;;  %327 = vst.msk [vmem:[#allocation2 + $0x2d0] sm:$0xff] %vm235_vm0, %v2560_v24 }
  0x49   : > { %413 = vrot.lane.b32.xlu0 %v212_v23, %s2559_s18  ;;  %328 = vst.msk [vmem:[#allocation2 + $0x2d8] sm:$0xff] %vm235_vm0, %v2560_v24 }
  0x4a   : > { %330 = vst.msk [vmem:[#allocation2 + $0x2e8] sm:$0xff] %vm235_vm0, %v2560_v24 }
  0x4b   : > { %331 = vst.msk [vmem:[#allocation2 + $0x2f0] sm:$0xff] %vm235_vm0, %v2560_v24 }
  0x4c   : > { %333 = vst.msk [vmem:[#allocation2 + $0x300] sm:$0xff] %vm235_vm0, %v2560_v24 }
  0x4d   : > { %334 = vst.msk [vmem:[#allocation2 + $0x308] sm:$0xff] %vm235_vm0, %v2560_v24 }
  0x4e   : > { %336 = vst.msk [vmem:[#allocation2 + $0x318] sm:$0xff] %vm235_vm0, %v2560_v24 }
  0x4f   : > { %423 = vrot.lane.b32.xlu2 %v223_v25, %s2559_s18  ;;  %337 = vst.msk [vmem:[#allocation2 + $0x320] sm:$0xff] %vm235_vm0, %v2560_v24 }
  0x50   : > { %421 = vrot.lane.b32.xlu1 %v220_v26, %s2559_s18  ;;  %248 = vst.msk [vmem:[#allocation2 + $0x58] sm:$0x1] %vm238_vm2, %v2560_v24 }
  0x51   : > { %419 = vrot.lane.b32.xlu0 %v219_v27, %s2559_s18  ;;  %239 = vst.msk [vmem:[#allocation2 + $0x10] sm:$0x1] %vm238_vm2, %v2560_v24 }
  0x52   : > { %242 = vst.msk [vmem:[#allocation2 + $0x28] sm:$0x1] %vm238_vm2, %v2560_v24 }
  0x53   : > { %245 = vst.msk [vmem:[#allocation2 + $0x40] sm:$0x1] %vm238_vm2, %v2560_v24 }
  0x54   : > { %251 = vst.msk [vmem:[#allocation2 + $0x70] sm:$0x1] %vm238_vm2, %v2560_v24 }
  0x55   : > { %254 = vst.msk [vmem:[#allocation2 + $0x88] sm:$0x1] %vm238_vm2, %v2560_v24 }
  0x56   : > { %257 = vst.msk [vmem:[#allocation2 + $0xa0] sm:$0x1] %vm238_vm2, %v2560_v24 }
  0x57   : > { %429 = vrot.lane.b32.xlu2 %v228_v28, %s2559_s18  ;;  %260 = vst.msk [vmem:[#allocation2 + $0xb8] sm:$0x1] %vm238_vm2, %v2560_v24 }
  0x58   : > { %427 = vrot.lane.b32.xlu1 %v227_v29, %s2559_s18  ;;  %263 = vst.msk [vmem:[#allocation2 + $0xd0] sm:$0x1] %vm238_vm2, %v2560_v24 }
  0x59   : > { %425 = vrot.lane.b32.xlu0 %v224_v30, %s2559_s18  ;;  %266 = vst.msk [vmem:[#allocation2 + $0xe8] sm:$0x1] %vm238_vm2, %v2560_v24 }
  0x5a   : > { %269 = vst.msk [vmem:[#allocation2 + $0x100] sm:$0x1] %vm238_vm2, %v2560_v24 }
  0x5b   : > { %272 = vst.msk [vmem:[#allocation2 + $0x118] sm:$0x1] %vm238_vm2, %v2560_v24 }
  0x5c   : > { %275 = vst.msk [vmem:[#allocation2 + $0x130] sm:$0x1] %vm238_vm2, %v2560_v24 }
  0x5d   : > { %278 = vst.msk [vmem:[#allocation2 + $0x148] sm:$0x1] %vm238_vm2, %v2560_v24 }
  0x5e   : > { %281 = vst.msk [vmem:[#allocation2 + $0x160] sm:$0x1] %vm238_vm2, %v2560_v24 }
  0x5f   : > { %501 = vrot.lane.b32.xlu2 %v2606_v2, %s2561_s19  ;;  %284 = vst.msk [vmem:[#allocation2 + $0x178] sm:$0x1] %vm238_vm2, %v2560_v24 }
  0x60   : > { %433 = vrot.lane.b32.xlu1 %v232_v31, %s2559_s18  ;;  %287 = vst.msk [vmem:[#allocation2 + $0x190] sm:$0x1] %vm238_vm2, %v2560_v24 }
  0x61   : > { %431 = vrot.lane.b32.xlu0 %v231_v32, %s2559_s18  ;;  %290 = vst.msk [vmem:[#allocation2 + $0x1a8] sm:$0x1] %vm238_vm2, %v2560_v24 }
  0x62   : > { %293 = vst.msk [vmem:[#allocation2 + $0x1c0] sm:$0x1] %vm238_vm2, %v2560_v24 }
  0x63   : > { %296 = vst.msk [vmem:[#allocation2 + $0x1d8] sm:$0x1] %vm238_vm2, %v2560_v24 }
  0x64   : > { %299 = vst.msk [vmem:[#allocation2 + $0x1f0] sm:$0x1] %vm238_vm2, %v2560_v24 }
  0x65   : > { %302 = vst.msk [vmem:[#allocation2 + $0x208] sm:$0x1] %vm238_vm2, %v2560_v24 }
  0x66   : > { %305 = vst.msk [vmem:[#allocation2 + $0x220] sm:$0x1] %vm238_vm2, %v2560_v24 }
  0x67   : > { %507 = vrot.lane.b32.xlu2 %v2618_v4, %s2561_s19  ;;  %308 = vst.msk [vmem:[#allocation2 + $0x238] sm:$0x1] %vm238_vm2, %v2560_v24 }
  0x68   : > { %505 = vrot.lane.b32.xlu1 %v2603_v1, %s2561_s19  ;;  %311 = vst.msk [vmem:[#allocation2 + $0x250] sm:$0x1] %vm238_vm2, %v2560_v24 }
  0x69   : > { %503 = vrot.lane.b32.xlu0 %v2621_v5, %s2561_s19  ;;  %v380_v33 = vpop.permute.xlu2 %379  ;;  %314 = vst.msk [vmem:[#allocation2 + $0x268] sm:$0x1] %vm238_vm2, %v2560_v24 }
  0x6a   : > { %473 = vst.msk [vmem:[#allocation2 + $0x78] sm:$0xff] %vm468_vm1, %v380_v33 }
  0x6b   : > { %317 = vst.msk [vmem:[#allocation2 + $0x280] sm:$0x1] %vm238_vm2, %v2560_v24 }
  0x6c   : > { %320 = vst.msk [vmem:[#allocation2 + $0x298] sm:$0x1] %vm238_vm2, %v2560_v24 }
  0x6d   : > { %323 = vst.msk [vmem:[#allocation2 + $0x2b0] sm:$0x1] %vm238_vm2, %v2560_v24 }
  0x6e   : > { %326 = vst.msk [vmem:[#allocation2 + $0x2c8] sm:$0x1] %vm238_vm2, %v2560_v24 }
  0x6f   : > { %664 = vrot.lane.b32.xlu2 %v174_v35, %s2559_s18  ;;  %329 = vst.msk [vmem:[#allocation2 + $0x2e0] sm:$0x1] %vm238_vm2, %v2560_v24 }
  0x70   : > { %662 = vrot.lane.b32.xlu1 %v173_v34, %s2559_s18  ;;  %332 = vst.msk [vmem:[#allocation2 + $0x2f8] sm:$0x1] %vm238_vm2, %v2560_v24 }
  0x71   : > { %509 = vrot.lane.b32.xlu0 %v2600_v0, %s2561_s19  ;;  %v382_v36 = vpop.permute.xlu2 %381  ;;  %335 = vst.msk [vmem:[#allocation2 + $0x310] sm:$0x1] %vm238_vm2, %v2560_v24 }
  0x72   : > { %474 = vst.msk [vmem:[#allocation2 + $0x80] sm:$0xff] %vm468_vm1, %v382_v36 }
  0x73   : > { %338 = vst.msk [vmem:[#allocation2 + $0x328] sm:$0x1] %vm238_vm2, %v2560_v24 }
  0x77   : > { %511 = vrot.lane.b32.xlu2 %v2615_v3, %s2561_s19 }
  0x78   : > { %793 = vrot.lane.b32.xlu1 %v174_v35, %s2561_s19 }
  0x79   : > { %791 = vrot.lane.b32.xlu0 %v173_v34, %s2561_s19  ;;  %v388_v37 = vpop.permute.xlu2 %387 }
  0x7a   : > { %477 = vst.msk [vmem:[#allocation2 + $0xd8] sm:$0xff] %vm468_vm1, %v388_v37  ;;  %v3017_v37 = vld [vmem:[#allocation2 + $0x8] sm:$0xff] }
  0x7f   : > { %795 = vrot.lane.b32.xlu2 %v177_v39, %s2561_s19 }
  0x80   : > { %668 = vrot.lane.b32.xlu1 %v178_v38, %s2559_s18 }
  0x81   : > { %666 = vrot.lane.b32.xlu0 %v177_v39, %s2559_s18  ;;  %v394_v40 = vpop.permute.xlu2 %393  ;;  %v3019_v39 = vld [vmem:[#allocation2] sm:$0xff] }
  0x82   : > { %v376_v41 = vpop.permute.xlu1 %375  ;;  %480 = vst.msk [vmem:[#allocation2 + $0x110] sm:$0xff] %vm468_vm1, %v394_v40 }
  0x83   : > { %v372_v42 = vpop.permute.xlu0 %371  ;;  %471 = vst.msk [vmem:[#allocation2 + $0x48] sm:$0xff] %vm468_vm1, %v376_v41 }
  0x84   : > { %469 = vst.msk [vmem:[#allocation2 + $0x18] sm:$0xff] %vm468_vm1, %v372_v42  ;;  %v1071_v42 = vrot.slane %v3017_v37, 1 }
  0x87   : > { %670 = vrot.lane.b32.xlu2 %v181_v43, %s2559_s18 }
  0x88   : > { %513 = vrot.lane.b32.xlu1 %v2636_v8, %s2561_s19 }
  0x89   : > { %797 = vrot.lane.b32.xlu0 %v178_v38, %s2561_s19  ;;  %v400_v44 = vpop.permute.xlu2 %399  ;;  %v921_v38 = vld [vmem:[#allocation2 + $0x10] sm:$0x1] }
  0x8a   : > { %v378_v45 = vpop.permute.xlu1 %377  ;;  %483 = vst.msk [vmem:[#allocation2 + $0x168] sm:$0xff] %vm468_vm1, %v400_v44  ;;  %v1070_v44 = vrot.slane %v3019_v39, 1 }
  0x8b   : > { %v374_v46 = vpop.permute.xlu0 %373  ;;  %472 = vst.msk [vmem:[#allocation2 + $0x50] sm:$0xff] %vm468_vm1, %v378_v45 }
  0x8c   : > { %470 = vst.msk [vmem:[#allocation2 + $0x20] sm:$0xff] %vm468_vm1, %v374_v46 }
  0x8f   : > { %801 = vrot.lane.b32.xlu2 %v182_v47, %s2561_s19 }
  0x90   : > { %799 = vrot.lane.b32.xlu1 %v181_v43, %s2561_s19  ;;  %v1073_v43 = vrot.slane %v921_v38, 1 }
  0x91   : > { %672 = vrot.lane.b32.xlu0 %v182_v47, %s2559_s18  ;;  %v406_v48 = vpop.permute.xlu2 %405 }
  0x92   : > { %v386_v49 = vpop.permute.xlu1 %385  ;;  %486 = vst.msk [vmem:[#allocation2 + $0x1a0] sm:$0xff] %vm468_vm1, %v406_v48 }
  0x93   : > { %v384_v50 = vpop.permute.xlu0 %383  ;;  %476 = vst.msk [vmem:[#allocation2 + $0xb0] sm:$0xff] %vm468_vm1, %v386_v49 }
  0x94   : > { %475 = vst.msk [vmem:[#allocation2 + $0xa8] sm:$0xff] %vm468_vm1, %v384_v50 }
  0x97   : > { %674 = vrot.lane.b32.xlu2 %v185_v51, %s2559_s18 }
  0x98   : > { %517 = vrot.lane.b32.xlu1 %v2630_v6, %s2561_s19 }
  0x99   : > { %515 = vrot.lane.b32.xlu0 %v2633_v7, %s2561_s19  ;;  %v412_v52 = vpop.permute.xlu2 %411 }
  0x9a   : > { %v392_v53 = vpop.permute.xlu1 %391  ;;  %489 = vst.msk [vmem:[#allocation2 + $0x1f8] sm:$0xff] %vm468_vm1, %v412_v52 }
  0x9b   : > { %v390_v54 = vpop.permute.xlu0 %389  ;;  %479 = vst.msk [vmem:[#allocation2 + $0x108] sm:$0xff] %vm468_vm1, %v392_v53  ;;  %v1072_v53 = vsel %vm1069_vm4, %v1070_v44, %v1071_v42  ;;  %v1663_v44 = vld [vmem:[%s4069_s1 + $0xe0] sm:$0xff] }
  0x9c   : > { %478 = vst.msk [vmem:[#allocation2 + $0xe0] sm:$0xff] %vm468_vm1, %v390_v54 }
  0x9f   : > { %805 = vrot.lane.b32.xlu2 %v186_v55, %s2561_s19 }
  0xa0   : > { %803 = vrot.lane.b32.xlu1 %v185_v51, %s2561_s19  ;;  %v1074_v51 = vsel %vm1069_vm4, %v1071_v42, %v1073_v43  ;;  %v1696_v42 = vld [vmem:[%s4069_s1 + $0x1e8] sm:$0xff] }
  0xa1   : > { %676 = vrot.lane.b32.xlu0 %v186_v55, %s2559_s18  ;;  %v418_v56 = vpop.permute.xlu2 %417 }
  0xa2   : > { %v398_v57 = vpop.permute.xlu1 %397  ;;  %492 = vst.msk [vmem:[#allocation2 + $0x230] sm:$0xff] %vm468_vm1, %v418_v56  ;;  %v189_v56 = vld [vmem:[%s2597_s17 + $0x90] sm:$0xff] }
  0xa3   : > { %v396_v58 = vpop.permute.xlu0 %395  ;;  %482 = vst.msk [vmem:[#allocation2 + $0x140] sm:$0xff] %vm468_vm1, %v398_v57 }
  0xa4   : > { %481 = vst.msk [vmem:[#allocation2 + $0x138] sm:$0xff] %vm468_vm1, %v396_v58 }
  0xa9   : > { %519 = vrot.lane.b32.xlu0 %v2651_v11, %s2561_s19  ;;  %v424_v59 = vpop.permute.xlu2 %423 }
  0xaa   : > { %v404_v60 = vpop.permute.xlu1 %403  ;;  %495 = vst.msk [vmem:[#allocation2 + $0x288] sm:$0xff] %vm468_vm1, %v424_v59 }
  0xab   : > { %v402_v61 = vpop.permute.xlu0 %401  ;;  %485 = vst.msk [vmem:[#allocation2 + $0x198] sm:$0xff] %vm468_vm1, %v404_v60 }
  0xac   : > { %484 = vst.msk [vmem:[#allocation2 + $0x170] sm:$0xff] %vm468_vm1, %v402_v61 }
  0xb1   : > { %v430_v62 = vpop.permute.xlu2 %429 }
  0xb2   : > { %v410_v63 = vpop.permute.xlu1 %409  ;;  %498 = vst.msk [vmem:[#allocation2 + $0x2c0] sm:$0xff] %vm468_vm1, %v430_v62 }
  0xb3   : > { %v408_v0 = vpop.permute.xlu0 %407  ;;  %488 = vst.msk [vmem:[#allocation2 + $0x1d0] sm:$0xff] %vm468_vm1, %v410_v63 }
  0xb4   : > { %487 = vst.msk [vmem:[#allocation2 + $0x1c8] sm:$0xff] %vm468_vm1, %v408_v0 }
  0xb9   : > { %v502_v2 = vpop.permute.xlu2 %501 }
  0xba   : > { %v416_v1 = vpop.permute.xlu1 %415  ;;  %598 = vst.msk [vmem:[#allocation2 + $0x19] sm:$0xff] %vm597_vm3, %v502_v2 }
  0xbb   : > { %491 = vst.msk [vmem:[#allocation2 + $0x228] sm:$0xff] %vm468_vm1, %v416_v1  ;;  %v414_v3 = vpop.permute.xlu0 %413 }
  0xbc   : > { %490 = vst.msk [vmem:[#allocation2 + $0x200] sm:$0xff] %vm468_vm1, %v414_v3 }
  0xc1   : > { %v508_v5 = vpop.permute.xlu2 %507  ;;  %v3000_v24 = vld [vmem:[#allocation2 + $0x18] sm:$0xff] }
  0xc2   : > { %v422_v4 = vpop.permute.xlu1 %421  ;;  %601 = vst.msk [vmem:[#allocation2 + $0x51] sm:$0xff] %vm597_vm3, %v508_v5  ;;  %v1294_v34 = vrot.slane %v3000_v24, 1  ;;  %v190_v5 = vld [vmem:[%s2597_s17 + $0x98] sm:$0xff] }
  0xc3   : > { %494 = vst.msk [vmem:[#allocation2 + $0x260] sm:$0xff] %vm468_vm1, %v422_v4  ;;  %v420_v6 = vpop.permute.xlu0 %419 }
  0xc4   : > { %493 = vst.msk [vmem:[#allocation2 + $0x258] sm:$0xff] %vm468_vm1, %v420_v6 }
  0xc9   : > { %v665_v8 = vpop.permute.xlu2 %664  ;;  %v930_v60 = vld [vmem:[#allocation2 + $0x58] sm:$0x1] }
  0xca   : > { %v428_v7 = vpop.permute.xlu1 %427  ;;  %760 = vst.msk [vmem:[#allocation2 + $0x38] sm:$0xff] %vm468_vm1, %v665_v8  ;;  %v1302_v0 = vrot.slane %v930_v60, 1  ;;  %v1692_v60 = vld [vmem:[%s4069_s1 + $0x1c8] sm:$0xff] }
  0xcb   : > { %497 = vst.msk [vmem:[#allocation2 + $0x2b8] sm:$0xff] %vm468_vm1, %v428_v7  ;;  %v426_v11 = vpop.permute.xlu0 %425 }
  0xcc   : > { %496 = vst.msk [vmem:[#allocation2 + $0x290] sm:$0xff] %vm468_vm1, %v426_v11 }
  0xd1   : > { %v512_v18 = vpop.permute.xlu2 %511 }
  0xd2   : > { %v434_v15 = vpop.permute.xlu1 %433  ;;  %603 = vst.msk [vmem:[#allocation2 + $0x81] sm:$0xff] %vm597_vm3, %v512_v18 }
  0xd3   : > { %500 = vst.msk [vmem:[#allocation2 + $0x2f0] sm:$0xff] %vm468_vm1, %v434_v15  ;;  %v432_v16 = vpop.permute.xlu0 %431 }
  0xd4   : > { %499 = vst.msk [vmem:[#allocation2 + $0x2e8] sm:$0xff] %vm468_vm1, %v432_v16 }
  0xd9   : > { %v796_v21 = vpop.permute.xlu2 %795 }
  0xda   : > { %v506_v19 = vpop.permute.xlu1 %505 }
  0xdb   : > { %v504_v20 = vpop.permute.xlu0 %503  ;;  %600 = vst.msk [vmem:[#allocation2 + $0x49] sm:$0xff] %vm597_vm3, %v506_v19 }
  0xdc   : > { %599 = vst.msk [vmem:[#allocation2 + $0x21] sm:$0xff] %vm597_vm3, %v504_v20  ;;  %v1666_v20 = vld [vmem:[%s4069_s1 + $0xf8] sm:$0xff] }
  0xdd   : > { %1816 = vmatpush.msra.mxu1 %v1666_v20 }
  0xe1   : > { %v671_v25 = vpop.permute.xlu2 %670 }
  0xe2   : > { %v663_v22 = vpop.permute.xlu1 %662  ;;  %763 = vst.msk [vmem:[#allocation2 + $0x90] sm:$0xff] %vm468_vm1, %v671_v25  ;;  %v3002_v26 = vld [vmem:[#allocation2 + $0x48] sm:$0xff]  ;;  %v3004_v27 = vld [vmem:[#allocation2 + $0x50] sm:$0xff] }
  0xe3   : > { %v510_v23 = vpop.permute.xlu0 %509  ;;  %759 = vst.msk [vmem:[#allocation2 + $0x30] sm:$0xff] %vm468_vm1, %v663_v22  ;;  %v1299_v28 = vrot.slane %v3002_v26, 1  ;;  %v1300_v29 = vrot.slane %v3004_v27, 1  ;;  %v3008_v31 = vld [vmem:[#allocation2 + $0x20] sm:$0xff]  ;;  %v924_v59 = vld [vmem:[#allocation2 + $0x28] sm:$0x1] }
  0xe4   : > { %602 = vst.msk [vmem:[#allocation2 + $0x79] sm:$0xff] %vm597_vm3, %v510_v23  ;;  %v1295_v35 = vrot.slane %v3008_v31, 1  ;;  %v1297_v63 = vrot.slane %v924_v59, 1 }
  0xe5   : > { %v1301_v36 = vsel %vm1069_vm4, %v1299_v28, %v1300_v29  ;;  %v1303_v4 = vsel %vm1069_vm4, %v1300_v29, %v1302_v0  ;;  %v193_v0 = vld [vmem:[%s2597_s17 + $0xb0] sm:$0xff] }
  0xe6   : > { %v1296_v40 = vsel %vm1069_vm4, %v1294_v34, %v1295_v35  ;;  %v1298_v3 = vsel %vm1069_vm4, %v1295_v35, %v1297_v63  ;;  %v936_v34 = vld [vmem:[#allocation2 + $0x88] sm:$0x1]  ;;  %v1659_v63 = vld [vmem:[%s4069_s1 + $0xc0] sm:$0xff] }
  0xe7   : > { %v2368_v41 = vpack.i.bf16 %v1296_v40, %v1301_v36  ;;  %v2378_v11 = vpack.i.bf16 %v1298_v3, %v1303_v4  ;;  %v1307_v38 = vrot.slane %v936_v34, 1  ;;  %v1665_v40 = vld [vmem:[%s4069_s1 + $0xf0] sm:$0xff]  ;;  %v1691_v3 = vld [vmem:[%s4069_s1 + $0x1c0] sm:$0xff] }
  0xe8   : > { %1817 = vmatpush.msra.mxu1 %v1665_v40  ;;  %v1685_v40 = vld [vmem:[%s4069_s1 + $0x190] sm:$0xff] }
  0xe9   : > { %v3011_v33 = vpop.permute.xlu2 %801  ;;  %2369 = vrot.lane.b32.xlu2 %v2368_v41, %s2562_s20  ;;  %v1664_v41 = vld [vmem:[%s4069_s1 + $0xe8] sm:$0xff] }
  0xea   : > { %v794_v30 = vpop.permute.xlu1 %793  ;;  %1818 = vmatpush.msra.mxu1 %v1664_v41 }
  0xeb   : > { %888 = vst.msk [vmem:[#allocation2 + $0x39] sm:$0xff] %vm597_vm3, %v794_v30  ;;  %v792_v32 = vpop.permute.xlu0 %791  ;;  %v3050_v7 = vld [vmem:[#allocation2 + $0x78] sm:$0xff]  ;;  %v3052_v8 = vld [vmem:[#allocation2 + $0x80] sm:$0xff] }
  0xec   : > { %887 = vst.msk [vmem:[#allocation2 + $0x31] sm:$0xff] %vm597_vm3, %v792_v32  ;;  %v1304_v18 = vrot.slane %v3050_v7, 1  ;;  %v1305_v19 = vrot.slane %v3052_v8, 1  ;;  %1819 = vmatpush.msra.mxu1 %v1663_v44  ;;  %v1652_v44 = vld [vmem:[%s4069_s1 + $0x88] sm:$0xff] }
  0xee   : > { %v1306_v30 = vsel %vm1069_vm4, %v1304_v18, %v1305_v19 }
  0xf1   : > { %v675_v55 = vpop.permute.xlu2 %674  ;;  %678 = vrot.lane.b32.xlu2 %v189_v56, %s2559_s18 }
  0xf2   : > { %v669_v45 = vpop.permute.xlu1 %668  ;;  %v927_v46 = vld [vmem:[#allocation2 + $0x40] sm:$0x1]  ;;  %765 = vst.msk [vmem:[#allocation2 + $0xc0] sm:$0xff] %vm468_vm1, %v675_v55  ;;  %v1693_v55 = vld [vmem:[%s4069_s1 + $0x1d0] sm:$0xff] }
  0xf3   : > { %762 = vst.msk [vmem:[#allocation2 + $0x68] sm:$0xff] %vm468_vm1, %v669_v45  ;;  %v667_v47 = vpop.permute.xlu0 %666  ;;  %v3026_v48 = vld [vmem:[#allocation2 + $0x38] sm:$0xff]  ;;  %v1078_v49 = vrot.slane %v927_v46, 1  ;;  %v3028_v50 = vld [vmem:[#allocation2 + $0x30] sm:$0xff]  ;;  %v1695_v45 = vld [vmem:[%s4069_s1 + $0x1e0] sm:$0xff]  ;;  %v1308_v46 = vsel %vm1069_vm4, %v1305_v19, %v1307_v38 }
  0xf4   : > { %761 = vst.msk [vmem:[#allocation2 + $0x60] sm:$0xff] %vm468_vm1, %v667_v47  ;;  %v1076_v52 = vrot.slane %v3026_v48, 1  ;;  %v1075_v54 = vrot.slane %v3028_v50, 1  ;;  %v3102_v47 = vld [vmem:[%s2597_s17 + $0xb8] sm:$0xff]  ;;  %v1657_v19 = vld [vmem:[%s4069_s1 + $0xb0] sm:$0xff] }
  0xf5   : > { %889 = vst.msk [vmem:[#allocation2 + $0x61] sm:$0xff] %vm597_vm3, %v796_v21  ;;  %v1698_v21 = vld [vmem:[%s4069_s1 + $0x1f8] sm:$0xff] }
  0xf6   : > { %v1079_v57 = vsel %vm1069_vm4, %v1076_v52, %v1078_v49  ;;  %v1077_v58 = vsel %vm1069_vm4, %v1075_v54, %v1076_v52  ;;  %2042 = vmatpush.msra.mxu3 %v1698_v21  ;;  %v1694_v52 = vld [vmem:[%s4069_s1 + $0x1d8] sm:$0xff]  ;;  %v1661_v54 = vld [vmem:[%s4069_s1 + $0xd0] sm:$0xff]  ;;  %v1656_v21 = vld [vmem:[%s4069_s1 + $0xa8] sm:$0xff] }
  0xf7   : > { %v2373_v61 = vpack.i.bf16 %v1074_v51, %v1079_v57  ;;  %v2363_v62 = vpack.i.bf16 %v1072_v53, %v1077_v58  ;;  %v1662_v51 = vld [vmem:[%s4069_s1 + $0xd8] sm:$0xff] }
  0xf8   : > { %1820 = vmatpush.msra.mxu1 %v1662_v51  ;;  %v1683_v51 = vld [vmem:[%s4069_s1 + $0x180] sm:$0xff] }
  0xf9   : > { %2374 = vrot.lane.b32.xlu0 %v2373_v61, %s2562_s20  ;;  %2364 = vrot.lane.b32.xlu1 %v2363_v62, %s2562_s20  ;;  %v806_v57 = vpop.permute.xlu2 %805 }
  0xfa   : > { %v514_v1 = vpop.permute.xlu1 %513  ;;  %809 = vrot.lane.b32.xlu2 %v190_v5, %s2561_s19  ;;  %1821 = vmatpush.msra.mxu1 %v1661_v54 }
  0xfb   : > { %604 = vst.msk [vmem:[#allocation2 + $0xa9] sm:$0xff] %vm597_vm3, %v514_v1  ;;  %v798_v2 = vpop.permute.xlu0 %797 }
  0xfc   : > { %890 = vst.msk [vmem:[#allocation2 + $0x69] sm:$0xff] %vm597_vm3, %v798_v2  ;;  %v3048_v6 = vld [vmem:[#allocation2 + $0x60] sm:$0xff] }
  0xfd   : > { %v1080_v16 = vrot.slane %v3048_v6, 1 }
 0x101   : > { %680 = vrot.lane.b32.xlu0 %v190_v5, %s2559_s18  ;;  %2379 = vrot.lane.b32.xlu1 %v2378_v11, %s2562_s20  ;;  %v1658_v11 = vld [vmem:[%s4069_s1 + $0xb8] sm:$0xff] }
 0x102   : > { %v800_v15 = vpop.permute.xlu1 %799 }
 0x103   : > { %v673_v22 = vpop.permute.xlu0 %672  ;;  %v3066_v23 = vld [vmem:[#allocation2 + $0x68] sm:$0xff]  ;;  %v933_v28 = vld [vmem:[#allocation2 + $0x70] sm:$0x1] }
 0x104   : > { %764 = vst.msk [vmem:[#allocation2 + $0x98] sm:$0xff] %vm468_vm1, %v673_v22  ;;  %v1081_v25 = vrot.slane %v3066_v23, 1  ;;  %v1083_v35 = vrot.slane %v933_v28, 1 }
 0x105   : > { %891 = vst.msk [vmem:[#allocation2 + $0x91] sm:$0xff] %vm597_vm3, %v800_v15  ;;  %v1690_v15 = vld [vmem:[%s4069_s1 + $0x1b8] sm:$0xff] }
 0x106   : > { %v1082_v29 = vsel %vm1069_vm4, %v1080_v16, %v1081_v25  ;;  %892 = vst.msk [vmem:[#allocation2 + $0x99] sm:$0xff] %vm597_vm3, %v3011_v33  ;;  %v1697_v33 = vld [vmem:[%s4069_s1 + $0x1f0] sm:$0xff]  ;;  %v1084_v43 = vsel %vm1069_vm4, %v1081_v25, %v1083_v35  ;;  %v1688_v25 = vld [vmem:[%s4069_s1 + $0x1a8] sm:$0xff]  ;;  %v1654_v35 = vld [vmem:[%s4069_s1 + $0x98] sm:$0xff] }
 0x107   : > { %v2383_v32 = vpack.i.bf16 %v1306_v30, %v1082_v29  ;;  %2043 = vmatpush.msra.mxu3 %v1697_v33  ;;  %v2388_v49 = vpack.i.bf16 %v1308_v46, %v1084_v43  ;;  %v1655_v29 = vld [vmem:[%s4069_s1 + $0xa0] sm:$0xff]  ;;  %v3173_v30 = vld [vmem:[#allocation2 + $0xa8] sm:$0xff] }
 0x108   : > { %v1309_v38 = vrot.slane %v3173_v30, 1  ;;  %v1651_v46 = vld [vmem:[%s4069_s1 + $0x80] sm:$0xff] }
 0x109   : > { %521 = vrot.lane.b32.xlu0 %v2648_v10, %s2561_s19  ;;  %2384 = vrot.lane.b32.xlu2 %v2383_v32, %s2562_s20  ;;  %v1687_v32 = vld [vmem:[%s4069_s1 + $0x1a0] sm:$0xff] }
 0x10a   : > { %807 = vrot.lane.b32.xlu1 %v189_v56, %s2561_s19  ;;  %v518_v36 = vpop.permute.xlu1 %517  ;;  %2044 = vmatpush.msra.mxu3 %v1696_v42 }
 0x10b   : > { %606 = vst.msk [vmem:[#allocation2 + $0xd9] sm:$0xff] %vm597_vm3, %v518_v36  ;;  %v516_v10 = vpop.permute.xlu0 %515  ;;  %v1686_v36 = vld [vmem:[%s4069_s1 + $0x198] sm:$0xff] }
 0x10c   : > { %605 = vst.msk [vmem:[#allocation2 + $0xb1] sm:$0xff] %vm597_vm3, %v516_v10  ;;  %2045 = vmatpush.msra.mxu3 %v1695_v45  ;;  %v3168_v28 = vld [vmem:[#allocation2 + $0x90] sm:$0xff]  ;;  %v1684_v45 = vld [vmem:[%s4069_s1 + $0x188] sm:$0xff] }
 0x10d   : > { %v939_v58 = vld [vmem:[#allocation2 + $0xa0] sm:$0x1]  ;;  %v3129_v61 = vld [vmem:[#allocation2 + $0x98] sm:$0xff]  ;;  %v1085_v34 = vrot.slane %v3168_v28, 1  ;;  %v197_v10 = vld [vmem:[%s2597_s17 + $0xd0] sm:$0xff] }
 0x10e   : > { %2046 = vmatpush.msra.mxu3 %v1694_v52  ;;  %v1088_v1 = vrot.slane %v939_v58, 1  ;;  %v1086_v4 = vrot.slane %v3129_v61, 1  ;;  %v198_v52 = vld [vmem:[%s2597_s17 + $0xd8] sm:$0xff] }
 0x10f   : > { %v1682_v58 = vld [vmem:[%s4069_s1 + $0x178] sm:$0xff] }
 0x110   : > { %2047 = vmatpush.msra.mxu3 %v1693_v55  ;;  %v1089_v16 = vsel %vm1069_vm4, %v1086_v4, %v1088_v1  ;;  %v1087_v33 = vsel %vm1069_vm4, %v1085_v34, %v1086_v4  ;;  %1929 = vmatpush.msra.mxu2 %v1682_v58  ;;  %v1648_v1 = vld [vmem:[%s4069_s1 + $0x68] sm:$0xff]  ;;  %v1675_v34 = vld [vmem:[%s4069_s1 + $0x140] sm:$0xff] }
 0x111   : > { %2389 = vrot.lane.b32.xlu0 %v2388_v49, %s2562_s20  ;;  %684 = vrot.lane.b32.xlu2 %v3102_v47, %s2559_s18  ;;  %v1636_v58 = vld [vmem:[%s4069_s1 + $0x8] sm:$0xff] }
 0x112   : > { %523 = vrot.lane.b32.xlu1 %v2645_v9, %s2561_s19  ;;  %v804_v53 = vpop.permute.xlu1 %803  ;;  %v1660_v9 = vld [vmem:[%s4069_s1 + $0xc8] sm:$0xff]  ;;  %2048 = vmatpush.msra.mxu3 %v1692_v60  ;;  %v1681_v60 = vld [vmem:[%s4069_s1 + $0x170] sm:$0xff] }
 0x113   : > { %v677_v56 = vpop.permute.xlu0 %676  ;;  %v942_v59 = vld [vmem:[#allocation2 + $0xb8] sm:$0x1]  ;;  %v3131_v62 = vld [vmem:[#allocation2 + $0xb0] sm:$0xff]  ;;  %1822 = vmatpush.msra.mxu1 %v1660_v9  ;;  %1930 = vmatpush.msra.mxu2 %v1681_v60 }
 0x114   : > { %766 = vst.msk [vmem:[#allocation2 + $0xc8] sm:$0xff] %vm468_vm1, %v677_v56  ;;  %v1312_v2 = vrot.slane %v942_v59, 1  ;;  %v1310_v5 = vrot.slane %v3131_v62, 1  ;;  %2049 = vmatpush.msra.mxu3 %v1691_v3  ;;  %v1649_v9 = vld [vmem:[%s4069_s1 + $0x70] sm:$0xff]  ;;  %v1647_v3 = vld [vmem:[%s4069_s1 + $0x60] sm:$0xff] }
 0x115   : > { %893 = vst.msk [vmem:[#allocation2 + $0xc1] sm:$0xff] %vm597_vm3, %v804_v53  ;;  %1823 = vmatpush.msra.mxu1 %v1659_v63  ;;  %v3222_v53 = vld [vmem:[#allocation2 + $0xd8] sm:$0xff] }
 0x116   : > { %894 = vst.msk [vmem:[#allocation2 + $0xc9] sm:$0xff] %vm597_vm3, %v806_v57  ;;  %v1313_v18 = vsel %vm1069_vm4, %v1310_v5, %v1312_v2  ;;  %2050 = vmatpush.msra.mxu3 %v1690_v15  ;;  %v1311_v41 = vsel %vm1069_vm4, %v1309_v38, %v1310_v5  ;;  %v1650_v57 = vld [vmem:[%s4069_s1 + $0x78] sm:$0xff]  ;;  %v1314_v59 = vrot.slane %v3222_v53, 1  ;;  %v1680_v2 = vld [vmem:[%s4069_s1 + $0x168] sm:$0xff] }
 0x117   : > { %1824 = vmatpush.msra.mxu1 %v1658_v11  ;;  %v2398_v22 = vpack.i.bf16 %v1313_v18, %v1089_v16  ;;  %v2393_v42 = vpack.i.bf16 %v1311_v41, %v1087_v33  ;;  %1703 = vmatpush.msra.mxu0 %v1650_v57  ;;  %v1646_v11 = vld [vmem:[%s4069_s1 + $0x58] sm:$0xff]  ;;  %v1645_v18 = vld [vmem:[%s4069_s1 + $0x50] sm:$0xff]  ;;  %v1640_v41 = vld [vmem:[%s4069_s1 + $0x28] sm:$0xff] }
 0x118   : > { %1931 = vmatpush.msra.mxu2 %v1680_v2  ;;  %v1678_v16 = vld [vmem:[%s4069_s1 + $0x158] sm:$0xff]  ;;  %v1673_v33 = vld [vmem:[%s4069_s1 + $0x130] sm:$0xff] }
 0x119   : > { %811 = vrot.lane.b32.xlu0 %v193_v0, %s2561_s19  ;;  %525 = vrot.lane.b32.xlu2 %v2666_v14, %s2561_s19  ;;  %v1689_v14 = vld [vmem:[%s4069_s1 + $0x1b0] sm:$0xff]  ;;  %v1674_v38 = vld [vmem:[%s4069_s1 + $0x138] sm:$0xff] }
 0x11a   : > { %682 = vrot.lane.b32.xlu1 %v193_v0, %s2559_s18  ;;  %1825 = vmatpush.msra.mxu1 %v1657_v19 }
 0x11b   : > { %v520_v20 = vpop.permute.xlu0 %519  ;;  %2051 = vmatpush.msra.mxu3 %v1689_v14  ;;  %1704 = vmatpush.msra.mxu0 %v1649_v9  ;;  %v1677_v14 = vld [vmem:[%s4069_s1 + $0x150] sm:$0xff] }
 0x11c   : > { %607 = vst.msk [vmem:[#allocation2 + $0xe1] sm:$0xff] %vm597_vm3, %v520_v20  ;;  %1826 = vmatpush.msra.mxu1 %v1656_v21  ;;  %v3203_v43 = vld [vmem:[#allocation2 + $0xc0] sm:$0xff]  ;;  %v201_v21 = vld [vmem:[%s2597_s17 + $0xf0] sm:$0xff] }
 0x11d   : > { %2052 = vmatpush.msra.mxu3 %v1688_v25  ;;  %v1090_v54 = vrot.slane %v3203_v43, 1  ;;  %1705 = vmatpush.msra.mxu0 %v1648_v1  ;;  %v945_v4 = vld [vmem:[#allocation2 + $0xd0] sm:$0x1]  ;;  %v1676_v25 = vld [vmem:[%s4069_s1 + $0x148] sm:$0xff] }
 0x11e   : > { %1827 = vmatpush.msra.mxu1 %v1655_v29  ;;  %v1093_v19 = vrot.slane %v945_v4, 1  ;;  %v1643_v29 = vld [vmem:[%s4069_s1 + $0x40] sm:$0xff] }
 0x11f   : > { %2053 = vmatpush.msra.mxu3 %v1687_v32  ;;  %1706 = vmatpush.msra.mxu0 %v1647_v3 }
 0x120   : > { %1828 = vmatpush.msra.mxu1 %v1654_v35  ;;  %v202_v35 = vld [vmem:[%s2597_s17 + $0xf8] sm:$0xff] }
 0x121   : > { %527 = vrot.lane.b32.xlu0 %v2663_v13, %s2561_s19  ;;  %2399 = vrot.lane.b32.xlu2 %v2398_v22, %s2562_s20  ;;  %v1653_v13 = vld [vmem:[%s4069_s1 + $0x90] sm:$0xff]  ;;  %v1644_v22 = vld [vmem:[%s4069_s1 + $0x48] sm:$0xff] }
 0x122   : > { %813 = vrot.lane.b32.xlu1 %v3102_v47, %s2561_s19  ;;  %2054 = vmatpush.msra.mxu3 %v1686_v36  ;;  %v3214_v47 = vld [vmem:[#allocation2 + $0xc8] sm:$0xff]  ;;  %v1642_v36 = vld [vmem:[%s4069_s1 + $0x38] sm:$0xff] }
 0x123   : > { %1829 = vmatpush.msra.mxu1 %v1653_v13  ;;  %v3216_v49 = vld [vmem:[#allocation2 + $0xe0] sm:$0xff]  ;;  %v1091_v55 = vrot.slane %v3214_v47, 1  ;;  %v948_v5 = vld [vmem:[#allocation2 + $0xe8] sm:$0x1]  ;;  %1707 = vmatpush.msra.mxu0 %v1646_v11 }
 0x124   : > { %2055 = vmatpush.msra.mxu3 %v1685_v40  ;;  %v1315_v56 = vrot.slane %v3216_v49, 1  ;;  %v1317_v20 = vrot.slane %v948_v5, 1  ;;  %v1641_v40 = vld [vmem:[%s4069_s1 + $0x30] sm:$0xff] }
 0x125   : > { %1830 = vmatpush.msra.mxu1 %v1652_v44  ;;  %v1092_v63 = vsel %vm1069_vm4, %v1090_v54, %v1091_v55  ;;  %1708 = vmatpush.msra.mxu0 %v1645_v18  ;;  %v1671_v44 = vld [vmem:[%s4069_s1 + $0x120] sm:$0xff]  ;;  %v1669_v54 = vld [vmem:[%s4069_s1 + $0x110] sm:$0xff] }
 0x126   : > { %2056 = vmatpush.msra.mxu3 %v1684_v45  ;;  %v1316_v0 = vsel %vm1069_vm4, %v1314_v59, %v1315_v56  ;;  %v1318_v32 = vsel %vm1069_vm4, %v1315_v56, %v1317_v20  ;;  %v1638_v45 = vld [vmem:[%s4069_s1 + $0x18] sm:$0xff]  ;;  %v1668_v59 = vld [vmem:[%s4069_s1 + $0x108] sm:$0xff] }
 0x127   : > { %1831 = vmatpush.msra.mxu1 %v1651_v46  ;;  %v2403_v15 = vpack.i.bf16 %v1316_v0, %v1092_v63  ;;  %1709 = vmatpush.msra.mxu0 %v1644_v22  ;;  %v1670_v46 = vld [vmem:[%s4069_s1 + $0x118] sm:$0xff]  ;;  %v1635_v63 = vld [vmem:[%s4069_s1] sm:$0xff]  ;;  %v3361_v22 = vld [vmem:[%s2597_s17 + $0x110] sm:$0xff] }
 0x128   : > { %2057 = vmatpush.msra.mxu3 %v1683_v51  ;;  %v1637_v51 = vld [vmem:[%s4069_s1 + $0x10] sm:$0xff]  ;;  %v1667_v0 = vld [vmem:[%s4069_s1 + $0x100] sm:$0xff] }
 0x129   : > { %686 = vrot.lane.b32.xlu0 %v197_v10, %s2559_s18  ;;  %815 = vrot.lane.b32.xlu2 %v197_v10, %s2561_s19  ;;  %v1672_v10 = vld [vmem:[%s4069_s1 + $0x128] sm:$0xff] }
 0x12a   : > { %2394 = vrot.lane.b32.xlu1 %v2393_v42, %s2562_s20  ;;  %1710 = vmatpush.msra.mxu0 %v1643_v29  ;;  %v1639_v42 = vld [vmem:[%s4069_s1 + $0x20] sm:$0xff] }
 0x12c   : > { %1711 = vmatpush.msra.mxu0 %v1642_v36 }
 0x12e   : > { %1712 = vmatpush.msra.mxu0 %v1641_v40 }
 0x130   : > { %1713 = vmatpush.msra.mxu0 %v1640_v41  ;;  %v3381_v41 = vld [vmem:[%s2597_s17 + $0x118] sm:$0xff] }
 0x131   : > { %817 = vrot.lane.b32.xlu0 %v198_v52, %s2561_s19  ;;  %531 = vrot.lane.b32.xlu2 %v2677_v17, %s2561_s19  ;;  %v1679_v17 = vld [vmem:[%s4069_s1 + $0x160] sm:$0xff] }
 0x132   : > { %688 = vrot.lane.b32.xlu1 %v198_v52, %s2559_s18  ;;  %1932 = vmatpush.msra.mxu2 %v1679_v17  ;;  %v2534_v52 = vld [vmem:[%s2597_s17 + $0x100] sm:$0xff] }
 0x133   : > { %1714 = vmatpush.msra.mxu0 %v1639_v42 }
 0x134   : > { %1933 = vmatpush.msra.mxu2 %v1678_v16 }
 0x135   : > { %1715 = vmatpush.msra.mxu0 %v1638_v45 }
 0x136   : > { %1934 = vmatpush.msra.mxu2 %v1677_v14 }
 0x137   : > { %1716 = vmatpush.msra.mxu0 %v1637_v51 }
 0x138   : > { %1935 = vmatpush.msra.mxu2 %v1676_v25 }
 0x139   : > { %2404 = vrot.lane.b32.xlu0 %v2403_v15, %s2562_s20  ;;  %690 = vrot.lane.b32.xlu2 %v201_v21, %s2559_s18 }
 0x13a   : > { %529 = vrot.lane.b32.xlu1 %v2660_v12, %s2561_s19  ;;  %v1094_v12 = vsel %vm1069_vm4, %v1091_v55, %v1093_v19  ;;  %1936 = vmatpush.msra.mxu2 %v1675_v34 }
 0x13b   : > { %v2408_v13 = vpack.i.bf16 %v1318_v32, %v1094_v12  ;;  %1717 = vmatpush.msra.mxu0 %v1636_v58 }
 0x13c   : > { %1937 = vmatpush.msra.mxu2 %v1674_v38 }
 0x13d   : > { %1718 = vmatpush.msra.mxu0 %v1635_v63 }
 0x13e   : > { %1938 = vmatpush.msra.mxu2 %v1673_v33 }
 0x140   : > { %1939 = vmatpush.msra.mxu2 %v1672_v10 }
 0x141   : > { %692 = vrot.lane.b32.xlu0 %v202_v35, %s2559_s18  ;;  %821 = vrot.lane.b32.xlu2 %v202_v35, %s2561_s19 }
 0x142   : > { %2409 = vrot.lane.b32.xlu1 %v2408_v13, %s2562_s20  ;;  %1940 = vmatpush.msra.mxu2 %v1671_v44 }
 0x143   : > { %v2370_v55 = vpop.permute.xlu2 %2369 }
 0x144   : > { %1941 = vmatpush.msra.mxu2 %v1670_v46  ;;  %v2372_v56 = vunpack.i.h.bf16 %v2370_v55  ;;  %v2371_v57 = vunpack.i.l.bf16 %v2370_v55 }
 0x146   : > { %1942 = vmatpush.msra.mxu2 %v1669_v54  ;;  %v1563_v9 = vsel %vm235_vm0, %v3000_v24, %v2372_v56  ;;  %v1565_v60 = vsel %vm235_vm0, %v3002_v26, %v2371_v57  ;;  %v2535_v24 = vld [vmem:[%s2597_s17 + $0x108] sm:$0xff] }
 0x147   : > { %v1595_v1 = vsel %vm1530_vm5, %v1563_v9, %v2372_v56  ;;  %v1597_v2 = vsel %vm1530_vm5, %v1565_v60, %v2371_v57 }
 0x148   : > { %1943 = vmatpush.msra.mxu2 %v1668_v59  ;;  %1832 = vmatmul.f32.vlgmr.msra.gmra.mxu1 %v1595_v1 }
 0x149   : > { %533 = vrot.lane.b32.xlu0 %v2534_v52, %s2561_s19  ;;  %2058 = vmatmul.f32.vlgmr.msra.gmra.mxu3 %v1597_v2 }
 0x14a   : > { %819 = vrot.lane.b32.xlu1 %v201_v21, %s2561_s19  ;;  %1944 = vmatpush.msra.mxu2 %v1667_v0 }
 0x14b   : > { %v679_v26 = vpop.permute.xlu2 %678 }
 0x14c   : > { %767 = vst.msk [vmem:[#allocation2 + $0xf0] sm:$0xff] %vm468_vm1, %v679_v26 }
 0x152   : > { %535 = vrot.lane.b32.xlu1 %v2535_v24, %s2561_s19 }
 0x154   : > { %v810_v3 = vpop.permute.xlu2 %809 }
 0x15a   : > { %694 = vrot.lane.b32.xlu1 %v3361_v22, %s2559_s18 }
 0x162   : > { %825 = vrot.lane.b32.xlu1 %v3381_v41, %s2561_s19 }
 0x163   : > { %v2385_v17 = vpop.permute.xlu2 %2384 }
 0x164   : > { %v2387_v10 = vunpack.i.h.bf16 %v2385_v17 }
 0x166   : > { %v1567_v45 = vsel %vm235_vm0, %v3050_v7, %v2387_v10 }
 0x167   : > { %v1599_v51 = vsel %vm1530_vm5, %v1567_v45, %v2387_v10 }
 0x16b   : > { %v685_v4 = vpop.permute.xlu2 %684  ;;  %v2375_v5 = vpop.permute.xlu0 %2374 }
 0x16c   : > { %v2365_v11 = vpop.permute.xlu1 %2364  ;;  %770 = vst.msk [vmem:[#allocation2 + $0x128] sm:$0xff] %vm468_vm1, %v685_v4  ;;  %v2377_v21 = vunpack.i.h.bf16 %v2375_v5  ;;  %v2376_v25 = vunpack.i.l.bf16 %v2375_v5 }
 0x16d   : > { %v2367_v15 = vunpack.i.h.bf16 %v2365_v11  ;;  %v2366_v16 = vunpack.i.l.bf16 %v2365_v11 }
 0x16e   : > { %v1499_v34 = vsel %vm235_vm0, %v3017_v37, %v2377_v21  ;;  %v1501_v35 = vsel %vm235_vm0, %v3026_v48, %v2376_v25  ;;  %v2386_v48 = vunpack.i.l.bf16 %v2385_v17 }
 0x16f   : > { %v1498_v18 = vsel %vm235_vm0, %v3019_v39, %v2367_v15  ;;  %v1500_v19 = vsel %vm235_vm0, %v3028_v50, %v2366_v16  ;;  %v1532_v13 = vsel %vm1530_vm5, %v1499_v34, %v2377_v21  ;;  %v1534_v37 = vsel %vm1530_vm5, %v1501_v35, %v2376_v25 }
 0x170   : > { %v1531_v20 = vsel %vm1530_vm5, %v1498_v18, %v2367_v15  ;;  %v1533_v14 = vsel %vm1530_vm5, %v1500_v19, %v2366_v16  ;;  %v1502_v44 = vsel %vm235_vm0, %v3048_v6, %v2386_v48 }
 0x171   : > { %1719 = vmatmul.f32.vlgmr.msra.gmra.mxu0 %v1531_v20  ;;  %1945 = vmatmul.f32.vlgmr.msra.gmra.mxu2 %v1533_v14  ;;  %v1535_v46 = vsel %vm1530_vm5, %v1502_v44, %v2386_v48 }
 0x173   : > { %v526_v29 = vpop.permute.xlu2 %525  ;;  %v681_v12 = vpop.permute.xlu0 %680 }
 0x174   : > { %v2380_v32 = vpop.permute.xlu1 %2379  ;;  %610 = vst.msk [vmem:[#allocation2 + $0x139] sm:$0xff] %vm597_vm3, %v526_v29 }
 0x175   : > { %v2382_v39 = vunpack.i.h.bf16 %v2380_v32  ;;  %v2381_v50 = vunpack.i.l.bf16 %v2380_v32  ;;  %768 = vst.msk [vmem:[#allocation2 + $0xf8] sm:$0xff] %vm468_vm1, %v681_v12 }
 0x176   : > { %896 = vst.msk [vmem:[#allocation2 + $0xf9] sm:$0xff] %vm597_vm3, %v810_v3 }
 0x177   : > { %v1564_v36 = vsel %vm235_vm0, %v3008_v31, %v2382_v39  ;;  %v1566_v38 = vsel %vm235_vm0, %v3004_v27, %v2381_v50 }
 0x178   : > { %v1596_v40 = vsel %vm1530_vm5, %v1564_v36, %v2382_v39  ;;  %v1598_v33 = vsel %vm1530_vm5, %v1566_v38, %v2381_v50 }
 0x179   : > { %1722 = vmatmul.f32.gmra.mxu0 %v1532_v13  ;;  %1835 = vmatmul.f32.gmra.mxu1 %v1596_v40 }
 0x17a   : > { %1948 = vmatmul.f32.gmra.mxu2 %v1534_v37  ;;  %2061 = vmatmul.f32.gmra.mxu3 %v1598_v33 }
 0x17b   : > { %v522_v31 = vpop.permute.xlu0 %521  ;;  %v3385_v42 = vpop.permute.xlu2 %2399  ;;  %v3428_v12 = vld [vmem:[#allocation2 + $0x138] sm:$0xff] }
 0x17c   : > { %v808_v27 = vpop.permute.xlu1 %807  ;;  %608 = vst.msk [vmem:[#allocation2 + $0x109] sm:$0xff] %vm597_vm3, %v522_v31  ;;  %v1324_v36 = vrot.slane %v3428_v12, 1 }
 0x17d   : > { %895 = vst.msk [vmem:[#allocation2 + $0xf1] sm:$0xff] %vm597_vm3, %v808_v27  ;;  %v951_v60 = vld [vmem:[#allocation2 + $0x100] sm:$0x1] }
 0x181   : > { %1725 = vmatmul.f32.gmra.mxu0 %v1533_v14  ;;  %1838 = vmatmul.f32.gmra.mxu1 %v1597_v2  ;;  %v1098_v2 = vrot.slane %v951_v60, 1 }
 0x182   : > { %1951 = vmatmul.f32.gmra.mxu2 %v1535_v46  ;;  %2064 = vmatmul.f32.gmra.mxu3 %v1599_v51 }
 0x183   : > { %v2390_v52 = vpop.permute.xlu0 %2389  ;;  %v3395_v57 = vpop.permute.xlu2 %815  ;;  %v3408_v0 = vld [vmem:[#allocation2 + $0x108] sm:$0xff] }
 0x184   : > { %v524_v54 = vpop.permute.xlu1 %523  ;;  %v2392_v55 = vunpack.i.h.bf16 %v2390_v52  ;;  %v2391_v56 = vunpack.i.l.bf16 %v2390_v52  ;;  %v3404_v9 = vld [vmem:[#allocation2 + $0xf8] sm:$0xff]  ;;  %v3406_v63 = vld [vmem:[#allocation2 + $0xf0] sm:$0xff]  ;;  %v1319_v5 = vrot.slane %v3408_v0, 1  ;;  %v2401_v52 = vunpack.i.l.bf16 %v3385_v42 }
 0x185   : > { %609 = vst.msk [vmem:[#allocation2 + $0x111] sm:$0xff] %vm597_vm3, %v524_v54  ;;  %v2536_v54 = vld [vmem:[%s2597_s17 + $0x128] sm:$0xff] }
 0x186   : > { %v1503_v6 = vsel %vm235_vm0, %v3066_v23, %v2391_v56  ;;  %v1568_v7 = vsel %vm235_vm0, %v3052_v8, %v2392_v55  ;;  %v1096_v23 = vrot.slane %v3404_v9, 1  ;;  %v1095_v8 = vrot.slane %v3406_v63, 1 }
 0x187   : > { %v1536_v58 = vsel %vm1530_vm5, %v1503_v6, %v2391_v56  ;;  %v1600_v59 = vsel %vm1530_vm5, %v1568_v7, %v2392_v55  ;;  %v2537_v55 = vld [vmem:[%s2597_s17 + $0x120] sm:$0xff] }
 0x188   : > { %v1099_v15 = vsel %vm1069_vm4, %v1096_v23, %v1098_v2  ;;  %v1097_v18 = vsel %vm1069_vm4, %v1095_v8, %v1096_v23  ;;  %v209_v23 = vld [vmem:[%s2597_s17 + $0x130] sm:$0xff]  ;;  %v210_v2 = vld [vmem:[%s2597_s17 + $0x138] sm:$0xff] }
 0x189   : > { %1728 = vmatmul.f32.gmra.mxu0 %v1534_v37  ;;  %1841 = vmatmul.f32.gmra.mxu1 %v1598_v33 }
 0x18a   : > { %1954 = vmatmul.f32.gmra.mxu2 %v1536_v58  ;;  %2067 = vmatmul.f32.gmra.mxu3 %v1600_v59 }
 0x18b   : > { %v812_v1 = vpop.permute.xlu0 %811  ;;  %v532_v11 = vpop.permute.xlu2 %531 }
 0x18c   : > { %v683_v24 = vpop.permute.xlu1 %682  ;;  %v3412_v26 = vld [vmem:[#allocation2 + $0x110] sm:$0xff]  ;;  %v954_v3 = vld [vmem:[#allocation2 + $0x118] sm:$0x1]  ;;  %613 = vst.msk [vmem:[#allocation2 + $0x171] sm:$0xff] %vm597_vm3, %v532_v11 }
 0x18d   : > { %769 = vst.msk [vmem:[#allocation2 + $0x120] sm:$0xff] %vm468_vm1, %v683_v24  ;;  %v1320_v17 = vrot.slane %v3412_v26, 1  ;;  %v1322_v4 = vrot.slane %v954_v3, 1 }
 0x18e   : > { %897 = vst.msk [vmem:[#allocation2 + $0x121] sm:$0xff] %vm597_vm3, %v812_v1 }
 0x18f   : > { %v1323_v16 = vsel %vm1069_vm4, %v1320_v17, %v1322_v4  ;;  %v1321_v19 = vsel %vm1069_vm4, %v1319_v5, %v1320_v17 }
 0x190   : > { %v2418_v20 = vpack.i.bf16 %v1323_v16, %v1099_v15  ;;  %v2413_v14 = vpack.i.bf16 %v1321_v19, %v1097_v18 }
 0x191   : > { %1731 = vmatmul.f32.gmra.mxu0 %v1535_v46  ;;  %1844 = vmatmul.f32.gmra.mxu1 %v1599_v51  ;;  %v2402_v51 = vunpack.i.h.bf16 %v3385_v42  ;;  %v1505_v42 = vsel %vm235_vm0, %v3129_v61, %v2401_v52 }
 0x192   : > { %2419 = vrot.lane.b32.xlu0 %v2418_v20, %s2562_s20  ;;  %2414 = vrot.lane.b32.xlu2 %v2413_v14, %s2562_s20  ;;  %v1538_v60 = vsel %vm1530_vm5, %v1505_v42, %v2401_v52  ;;  %v214_v52 = vld [vmem:[%s2597_s17 + $0x158] sm:$0xff] }
 0x193   : > { %v528_v21 = vpop.permute.xlu0 %527  ;;  %v691_v29 = vpop.permute.xlu2 %690  ;;  %v1570_v7 = vsel %vm235_vm0, %v3131_v62, %v2402_v51  ;;  %v966_v18 = vld [vmem:[#allocation2 + $0x178] sm:$0x1] }
 0x194   : > { %v814_v25 = vpop.permute.xlu1 %813  ;;  %611 = vst.msk [vmem:[#allocation2 + $0x141] sm:$0xff] %vm597_vm3, %v528_v21  ;;  %v1602_v1 = vsel %vm1530_vm5, %v1570_v7, %v2402_v51  ;;  %v1332_v21 = vrot.slane %v966_v18, 1  ;;  %v213_v51 = vld [vmem:[%s2597_s17 + $0x150] sm:$0xff]  ;;  %v2543_v18 = vld [vmem:[%s2597_s17 + $0x180] sm:$0xff] }
 0x195   : > { %898 = vst.msk [vmem:[#allocation2 + $0x129] sm:$0xff] %vm597_vm3, %v814_v25  ;;  %v3434_v32 = vld [vmem:[#allocation2 + $0x120] sm:$0xff] }
 0x196   : > { %773 = vst.msk [vmem:[#allocation2 + $0x180] sm:$0xff] %vm468_vm1, %v691_v29  ;;  %v2538_v25 = vld [vmem:[%s2597_s17 + $0x140] sm:$0xff] }
 0x199   : > { %1734 = vmatmul.f32.gmra.mxu0 %v1536_v58  ;;  %1847 = vmatmul.f32.gmra.mxu1 %v1600_v59 }
 0x19a   : > { %823 = vrot.lane.b32.xlu0 %v3361_v22, %s2561_s19  ;;  %696 = vrot.lane.b32.xlu2 %v3381_v41, %s2559_s18  ;;  %v1100_v22 = vrot.slane %v3434_v32, 1 }
 0x19b   : > { %v687_v39 = vpop.permute.xlu0 %686  ;;  %v3436_v50 = vld [vmem:[#allocation2 + $0x140] sm:$0xff]  ;;  %v960_v27 = vld [vmem:[#allocation2 + $0x148] sm:$0x1]  ;;  %v822_v20 = vpop.permute.xlu2 %821 }
 0x19c   : > { %v2395_v34 = vpop.permute.xlu1 %2394  ;;  %771 = vst.msk [vmem:[#allocation2 + $0x150] sm:$0xff] %vm468_vm1, %v687_v39  ;;  %v3439_v35 = vld [vmem:[#allocation2 + $0x128] sm:$0xff]  ;;  %v1325_v38 = vrot.slane %v3436_v50, 1  ;;  %v957_v31 = vld [vmem:[#allocation2 + $0x130] sm:$0x1] }
 0x19d   : > { %v2397_v13 = vunpack.i.h.bf16 %v2395_v34  ;;  %v2396_v40 = vunpack.i.l.bf16 %v2395_v34  ;;  %v1101_v33 = vrot.slane %v3439_v35, 1 }
 0x19e   : > { %v1326_v37 = vsel %vm1069_vm4, %v1324_v36, %v1325_v38 }
 0x19f   : > { %v1504_v41 = vsel %vm235_vm0, %v3168_v28, %v2396_v40  ;;  %v1569_v10 = vsel %vm235_vm0, %v3173_v30, %v2397_v13  ;;  %v1102_v48 = vsel %vm1069_vm4, %v1100_v22, %v1101_v33  ;;  %v1103_v28 = vrot.slane %v957_v31, 1 }
 0x1a0   : > { %v1537_v44 = vsel %vm1530_vm5, %v1504_v41, %v2396_v40  ;;  %v1601_v45 = vsel %vm1530_vm5, %v1569_v10, %v2397_v13  ;;  %v2423_v46 = vpack.i.bf16 %v1326_v37, %v1102_v48  ;;  %v1327_v30 = vrot.slane %v960_v27, 1 }
 0x1a1   : > { %1737 = vmatmul.f32.gmra.mxu0 %v1537_v44  ;;  %1850 = vmatmul.f32.gmra.mxu1 %v1601_v45  ;;  %v1104_v58 = vsel %vm1069_vm4, %v1101_v33, %v1103_v28 }
 0x1a2   : > { %1957 = vmatmul.f32.gmra.mxu2 %v1537_v44  ;;  %2070 = vmatmul.f32.gmra.mxu3 %v1601_v45  ;;  %v1328_v59 = vsel %vm1069_vm4, %v1325_v38, %v1327_v30 }
 0x1a3   : > { %539 = vrot.lane.b32.xlu0 %v2536_v54, %s2561_s19  ;;  %537 = vrot.lane.b32.xlu2 %v2537_v55, %s2561_s19  ;;  %v818_v56 = vpop.permute.xlu0 %817  ;;  %v2428_v61 = vpack.i.bf16 %v1328_v59, %v1104_v58  ;;  %v2541_v59 = vld [vmem:[%s2597_s17 + $0x168] sm:$0xff] }
 0x1a4   : > { %2424 = vrot.lane.b32.xlu1 %v2423_v46, %s2562_s20  ;;  %v689_v6 = vpop.permute.xlu1 %688 }
 0x1a5   : > { %772 = vst.msk [vmem:[#allocation2 + $0x158] sm:$0xff] %vm468_vm1, %v689_v6  ;;  %v2540_v6 = vld [vmem:[%s2597_s17 + $0x160] sm:$0xff] }
 0x1a6   : > { %899 = vst.msk [vmem:[#allocation2 + $0x151] sm:$0xff] %vm597_vm3, %v3395_v57 }
 0x1a7   : > { %900 = vst.msk [vmem:[#allocation2 + $0x159] sm:$0xff] %vm597_vm3, %v818_v56 }
 0x1a9   : > { %1740 = vmatmul.f32.gmra.mxu0 %v1538_v60  ;;  %1853 = vmatmul.f32.gmra.mxu1 %v1602_v1 }
 0x1aa   : > { %1960 = vmatmul.f32.gmra.mxu2 %v1538_v60  ;;  %2073 = vmatmul.f32.gmra.mxu3 %v1602_v1 }
 0x1ab   : > { %698 = vrot.lane.b32.xlu0 %v209_v23, %s2559_s18  ;;  %2429 = vrot.lane.b32.xlu2 %v2428_v61, %s2562_s20  ;;  %v2405_v62 = vpop.permute.xlu0 %2404 }
 0x1ac   : > { %700 = vrot.lane.b32.xlu1 %v210_v2, %s2559_s18  ;;  %v530_v57 = vpop.permute.xlu1 %529  ;;  %v2407_v8 = vunpack.i.h.bf16 %v2405_v62  ;;  %v2406_v24 = vunpack.i.l.bf16 %v2405_v62 }
 0x1ad   : > { %612 = vst.msk [vmem:[#allocation2 + $0x169] sm:$0xff] %vm597_vm3, %v530_v57  ;;  %v3486_v16 = vld [vmem:[#allocation2 + $0x150] sm:$0xff] }
 0x1ae   : > { %v1506_v3 = vsel %vm235_vm0, %v3203_v43, %v2406_v24  ;;  %v1571_v17 = vsel %vm235_vm0, %v3222_v53, %v2407_v8  ;;  %v3484_v11 = vld [vmem:[#allocation2 + $0x158] sm:$0xff]  ;;  %v963_v15 = vld [vmem:[#allocation2 + $0x160] sm:$0x1]  ;;  %v1105_v53 = vrot.slane %v3486_v16, 1 }
 0x1af   : > { %v1539_v4 = vsel %vm1530_vm5, %v1506_v3, %v2406_v24  ;;  %v1603_v5 = vsel %vm1530_vm5, %v1571_v17, %v2407_v8  ;;  %v1106_v43 = vrot.slane %v3484_v11, 1  ;;  %v1108_v19 = vrot.slane %v963_v15, 1  ;;  %v2542_v15 = vld [vmem:[%s2597_s17 + $0x188] sm:$0xff] }
 0x1b1   : > { %1743 = vmatmul.f32.gmra.mxu0 %v1539_v4  ;;  %1856 = vmatmul.f32.gmra.mxu1 %v1603_v5  ;;  %v1109_v22 = vsel %vm1069_vm4, %v1106_v43, %v1108_v19  ;;  %v1107_v33 = vsel %vm1069_vm4, %v1105_v53, %v1106_v43  ;;  %v3561_v19 = vld [vmem:[%s4070_s2] ss:$0 sm:$0xff] }
 0x1b2   : > { %1963 = vmatmul.f32.gmra.mxu2 %v1539_v4  ;;  %2076 = vmatmul.f32.gmra.mxu3 %v1603_v5  ;;  %v217_v4 = vld [vmem:[%s2597_s17 + $0x170] sm:$0xff]  ;;  %v218_v5 = vld [vmem:[%s2597_s17 + $0x178] sm:$0xff] }
 0x1b3   : > { %829 = vrot.lane.b32.xlu0 %v210_v2, %s2561_s19  ;;  %827 = vrot.lane.b32.xlu2 %v209_v23, %s2561_s19  ;;  %v693_v14 = vpop.permute.xlu0 %692 }
 0x1b4   : > { %541 = vrot.lane.b32.xlu1 %v2538_v25, %s2561_s19  ;;  %v2410_v29 = vpop.permute.xlu1 %2409  ;;  %774 = vst.msk [vmem:[#allocation2 + $0x188] sm:$0xff] %vm468_vm1, %v693_v14  ;;  %v3495_v39 = vld [vmem:[#allocation2 + $0x170] sm:$0xff]  ;;  %v3497_v34 = vld [vmem:[#allocation2 + $0x168] sm:$0xff] }
 0x1b5   : > { %v2412_v36 = vunpack.i.h.bf16 %v2410_v29  ;;  %v2411_v38 = vunpack.i.l.bf16 %v2410_v29  ;;  %v1330_v13 = vrot.slane %v3495_v39, 1  ;;  %v1329_v40 = vrot.slane %v3497_v34, 1  ;;  %902 = vst.msk [vmem:[#allocation2 + $0x189] sm:$0xff] %vm597_vm3, %v822_v20 }
 0x1b7   : > { %v1507_v37 = vsel %vm235_vm0, %v3214_v47, %v2411_v38  ;;  %v1572_v41 = vsel %vm235_vm0, %v3216_v49, %v2412_v36  ;;  %v1333_v10 = vsel %vm1069_vm4, %v1330_v13, %v1332_v21  ;;  %v1331_v48 = vsel %vm1069_vm4, %v1329_v40, %v1330_v13  ;;  %v2539_v47 = vld [vmem:[%s2597_s17 + $0x148] sm:$0xff] }
 0x1b8   : > { %v1540_v31 = vsel %vm1530_vm5, %v1507_v37, %v2411_v38  ;;  %v1604_v27 = vsel %vm1530_vm5, %v1572_v41, %v2412_v36  ;;  %v2438_v44 = vpack.i.bf16 %v1333_v10, %v1109_v22  ;;  %v2433_v45 = vpack.i.bf16 %v1331_v48, %v1107_v33 }
 0x1b9   : > { %1746 = vmatmul.f32.gmra.mxu0 %v1540_v31  ;;  %1859 = vmatmul.f32.gmra.mxu1 %v1604_v27 }
 0x1ba   : > { %1966 = vmatmul.f32.gmra.mxu2 %v1540_v31  ;;  %2079 = vmatmul.f32.gmra.mxu3 %v1604_v27 }
 0x1bb   : > { %543 = vrot.lane.b32.xlu2 %v2539_v47, %s2561_s19  ;;  %2434 = vrot.lane.b32.xlu0 %v2433_v45, %s2562_s20  ;;  %v534_v49 = vpop.permute.xlu0 %533 }
 0x1bc   : > { %2439 = vrot.lane.b32.xlu1 %v2438_v44, %s2562_s20  ;;  %v820_v46 = vpop.permute.xlu1 %819  ;;  %614 = vst.msk [vmem:[#allocation2 + $0x199] sm:$0xff] %vm597_vm3, %v534_v49  ;;  %v969_v54 = vld [vmem:[#allocation2 + $0x190] sm:$0x1] }
 0x1bd   : > { %901 = vst.msk [vmem:[#allocation2 + $0x181] sm:$0xff] %vm597_vm3, %v820_v46  ;;  %v1113_v7 = vrot.slane %v969_v54, 1 }
 0x1c3   : > { %702 = vrot.lane.b32.xlu2 %v213_v51, %s2559_s18  ;;  %704 = vrot.lane.b32.xlu0 %v214_v52, %s2559_s18  ;;  %v3528_v56 = vld [vmem:[#allocation2 + $0x198] sm:$0xff] }
 0x1c4   : > { %831 = vrot.lane.b32.xlu1 %v213_v51, %s2561_s19  ;;  %v536_v28 = vpop.permute.xlu1 %535  ;;  %v3524_v30 = vld [vmem:[#allocation2 + $0x188] sm:$0xff]  ;;  %v3526_v55 = vld [vmem:[#allocation2 + $0x180] sm:$0xff]  ;;  %v1334_v2 = vrot.slane %v3528_v56, 1 }
 0x1c5   : > { %615 = vst.msk [vmem:[#allocation2 + $0x1a1] sm:$0xff] %vm597_vm3, %v536_v28  ;;  %v1111_v42 = vrot.slane %v3524_v30, 1  ;;  %v1110_v58 = vrot.slane %v3526_v55, 1  ;;  %v1833_v38 = vpop.f32.mrf.mxu1 }
 0x1c7   : > { %v1114_v62 = vsel %vm1069_vm4, %v1111_v42, %v1113_v7  ;;  %v1112_v8 = vsel %vm1069_vm4, %v1110_v58, %v1111_v42 }
 0x1cb   : > { %833 = vrot.lane.b32.xlu2 %v214_v52, %s2561_s19  ;;  %545 = vrot.lane.b32.xlu0 %v2540_v6, %s2561_s19 }
 0x1cc   : > { %547 = vrot.lane.b32.xlu1 %v2541_v59, %s2561_s19  ;;  %v3537_v60 = vld [vmem:[#allocation2 + $0x1a0] sm:$0xff]  ;;  %v972_v1 = vld [vmem:[#allocation2 + $0x1a8] sm:$0x1]  ;;  %v695_v43 = vpop.permute.xlu1 %694  ;;  %v2059_v10 = vpop.f32.mrf.mxu3  ;;  %v3584_v59 = vld [vmem:[%s2597_s17 + $0x190] sm:$0xff] }
 0x1cd   : > { %v1335_v23 = vrot.slane %v3537_v60, 1  ;;  %v1337_v61 = vrot.slane %v972_v1, 1  ;;  %775 = vst.msk [vmem:[#allocation2 + $0x1b0] sm:$0xff] %vm468_vm1, %v695_v43 }
 0x1cf   : > { %v1338_v57 = vsel %vm1069_vm4, %v1335_v23, %v1337_v61  ;;  %v1336_v24 = vsel %vm1069_vm4, %v1334_v2, %v1335_v23 }
 0x1d0   : > { %v2448_v3 = vpack.i.bf16 %v1338_v57, %v1114_v62  ;;  %v2443_v17 = vpack.i.bf16 %v1336_v24, %v1112_v8 }
 0x1d3   : > { %2449 = vrot.lane.b32.xlu0 %v2448_v3, %s2562_s20  ;;  %2444 = vrot.lane.b32.xlu2 %v2443_v17, %s2562_s20 }
 0x1d4   : > { %706 = vrot.lane.b32.xlu1 %v217_v4, %s2559_s18  ;;  %v826_v33 = vpop.permute.xlu1 %825 }
 0x1db   : > { %835 = vrot.lane.b32.xlu0 %v217_v4, %s2561_s19  ;;  %708 = vrot.lane.b32.xlu2 %v218_v5, %s2559_s18 }
 0x1dc   : > { %837 = vrot.lane.b32.xlu1 %v218_v5, %s2561_s19 }
 0x1e3   : > { %551 = vrot.lane.b32.xlu0 %v2542_v15, %s2561_s19  ;;  %549 = vrot.lane.b32.xlu2 %v2543_v18, %s2561_s19 }
 0x1eb   : > { %710 = vrot.lane.b32.xlu0 %v3584_v59, %s2559_s18 }
 0x1ec   : > { %v2415_v53 = vpop.permute.xlu2 %2414 }
 0x1ed   : > { %v2417_v20 = vunpack.i.h.bf16 %v2415_v53  ;;  %v2416_v14 = vunpack.i.l.bf16 %v2415_v53 }
 0x1ee   : > { %v1720_v21 = vpop.f32.mrf.mxu0 }
 0x1ef   : > { %v1721_v25 = vadd.f32 %v3561_v19, %v1720_v21  ;;  %v1508_v29 = vsel %vm235_vm0, %v3406_v63, %v2416_v14  ;;  %v1573_v36 = vsel %vm235_vm0, %v3408_v0, %v2417_v20 }
 0x1f0   : > { %v1541_v13 = vsel %vm1530_vm5, %v1508_v29, %v2416_v14  ;;  %v1605_v40 = vsel %vm1530_vm5, %v1573_v36, %v2417_v20  ;;  %v3603_v29 = vld [vmem:[%s2597_s17 + $0x198] sm:$0xff] }
 0x1f1   : > { %1749 = vmatmul.f32.gmra.mxu0 %v1541_v13  ;;  %1862 = vmatmul.f32.gmra.mxu1 %v1605_v40  ;;  %v1834_v22 = vadd.f32 %v1833_v38, %v1721_v25 }
 0x1f2   : > { %1969 = vmatmul.f32.gmra.mxu2 %v1541_v13  ;;  %2082 = vmatmul.f32.gmra.mxu3 %v1605_v40 }
 0x1f3   : > { %841 = vrot.lane.b32.xlu0 %v3603_v29, %s2561_s19 }
 0x1f4   : > { %v1946_v37 = vpop.f32.mrf.mxu2  ;;  %v697_v41 = vpop.permute.xlu2 %696 }
 0x1f5   : > { %v1947_v48 = vadd.f32 %v1946_v37, %v1834_v22  ;;  %776 = vst.msk [vmem:[#allocation2 + $0x1b8] sm:$0xff] %vm468_vm1, %v697_v41 }
 0x1f6   : > { %v1723_v63 = vpop.f32.mrf.mxu0  ;;  %904 = vst.msk [vmem:[#allocation2 + $0x1b9] sm:$0xff] %vm597_vm3, %v826_v33  ;;  %v1836_v31 = vpop.f32.mrf.mxu1 }
 0x1f7   : > { %v2060_v0 = vadd.f32 %v2059_v10, %v1947_v48  ;;  %v1724_v44 = vadd.f32 %v3561_v19, %v1723_v63 }
 0x1f9   : > { %vm2155_vm6 = vcmp.ge.f32.partialorder %v2060_v0, 0.0  ;;  %v2187_v27 = vmul.f32 0.1, %v2060_v0  ;;  %v1837_v47 = vadd.f32 %v1836_v31, %v1724_v44 }
 0x1fb   : > { %v2219_v45 = vsel %vm2155_vm6, %v2060_v0, %v2187_v27 }
 0x1fc   : > { %2251 = vst.msk [vmem:[%s3576_s28] sm:$0xff] %vm597_vm3, %v2219_v45 }
 0x1fd   : > { %v2062_v49 = vpop.f32.mrf.mxu3  ;;  %v538_v46 = vpop.permute.xlu2 %537 }
 0x1fe   : > { %616 = vst.msk [vmem:[#allocation2 + $0x1c9] sm:$0xff] %vm597_vm3, %v538_v46  ;;  %v1949_v51 = vpop.f32.mrf.mxu2  ;;  %v1726_v52 = vpop.f32.mrf.mxu0 }
 0x1ff   : > { %v1950_v28 = vadd.f32 %v1949_v51, %v1837_v47  ;;  %v1727_v6 = vadd.f32 %v3561_v19, %v1726_v52  ;;  %v1839_v42 = vpop.f32.mrf.mxu1 }
 0x201   : > { %v2063_v54 = vadd.f32 %v2062_v49, %v1950_v28  ;;  %v1840_v23 = vadd.f32 %v1839_v42, %v1727_v6  ;;  %v975_v49 = vld [vmem:[#allocation2 + $0x1c0] sm:$0x1] }
 0x203   : > { %vm2156_vm7 = vcmp.ge.f32.partialorder %v2063_v54, 0.0  ;;  %v2188_v7 = vmul.f32 0.1, %v2063_v54 }
 0x204   : > { %v2420_v58 = vpop.permute.xlu0 %2419 }
 0x205   : > { %v2220_v1 = vsel %vm2156_vm7, %v2063_v54, %v2188_v7  ;;  %v2065_v61 = vpop.f32.mrf.mxu3  ;;  %v3586_v2 = vpop.permute.xlu2 %2429  ;;  %v2422_v62 = vunpack.i.h.bf16 %v2420_v58  ;;  %v2421_v57 = vunpack.i.l.bf16 %v2420_v58  ;;  %v3623_v28 = vld [vmem:[#allocation2 + $0x1c8] sm:$0xff] }
 0x206   : > { %2252 = vst.msk [vmem:[%s3576_s28 + $0x8] sm:$0xff] %vm597_vm3, %v2220_v1  ;;  %v1952_v8 = vpop.f32.mrf.mxu2  ;;  %v1729_v24 = vpop.f32.mrf.mxu0  ;;  %v2432_v27 = vunpack.i.h.bf16 %v3586_v2  ;;  %v2431_v44 = vunpack.i.l.bf16 %v3586_v2 }
 0x207   : > { %v1953_v3 = vadd.f32 %v1952_v8, %v1840_v23  ;;  %v1509_v17 = vsel %vm235_vm0, %v3404_v9, %v2421_v57  ;;  %v1574_v4 = vsel %vm235_vm0, %v3412_v26, %v2422_v62  ;;  %v1730_v43 = vadd.f32 %v3561_v19, %v1729_v24  ;;  %v1842_v20 = vpop.f32.mrf.mxu1 }
 0x208   : > { %v1542_v5 = vsel %vm1530_vm5, %v1509_v17, %v2421_v57  ;;  %v1606_v15 = vsel %vm1530_vm5, %v1574_v4, %v2422_v62  ;;  %v1511_v42 = vsel %vm235_vm0, %v3439_v35, %v2431_v44  ;;  %v1576_v7 = vsel %vm235_vm0, %v3436_v50, %v2432_v27 }
 0x209   : > { %v2066_v18 = vadd.f32 %v2065_v61, %v1953_v3  ;;  %1752 = vmatmul.f32.gmra.mxu0 %v1542_v5  ;;  %1865 = vmatmul.f32.gmra.mxu1 %v1606_v15  ;;  %v1843_v26 = vadd.f32 %v1842_v20, %v1730_v43  ;;  %v1339_v35 = vrot.slane %v3623_v28, 1  ;;  %v1544_v50 = vsel %vm1530_vm5, %v1511_v42, %v2431_v44 }
 0x20a   : > { %1972 = vmatmul.f32.gmra.mxu2 %v1542_v5  ;;  %2085 = vmatmul.f32.gmra.mxu3 %v1606_v15  ;;  %v1608_v24 = vsel %vm1530_vm5, %v1576_v7, %v2432_v27 }
 0x20b   : > { %vm2157_vm8 = vcmp.ge.f32.partialorder %v2066_v18, 0.0  ;;  %v2189_v53 = vmul.f32 0.1, %v2066_v18 }
 0x20c   : > { %v824_v9 = vpop.permute.xlu0 %823 }
 0x20d   : > { %v2221_v14 = vsel %vm2157_vm8, %v2066_v18, %v2189_v53  ;;  %v828_v21 = vpop.permute.xlu2 %827  ;;  %903 = vst.msk [vmem:[#allocation2 + $0x1b1] sm:$0xff] %vm597_vm3, %v824_v9  ;;  %v2068_v38 = vpop.f32.mrf.mxu3 }
 0x20e   : > { %2253 = vst.msk [vmem:[%s3576_s28 + $0x10] sm:$0xff] %vm597_vm3, %v2221_v14  ;;  %v1955_v25 = vpop.f32.mrf.mxu2  ;;  %v1732_v41 = vpop.f32.mrf.mxu0 }
 0x20f   : > { %v1956_v36 = vadd.f32 %v1955_v25, %v1843_v26  ;;  %v1845_v54 = vpop.f32.mrf.mxu1  ;;  %v1733_v8 = vadd.f32 %v3561_v19, %v1732_v41 }
 0x211   : > { %v2069_v13 = vadd.f32 %v2068_v38, %v1956_v36  ;;  %v1846_v43 = vadd.f32 %v1845_v54, %v1733_v8 }
 0x213   : > { %vm2158_vm9 = vcmp.ge.f32.partialorder %v2069_v13, 0.0  ;;  %v2190_v40 = vmul.f32 0.1, %v2069_v13 }
 0x214   : > { %v3619_v46 = vld [vmem:[#allocation2 + $0x1b8] sm:$0xff]  ;;  %v3621_v51 = vld [vmem:[#allocation2 + $0x1b0] sm:$0xff] }
 0x215   : > { %v2222_v22 = vsel %vm2158_vm9, %v2069_v13, %v2190_v40  ;;  %v544_v33 = vpop.permute.xlu2 %543  ;;  %v540_v37 = vpop.permute.xlu0 %539  ;;  %v1116_v58 = vrot.slane %v3619_v46, 1  ;;  %v1115_v1 = vrot.slane %v3621_v51, 1 }
 0x216   : > { %2254 = vst.msk [vmem:[%s3576_s28 + $0x18] sm:$0xff] %vm597_vm3, %v2222_v22  ;;  %v2425_v10 = vpop.permute.xlu1 %2424  ;;  %v1735_v2 = vpop.f32.mrf.mxu0 }
 0x217   : > { %619 = vst.msk [vmem:[#allocation2 + $0x201] sm:$0xff] %vm597_vm3, %v544_v33  ;;  %v2427_v48 = vunpack.i.h.bf16 %v2425_v10  ;;  %v2426_v63 = vunpack.i.l.bf16 %v2425_v10  ;;  %v1117_v4 = vsel %vm1069_vm4, %v1115_v1, %v1116_v58  ;;  %v1848_v25 = vpop.f32.mrf.mxu1  ;;  %v1736_v36 = vadd.f32 %v3561_v19, %v1735_v2 }
 0x218   : > { %617 = vst.msk [vmem:[#allocation2 + $0x1d1] sm:$0xff] %vm597_vm3, %v540_v37 }
 0x219   : > { %v1510_v0 = vsel %vm235_vm0, %v3434_v32, %v2426_v63  ;;  %v1575_v31 = vsel %vm235_vm0, %v3428_v12, %v2427_v48  ;;  %v1118_v12 = vrot.slane %v975_v49, 1  ;;  %v1849_v22 = vadd.f32 %v1848_v25, %v1736_v36 }
 0x21a   : > { %v1543_v45 = vsel %vm1530_vm5, %v1510_v0, %v2426_v63  ;;  %v1607_v47 = vsel %vm1530_vm5, %v1575_v31, %v2427_v48 }
 0x21b   : > { %1755 = vmatmul.f32.gmra.mxu0 %v1543_v45  ;;  %1868 = vmatmul.f32.gmra.mxu1 %v1607_v47  ;;  %v1119_v3 = vsel %vm1069_vm4, %v1116_v58, %v1118_v12 }
 0x21c   : > { %1975 = vmatmul.f32.gmra.mxu2 %v1543_v45  ;;  %2088 = vmatmul.f32.gmra.mxu3 %v1607_v47 }
 0x21d   : > { %v703_v32 = vpop.permute.xlu2 %702  ;;  %v699_v52 = vpop.permute.xlu0 %698 }
 0x21e   : > { %779 = vst.msk [vmem:[#allocation2 + $0x210] sm:$0xff] %vm468_vm1, %v703_v32  ;;  %v701_v6 = vpop.permute.xlu1 %700  ;;  %v1738_v13 = vpop.f32.mrf.mxu0  ;;  %v984_v1 = vld [vmem:[#allocation2 + $0x208] sm:$0x1] }
 0x21f   : > { %778 = vst.msk [vmem:[#allocation2 + $0x1e8] sm:$0xff] %vm468_vm1, %v701_v6  ;;  %v3633_v23 = vld [vmem:[#allocation2 + $0x1d0] sm:$0xff]  ;;  %v978_v61 = vld [vmem:[#allocation2 + $0x1d8] sm:$0x1]  ;;  %v1739_v54 = vadd.f32 %v3561_v19, %v1738_v13 }
 0x220   : > { %777 = vst.msk [vmem:[#allocation2 + $0x1e0] sm:$0xff] %vm468_vm1, %v699_v52  ;;  %v1340_v62 = vrot.slane %v3633_v23, 1  ;;  %v1342_v57 = vrot.slane %v978_v61, 1  ;;  %v1851_v61 = vpop.f32.mrf.mxu1 }
 0x221   : > { %905 = vst.msk [vmem:[#allocation2 + $0x1e1] sm:$0xff] %vm597_vm3, %v828_v21 }
 0x222   : > { %v1343_v17 = vsel %vm1069_vm4, %v1340_v62, %v1342_v57  ;;  %v1341_v5 = vsel %vm1069_vm4, %v1339_v35, %v1340_v62 }
 0x223   : > { %1758 = vmatmul.f32.gmra.mxu0 %v1544_v50  ;;  %1871 = vmatmul.f32.gmra.mxu1 %v1608_v24  ;;  %v2458_v15 = vpack.i.bf16 %v1343_v17, %v1119_v3  ;;  %v2453_v18 = vpack.i.bf16 %v1341_v5, %v1117_v4  ;;  %v1852_v3 = vadd.f32 %v1851_v61, %v1739_v54  ;;  %v2544_v4 = vld [vmem:[%s2597_s17 + $0x1a8] sm:$0xff]  ;;  %v2545_v5 = vld [vmem:[%s2597_s17 + $0x1a0] sm:$0xff] }
 0x224   : > { %1978 = vmatmul.f32.gmra.mxu2 %v1544_v50  ;;  %2091 = vmatmul.f32.gmra.mxu3 %v1608_v24  ;;  %v1347_v24 = vrot.slane %v984_v1, 1 }
 0x225   : > { %2459 = vrot.lane.b32.xlu2 %v2458_v15, %s2562_s20  ;;  %2454 = vrot.lane.b32.xlu1 %v2453_v18, %s2562_s20  ;;  %v3648_v53 = vpop.permute.xlu2 %833  ;;  %v830_v20 = vpop.permute.xlu0 %829 }
 0x226   : > { %v542_v9 = vpop.permute.xlu1 %541  ;;  %906 = vst.msk [vmem:[#allocation2 + $0x1e9] sm:$0xff] %vm597_vm3, %v830_v20  ;;  %v1958_v14 = vpop.f32.mrf.mxu2 }
 0x227   : > { %618 = vst.msk [vmem:[#allocation2 + $0x1f9] sm:$0xff] %vm597_vm3, %v542_v9  ;;  %v1959_v26 = vadd.f32 %v1958_v14, %v1846_v43  ;;  %v2071_v21 = vpop.f32.mrf.mxu3  ;;  %v1741_v35 = vpop.f32.mrf.mxu0 }
 0x228   : > { %v3659_v10 = vld [vmem:[#allocation2 + $0x1e0] sm:$0xff]  ;;  %v1742_v13 = vadd.f32 %v3561_v19, %v1741_v35 }
 0x229   : > { %v2072_v38 = vadd.f32 %v2071_v21, %v1959_v26  ;;  %v1120_v52 = vrot.slane %v3659_v10, 1 }
 0x22b   : > { %vm2159_vm10 = vcmp.ge.f32.partialorder %v2072_v38, 0.0  ;;  %v2191_v40 = vmul.f32 0.1, %v2072_v38 }
 0x22d   : > { %v2223_v33 = vsel %vm2159_vm10, %v2072_v38, %v2191_v40  ;;  %839 = vrot.lane.b32.xlu2 %v3584_v59, %s2561_s19  ;;  %712 = vrot.lane.b32.xlu1 %v3603_v29, %s2559_s18  ;;  %v3657_v37 = vpop.permute.xlu2 %2444  ;;  %v2435_v41 = vpop.permute.xlu0 %2434  ;;  %v3661_v48 = vld [vmem:[#allocation2 + $0x1e8] sm:$0xff]  ;;  %v981_v58 = vld [vmem:[#allocation2 + $0x1f0] sm:$0x1] }
 0x22e   : > { %2255 = vst.msk [vmem:[%s3576_s28 + $0x20] sm:$0xff] %vm597_vm3, %v2223_v33  ;;  %v2440_v63 = vpop.permute.xlu1 %2439  ;;  %v2437_v0 = vunpack.i.h.bf16 %v2435_v41  ;;  %v2436_v31 = vunpack.i.l.bf16 %v2435_v41  ;;  %v1961_v27 = vpop.f32.mrf.mxu2  ;;  %v3665_v44 = vld [vmem:[#allocation2 + $0x1f8] sm:$0xff]  ;;  %v3667_v47 = vld [vmem:[#allocation2 + $0x200] sm:$0xff]  ;;  %v1121_v29 = vrot.slane %v3661_v48, 1  ;;  %v1123_v50 = vrot.slane %v981_v58, 1  ;;  %v225_v41 = vld [vmem:[%s2597_s17 + $0x1b0] sm:$0xff] }
 0x22f   : > { %v1962_v45 = vadd.f32 %v1961_v27, %v1849_v22  ;;  %v2074_v59 = vpop.f32.mrf.mxu3  ;;  %v1344_v12 = vrot.slane %v3665_v44, 1  ;;  %v2442_v2 = vunpack.i.h.bf16 %v2440_v63  ;;  %v1345_v62 = vrot.slane %v3667_v47, 1  ;;  %v226_v27 = vld [vmem:[%s2597_s17 + $0x1b8] sm:$0xff] }
 0x230   : > { %v1512_v49 = vsel %vm235_vm0, %v3486_v16, %v2436_v31  ;;  %v1577_v32 = vsel %vm235_vm0, %v3497_v34, %v2437_v0  ;;  %v2441_v16 = vunpack.i.l.bf16 %v2440_v63  ;;  %v1122_v34 = vsel %vm1069_vm4, %v1120_v52, %v1121_v29 }
 0x231   : > { %v2075_v6 = vadd.f32 %v2074_v59, %v1962_v45  ;;  %v1545_v42 = vsel %vm1530_vm5, %v1512_v49, %v2436_v31  ;;  %v1609_v7 = vsel %vm1530_vm5, %v1577_v32, %v2437_v0  ;;  %v1346_v8 = vsel %vm1069_vm4, %v1344_v12, %v1345_v62  ;;  %v1854_v31 = vpop.f32.mrf.mxu1 }
 0x232   : > { %1761 = vmatmul.f32.gmra.mxu0 %v1545_v42  ;;  %1874 = vmatmul.f32.gmra.mxu1 %v1609_v7  ;;  %v2463_v15 = vpack.i.bf16 %v1346_v8, %v1122_v34  ;;  %v1513_v14 = vsel %vm235_vm0, %v3484_v11, %v2441_v16  ;;  %v1578_v26 = vsel %vm235_vm0, %v3495_v39, %v2442_v2  ;;  %v2447_v22 = vunpack.i.h.bf16 %v3657_v37 }
 0x233   : > { %vm2160_vm11 = vcmp.ge.f32.partialorder %v2075_v6, 0.0  ;;  %v2192_v57 = vmul.f32 0.1, %v2075_v6  ;;  %1981 = vmatmul.f32.gmra.mxu2 %v1545_v42  ;;  %2094 = vmatmul.f32.gmra.mxu3 %v1609_v7  ;;  %v1124_v36 = vsel %vm1069_vm4, %v1121_v29, %v1123_v50  ;;  %v1348_v38 = vsel %vm1069_vm4, %v1345_v62, %v1347_v24  ;;  %v2546_v50 = vld [vmem:[%s2597_s17 + $0x1c0] sm:$0xff] }
 0x234   : > { %2464 = vrot.lane.b32.xlu0 %v2463_v15, %s2562_s20  ;;  %v1546_v39 = vsel %vm1530_vm5, %v1513_v14, %v2441_v16  ;;  %v1610_v40 = vsel %vm1530_vm5, %v1578_v26, %v2442_v2  ;;  %v2446_v33 = vunpack.i.l.bf16 %v3657_v37  ;;  %v2468_v0 = vpack.i.bf16 %v1348_v38, %v1124_v36  ;;  %v2547_v36 = vld [vmem:[%s2597_s17 + $0x1c8] sm:$0xff] }
 0x235   : > { %v2224_v17 = vsel %vm2160_vm11, %v2075_v6, %v2192_v57  ;;  %555 = vrot.lane.b32.xlu2 %v2544_v4, %s2561_s19  ;;  %553 = vrot.lane.b32.xlu1 %v2545_v5, %s2561_s19  ;;  %v709_v18 = vpop.permute.xlu2 %708  ;;  %v705_v43 = vpop.permute.xlu0 %704  ;;  %v1855_v45 = vadd.f32 %v1854_v31, %v1742_v13  ;;  %v1579_v52 = vsel %vm235_vm0, %v3528_v56, %v2447_v22 }
 0x236   : > { %2256 = vst.msk [vmem:[%s3576_s28 + $0x28] sm:$0xff] %vm597_vm3, %v2224_v17  ;;  %v832_v20 = vpop.permute.xlu1 %831  ;;  %v1964_v9 = vpop.f32.mrf.mxu2  ;;  %v1514_v32 = vsel %vm235_vm0, %v3526_v55, %v2446_v33  ;;  %v1611_v7 = vsel %vm1530_vm5, %v1579_v52, %v2447_v22 }
 0x237   : > { %782 = vst.msk [vmem:[#allocation2 + $0x248] sm:$0xff] %vm468_vm1, %v709_v18  ;;  %v1965_v21 = vadd.f32 %v1964_v9, %v1852_v3  ;;  %v2077_v25 = vpop.f32.mrf.mxu3  ;;  %v1547_v42 = vsel %vm1530_vm5, %v1514_v32, %v2446_v33  ;;  %v2549_v32 = vld [vmem:[%s2597_s17 + $0x1e8] sm:$0xff] }
 0x238   : > { %780 = vst.msk [vmem:[#allocation2 + $0x218] sm:$0xff] %vm468_vm1, %v705_v43 }
 0x239   : > { %907 = vst.msk [vmem:[#allocation2 + $0x211] sm:$0xff] %vm597_vm3, %v832_v20  ;;  %v2078_v11 = vadd.f32 %v2077_v25, %v1965_v21 }
 0x23a   : > { %908 = vst.msk [vmem:[#allocation2 + $0x219] sm:$0xff] %vm597_vm3, %v3648_v53  ;;  %1764 = vmatmul.f32.gmra.mxu0 %v1546_v39  ;;  %1877 = vmatmul.f32.gmra.mxu1 %v1610_v40 }
 0x23b   : > { %vm2161_vm12 = vcmp.ge.f32.partialorder %v2078_v11, 0.0  ;;  %v2193_v63 = vmul.f32 0.1, %v2078_v11  ;;  %1984 = vmatmul.f32.gmra.mxu2 %v1546_v39  ;;  %2097 = vmatmul.f32.gmra.mxu3 %v1610_v40  ;;  %v230_v39 = vld [vmem:[%s2597_s17 + $0x1d8] sm:$0xff] }
 0x23c   : > { %716 = vrot.lane.b32.xlu0 %v226_v27, %s2559_s18 }
 0x23d   : > { %v2225_v59 = vsel %vm2161_vm12, %v2078_v11, %v2193_v63  ;;  %714 = vrot.lane.b32.xlu2 %v225_v41, %s2559_s18  ;;  %2469 = vrot.lane.b32.xlu1 %v2468_v0, %s2562_s20  ;;  %v550_v37 = vpop.permute.xlu2 %549  ;;  %v546_v29 = vpop.permute.xlu0 %545  ;;  %v229_v11 = vld [vmem:[%s2597_s17 + $0x1d0] sm:$0xff] }
 0x23e   : > { %2257 = vst.msk [vmem:[%s3576_s28 + $0x30] sm:$0xff] %vm597_vm3, %v2225_v59  ;;  %v548_v53 = vpop.permute.xlu1 %547  ;;  %v1967_v49 = vpop.f32.mrf.mxu2 }
 0x23f   : > { %621 = vst.msk [vmem:[#allocation2 + $0x231] sm:$0xff] %vm597_vm3, %v548_v53  ;;  %v1968_v12 = vadd.f32 %v1967_v49, %v1855_v45  ;;  %v2080_v54 = vpop.f32.mrf.mxu3 }
 0x240   : > { %622 = vst.msk [vmem:[#allocation2 + $0x259] sm:$0xff] %vm597_vm3, %v550_v37  ;;  %v3723_v1 = vld [vmem:[#allocation2 + $0x210] sm:$0xff]  ;;  %v2548_v37 = vld [vmem:[%s2597_s17 + $0x1e0] sm:$0xff] }
 0x241   : > { %620 = vst.msk [vmem:[#allocation2 + $0x229] sm:$0xff] %vm597_vm3, %v546_v29  ;;  %v2081_v6 = vadd.f32 %v2080_v54, %v1968_v12  ;;  %v3721_v56 = vld [vmem:[#allocation2 + $0x218] sm:$0xff]  ;;  %v987_v58 = vld [vmem:[#allocation2 + $0x220] sm:$0x1]  ;;  %v1125_v3 = vrot.slane %v3723_v1, 1 }
 0x242   : > { %1767 = vmatmul.f32.gmra.mxu0 %v1547_v42  ;;  %1880 = vmatmul.f32.gmra.mxu1 %v1611_v7  ;;  %v1126_v35 = vrot.slane %v3721_v56, 1  ;;  %v1128_v8 = vrot.slane %v987_v58, 1  ;;  %v234_v58 = vld [vmem:[%s2597_s17 + $0x1f8] sm:$0xff] }
 0x243   : > { %vm2162_vm13 = vcmp.ge.f32.partialorder %v2081_v6, 0.0  ;;  %v2194_v55 = vmul.f32 0.1, %v2081_v6  ;;  %1987 = vmatmul.f32.gmra.mxu2 %v1547_v42  ;;  %2100 = vmatmul.f32.gmra.mxu3 %v1611_v7 }
 0x244   : > { %557 = vrot.lane.b32.xlu0 %v2546_v50, %s2561_s19  ;;  %v1127_v14 = vsel %vm1069_vm4, %v1125_v3, %v1126_v35 }
 0x245   : > { %v2226_v61 = vsel %vm2162_vm13, %v2081_v6, %v2194_v55  ;;  %845 = vrot.lane.b32.xlu2 %v226_v27, %s2561_s19  ;;  %843 = vrot.lane.b32.xlu1 %v225_v41, %s2561_s19  ;;  %v2450_v2 = vpop.permute.xlu0 %2449  ;;  %v233_v55 = vld [vmem:[%s2597_s17 + $0x1f0] sm:$0xff] }
 0x246   : > { %2258 = vst.msk [vmem:[%s3576_s28 + $0x38] sm:$0xff] %vm597_vm3, %v2226_v61  ;;  %v707_v16 = vpop.permute.xlu1 %706  ;;  %v2452_v34 = vunpack.i.h.bf16 %v2450_v2  ;;  %v2451_v62 = vunpack.i.l.bf16 %v2450_v2  ;;  %v990_v57 = vld [vmem:[#allocation2 + $0x238] sm:$0x1]  ;;  %v1744_v61 = vpop.f32.mrf.mxu0 }
 0x247   : > { %781 = vst.msk [vmem:[#allocation2 + $0x240] sm:$0xff] %vm468_vm1, %v707_v16  ;;  %v1352_v24 = vrot.slane %v990_v57, 1  ;;  %v3766_v63 = vld [vmem:[#allocation2 + $0x258] sm:$0xff]  ;;  %v1745_v2 = vadd.f32 %v3561_v19, %v1744_v61  ;;  %v1857_v16 = vpop.f32.mrf.mxu1 }
 0x248   : > { %v1515_v17 = vsel %vm235_vm0, %v3524_v30, %v2451_v62  ;;  %v1580_v4 = vsel %vm235_vm0, %v3537_v60, %v2452_v34  ;;  %v3738_v5 = vld [vmem:[#allocation2 + $0x230] sm:$0xff]  ;;  %v3740_v15 = vld [vmem:[#allocation2 + $0x228] sm:$0xff]  ;;  %v1129_v30 = vsel %vm1069_vm4, %v1126_v35, %v1128_v8  ;;  %v1354_v49 = vrot.slane %v3766_v63, 1 }
 0x249   : > { %v1548_v18 = vsel %vm1530_vm5, %v1515_v17, %v2451_v62  ;;  %v1612_v43 = vsel %vm1530_vm5, %v1580_v4, %v2452_v34  ;;  %v1350_v20 = vrot.slane %v3738_v5, 1  ;;  %v1349_v9 = vrot.slane %v3740_v15, 1 }
 0x24a   : > { %1770 = vmatmul.f32.gmra.mxu0 %v1548_v18  ;;  %1883 = vmatmul.f32.gmra.mxu1 %v1612_v43  ;;  %v1858_v34 = vadd.f32 %v1857_v16, %v1745_v2 }
 0x24b   : > { %1990 = vmatmul.f32.gmra.mxu2 %v1548_v18  ;;  %2103 = vmatmul.f32.gmra.mxu3 %v1612_v43  ;;  %v1353_v60 = vsel %vm1069_vm4, %v1350_v20, %v1352_v24  ;;  %v1351_v26 = vsel %vm1069_vm4, %v1349_v9, %v1350_v20 }
 0x24c   : > { %v2478_v21 = vpack.i.bf16 %v1353_v60, %v1129_v30  ;;  %v2473_v25 = vpack.i.bf16 %v1351_v26, %v1127_v14 }
 0x24d   : > { %559 = vrot.lane.b32.xlu1 %v2547_v36, %s2561_s19  ;;  %v836_v38 = vpop.permute.xlu0 %835 }
 0x24e   : > { %2474 = vrot.lane.b32.xlu2 %v2473_v25, %s2562_s20  ;;  %v838_v13 = vpop.permute.xlu1 %837  ;;  %909 = vst.msk [vmem:[#allocation2 + $0x241] sm:$0xff] %vm597_vm3, %v836_v38  ;;  %2479 = vrot.lane.b32.xlu0 %v2478_v21, %s2562_s20  ;;  %v1747_v4 = vpop.f32.mrf.mxu0 }
 0x24f   : > { %910 = vst.msk [vmem:[#allocation2 + $0x249] sm:$0xff] %vm597_vm3, %v838_v13  ;;  %v1748_v43 = vadd.f32 %v3561_v19, %v1747_v4  ;;  %v1860_v20 = vpop.f32.mrf.mxu1 }
 0x251   : > { %v1861_v9 = vadd.f32 %v1860_v20, %v1748_v43 }
 0x255   : > { %718 = vrot.lane.b32.xlu1 %v229_v11, %s2559_s18  ;;  %v552_v40 = vpop.permute.xlu0 %551  ;;  %v3764_v33 = vld [vmem:[#allocation2 + $0x240] sm:$0xff] }
 0x256   : > { %720 = vrot.lane.b32.xlu2 %v230_v39, %s2559_s18  ;;  %623 = vst.msk [vmem:[#allocation2 + $0x261] sm:$0xff] %vm597_vm3, %v552_v40  ;;  %847 = vrot.lane.b32.xlu0 %v229_v11, %s2561_s19  ;;  %v3762_v22 = vld [vmem:[#allocation2 + $0x248] sm:$0xff]  ;;  %v993_v41 = vld [vmem:[#allocation2 + $0x250] sm:$0x1]  ;;  %v1130_v31 = vrot.slane %v3764_v33, 1 }
 0x257   : > { %v1131_v0 = vrot.slane %v3762_v22, 1  ;;  %v1133_v59 = vrot.slane %v993_v41, 1 }
 0x259   : > { %v1132_v12 = vsel %vm1069_vm4, %v1130_v31, %v1131_v0  ;;  %v1134_v6 = vsel %vm1069_vm4, %v1131_v0, %v1133_v59 }
 0x25d   : > { %849 = vrot.lane.b32.xlu1 %v230_v39, %s2561_s19  ;;  %v3771_v27 = vld [vmem:[#allocation2 + $0x260] sm:$0xff]  ;;  %v996_v45 = vld [vmem:[#allocation2 + $0x268] sm:$0x1]  ;;  %v711_v50 = vpop.permute.xlu0 %710 }
 0x25e   : > { %561 = vrot.lane.b32.xlu2 %v2548_v37, %s2561_s19  ;;  %v1355_v29 = vrot.slane %v3771_v27, 1  ;;  %v1357_v53 = vrot.slane %v996_v45, 1  ;;  %563 = vrot.lane.b32.xlu0 %v2549_v32, %s2561_s19  ;;  %783 = vst.msk [vmem:[#allocation2 + $0x270] sm:$0xff] %vm468_vm1, %v711_v50 }
 0x260   : > { %v1358_v52 = vsel %vm1069_vm4, %v1355_v29, %v1357_v53  ;;  %v1356_v54 = vsel %vm1069_vm4, %v1354_v49, %v1355_v29 }
 0x261   : > { %v2483_v42 = vpack.i.bf16 %v1356_v54, %v1132_v12  ;;  %v2488_v7 = vpack.i.bf16 %v1358_v52, %v1134_v6 }
 0x265   : > { %2484 = vrot.lane.b32.xlu1 %v2483_v42, %s2562_s20  ;;  %v842_v32 = vpop.permute.xlu0 %841 }
 0x266   : > { %2489 = vrot.lane.b32.xlu2 %v2488_v7, %s2562_s20  ;;  %722 = vrot.lane.b32.xlu0 %v233_v55, %s2559_s18 }
 0x26d   : > { %724 = vrot.lane.b32.xlu1 %v234_v58, %s2559_s18 }
 0x26e   : > { %851 = vrot.lane.b32.xlu2 %v233_v55, %s2561_s19  ;;  %853 = vrot.lane.b32.xlu0 %v234_v58, %s2561_s19  ;;  %v1750_v38 = vpop.f32.mrf.mxu0  ;;  %v1863_v53 = vpop.f32.mrf.mxu1 }
 0x26f   : > { %v1751_v31 = vadd.f32 %v3561_v19, %v1750_v38 }
 0x271   : > { %v1864_v52 = vadd.f32 %v1863_v53, %v1751_v31 }
 0x275   : > { %v1970_v62 = vpop.f32.mrf.mxu2  ;;  %v2083_v35 = vpop.f32.mrf.mxu3 }
 0x276   : > { %v1971_v57 = vadd.f32 %v1970_v62, %v1858_v34 }
 0x278   : > { %v2084_v8 = vadd.f32 %v2083_v35, %v1971_v57 }
 0x27a   : > { %vm2163_vm14 = vcmp.ge.f32.partialorder %v2084_v8, 0.0  ;;  %v2195_v24 = vmul.f32 0.1, %v2084_v8 }
 0x27c   : > { %v2227_v3 = vsel %vm2163_vm14, %v2084_v8, %v2195_v24 }
 0x27d   : > { %2259 = vst.msk [vmem:[%s3576_s28 + $0x40] sm:$0xff] %vm597_vm3, %v2227_v3 }
 0x27f   : > { %v2460_v17 = vpop.permute.xlu2 %2459 }
 0x280   : > { %v2462_v37 = vunpack.i.h.bf16 %v2460_v17  ;;  %v2461_v29 = vunpack.i.l.bf16 %v2460_v17 }
 0x282   : > { %v1517_v6 = vsel %vm235_vm0, %v3619_v46, %v2461_v29  ;;  %v1582_v42 = vsel %vm235_vm0, %v3633_v23, %v2462_v37 }
 0x283   : > { %v1550_v61 = vsel %vm1530_vm5, %v1517_v6, %v2461_v29  ;;  %v1614_v2 = vsel %vm1530_vm5, %v1582_v42, %v2462_v37 }
 0x286   : > { %v1753_v49 = vpop.f32.mrf.mxu0  ;;  %v1866_v23 = vpop.f32.mrf.mxu1 }
 0x287   : > { %v840_v18 = vpop.permute.xlu2 %839  ;;  %v1754_v55 = vadd.f32 %v3561_v19, %v1753_v49 }
 0x289   : > { %v1867_v16 = vadd.f32 %v1866_v23, %v1754_v55 }
 0x28d   : > { %v1973_v30 = vpop.f32.mrf.mxu2  ;;  %v2086_v26 = vpop.f32.mrf.mxu3 }
 0x28e   : > { %v1974_v60 = vadd.f32 %v1973_v30, %v1861_v9 }
 0x28f   : > { %v556_v14 = vpop.permute.xlu2 %555 }
 0x290   : > { %625 = vst.msk [vmem:[#allocation2 + $0x291] sm:$0xff] %vm597_vm3, %v556_v14  ;;  %v2087_v21 = vadd.f32 %v2086_v26, %v1974_v60 }
 0x292   : > { %vm2164_vm15 = vcmp.ge.f32.partialorder %v2087_v21, 0.0  ;;  %v2196_v25 = vmul.f32 0.1, %v2087_v21 }
 0x294   : > { %v2228_v36 = vsel %vm2164_vm15, %v2087_v21, %v2196_v25 }
 0x295   : > { %2260 = vst.msk [vmem:[%s3576_s28 + $0x48] sm:$0xff] %vm597_vm3, %v2228_v36 }
 0x297   : > { %v715_v13 = vpop.permute.xlu2 %714  ;;  %v2455_v11 = vpop.permute.xlu1 %2454  ;;  %v1002_v14 = vld [vmem:[#allocation2 + $0x298] sm:$0x1] }
 0x298   : > { %785 = vst.msk [vmem:[#allocation2 + $0x2a0] sm:$0xff] %vm468_vm1, %v715_v13  ;;  %v2457_v39 = vunpack.i.h.bf16 %v2455_v11  ;;  %v2456_v40 = vunpack.i.l.bf16 %v2455_v11  ;;  %v1756_v8 = vpop.f32.mrf.mxu0 }
 0x29a   : > { %v1516_v41 = vsel %vm235_vm0, %v3621_v51, %v2456_v40  ;;  %v1581_v0 = vsel %vm235_vm0, %v3623_v28, %v2457_v39 }
 0x29b   : > { %v1549_v45 = vsel %vm1530_vm5, %v1516_v41, %v2456_v40  ;;  %v1613_v59 = vsel %vm1530_vm5, %v1581_v0, %v2457_v39  ;;  %v1869_v39 = vpop.f32.mrf.mxu1 }
 0x29c   : > { %1773 = vmatmul.f32.gmra.mxu0 %v1549_v45  ;;  %1886 = vmatmul.f32.gmra.mxu1 %v1613_v59 }
 0x29d   : > { %1993 = vmatmul.f32.gmra.mxu2 %v1549_v45  ;;  %2106 = vmatmul.f32.gmra.mxu3 %v1613_v59  ;;  %v1757_v59 = vadd.f32 %v3561_v19, %v1756_v8 }
 0x29f   : > { %v3807_v51 = vpop.permute.xlu2 %845  ;;  %v713_v12 = vpop.permute.xlu1 %712 }
 0x2a0   : > { %784 = vst.msk [vmem:[#allocation2 + $0x278] sm:$0xff] %vm468_vm1, %v713_v12  ;;  %v1976_v28 = vpop.f32.mrf.mxu2  ;;  %v2089_v54 = vpop.f32.mrf.mxu3 }
 0x2a1   : > { %911 = vst.msk [vmem:[#allocation2 + $0x271] sm:$0xff] %vm597_vm3, %v840_v18  ;;  %v1977_v7 = vadd.f32 %v1976_v28, %v1864_v52  ;;  %v1759_v28 = vpop.f32.mrf.mxu0 }
 0x2a2   : > { %912 = vst.msk [vmem:[#allocation2 + $0x279] sm:$0xff] %vm597_vm3, %v842_v32 }
 0x2a3   : > { %v2090_v58 = vadd.f32 %v2089_v54, %v1977_v7 }
 0x2a4   : > { %1776 = vmatmul.f32.gmra.mxu0 %v1550_v61  ;;  %1889 = vmatmul.f32.gmra.mxu1 %v1614_v2 }
 0x2a5   : > { %vm2165_vm2 = vcmp.ge.f32.partialorder %v2090_v58, 0.0  ;;  %v2197_v46 = vmul.f32 0.1, %v2090_v58  ;;  %1996 = vmatmul.f32.gmra.mxu2 %v1550_v61  ;;  %2109 = vmatmul.f32.gmra.mxu3 %v1614_v2 }
 0x2a6   : > { %v2465_v50 = vpop.permute.xlu0 %2464 }
 0x2a7   : > { %v2229_v34 = vsel %vm2165_vm2, %v2090_v58, %v2197_v46  ;;  %v554_v62 = vpop.permute.xlu1 %553  ;;  %v2467_v3 = vunpack.i.h.bf16 %v2465_v50  ;;  %v2466_v17 = vunpack.i.l.bf16 %v2465_v50  ;;  %v1870_v58 = vadd.f32 %v1869_v39, %v1757_v59 }
 0x2a8   : > { %2261 = vst.msk [vmem:[%s3576_s28 + $0x50] sm:$0xff] %vm597_vm3, %v2229_v34  ;;  %v3821_v57 = vpop.permute.xlu2 %2474  ;;  %v1979_v35 = vpop.f32.mrf.mxu2  ;;  %v3826_v9 = vld [vmem:[#allocation2 + $0x270] sm:$0xff]  ;;  %v1760_v34 = vadd.f32 %v3561_v19, %v1759_v28 }
 0x2a9   : > { %624 = vst.msk [vmem:[#allocation2 + $0x289] sm:$0xff] %vm597_vm3, %v554_v62  ;;  %v1980_v24 = vadd.f32 %v1979_v35, %v1867_v16  ;;  %v2092_v4 = vpop.f32.mrf.mxu3  ;;  %v3824_v43 = vld [vmem:[#allocation2 + $0x278] sm:$0xff]  ;;  %v999_v20 = vld [vmem:[#allocation2 + $0x280] sm:$0x1]  ;;  %v1518_v30 = vsel %vm235_vm0, %v3659_v10, %v2466_v17  ;;  %v1583_v60 = vsel %vm235_vm0, %v3665_v44, %v2467_v3  ;;  %v1135_v13 = vrot.slane %v3826_v9, 1  ;;  %v1872_v35 = vpop.f32.mrf.mxu1 }
 0x2aa   : > { %v1551_v21 = vsel %vm1530_vm5, %v1518_v30, %v2466_v17  ;;  %v1615_v25 = vsel %vm1530_vm5, %v1583_v60, %v2467_v3  ;;  %v1136_v36 = vrot.slane %v3824_v43, 1  ;;  %v1138_v38 = vrot.slane %v999_v20, 1 }
 0x2ab   : > { %v2093_v18 = vadd.f32 %v2092_v4, %v1980_v24  ;;  %v1362_v44 = vrot.slane %v1002_v14, 1  ;;  %v2476_v61 = vunpack.i.l.bf16 %v3821_v57  ;;  %v1873_v17 = vadd.f32 %v1872_v35, %v1760_v34 }
 0x2ac   : > { %1779 = vmatmul.f32.gmra.mxu0 %v1551_v21  ;;  %1892 = vmatmul.f32.gmra.mxu1 %v1615_v25  ;;  %v1139_v52 = vsel %vm1069_vm4, %v1136_v36, %v1138_v38  ;;  %v1137_v12 = vsel %vm1069_vm4, %v1135_v13, %v1136_v36 }
 0x2ad   : > { %vm2166_vm6 = vcmp.ge.f32.partialorder %v2093_v18, 0.0  ;;  %v2198_v26 = vmul.f32 0.1, %v2093_v18  ;;  %1999 = vmatmul.f32.gmra.mxu2 %v1551_v21  ;;  %2112 = vmatmul.f32.gmra.mxu3 %v1615_v25  ;;  %v1520_v8 = vsel %vm235_vm0, %v3723_v1, %v2476_v61 }
 0x2ae   : > { %v717_v37 = vpop.permute.xlu0 %716  ;;  %v1553_v19 = vsel %vm1530_vm5, %v1520_v8, %v2476_v61 }
 0x2af   : > { %v2230_v11 = vsel %vm2166_vm6, %v2093_v18, %v2198_v26  ;;  %v2470_v10 = vpop.permute.xlu1 %2469  ;;  %786 = vst.msk [vmem:[#allocation2 + $0x2a8] sm:$0xff] %vm468_vm1, %v717_v37  ;;  %v1762_v24 = vpop.f32.mrf.mxu0 }
 0x2b0   : > { %2262 = vst.msk [vmem:[%s3576_s28 + $0x58] sm:$0xff] %vm597_vm3, %v2230_v11  ;;  %v2472_v40 = vunpack.i.h.bf16 %v2470_v10  ;;  %v2471_v41 = vunpack.i.l.bf16 %v2470_v10  ;;  %v721_v0 = vpop.permute.xlu2 %720  ;;  %v3838_v31 = vld [vmem:[#allocation2 + $0x290] sm:$0xff]  ;;  %v3840_v45 = vld [vmem:[#allocation2 + $0x288] sm:$0xff] }
 0x2b1   : > { %788 = vst.msk [vmem:[#allocation2 + $0x2d8] sm:$0xff] %vm468_vm1, %v721_v0  ;;  %v1360_v29 = vrot.slane %v3838_v31, 1  ;;  %v1359_v53 = vrot.slane %v3840_v45, 1  ;;  %v1875_v25 = vpop.f32.mrf.mxu1 }
 0x2b2   : > { %v1519_v49 = vsel %vm235_vm0, %v3661_v48, %v2471_v41  ;;  %v1584_v32 = vsel %vm235_vm0, %v3667_v47, %v2472_v40  ;;  %914 = vst.msk [vmem:[#allocation2 + $0x2a9] sm:$0xff] %vm597_vm3, %v3807_v51  ;;  %v2477_v47 = vunpack.i.h.bf16 %v3821_v57 }
 0x2b3   : > { %v1552_v54 = vsel %vm1530_vm5, %v1519_v49, %v2471_v41  ;;  %v1616_v6 = vsel %vm1530_vm5, %v1584_v32, %v2472_v40  ;;  %v1363_v42 = vsel %vm1069_vm4, %v1360_v29, %v1362_v44  ;;  %v1361_v7 = vsel %vm1069_vm4, %v1359_v53, %v1360_v29 }
 0x2b4   : > { %v2498_v48 = vpack.i.bf16 %v1363_v42, %v1139_v52  ;;  %v2493_v55 = vpack.i.bf16 %v1361_v7, %v1137_v12  ;;  %1782 = vmatmul.f32.gmra.mxu0 %v1552_v54  ;;  %1895 = vmatmul.f32.gmra.mxu1 %v1616_v6  ;;  %v1585_v50 = vsel %vm235_vm0, %v3740_v15, %v2477_v47  ;;  %v3879_v15 = vld [vmem:[%s4070_s2] ss:$0 sm:$0xff] }
 0x2b5   : > { %2002 = vmatmul.f32.gmra.mxu2 %v1552_v54  ;;  %2115 = vmatmul.f32.gmra.mxu3 %v1616_v6  ;;  %v1617_v18 = vsel %vm1530_vm5, %v1585_v50, %v2477_v47  ;;  %v1763_v14 = vadd.f32 %v3879_v15, %v1762_v24 }
 0x2b6   : > { %v1982_v2 = vpop.f32.mrf.mxu2  ;;  %v2095_v46 = vpop.f32.mrf.mxu3  ;;  %2499 = vrot.lane.b32.xlu2 %v2498_v48, %s2562_s20  ;;  %2494 = vrot.lane.b32.xlu1 %v2493_v55, %s2562_s20 }
 0x2b7   : > { %v844_v51 = vpop.permute.xlu1 %843  ;;  %v1983_v23 = vadd.f32 %v1982_v2, %v1870_v58  ;;  %v558_v62 = vpop.permute.xlu0 %557  ;;  %v1876_v41 = vadd.f32 %v1875_v25, %v1763_v14 }
 0x2b8   : > { %913 = vst.msk [vmem:[#allocation2 + $0x2a1] sm:$0xff] %vm597_vm3, %v844_v51  ;;  %v562_v16 = vpop.permute.xlu2 %561  ;;  %v1765_v0 = vpop.f32.mrf.mxu0 }
 0x2b9   : > { %628 = vst.msk [vmem:[#allocation2 + $0x2e9] sm:$0xff] %vm597_vm3, %v562_v16  ;;  %v2096_v57 = vadd.f32 %v2095_v46, %v1983_v23  ;;  %v1005_v13 = vld [vmem:[#allocation2 + $0x2b0] sm:$0x1]  ;;  %v1766_v55 = vadd.f32 %v3879_v15, %v1765_v0 }
 0x2ba   : > { %626 = vst.msk [vmem:[#allocation2 + $0x2b9] sm:$0xff] %vm597_vm3, %v558_v62  ;;  %v1143_v52 = vrot.slane %v1005_v13, 1  ;;  %v1878_v62 = vpop.f32.mrf.mxu1 }
 0x2bb   : > { %vm2167_vm7 = vcmp.ge.f32.partialorder %v2096_v57, 0.0  ;;  %v2199_v3 = vmul.f32 0.1, %v2096_v57 }
 0x2bc   : > { %1785 = vmatmul.f32.gmra.mxu0 %v1553_v19  ;;  %1898 = vmatmul.f32.gmra.mxu1 %v1617_v18 }
 0x2bd   : > { %v2231_v4 = vsel %vm2167_vm7, %v2096_v57, %v2199_v3  ;;  %2005 = vmatmul.f32.gmra.mxu2 %v1553_v19  ;;  %2118 = vmatmul.f32.gmra.mxu3 %v1617_v18  ;;  %v1879_v57 = vadd.f32 %v1878_v62, %v1766_v55 }
 0x2be   : > { %2263 = vst.msk [vmem:[%s3576_s28 + $0x60] sm:$0xff] %vm597_vm3, %v2231_v4  ;;  %v1985_v20 = vpop.f32.mrf.mxu2  ;;  %v2098_v30 = vpop.f32.mrf.mxu3 }
 0x2bf   : > { %v560_v1 = vpop.permute.xlu1 %559  ;;  %v1986_v60 = vadd.f32 %v1985_v20, %v1873_v17  ;;  %v3882_v10 = vld [vmem:[#allocation2 + $0x2a8] sm:$0xff]  ;;  %v3884_v44 = vld [vmem:[#allocation2 + $0x2a0] sm:$0xff] }
 0x2c0   : > { %627 = vst.msk [vmem:[#allocation2 + $0x2c1] sm:$0xff] %vm597_vm3, %v560_v1  ;;  %v2480_v26 = vpop.permute.xlu0 %2479  ;;  %v2490_v20 = vpop.permute.xlu2 %2489  ;;  %v3919_v1 = vld [vmem:[#allocation2 + $0x2e8] sm:$0xff] }
 0x2c1   : > { %v2099_v21 = vadd.f32 %v2098_v30, %v1986_v60  ;;  %v2482_v36 = vunpack.i.h.bf16 %v2480_v26  ;;  %v2481_v38 = vunpack.i.l.bf16 %v2480_v26  ;;  %v3892_v53 = vld [vmem:[#allocation2 + $0x2b8] sm:$0xff] }
 0x2c2   : > { %v1364_v48 = vrot.slane %v3892_v53, 1 }
 0x2c3   : > { %vm2168_vm8 = vcmp.ge.f32.partialorder %v2099_v21, 0.0  ;;  %v2200_v11 = vmul.f32 0.1, %v2099_v21  ;;  %v1521_v39 = vsel %vm235_vm0, %v3721_v56, %v2481_v38  ;;  %v1586_v40 = vsel %vm235_vm0, %v3738_v5, %v2482_v36 }
 0x2c4   : > { %v1554_v37 = vsel %vm1530_vm5, %v1521_v39, %v2481_v38  ;;  %v1618_v29 = vsel %vm1530_vm5, %v1586_v40, %v2482_v36  ;;  %v1141_v56 = vrot.slane %v3882_v10, 1  ;;  %v1140_v5 = vrot.slane %v3884_v44, 1 }
 0x2c5   : > { %v2232_v59 = vsel %vm2168_vm8, %v2099_v21, %v2200_v11  ;;  %1788 = vmatmul.f32.gmra.mxu0 %v1554_v37  ;;  %1901 = vmatmul.f32.gmra.mxu1 %v1618_v29 }
 0x2c6   : > { %2264 = vst.msk [vmem:[%s3576_s28 + $0x68] sm:$0xff] %vm597_vm3, %v2232_v59  ;;  %v1988_v49 = vpop.f32.mrf.mxu2  ;;  %v2101_v32 = vpop.f32.mrf.mxu3  ;;  %2008 = vmatmul.f32.gmra.mxu2 %v1554_v37  ;;  %2121 = vmatmul.f32.gmra.mxu3 %v1618_v29  ;;  %v1144_v61 = vsel %vm1069_vm4, %v1141_v56, %v1143_v52  ;;  %v1142_v46 = vsel %vm1069_vm4, %v1140_v5, %v1141_v56  ;;  %v2492_v5 = vunpack.i.h.bf16 %v2490_v20 }
 0x2c7   : > { %v719_v12 = vpop.permute.xlu1 %718  ;;  %v1989_v28 = vadd.f32 %v1988_v49, %v1876_v41  ;;  %v3898_v54 = vld [vmem:[#allocation2 + $0x2c0] sm:$0xff]  ;;  %v1008_v6 = vld [vmem:[#allocation2 + $0x2c8] sm:$0x1]  ;;  %v1369_v41 = vrot.slane %v3919_v1, 1 }
 0x2c8   : > { %787 = vst.msk [vmem:[#allocation2 + $0x2d0] sm:$0xff] %vm468_vm1, %v719_v12  ;;  %v1365_v42 = vrot.slane %v3898_v54, 1  ;;  %v1367_v7 = vrot.slane %v1008_v6, 1  ;;  %v848_v58 = vpop.permute.xlu0 %847  ;;  %v2491_v12 = vunpack.i.l.bf16 %v2490_v20  ;;  %v1588_v55 = vsel %vm235_vm0, %v3771_v27, %v2492_v5  ;;  %v1881_v20 = vpop.f32.mrf.mxu1 }
 0x2c9   : > { %v2102_v47 = vadd.f32 %v2101_v32, %v1989_v28  ;;  %915 = vst.msk [vmem:[#allocation2 + $0x2d1] sm:$0xff] %vm597_vm3, %v848_v58 }
 0x2ca   : > { %v1368_v2 = vsel %vm1069_vm4, %v1365_v42, %v1367_v7  ;;  %v1366_v51 = vsel %vm1069_vm4, %v1364_v48, %v1365_v42  ;;  %v852_v42 = vpop.permute.xlu2 %851  ;;  %v1523_v48 = vsel %vm235_vm0, %v3762_v22, %v2491_v12 }
 0x2cb   : > { %vm2169_vm9 = vcmp.ge.f32.partialorder %v2102_v47, 0.0  ;;  %v2201_v23 = vmul.f32 0.1, %v2102_v47  ;;  %v2508_v16 = vpack.i.bf16 %v1368_v2, %v1144_v61  ;;  %v2503_v34 = vpack.i.bf16 %v1366_v51, %v1142_v46  ;;  %v3951_v2 = vld [vmem:[#allocation2 + $0x320] sm:$0xff]  ;;  %v1020_v46 = vld [vmem:[#allocation2 + $0x328] sm:$0x1] }
 0x2cc   : > { %v1620_v61 = vsel %vm1530_vm5, %v1588_v55, %v2492_v5  ;;  %v3953_v51 = vld [vmem:[#allocation2 + $0x318] sm:$0xff]  ;;  %v1488_v22 = vrot.slane %v3951_v2, 1  ;;  %v1490_v27 = vrot.slane %v1020_v46, 1 }
 0x2cd   : > { %v2233_v35 = vsel %vm2169_vm9, %v2102_v47, %v2201_v23  ;;  %2509 = vrot.lane.b32.xlu1 %v2508_v16, %s2562_s20  ;;  %2504 = vrot.lane.b32.xlu0 %v2503_v34, %s2562_s20  ;;  %v1556_v47 = vsel %vm1530_vm5, %v1523_v48, %v2491_v12  ;;  %v1487_v23 = vrot.slane %v3953_v51, 1 }
 0x2ce   : > { %2265 = vst.msk [vmem:[%s3576_s28 + $0x70] sm:$0xff] %vm597_vm3, %v2233_v35  ;;  %v1991_v8 = vpop.f32.mrf.mxu2  ;;  %v2104_v3 = vpop.f32.mrf.mxu3 }
 0x2cf   : > { %v850_v50 = vpop.permute.xlu1 %849  ;;  %v1992_v24 = vadd.f32 %v1991_v8, %v1879_v57 }
 0x2d0   : > { %916 = vst.msk [vmem:[#allocation2 + $0x2d9] sm:$0xff] %vm597_vm3, %v850_v50  ;;  %v564_v17 = vpop.permute.xlu0 %563  ;;  %v3917_v30 = vld [vmem:[#allocation2 + $0x2d0] sm:$0xff]  ;;  %v1491_v50 = vsel %vm1069_vm4, %v1488_v22, %v1490_v27 }
 0x2d1   : > { %v2105_v4 = vadd.f32 %v2104_v3, %v1992_v24  ;;  %629 = vst.msk [vmem:[#allocation2 + $0x2f1] sm:$0xff] %vm597_vm3, %v564_v17  ;;  %v1145_v40 = vrot.slane %v3917_v30, 1  ;;  %v1489_v24 = vsel %vm1069_vm4, %v1487_v23, %v1488_v22 }
 0x2d3   : > { %vm2170_vm10 = vcmp.ge.f32.partialorder %v2105_v4, 0.0  ;;  %v2202_v19 = vmul.f32 0.1, %v2105_v4 }
 0x2d5   : > { %v2234_v18 = vsel %vm2170_vm10, %v2105_v4, %v2202_v19 }
 0x2d6   : > { %2266 = vst.msk [vmem:[%s3576_s28 + $0x78] sm:$0xff] %vm597_vm3, %v2234_v18  ;;  %v1768_v18 = vpop.f32.mrf.mxu0 }
 0x2d7   : > { %v2485_v60 = vpop.permute.xlu1 %2484  ;;  %v3921_v14 = vld [vmem:[#allocation2 + $0x2d8] sm:$0xff]  ;;  %v1011_v26 = vld [vmem:[#allocation2 + $0x2e0] sm:$0x1] }
 0x2d8   : > { %v2487_v21 = vunpack.i.h.bf16 %v2485_v60  ;;  %v2486_v25 = vunpack.i.l.bf16 %v2485_v60  ;;  %v1146_v36 = vrot.slane %v3921_v14, 1  ;;  %v1148_v38 = vrot.slane %v1011_v26, 1  ;;  %v723_v13 = vpop.permute.xlu0 %722  ;;  %v3924_v11 = vld [vmem:[#allocation2 + $0x2f0] sm:$0xff]  ;;  %v1014_v39 = vld [vmem:[#allocation2 + $0x2f8] sm:$0x1] }
 0x2d9   : > { %789 = vst.msk [vmem:[#allocation2 + $0x300] sm:$0xff] %vm468_vm1, %v723_v13  ;;  %v1370_v29 = vrot.slane %v3924_v11, 1  ;;  %v1372_v56 = vrot.slane %v1014_v39, 1  ;;  %v1769_v60 = vadd.f32 %v3879_v15, %v1768_v18  ;;  %v1884_v13 = vpop.f32.mrf.mxu1 }
 0x2da   : > { %v1522_v0 = vsel %vm235_vm0, %v3764_v33, %v2486_v25  ;;  %v1587_v59 = vsel %vm235_vm0, %v3766_v63, %v2487_v21  ;;  %v1149_v37 = vsel %vm1069_vm4, %v1146_v36, %v1148_v38  ;;  %v1147_v52 = vsel %vm1069_vm4, %v1145_v40, %v1146_v36 }
 0x2db   : > { %v1555_v49 = vsel %vm1530_vm5, %v1522_v0, %v2486_v25  ;;  %v1619_v32 = vsel %vm1530_vm5, %v1587_v59, %v2487_v21  ;;  %v1371_v33 = vsel %vm1069_vm4, %v1369_v41, %v1370_v29  ;;  %v1373_v63 = vsel %vm1069_vm4, %v1370_v29, %v1372_v56 }
 0x2dc   : > { %1791 = vmatmul.f32.gmra.mxu0 %v1555_v49  ;;  %1904 = vmatmul.f32.gmra.mxu1 %v1619_v32  ;;  %v2513_v28 = vpack.i.bf16 %v1371_v33, %v1147_v52  ;;  %v2518_v6 = vpack.i.bf16 %v1373_v63, %v1149_v37  ;;  %v1882_v21 = vadd.f32 %v1881_v20, %v1769_v60 }
 0x2dd   : > { %2011 = vmatmul.f32.gmra.mxu2 %v1555_v49  ;;  %2124 = vmatmul.f32.gmra.mxu3 %v1619_v32 }
 0x2de   : > { %2514 = vrot.lane.b32.xlu2 %v2513_v28, %s2562_s20  ;;  %2519 = vrot.lane.b32.xlu0 %v2518_v6, %s2562_s20  ;;  %v1771_v26 = vpop.f32.mrf.mxu0 }
 0x2df   : > { %v725_v7 = vpop.permute.xlu1 %724  ;;  %v1772_v39 = vadd.f32 %v3879_v15, %v1771_v26 }
 0x2e0   : > { %790 = vst.msk [vmem:[#allocation2 + $0x308] sm:$0xff] %vm468_vm1, %v725_v7  ;;  %v854_v58 = vpop.permute.xlu0 %853 }
 0x2e1   : > { %917 = vst.msk [vmem:[#allocation2 + $0x301] sm:$0xff] %vm597_vm3, %v852_v42  ;;  %v1885_v59 = vadd.f32 %v1884_v13, %v1772_v39 }
 0x2e2   : > { %918 = vst.msk [vmem:[#allocation2 + $0x309] sm:$0xff] %vm597_vm3, %v854_v58 }
 0x2e4   : > { %1794 = vmatmul.f32.gmra.mxu0 %v1556_v47  ;;  %1907 = vmatmul.f32.gmra.mxu1 %v1620_v61 }
 0x2e5   : > { %2014 = vmatmul.f32.gmra.mxu2 %v1556_v47  ;;  %2127 = vmatmul.f32.gmra.mxu3 %v1620_v61 }
 0x2e8   : > { %v3957_v16 = vld [vmem:[#allocation2 + $0x300] sm:$0xff] }
 0x2e9   : > { %v3959_v34 = vld [vmem:[#allocation2 + $0x308] sm:$0xff]  ;;  %v1017_v62 = vld [vmem:[#allocation2 + $0x310] sm:$0x1]  ;;  %v1473_v57 = vrot.slane %v3957_v16, 1 }
 0x2ea   : > { %v1474_v35 = vrot.slane %v3959_v34, 1  ;;  %v1476_v8 = vrot.slane %v1017_v62, 1 }
 0x2ec   : > { %v1477_v3 = vsel %vm1069_vm4, %v1474_v35, %v1476_v8  ;;  %v1475_v17 = vsel %vm1069_vm4, %v1473_v57, %v1474_v35 }
 0x2ed   : > { %v2528_v4 = vpack.i.bf16 %v1491_v50, %v1477_v3  ;;  %v2523_v19 = vpack.i.bf16 %v1489_v24, %v1475_v17 }
 0x2ef   : > { %2529 = vrot.lane.b32.xlu2 %v2528_v4, %s2562_s20  ;;  %2524 = vrot.lane.b32.xlu1 %v2523_v19, %s2562_s20 }
 0x310   : > { %v2500_v63 = vpop.permute.xlu2 %2499 }
 0x311   : > { %v2502_v47 = vunpack.i.h.bf16 %v2500_v63  ;;  %v2501_v61 = vunpack.i.l.bf16 %v2500_v63 }
 0x313   : > { %v1590_v62 = vsel %vm235_vm0, %v3838_v31, %v2502_v47 }
 0x314   : > { %v1622_v24 = vsel %vm1530_vm5, %v1590_v62, %v2502_v47 }
 0x319   : > { %v1774_v40 = vpop.f32.mrf.mxu0  ;;  %v1887_v56 = vpop.f32.mrf.mxu1 }
 0x31a   : > { %v1775_v28 = vadd.f32 %v3879_v15, %v1774_v40 }
 0x31c   : > { %v1888_v22 = vadd.f32 %v1887_v56, %v1775_v28 }
 0x320   : > { %v1994_v25 = vpop.f32.mrf.mxu2  ;;  %v2107_v36 = vpop.f32.mrf.mxu3 }
 0x321   : > { %v1995_v38 = vadd.f32 %v1994_v25, %v1882_v21  ;;  %v1777_v6 = vpop.f32.mrf.mxu0  ;;  %v1890_v57 = vpop.f32.mrf.mxu1 }
 0x322   : > { %v1778_v35 = vadd.f32 %v3879_v15, %v1777_v6 }
 0x323   : > { %v2108_v41 = vadd.f32 %v2107_v36, %v1995_v38 }
 0x325   : > { %vm2171_vm1 = vcmp.ge.f32.partialorder %v2108_v41, 0.0  ;;  %v2203_v0 = vmul.f32 0.1, %v2108_v41 }
 0x327   : > { %v2235_v37 = vsel %vm2171_vm1, %v2108_v41, %v2203_v0 }
 0x328   : > { %2267 = vst.msk [vmem:[%s3576_s28 + $0x80] sm:$0xff] %vm597_vm3, %v2235_v37  ;;  %v1997_v29 = vpop.f32.mrf.mxu2  ;;  %v2110_v49 = vpop.f32.mrf.mxu3 }
 0x329   : > { %v1998_v32 = vadd.f32 %v1997_v29, %v1885_v59  ;;  %v2495_v52 = vpop.permute.xlu1 %2494  ;;  %v1780_v3 = vpop.f32.mrf.mxu0 }
 0x32a   : > { %v2497_v5 = vunpack.i.h.bf16 %v2495_v52  ;;  %v2496_v12 = vunpack.i.l.bf16 %v2495_v52  ;;  %v1781_v20 = vadd.f32 %v3879_v15, %v1780_v3  ;;  %v1893_v26 = vpop.f32.mrf.mxu1 }
 0x32b   : > { %v2111_v33 = vadd.f32 %v2110_v49, %v1998_v32 }
 0x32c   : > { %v1524_v7 = vsel %vm235_vm0, %v3826_v9, %v2496_v12  ;;  %v1589_v48 = vsel %vm235_vm0, %v3840_v45, %v2497_v5  ;;  %v1525_v45 = vsel %vm235_vm0, %v3824_v43, %v2501_v61  ;;  %v1891_v43 = vadd.f32 %v1890_v57, %v1778_v35 }
 0x32d   : > { %vm2172_vm4 = vcmp.ge.f32.partialorder %v2111_v33, 0.0  ;;  %v2204_v42 = vmul.f32 0.1, %v2111_v33  ;;  %v1557_v55 = vsel %vm1530_vm5, %v1524_v7, %v2496_v12  ;;  %v1621_v58 = vsel %vm1530_vm5, %v1589_v48, %v2497_v5 }
 0x32e   : > { %1797 = vmatmul.f32.gmra.mxu0 %v1557_v55  ;;  %1910 = vmatmul.f32.gmra.mxu1 %v1621_v58  ;;  %v1558_v50 = vsel %vm1530_vm5, %v1525_v45, %v2501_v61  ;;  %v1894_v13 = vadd.f32 %v1893_v26, %v1781_v20 }
 0x32f   : > { %v2236_v46 = vsel %vm2172_vm4, %v2111_v33, %v2204_v42  ;;  %2017 = vmatmul.f32.gmra.mxu2 %v1557_v55  ;;  %2130 = vmatmul.f32.gmra.mxu3 %v1621_v58 }
 0x330   : > { %2268 = vst.msk [vmem:[%s3576_s28 + $0x88] sm:$0xff] %vm597_vm3, %v2236_v46  ;;  %v2000_v27 = vpop.f32.mrf.mxu2  ;;  %v2113_v23 = vpop.f32.mrf.mxu3 }
 0x331   : > { %v2001_v9 = vadd.f32 %v2000_v27, %v1888_v22  ;;  %v1783_v39 = vpop.f32.mrf.mxu0 }
 0x332   : > { %v1784_v12 = vadd.f32 %v3879_v15, %v1783_v39  ;;  %v1896_v63 = vpop.f32.mrf.mxu1 }
 0x333   : > { %v2114_v8 = vadd.f32 %v2113_v23, %v2001_v9 }
 0x334   : > { %v1897_v6 = vadd.f32 %v1896_v63, %v1784_v12 }
 0x335   : > { %vm2173_vm11 = vcmp.ge.f32.partialorder %v2114_v8, 0.0  ;;  %v2205_v17 = vmul.f32 0.1, %v2114_v8 }
 0x336   : > { %1800 = vmatmul.f32.gmra.mxu0 %v1558_v50  ;;  %1913 = vmatmul.f32.gmra.mxu1 %v1622_v24 }
 0x337   : > { %2020 = vmatmul.f32.gmra.mxu2 %v1558_v50  ;;  %2133 = vmatmul.f32.gmra.mxu3 %v1622_v24  ;;  %v2237_v4 = vsel %vm2173_vm11, %v2114_v8, %v2205_v17 }
 0x338   : > { %2269 = vst.msk [vmem:[%s3576_s28 + $0x90] sm:$0xff] %vm597_vm3, %v2237_v4  ;;  %v2003_v31 = vpop.f32.mrf.mxu2  ;;  %v2116_v19 = vpop.f32.mrf.mxu3 }
 0x339   : > { %v2004_v18 = vadd.f32 %v2003_v31, %v1891_v43  ;;  %v2515_v42 = vpop.permute.xlu2 %2514  ;;  %v1786_v50 = vpop.f32.mrf.mxu0 }
 0x33a   : > { %v2517_v61 = vunpack.i.h.bf16 %v2515_v42  ;;  %v2516_v46 = vunpack.i.l.bf16 %v2515_v42  ;;  %v1787_v24 = vadd.f32 %v3879_v15, %v1786_v50  ;;  %v1899_v43 = vpop.f32.mrf.mxu1 }
 0x33b   : > { %v2117_v60 = vadd.f32 %v2116_v19, %v2004_v18 }
 0x33c   : > { %v1528_v27 = vsel %vm235_vm0, %v3917_v30, %v2516_v46  ;;  %v1593_v23 = vsel %vm235_vm0, %v3919_v1, %v2517_v61  ;;  %v1900_v4 = vadd.f32 %v1899_v43, %v1787_v24 }
 0x33d   : > { %vm2174_vm12 = vcmp.ge.f32.partialorder %v2117_v60, 0.0  ;;  %v2206_v21 = vmul.f32 0.1, %v2117_v60  ;;  %v1561_v62 = vsel %vm1530_vm5, %v1528_v27, %v2516_v46  ;;  %v1625_v57 = vsel %vm1530_vm5, %v1593_v23, %v2517_v61 }
 0x33f   : > { %v2505_v25 = vpop.permute.xlu0 %2504  ;;  %v2238_v40 = vsel %vm2174_vm12, %v2117_v60, %v2206_v21  ;;  %v2510_v41 = vpop.permute.xlu1 %2509 }
 0x340   : > { %v2507_v36 = vunpack.i.h.bf16 %v2505_v25  ;;  %v2506_v38 = vunpack.i.l.bf16 %v2505_v25  ;;  %2270 = vst.msk [vmem:[%s3576_s28 + $0x98] sm:$0xff] %vm597_vm3, %v2238_v40  ;;  %v2006_v0 = vpop.f32.mrf.mxu2  ;;  %v2119_v59 = vpop.f32.mrf.mxu3  ;;  %v2512_v52 = vunpack.i.h.bf16 %v2510_v41  ;;  %v2511_v5 = vunpack.i.l.bf16 %v2510_v41 }
 0x341   : > { %v2007_v49 = vadd.f32 %v2006_v0, %v1894_v13 }
 0x342   : > { %v1526_v37 = vsel %vm235_vm0, %v3884_v44, %v2506_v38  ;;  %v1591_v29 = vsel %vm235_vm0, %v3892_v53, %v2507_v36  ;;  %v1527_v53 = vsel %vm235_vm0, %v3882_v10, %v2511_v5  ;;  %v1592_v28 = vsel %vm235_vm0, %v3898_v54, %v2512_v52  ;;  %v1789_v31 = vpop.f32.mrf.mxu0  ;;  %v1902_v41 = vpop.f32.mrf.mxu1 }
 0x343   : > { %v1559_v32 = vsel %vm1530_vm5, %v1526_v37, %v2506_v38  ;;  %v1623_v56 = vsel %vm1530_vm5, %v1591_v29, %v2507_v36  ;;  %v2120_v33 = vadd.f32 %v2119_v59, %v2007_v49  ;;  %v1560_v58 = vsel %vm1530_vm5, %v1527_v53, %v2511_v5 }
 0x344   : > { %1803 = vmatmul.f32.gmra.mxu0 %v1559_v32  ;;  %1916 = vmatmul.f32.gmra.mxu1 %v1623_v56  ;;  %v1624_v47 = vsel %vm1530_vm5, %v1592_v28, %v2512_v52 }
 0x345   : > { %2023 = vmatmul.f32.gmra.mxu2 %v1559_v32  ;;  %2136 = vmatmul.f32.gmra.mxu3 %v1623_v56  ;;  %vm2175_vm13 = vcmp.ge.f32.partialorder %v2120_v33, 0.0  ;;  %v2207_v44 = vmul.f32 0.1, %v2120_v33 }
 0x347   : > { %v2239_v7 = vsel %vm2175_vm13, %v2120_v33, %v2207_v44 }
 0x348   : > { %2271 = vst.msk [vmem:[%s3576_s28 + $0xa0] sm:$0xff] %vm597_vm3, %v2239_v7 }
 0x349   : > { %v2009_v48 = vpop.f32.mrf.mxu2  ;;  %v2122_v22 = vpop.f32.mrf.mxu3 }
 0x34a   : > { %v2010_v55 = vadd.f32 %v2009_v48, %v1897_v6  ;;  %v2530_v21 = vpop.permute.xlu2 %2529 }
 0x34b   : > { %v2532_v0 = vunpack.i.h.bf16 %v2530_v21  ;;  %v2531_v59 = vunpack.i.l.bf16 %v2530_v21 }
 0x34c   : > { %1806 = vmatmul.f32.gmra.mxu0 %v1560_v58  ;;  %1919 = vmatmul.f32.gmra.mxu1 %v1624_v47  ;;  %v2123_v10 = vadd.f32 %v2122_v22, %v2010_v55 }
 0x34d   : > { %2026 = vmatmul.f32.gmra.mxu2 %v1560_v58  ;;  %2139 = vmatmul.f32.gmra.mxu3 %v1624_v47  ;;  %v1632_v56 = vsel %vm235_vm0, %v3951_v2, %v2532_v0 }
 0x34e   : > { %vm2176_vm14 = vcmp.ge.f32.partialorder %v2123_v10, 0.0  ;;  %v2208_v54 = vmul.f32 0.1, %v2123_v10  ;;  %v1634_v33 = vsel %vm1530_vm5, %v1632_v56, %v2532_v0 }
 0x350   : > { %v2240_v9 = vsel %vm2176_vm14, %v2123_v10, %v2208_v54  ;;  %v2520_v45 = vpop.permute.xlu0 %2519 }
 0x351   : > { %2272 = vst.msk [vmem:[%s3576_s28 + $0xa8] sm:$0xff] %vm597_vm3, %v2240_v9  ;;  %v2522_v35 = vunpack.i.h.bf16 %v2520_v45  ;;  %v2521_v8 = vunpack.i.l.bf16 %v2520_v45 }
 0x353   : > { %v1529_v30 = vsel %vm235_vm0, %v3921_v14, %v2521_v8  ;;  %v1594_v1 = vsel %vm235_vm0, %v3924_v11, %v2522_v35  ;;  %v1790_v11 = vadd.f32 %v3879_v15, %v1789_v31 }
 0x354   : > { %1809 = vmatmul.f32.gmra.mxu0 %v1561_v62  ;;  %1922 = vmatmul.f32.gmra.mxu1 %v1625_v57  ;;  %v1562_v3 = vsel %vm1530_vm5, %v1529_v30, %v2521_v8  ;;  %v1626_v17 = vsel %vm1530_vm5, %v1594_v1, %v2522_v35 }
 0x355   : > { %2029 = vmatmul.f32.gmra.mxu2 %v1561_v62  ;;  %2142 = vmatmul.f32.gmra.mxu3 %v1625_v57  ;;  %v1903_v37 = vadd.f32 %v1902_v41, %v1790_v11 }
 0x359   : > { %v1792_v63 = vpop.f32.mrf.mxu0  ;;  %v1905_v53 = vpop.f32.mrf.mxu1 }
 0x35c   : > { %1812 = vmatmul.f32.gmra.mxu0 %v1562_v3  ;;  %1925 = vmatmul.f32.gmra.mxu1 %v1626_v17 }
 0x35d   : > { %2032 = vmatmul.f32.gmra.mxu2 %v1562_v3  ;;  %2145 = vmatmul.f32.gmra.mxu3 %v1626_v17 }
 0x360   : > { %v2012_v19 = vpop.f32.mrf.mxu2  ;;  %v2125_v18 = vpop.f32.mrf.mxu3 }
 0x361   : > { %v2013_v20 = vadd.f32 %v2012_v19, %v1900_v4  ;;  %v2525_v14 = vpop.permute.xlu1 %2524  ;;  %v1795_v28 = vpop.f32.mrf.mxu0 }
 0x362   : > { %v2527_v60 = vunpack.i.h.bf16 %v2525_v14  ;;  %v2526_v26 = vunpack.i.l.bf16 %v2525_v14  ;;  %v1796_v48 = vadd.f32 %v3879_v15, %v1795_v28  ;;  %v1908_v58 = vpop.f32.mrf.mxu1 }
 0x363   : > { %v2126_v25 = vadd.f32 %v2125_v18, %v2013_v20 }
 0x364   : > { %v1627_v36 = vsel %vm235_vm0, %v3957_v16, %v2526_v26  ;;  %v1631_v38 = vsel %vm235_vm0, %v3953_v51, %v2527_v60  ;;  %v1628_v51 = vsel %vm235_vm0, %v3959_v34, %v2531_v59  ;;  %v1793_v34 = vadd.f32 %v3879_v15, %v1792_v63 }
 0x365   : > { %vm2177_vm15 = vcmp.ge.f32.partialorder %v2126_v25, 0.0  ;;  %v2209_v13 = vmul.f32 0.1, %v2126_v25  ;;  %v1629_v39 = vsel %vm1530_vm5, %v1627_v36, %v2526_v26  ;;  %v1633_v40 = vsel %vm1530_vm5, %v1631_v38, %v2527_v60 }
 0x366   : > { %2035 = vmatmul.f32.gmra.mxu2 %v1629_v39  ;;  %2148 = vmatmul.f32.gmra.mxu3 %v1633_v40  ;;  %v1630_v12 = vsel %vm1530_vm5, %v1628_v51, %v2531_v59  ;;  %v1906_v6 = vadd.f32 %v1905_v53, %v1793_v34  ;;  %v1909_v46 = vadd.f32 %v1908_v58, %v1796_v48 }
 0x367   : > { %v2241_v29 = vsel %vm2177_vm15, %v2126_v25, %v2209_v13 }
 0x368   : > { %2273 = vst.msk [vmem:[%s3576_s28 + $0xb0] sm:$0xff] %vm597_vm3, %v2241_v29  ;;  %v2015_v16 = vpop.f32.mrf.mxu2  ;;  %v2128_v32 = vpop.f32.mrf.mxu3 }
 0x369   : > { %v2016_v49 = vadd.f32 %v2015_v16, %v1903_v37 }
 0x36b   : > { %v2129_v52 = vadd.f32 %v2128_v32, %v2016_v49 }
 0x36d   : > { %vm2178_vm2 = vcmp.ge.f32.partialorder %v2129_v52, 0.0  ;;  %v2210_v5 = vmul.f32 0.1, %v2129_v52 }
 0x36e   : > { %2038 = vmatmul.f32.gmra.mxu2 %v1630_v12  ;;  %2151 = vmatmul.f32.gmra.mxu3 %v1634_v33 }
 0x36f   : > { %v2242_v44 = vsel %vm2178_vm2, %v2129_v52, %v2210_v5 }
 0x370   : > { %2274 = vst.msk [vmem:[%s3576_s28 + $0xb8] sm:$0xff] %vm597_vm3, %v2242_v44 }
 0x3ab   : > { %v1798_v47 = vpop.f32.mrf.mxu0  ;;  %v1911_v9 = vpop.f32.mrf.mxu1 }
 0x3ac   : > { %v1799_v35 = vadd.f32 %v3879_v15, %v1798_v47 }
 0x3ae   : > { %v1912_v8 = vadd.f32 %v1911_v9, %v1799_v35 }
 0x3b2   : > { %v2018_v2 = vpop.f32.mrf.mxu2  ;;  %v2131_v42 = vpop.f32.mrf.mxu3 }
 0x3b3   : > { %v2019_v7 = vadd.f32 %v2018_v2, %v1906_v6  ;;  %v1801_v62 = vpop.f32.mrf.mxu0  ;;  %v1914_v1 = vpop.f32.mrf.mxu1 }
 0x3b4   : > { %v1802_v17 = vadd.f32 %v3879_v15, %v1801_v62 }
 0x3b5   : > { %v2132_v55 = vadd.f32 %v2131_v42, %v2019_v7 }
 0x3b6   : > { %v1915_v31 = vadd.f32 %v1914_v1, %v1802_v17 }
 0x3b7   : > { %vm2179_vm0 = vcmp.ge.f32.partialorder %v2132_v55, 0.0  ;;  %v2211_v61 = vmul.f32 0.1, %v2132_v55 }
 0x3b9   : > { %v2243_v22 = vsel %vm2179_vm0, %v2132_v55, %v2211_v61 }
 0x3ba   : > { %2275 = vst.msk [vmem:[%s3576_s28 + $0xc0] sm:$0xff] %vm597_vm3, %v2243_v22  ;;  %v2021_v10 = vpop.f32.mrf.mxu2  ;;  %v2134_v27 = vpop.f32.mrf.mxu3 }
 0x3bb   : > { %v2022_v54 = vadd.f32 %v2021_v10, %v1909_v46 }
 0x3bd   : > { %v2135_v23 = vadd.f32 %v2134_v27, %v2022_v54 }
 0x3bf   : > { %vm2180_vm5 = vcmp.ge.f32.partialorder %v2135_v23, 0.0  ;;  %v2212_v45 = vmul.f32 0.1, %v2135_v23 }
 0x3c1   : > { %v2244_v57 = vsel %vm2180_vm5, %v2135_v23, %v2212_v45  ;;  %v1804_v3 = vpop.f32.mrf.mxu0  ;;  %v1917_v14 = vpop.f32.mrf.mxu1 }
 0x3c2   : > { %2276 = vst.msk [vmem:[%s3576_s28 + $0xc8] sm:$0xff] %vm597_vm3, %v2244_v57  ;;  %v1805_v26 = vadd.f32 %v3879_v15, %v1804_v3 }
 0x3c4   : > { %v1918_v36 = vadd.f32 %v1917_v14, %v1805_v26 }
 0x3c8   : > { %v2024_v50 = vpop.f32.mrf.mxu2  ;;  %v2137_v30 = vpop.f32.mrf.mxu3 }
 0x3c9   : > { %v2025_v24 = vadd.f32 %v2024_v50, %v1912_v8  ;;  %v1807_v21 = vpop.f32.mrf.mxu0  ;;  %v1920_v0 = vpop.f32.mrf.mxu1 }
 0x3ca   : > { %v1808_v41 = vadd.f32 %v3879_v15, %v1807_v21 }
 0x3cb   : > { %v2138_v43 = vadd.f32 %v2137_v30, %v2025_v24 }
 0x3cc   : > { %v1921_v16 = vadd.f32 %v1920_v0, %v1808_v41 }
 0x3cd   : > { %vm2181_vm6 = vcmp.ge.f32.partialorder %v2138_v43, 0.0  ;;  %v2213_v4 = vmul.f32 0.1, %v2138_v43 }
 0x3cf   : > { %v2245_v19 = vsel %vm2181_vm6, %v2138_v43, %v2213_v4 }
 0x3d0   : > { %2277 = vst.msk [vmem:[%s3576_s28 + $0xd0] sm:$0xff] %vm597_vm3, %v2245_v19  ;;  %v2027_v18 = vpop.f32.mrf.mxu2  ;;  %v2140_v20 = vpop.f32.mrf.mxu3 }
 0x3d1   : > { %v2028_v60 = vadd.f32 %v2027_v18, %v1915_v31  ;;  %v1810_v29 = vpop.f32.mrf.mxu0  ;;  %v1923_v12 = vpop.f32.mrf.mxu1 }
 0x3d2   : > { %v1811_v5 = vadd.f32 %v3879_v15, %v1810_v29 }
 0x3d3   : > { %v2141_v11 = vadd.f32 %v2140_v20, %v2028_v60 }
 0x3d4   : > { %v1924_v63 = vadd.f32 %v1923_v12, %v1811_v5 }
 0x3d5   : > { %vm2182_vm7 = vcmp.ge.f32.partialorder %v2141_v11, 0.0  ;;  %v2214_v25 = vmul.f32 0.1, %v2141_v11 }
 0x3d7   : > { %v2246_v38 = vsel %vm2182_vm7, %v2141_v11, %v2214_v25 }
 0x3d8   : > { %2278 = vst.msk [vmem:[%s3576_s28 + $0xd8] sm:$0xff] %vm597_vm3, %v2246_v38  ;;  %v2030_v13 = vpop.f32.mrf.mxu2  ;;  %v2143_v39 = vpop.f32.mrf.mxu3 }
 0x3d9   : > { %v2031_v40 = vadd.f32 %v2030_v13, %v1918_v36  ;;  %v1813_v53 = vpop.f32.mrf.mxu0  ;;  %v1926_v48 = vpop.f32.mrf.mxu1 }
 0x3da   : > { %v1814_v2 = vadd.f32 %v3879_v15, %v1813_v53 }
 0x3db   : > { %v2144_v59 = vadd.f32 %v2143_v39, %v2031_v40 }
 0x3dc   : > { %v1927_v55 = vadd.f32 %v1926_v48, %v1814_v2 }
 0x3dd   : > { %vm2183_vm8 = vcmp.ge.f32.partialorder %v2144_v59, 0.0  ;;  %v2215_v37 = vmul.f32 0.1, %v2144_v59 }
 0x3df   : > { %v2247_v49 = vsel %vm2183_vm8, %v2144_v59, %v2215_v37 }
 0x3e0   : > { %2279 = vst.msk [vmem:[%s3576_s28 + $0xe0] sm:$0xff] %vm597_vm3, %v2247_v49  ;;  %v2033_v32 = vpop.f32.mrf.mxu2  ;;  %v2146_v51 = vpop.f32.mrf.mxu3 }
 0x3e1   : > { %v2034_v56 = vadd.f32 %v2033_v32, %v1921_v16 }
 0x3e3   : > { %v2147_v52 = vadd.f32 %v2146_v51, %v2034_v56 }
 0x3e5   : > { %vm2184_vm9 = vcmp.ge.f32.partialorder %v2147_v52, 0.0  ;;  %v2216_v33 = vmul.f32 0.1, %v2147_v52 }
 0x3e7   : > { %v2248_v44 = vsel %vm2184_vm9, %v2147_v52, %v2216_v33 }
 0x3e8   : > { %2280 = vst.msk [vmem:[%s3576_s28 + $0xe8] sm:$0xff] %vm597_vm3, %v2248_v44 }
 0x3e9   : > { %v2036_v34 = vpop.f32.mrf.mxu2  ;;  %v2149_v28 = vpop.f32.mrf.mxu3 }
 0x3ea   : > { %v2037_v6 = vadd.f32 %v2036_v34, %v1924_v63 }
 0x3ec   : > { %v2150_v42 = vadd.f32 %v2149_v28, %v2037_v6 }
 0x3ee   : > { %vm2185_vm10 = vcmp.ge.f32.partialorder %v2150_v42, 0.0  ;;  %v2217_v7 = vmul.f32 0.1, %v2150_v42 }
 0x3f0   : > { %v2249_v58 = vsel %vm2185_vm10, %v2150_v42, %v2217_v7 }
 0x3f1   : > { %2281 = vst.msk [vmem:[%s3576_s28 + $0xf0] sm:$0xff] %vm597_vm3, %v2249_v58  ;;  %v2039_v47 = vpop.f32.mrf.mxu2  ;;  %v2152_v46 = vpop.f32.mrf.mxu3 }
 0x3f2   : > { %v2040_v61 = vadd.f32 %v2039_v47, %v1927_v55 }
 0x3f4   : > { %v2153_v22 = vadd.f32 %v2152_v46, %v2040_v61 }
 0x3f6   : > { %vm2186_vm1 = vcmp.ge.f32.partialorder %v2153_v22, 0.0  ;;  %v2218_v10 = vmul.f32 0.1, %v2153_v22 }
 0x3f8   : > { %v2250_v54 = vsel %vm2186_vm1, %v2153_v22, %v2218_v10 }
 0x3f9   : > { %2282 = vst.msk [vmem:[%s3576_s28 + $0xf8] sm:$0xff] %vm597_vm3, %v2250_v54 }
 0x3fa PF: > { %s13_s12 = sadd.s32 1, %s2557_s12  }
 0x3fb   : > { %p10_p4 = scmp.ge.s32.totalorder %s13_s12, 4  }
 0x3fd   :  { %12 = sbr.rel (!%p10_p4) target bundleno = 1 (0x1), region = 64 }

// kernel: _lambda_.7
= control target key start
LH: loop header
LB: loop body
LE: loop exit
PB: predicated region body
PF: predicated region fallthrough
CT: control target
= control target key end

     0   :  { %9 = vsyncpa [#allocation3], 0  ;;  %s2934_s0 = inlined_call_operand.vmem [shape: f32[2,64,96], index: 0, kind: input, shape index: {}]   ;;  %s2935_s1 = inlined_call_operand.vmem [shape: f32[2,64,32], index: 1, kind: input, shape index: {}]   ;;  %s2936_s2 = inlined_call_operand.vmem [shape: f32[4,1], index: 2, kind: input, shape index: {}]   ;;  %s2937_s3 = inlined_call_operand.vmem [shape: f32[32,32], index: 3, kind: input, shape index: {}]   ;;  %s2938_s4 = inlined_call_operand.hbm [shape: f32[2,64,32], index: 4, kind: output, shape index: {}]  }
   0x1   :  { %11 = vsyncpa [#allocation3 + $0x1], 0  ;;  %s2204_s15 = smov 0   ;;  %s2206_s16 = smov 0  }
   0x2   :  { %s2208_s17 = smov 0   ;;  %s2210_s18 = smov 0  }
   0x3 LB: > { %s2225_s19 = sadd.s32 4294967295, %s2164_s18   ;;  %s1832_s20 = sadd.s32 4294967294, %s2164_s18   ;;  %s2164_s18 = sphi %s2210_s18, %s2944_s18   ;;  %s2160_s17 = sphi %s2208_s17, %s2943_s17   ;;  %s2156_s16 = sphi %s2206_s16, %s2942_s16   ;;  %s2152_s15 = sphi %s2204_s15, %s2941_s15  }
   0x4   : > { %s2229_s21 = sadd.s32 1, %s2164_s18   ;;  %s118_s22 = sadd.s32 1, %s2160_s17 }
   0x5   : > { %s115_s23 = ssub.s32 %s2164_s18, %s2229_s21  ;;  %p128_p0 = scmp.ne.s32.totalorder %s2160_s17, %s2156_s16 }
   0x6   : > { %p116_p1 = scmp.eq.s32.totalorder %s115_s23, 0  ;;  %p129_p2 = scmp.eq.s32.totalorder %s2225_s19, 1 }
   0x7   : > { %p134_p3 = scmp.ne.s32.totalorder %s2156_s16, %s2152_s15  ;;  %p135_p4 = scmp.eq.s32.totalorder %s1832_s20, 1 }
   0x8   : > { %s2240_s24 = scalar_select %p116_p1, %s2160_s17, %s118_s22  }
   0x9   : > { %p2242_p5 = por %p129_p2, %p128_p0  ;;  %p2246_p6 = por %p135_p4, %p134_p3 }
   0xa   : > { %p1835_p7 = scmp.ge.s32.totalorder %s2164_s18, 1  ;;  %p175_p8 = scmp.lt.s32.totalorder %s2164_s18, 3 }
   0xc   : > { %p176_p9 = pnand %p1835_p7, %p175_p8 }
   0xd   : > { %p206_p10 = scmp.lt.s32.totalorder (!%p176_p9), %s2225_s19, 1  ;;  %s2166_s6 = smov (!%p176_p9), 120  }
   0xe   : > { %179 = sbr.rel (%p176_p9) target bundleno = 1857 (0x741), region = 36  ;;  %s2167_s7 = smov (!%p176_p9), 88  }
   0xf   : > { %s2168_s8 = smov (!%p176_p9), 96   ;;  %s2169_s9 = smov (!%p176_p9), 56  }
  0x10   : > { %s2170_s22 = smov (!%p176_p9), 64   ;;  %s2171_s23 = smov (!%p176_p9), 104  }
  0x11   : > { %s2172_s29 = smov (!%p176_p9), 112   ;;  %s2173_s30 = smov (!%p176_p9), 72  }
  0x12   : > { %s2175_s10 = smov (!%p176_p9), 48   ;;  %s2176_s11 = smov (!%p176_p9), 40  }
  0x13   : > { %s2254_s27 = scalar_select %p206_p10, %s2225_s19, 1  ;;  %vm517_vm0 = vcmask 130112   ;;  %vm558_vm1 = vcmask 392512   ;;  %vm273_vm2 = vcmask 326912   ;;  %vm232_vm8 = vcmask 64512  }
  0x15   : > { %s1918_s28 = sshll.u32 %s2254_s27, 6 }
  0x16   : > { %s2262_s5 = scalar_lea.vmem %s2934_s0, %s1918_s28 }
  0x17   : > { %v2265_v0 = vld [vmem:[%s2262_s5] sm:$0xff]  ;;  %v2268_v1 = vld [vmem:[%s2262_s5 + $0x8] sm:$0xff]  ;;  %v2271_v2 = vld [vmem:[%s2262_s5 + $0x10] sm:$0xff] }
  0x18   : > { %v2274_v3 = vld [vmem:[%s2262_s5 + $0x18] sm:$0xff]  ;;  %v2277_v4 = vld [vmem:[%s2262_s5 + $0x20] sm:$0xff]  ;;  %v2281_v5 = vmul.f32 %v2265_v0, %v2265_v0  ;;  %v2285_v6 = vmul.f32 %v2268_v1, %v2268_v1  ;;  %v2289_v7 = vmul.f32 %v2271_v2, %v2271_v2  ;;  %v2292_v8 = vld [vmem:[%s2262_s5 + $0x28] sm:$0xff] }
  0x19   : > { %v2296_v9 = vmul.f32 %v2274_v3, %v2274_v3  ;;  %v2300_v10 = vmul.f32 %v2277_v4, %v2277_v4  ;;  %v2307_v13 = vld [vmem:[%s2262_s5 + $0x30] sm:$0xff]  ;;  %v2310_v14 = vld [vmem:[%s2262_s5 + $0x38] sm:$0xff]  ;;  %v2316_v17 = vmul.f32 %v2292_v8, %v2292_v8 }
  0x1a   : > { %v518_v11 = vsel %vm517_vm0, %v2281_v5, 0.0  ;;  %v519_v12 = vsel %vm517_vm0, %v2285_v6, 0.0  ;;  %v521_v16 = vsel %vm517_vm0, %v2289_v7, 0.0  ;;  %v559_v19 = vsel %vm558_vm1, %v2281_v5, 0.0 }
  0x1b   : > { %v520_v15 = vadd.f32 %v519_v12, %v518_v11  ;;  %v523_v18 = vsel %vm517_vm0, %v2296_v9, 0.0  ;;  %v560_v21 = vsel %vm558_vm1, %v2285_v6, 0.0  ;;  %v562_v22 = vsel %vm558_vm1, %v2289_v7, 0.0 }
  0x1c   : > { %v2328_v23 = vmul.f32 %v2307_v13, %v2307_v13  ;;  %v2332_v24 = vmul.f32 %v2310_v14, %v2310_v14  ;;  %v525_v25 = vsel %vm517_vm0, %v2300_v10, 0.0  ;;  %v561_v26 = vadd.f32 %v560_v21, %v559_v19 }
  0x1d   : > { %v522_v20 = vadd.f32 %v521_v16, %v520_v15  ;;  %v564_v28 = vsel %vm558_vm1, %v2296_v9, 0.0  ;;  %v274_v29 = vsel %vm273_vm2, %v2281_v5, 0.0  ;;  %v275_v30 = vsel %vm273_vm2, %v2285_v6, 0.0 }
  0x1e   : > { %v527_v31 = vsel %vm517_vm0, %v2316_v17, 0.0  ;;  %v563_v32 = vadd.f32 %v562_v22, %v561_v26  ;;  %v276_v33 = vadd.f32 %v275_v30, %v274_v29  ;;  %v277_v34 = vsel %vm273_vm2, %v2289_v7, 0.0 }
  0x1f   : > { %v524_v27 = vadd.f32 %v523_v18, %v522_v20  ;;  %v566_v36 = vsel %vm558_vm1, %v2300_v10, 0.0  ;;  %v279_v37 = vsel %vm273_vm2, %v2296_v9, 0.0  ;;  %v529_v38 = vsel %vm517_vm0, %v2328_v23, 0.0 }
  0x20   : > { %v565_v39 = vadd.f32 %v564_v28, %v563_v32  ;;  %v278_v40 = vadd.f32 %v277_v34, %v276_v33  ;;  %v568_v42 = vsel %vm558_vm1, %v2316_v17, 0.0  ;;  %v281_v43 = vsel %vm273_vm2, %v2300_v10, 0.0 }
  0x21   : > { %v526_v35 = vadd.f32 %v525_v25, %v524_v27  ;;  %v531_v44 = vsel %vm517_vm0, %v2332_v24, 0.0  ;;  %v570_v48 = vsel %vm558_vm1, %v2328_v23, 0.0  ;;  %v283_v49 = vsel %vm273_vm2, %v2316_v17, 0.0 }
  0x22   : > { %v567_v45 = vadd.f32 %v566_v36, %v565_v39  ;;  %v280_v46 = vadd.f32 %v279_v37, %v278_v40  ;;  %v572_v53 = vsel %vm558_vm1, %v2332_v24, 0.0  ;;  %v285_v54 = vsel %vm273_vm2, %v2328_v23, 0.0 }
  0x23   : > { %v528_v41 = vadd.f32 %v527_v31, %v526_v35  ;;  %v287_v58 = vsel %vm273_vm2, %v2332_v24, 0.0  ;;  %vm378_vm0 = vcmask 523264   ;;  %vm1336_vm1 = vcmask 261312  }
  0x24   : > { %v569_v50 = vadd.f32 %v568_v42, %v567_v45  ;;  %v282_v51 = vadd.f32 %v281_v43, %v280_v46  ;;  %vm955_vm2 = vcmask 195712  }
  0x25   : > { %v530_v47 = vadd.f32 %v529_v38, %v528_v41 }
  0x26   : > { %v571_v55 = vadd.f32 %v570_v48, %v569_v50  ;;  %v284_v56 = vadd.f32 %v283_v49, %v282_v51 }
  0x27   : > { %v532_v52 = vadd.f32 %v531_v44, %v530_v47 }
  0x28   : > { %v573_v59 = vadd.f32 %v572_v53, %v571_v55  ;;  %v286_v60 = vadd.f32 %v285_v54, %v284_v56  ;;  %v233_v56 = vsel %vm232_vm8, %v2281_v5, 0.0 }
  0x29   : > { %v533_v57 = vrot.slane %v532_v52, 4 }
  0x2a   : > { %v574_v62 = vrot.slane %v573_v59, 4  ;;  %v288_v63 = vadd.f32 %v287_v58, %v286_v60  ;;  %v238_v60 = vsel %vm232_vm8, %v2296_v9, 0.0 }
  0x2b   : > { %v534_v61 = vadd.f32 %v533_v57, %v532_v52  ;;  %v234_v57 = vsel %vm232_vm8, %v2285_v6, 0.0 }
  0x2c   : > { %v575_v12 = vadd.f32 %v574_v62, %v573_v59  ;;  %v289_v15 = vrot.slane %v288_v63, 4  ;;  %v235_v58 = vadd.f32 %v234_v57, %v233_v56  ;;  %v236_v59 = vsel %vm232_vm8, %v2289_v7, 0.0 }
  0x2d   : > { %v535_v11 = vrot.slane %v534_v61, 2 }
  0x2e   : > { %v576_v18 = vrot.slane %v575_v12, 2  ;;  %v290_v19 = vadd.f32 %v289_v15, %v288_v63  ;;  %v240_v15 = vsel %vm232_vm8, %v2300_v10, 0.0 }
  0x2f   : > { %v536_v16 = vadd.f32 %v535_v11, %v534_v61  ;;  %v237_v11 = vadd.f32 %v236_v59, %v235_v58 }
  0x30   : > { %v577_v21 = vadd.f32 %v576_v18, %v575_v12  ;;  %v291_v22 = vrot.slane %v290_v19, 2 }
  0x31   : > { %v537_v20 = vrot.slane %v536_v16, 1  ;;  %v239_v18 = vadd.f32 %v238_v60, %v237_v11 }
  0x32   : > { %v578_v26 = vrot.slane %v577_v21, 1  ;;  %v292_v27 = vadd.f32 %v291_v22, %v290_v19 }
  0x33   : > { %v538_v25 = vadd.f32 %v537_v20, %v536_v16 }
  0x34   : > { %v579_v29 = vadd.f32 %v578_v26, %v577_v21  ;;  %v293_v30 = vrot.slane %v292_v27, 1  ;;  %v242_v21 = vsel %vm232_vm8, %v2316_v17, 0.0  ;;  %v241_v26 = vadd.f32 %v240_v15, %v239_v18 }
  0x35   : > { %v539_v28 = vmax.f32 %v538_v25, 1e-24 }
  0x36   : > { %v580_v31 = vmax.f32 %v579_v29, 1e-24  ;;  %v294_v32 = vadd.f32 %v293_v30, %v292_v27  ;;  %v244_v29 = vsel %vm232_vm8, %v2328_v23, 0.0 }
  0x37   : > { %2062 = vrsqrt.f32 %v539_v28  ;;  %vm546_vm3 = vweird.f32 %v539_v28 }
  0x38   : > { %2064 = vrsqrt.f32 %v580_v31  ;;  %v295_v35 = vmax.f32 %v294_v32, 1e-24  ;;  %vm587_vm6 = vweird.f32 %v580_v31 }
  0x3a   : > { %2066 = vrsqrt.f32 %v295_v35  ;;  %vm302_vm10 = vweird.f32 %v295_v35 }
  0x3d   : > { %v2063_v33 = vpop.eup %2062 }
  0x3e   : > { %v541_v34 = vmul.f32 %v2063_v33, %v539_v28  ;;  %v2065_v36 = vpop.eup %2064  ;;  %vm547_vm4 = vweird.f32 %v2063_v33  ;;  %v243_v28 = vadd.f32 %v242_v21, %v241_v26 }
  0x3f   : > { %v582_v39 = vmul.f32 %v2065_v36, %v580_v31  ;;  %vm548_vm5 = vmor %vm546_vm3, %vm547_vm4  ;;  %vm588_vm7 = vweird.f32 %v2065_v36 }
  0x40   : > { %v542_v37 = vmul.f32 %v2063_v33, %v541_v34  ;;  %v2067_v44 = vpop.eup %2066  ;;  %vm589_vm9 = vmor %vm587_vm6, %vm588_vm7  ;;  %v246_v34 = vsel %vm232_vm8, %v2332_v24, 0.0  ;;  %vm1377_vm6 = vcmask 523712   ;;  %vm996_vm7 = vcmask 458112  }
  0x41   : > { %v583_v42 = vmul.f32 %v2065_v36, %v582_v39  ;;  %v297_v48 = vmul.f32 %v2067_v44, %v295_v35  ;;  %vm303_vm11 = vweird.f32 %v2067_v44 }
  0x42   : > { %v543_v38 = vmul.f32 0.5, %v542_v37  ;;  %vm304_vm12 = vmor %vm302_vm10, %vm303_vm11 }
  0x43   : > { %v584_v47 = vmul.f32 0.5, %v583_v42  ;;  %v298_v52 = vmul.f32 %v2067_v44, %v297_v48 }
  0x44   : > { %v544_v40 = vsub.f32 1.5, %v543_v38 }
  0x45   : > { %v585_v51 = vsub.f32 1.5, %v584_v47  ;;  %v299_v55 = vmul.f32 0.5, %v298_v52 }
  0x46   : > { %v545_v41 = vmul.f32 %v2063_v33, %v544_v40 }
  0x47   : > { %v586_v53 = vmul.f32 %v2065_v36, %v585_v51  ;;  %v300_v12 = vsub.f32 1.5, %v299_v55 }
  0x48   : > { %v549_v43 = vsel %vm548_vm5, %v2063_v33, %v545_v41  ;;  %v245_v33 = vadd.f32 %v244_v29, %v243_v28 }
  0x49   : > { %v552_v45 = vmul.f32 %v549_v43, %v2271_v2  ;;  %v550_v46 = vmul.f32 %v549_v43, %v2265_v0  ;;  %v553_v49 = vmul.f32 %v549_v43, %v2274_v3  ;;  %v551_v50 = vmul.f32 %v549_v43, %v2268_v1 }
  0x4a   : > { %v554_v54 = vmul.f32 %v549_v43, %v2277_v4  ;;  %v557_v61 = vmul.f32 %v549_v43, %v2310_v14  ;;  %v2387_v62 = vsel %vm589_vm9, %v2065_v36, %v586_v53  ;;  %v556_v63 = vmul.f32 %v549_v43, %v2307_v13 }
  0x4b   : > { %611 = vrot.lane.b32.xlu1 %v552_v45, %s2166_s6  ;;  %607 = vrot.lane.b32.xlu0 %v550_v46, %s2166_s6  ;;  %v555_v16 = vmul.f32 %v549_v43, %v2292_v8  ;;  %v593_v19 = vmul.f32 %v2387_v62, %v2271_v2  ;;  %v594_v20 = vmul.f32 %v2387_v62, %v2274_v3 }
  0x4c   : > { %615 = vrot.lane.b32.xlu2 %v554_v54, %s2166_s6  ;;  %v595_v22 = vmul.f32 %v2387_v62, %v2277_v4  ;;  %v596_v25 = vmul.f32 %v2387_v62, %v2292_v8  ;;  %v301_v27 = vmul.f32 %v2067_v44, %v300_v12  ;;  %v247_v37 = vadd.f32 %v246_v34, %v245_v33 }
  0x4d   : > { %v1992_v30 = vpack.i.bf16 %v593_v19, %v594_v20  ;;  %v592_v11 = vmul.f32 %v2387_v62, %v2268_v1 }
  0x4e   : > { %v1987_v31 = vpack.i.bf16 %v595_v22, %v596_v25  ;;  %v305_v32 = vsel %vm304_vm12, %v2067_v44, %v301_v27  ;;  %v248_v39 = vrot.slane %v247_v37, 4 }
  0x4f   : > { %v312_v35 = vmul.f32 %v305_v32, %v2307_v13  ;;  %v313_v36 = vmul.f32 %v305_v32, %v2310_v14  ;;  %v308_v40 = vmul.f32 %v305_v32, %v2271_v2  ;;  %v309_v41 = vmul.f32 %v305_v32, %v2274_v3 }
  0x50   : > { %v249_v42 = vadd.f32 %v248_v39, %v247_v37  ;;  %v310_v18 = vmul.f32 %v305_v32, %v2277_v4  ;;  %v311_v19 = vmul.f32 %v305_v32, %v2292_v8  ;;  %v307_v25 = vmul.f32 %v305_v32, %v2268_v1 }
  0x51   : > { %v2002_v38 = vpack.i.bf16 %v312_v35, %v313_v36  ;;  %v2012_v43 = vpack.i.bf16 %v308_v40, %v309_v41 }
  0x52   : > { %v250_v44 = vrot.slane %v249_v42, 2  ;;  %v2007_v20 = vpack.i.bf16 %v310_v18, %v311_v19 }
  0x53   : > { %613 = vrot.lane.b32.xlu1 %v553_v49, %s2166_s6  ;;  %609 = vrot.lane.b32.xlu0 %v551_v50, %s2166_s6  ;;  %v597_v49 = vmul.f32 %v2387_v62, %v2307_v13  ;;  %v598_v50 = vmul.f32 %v2387_v62, %v2310_v14 }
  0x54   : > { %617 = vrot.lane.b32.xlu2 %v555_v16, %s2166_s6  ;;  %v251_v45 = vadd.f32 %v250_v44, %v249_v42 }
  0x55   : > { %v1982_v52 = vpack.i.bf16 %v597_v49, %v598_v50 }
  0x56   : > { %v252_v46 = vrot.slane %v251_v45, 1 }
  0x58   : > { %v253_v47 = vadd.f32 %v252_v46, %v251_v45 }
  0x5a   : > { %v254_v48 = vmax.f32 %v253_v47, 1e-24 }
  0x5b   : > { %621 = vrot.lane.b32.xlu1 %v557_v61, %s2166_s6  ;;  %619 = vrot.lane.b32.xlu0 %v556_v63, %s2166_s6  ;;  %v591_v63 = vmul.f32 %v2387_v62, %v2265_v0  ;;  %v306_v62 = vmul.f32 %v305_v32, %v2265_v0  ;;  %s2174_s6 = smov 80  }
  0x5c   : > { %2068 = vrsqrt.f32 %v254_v48  ;;  %1983 = vrot.lane.b32.xlu2 %v1982_v52, %s2167_s7  ;;  %vm261_vm13 = vweird.f32 %v254_v48 }
  0x5d   : > { %v1997_v12 = vpack.i.bf16 %v591_v63, %v592_v11  ;;  %v2017_v26 = vpack.i.bf16 %v306_v62, %v307_v25 }
  0x62   : > { %v2069_v51 = vpop.eup %2068 }
  0x63   : > { %1993 = vrot.lane.b32.xlu1 %v1992_v30, %s2167_s7  ;;  %1988 = vrot.lane.b32.xlu0 %v1987_v31, %s2167_s7  ;;  %v256_v53 = vmul.f32 %v2069_v51, %v254_v48  ;;  %vm262_vm14 = vweird.f32 %v2069_v51 }
  0x64   : > { %vm263_vm15 = vmor %vm261_vm13, %vm262_vm14  ;;  %1998 = vrot.lane.b32.xlu2 %v1997_v12, %s2167_s7  ;;  %s2122_s7 = scalar_lea.hbm %s2938_s4, 128 }
  0x65   : > { %v257_v54 = vmul.f32 %v2069_v51, %v256_v53 }
  0x67   : > { %v258_v55 = vmul.f32 0.5, %v257_v54 }
  0x69   : > { %v259_v56 = vsub.f32 1.5, %v258_v55 }
  0x6b   : > { %2003 = vrot.lane.b32.xlu1 %v2002_v38, %s2168_s8  ;;  %v260_v57 = vmul.f32 %v2069_v51, %v259_v56 }
  0x6c   : > { %2008 = vrot.lane.b32.xlu2 %v2007_v20, %s2168_s8 }
  0x6d   : > { %v264_v58 = vsel %vm263_vm15, %v2069_v51, %v260_v57 }
  0x6e   : > { %v265_v59 = vmul.f32 %v264_v58, %v2265_v0  ;;  %v266_v60 = vmul.f32 %v264_v58, %v2268_v1  ;;  %v267_v61 = vmul.f32 %v264_v58, %v2271_v2  ;;  %v268_v15 = vmul.f32 %v264_v58, %v2274_v3 }
  0x6f   : > { %v269_v21 = vmul.f32 %v264_v58, %v2277_v4  ;;  %v270_v28 = vmul.f32 %v264_v58, %v2292_v8  ;;  %v271_v30 = vmul.f32 %v264_v58, %v2307_v13  ;;  %v272_v33 = vmul.f32 %v264_v58, %v2310_v14 }
  0x73   : > { %2013 = vrot.lane.b32.xlu1 %v2012_v43, %s2168_s8 }
  0x74   : > { %2018 = vrot.lane.b32.xlu2 %v2017_v26, %s2168_s8  ;;  %s203_s8 = sand.u32 1, %s2156_s16  }
  0x7c   : > { %748 = vrot.lane.b32.xlu2 %v2265_v0, %s2169_s9 }
  0x84   : > { %750 = vrot.lane.b32.xlu2 %v2268_v1, %s2169_s9 }
  0x8c   : > { %754 = vrot.lane.b32.xlu2 %v2274_v3, %s2169_s9 }
  0xa6   : > { %v616_v31 = vpop.permute.xlu2 %615 }
  0xa8   : > { %314 = vxpose.xlu1.b32.start [1/8] (short) (narrow) %v265_v59, 8 }
  0xae   : > { %v618_v34 = vpop.permute.xlu2 %617 }
  0xb0   : > { %315 = vxpose.xlu1.b32.cont [2/8] (short) (narrow) %v266_v60, 8  ;;  %v402_v60 = vld [vmem:[%s2936_s2] sm:$0x1] }
  0xb1   : > { %1921 = vpush %v402_v60 }
  0xb6   : > { %v1984_v36 = vpop.permute.xlu2 %1983 }
  0xb7   : > { %v1985_v38 = vunpack.i.l.bf16 %v1984_v36  ;;  %v1986_v39 = vunpack.i.h.bf16 %v1984_v36 }
  0xb8   : > { %316 = vxpose.xlu1.b32.cont [3/8] (short) (narrow) %v267_v61, 8  ;;  %v718_v61 = vld [vmem:[%s2936_s2 + $0x1] sm:$0x1] }
  0xb9   : > { %706 = vmatpush.msra.mxu2 %v1985_v38  ;;  %1923 = vpush %v718_v61 }
  0xbb   : > { %707 = vmatpush.msra.mxu2 %v1986_v39  ;;  %v1344_v39 = vsel %vm1336_vm1, %v2300_v10, 0.0 }
  0xbd   : > { %v608_v16 = vpop.permute.xlu0 %607  ;;  %v612_v27 = vpop.permute.xlu1 %611 }
  0xbe   : > { %631 = vxpose.xlu0.b32.start [1/8] (short) (narrow) %v608_v16, 8  ;;  %v1999_v48 = vpop.permute.xlu2 %1998 }
  0xbf   : > { %v2000_v58 = vunpack.i.l.bf16 %v1999_v48  ;;  %v2001_v59 = vunpack.i.h.bf16 %v1999_v48 }
  0xc0   : > { %317 = vxpose.xlu1.b32.cont [4/8] (short) (narrow) %v268_v15, 8 }
  0xc5   : > { %v610_v22 = vpop.permute.xlu0 %609  ;;  %v614_v29 = vpop.permute.xlu1 %613 }
  0xc6   : > { %632 = vxpose.xlu0.b32.cont [2/8] (short) (narrow) %v610_v22, 8  ;;  %v2009_v49 = vpop.permute.xlu2 %2008 }
  0xc7   : > { %v2010_v51 = vunpack.i.l.bf16 %v2009_v49  ;;  %v2011_v52 = vunpack.i.h.bf16 %v2009_v49 }
  0xc8   : > { %318 = vxpose.xlu1.b32.cont [5/8] (short) (narrow) %v269_v21, 8 }
  0xcd   : > { %v620_v32 = vpop.permute.xlu0 %619  ;;  %v622_v35 = vpop.permute.xlu1 %621 }
  0xce   : > { %633 = vxpose.xlu0.b32.cont [3/8] (short) (narrow) %v612_v27, 8  ;;  %v2019_v55 = vpop.permute.xlu2 %2018 }
  0xcf   : > { %v2020_v56 = vunpack.i.l.bf16 %v2019_v55  ;;  %v2021_v57 = vunpack.i.h.bf16 %v2019_v55  ;;  %v957_v55 = vsel %vm955_vm2, %v2285_v6, 0.0 }
  0xd0   : > { %319 = vxpose.xlu1.b32.cont [6/8] (short) (narrow) %v270_v28, 8 }
  0xd5   : > { %v1989_v37 = vpop.permute.xlu0 %1988  ;;  %v1994_v42 = vpop.permute.xlu1 %1993 }
  0xd6   : > { %634 = vxpose.xlu0.b32.cont [4/8] (short) (narrow) %v614_v29, 8  ;;  %v1990_v40 = vunpack.i.l.bf16 %v1989_v37  ;;  %v1991_v41 = vunpack.i.h.bf16 %v1989_v37  ;;  %v1995_v44 = vunpack.i.l.bf16 %v1994_v42  ;;  %v1996_v45 = vunpack.i.h.bf16 %v1994_v42  ;;  %v2473_v62 = vpop.permute.xlu2 %748 }
  0xd7   : > { %v1342_v37 = vsel %vm1336_vm1, %v2296_v9, 0.0 }
  0xd8   : > { %320 = vxpose.xlu1.b32.cont [7/8] (short) (narrow) %v271_v30, 8  ;;  %708 = vmatpush.msra.mxu2 %v1990_v40 }
  0xda   : > { %709 = vmatpush.msra.mxu2 %v1991_v41  ;;  %v1346_v41 = vsel %vm1336_vm1, %v2316_v17, 0.0 }
  0xdc   : > { %710 = vmatpush.msra.mxu2 %v1995_v44 }
  0xdd   : > { %v2004_v43 = vpop.permute.xlu1 %2003 }
  0xde   : > { %635 = vxpose.xlu0.b32.cont [5/8] (short) (narrow) %v616_v31, 8  ;;  %v2005_v46 = vunpack.i.l.bf16 %v2004_v43  ;;  %711 = vmatpush.msra.mxu2 %v1996_v45  ;;  %v2006_v47 = vunpack.i.h.bf16 %v2004_v43  ;;  %v2475_v25 = vpop.permute.xlu2 %750  ;;  %v1348_v43 = vsel %vm1336_vm1, %v2328_v23, 0.0  ;;  %v1350_v45 = vsel %vm1336_vm1, %v2332_v24, 0.0 }
  0xe0   : > { %321 = vxpose.xlu1.b32.end [8/8] (short) (narrow) %v272_v33, 8  ;;  %390 = vmatpush.msra.mxu3 %v2005_v46  ;;  %v1337_v33 = vsel %vm1336_vm1, %v2281_v5, 0.0 }
  0xe1   : > { %712 = vmatpush.msra.mxu2 %v2000_v58 }
  0xe2   : > { %391 = vmatpush.msra.mxu3 %v2006_v47  ;;  %s1922_s14 = spop %1921 }
  0xe3   : > { %713 = vmatpush.msra.mxu2 %v2001_v59  ;;  %v405_v12 = vstv %s1922_s14  ;;  %v959_v59 = vsel %vm955_vm2, %v2289_v7, 0.0 }
  0xe4   : > { %392 = vmatpush.msra.mxu3 %v2010_v51 }
  0xe5   : > { %v2014_v50 = vpop.permute.xlu1 %2013 }
  0xe6   : > { %636 = vxpose.xlu0.b32.cont [6/8] (short) (narrow) %v618_v34, 8  ;;  %v2015_v53 = vunpack.i.l.bf16 %v2014_v50  ;;  %393 = vmatpush.msra.mxu3 %v2011_v52  ;;  %v2016_v54 = vunpack.i.h.bf16 %v2014_v50  ;;  %v2477_v26 = vpop.permute.xlu2 %754  ;;  %v1338_v34 = vsel %vm1336_vm1, %v2285_v6, 0.0 }
  0xe8   : > { %394 = vmatpush.msra.mxu3 %v2015_v53 }
  0xea   : > { %395 = vmatpush.msra.mxu3 %v2016_v54  ;;  %s1924_s20 = spop %1923  ;;  %v956_v54 = vsel %vm955_vm2, %v2281_v5, 0.0 }
  0xeb   : > { %v721_v19 = vstv %s1924_s20 }
  0xec   : > { %396 = vmatpush.msra.mxu3 %v2020_v56 }
  0xee   : > { %637 = vxpose.xlu0.b32.cont [7/8] (short) (narrow) %v620_v32, 8  ;;  %397 = vmatpush.msra.mxu3 %v2021_v57  ;;  %v1339_v32 = vadd.f32 %v1338_v34, %v1337_v33  ;;  %v958_v57 = vadd.f32 %v957_v55, %v956_v54  ;;  %v969_v33 = vsel %vm955_vm2, %v2332_v24, 0.0  ;;  %v1387_v55 = vsel %vm1377_vm6, %v2316_v17, 0.0 }
  0xf0   : > { %v960_v60 = vadd.f32 %v959_v59, %v958_v57  ;;  %v1389_v57 = vsel %vm1377_vm6, %v2328_v23, 0.0 }
  0xf6   : > { %638 = vxpose.xlu0.b32.end [8/8] (short) (narrow) %v622_v35, 8  ;;  %v1340_v35 = vsel %vm1336_vm1, %v2289_v7, 0.0 }
  0xf7   : > { %v1341_v36 = vadd.f32 %v1340_v35, %v1339_v32 }
  0xf9   : > { %v1343_v38 = vadd.f32 %v1342_v37, %v1341_v36 }
  0xfb   : > { %v1345_v40 = vadd.f32 %v1344_v39, %v1343_v38 }
  0xfd   : > { %v1347_v42 = vadd.f32 %v1346_v41, %v1345_v40  ;;  %v1378_v41 = vsel %vm1377_vm6, %v2281_v5, 0.0 }
  0xff   : > { %v1349_v44 = vadd.f32 %v1348_v43, %v1347_v42  ;;  %v1379_v42 = vsel %vm1377_vm6, %v2285_v6, 0.0 }
 0x101   : > { %v1351_v46 = vadd.f32 %v1350_v45, %v1349_v44  ;;  %v1380_v44 = vadd.f32 %v1379_v42, %v1378_v41  ;;  %v1004_v41 = vsel %vm996_vm7, %v2300_v10, 0.0 }
 0x103   : > { %v1352_v47 = vrot.slane %v1351_v46, 4 }
 0x105   : > { %v1353_v48 = vadd.f32 %v1352_v47, %v1351_v46  ;;  %v1383_v47 = vsel %vm1377_vm6, %v2296_v9, 0.0 }
 0x107   : > { %v1354_v49 = vrot.slane %v1353_v48, 2 }
 0x109   : > { %v1355_v50 = vadd.f32 %v1354_v49, %v1353_v48 }
 0x10b   : > { %v1356_v51 = vrot.slane %v1355_v50, 1 }
 0x10d   : > { %v1357_v52 = vadd.f32 %v1356_v51, %v1355_v50  ;;  %v1385_v50 = vsel %vm1377_vm6, %v2300_v10, 0.0 }
 0x10f   : > { %v1358_v53 = vmax.f32 %v1357_v52, 1e-24 }
 0x111   : > { %vm1365_vm3 = vweird.f32 %v1358_v53 }
 0x14c   : > { %v330_v63 = vpop.trf.xlu1 }
 0x14d   : > { %1841 = vmatmul.msk.f32.vlgmr.msra.gmra.mxu3 %vm378_vm0, %v330_v63  ;;  %v961_v63 = vsel %vm955_vm2, %v2296_v9, 0.0 }
 0x162   : > { %v647_v11 = vpop.trf.xlu0 }
 0x163   : > { %1851 = vmatmul.msk.f32.vlgmr.msra.gmra.mxu2 %vm378_vm0, %v647_v11  ;;  %v962_v11 = vadd.f32 %v961_v63, %v960_v60  ;;  %v1391_v60 = vsel %vm1377_vm6, %v2332_v24, 0.0 }
 0x164   : > { %752 = vrot.lane.b32.xlu0 %v2271_v2, %s2169_s9 }
 0x16c   : > { %442 = vrot.lane.b32.xlu0 %v2268_v1, %s2170_s22 }
 0x174   : > { %446 = vrot.lane.b32.xlu0 %v2274_v3, %s2170_s22 }
 0x1d0   : > { %v399_v15 = vpop.f32.mrf.mxu3 }
 0x1d1   : > { %v2458_v16 = vmul.f32 %v405_v12, %v399_v15  ;;  %v963_v15 = vsel %vm955_vm2, %v2300_v10, 0.0 }
 0x1d3   : > { %v408_v18 = vsel %vm232_vm8, %v2458_v16, -inf }
 0x1d4   : > { %409 = vmax.xlane.f32.xlu1 %v408_v18  ;;  %v964_v18 = vadd.f32 %v963_v15, %v962_v11 }
 0x1e6   : > { %v715_v20 = vpop.f32.mrf.mxu2 }
 0x1e7   : > { %v723_v21 = vmul.f32 %v721_v19, %v715_v20  ;;  %v965_v20 = vsel %vm955_vm2, %v2316_v17, 0.0 }
 0x1e9   : > { %v724_v22 = vsel %vm232_vm8, %v723_v21, -inf }
 0x1ea   : > { %725 = vmax.xlane.f32.xlu2 %v724_v22 }
 0x1ed   : > { %448 = vrot.lane.b32.xlu1 %v2277_v4, %s2170_s22 }
 0x1f5   : > { %450 = vrot.lane.b32.xlu1 %v2292_v8, %s2170_s22 }
 0x202   : > { %756 = vrot.lane.b32.xlu2 %v2277_v4, %s2169_s9 }
 0x25d   : > { %v726_v27 = vpop.xlane.xlu2 %725 }
 0x25e   : > { %v727_v28 = vsub.f32 %v723_v21, %v726_v27  ;;  %v966_v21 = vadd.f32 %v965_v20, %v964_v18  ;;  %v967_v27 = vsel %vm955_vm2, %v2328_v23, 0.0 }
 0x260   : > { %v728_v29 = vmul.f32 1.442695, %v727_v28  ;;  %v410_v28 = vpop.xlane.xlu1 %409 }
 0x261   : > { %v411_v35 = vsub.f32 %v2458_v16, %v410_v28  ;;  %v1381_v16 = vsel %vm1377_vm6, %v2289_v7, 0.0 }
 0x262   : > { %2070 = vpow2.f32 %v728_v29  ;;  %v968_v29 = vadd.f32 %v967_v27, %v966_v21  ;;  %v1382_v46 = vadd.f32 %v1381_v16, %v1380_v44  ;;  %v1006_v44 = vsel %vm996_vm7, %v2316_v17, 0.0 }
 0x263   : > { %2072 = vrsqrt.f32 %v1358_v53  ;;  %v412_v38 = vmul.f32 1.442695, %v411_v35 }
 0x264   : > { %v970_v32 = vadd.f32 %v969_v33, %v968_v29  ;;  %v1384_v49 = vadd.f32 %v1383_v47, %v1382_v46  ;;  %v1010_v47 = vsel %vm996_vm7, %v2332_v24, 0.0 }
 0x265   : > { %2074 = vpow2.f32 %v412_v38 }
 0x266   : > { %v971_v36 = vrot.slane %v970_v32, 4 }
 0x268   : > { %v2479_v30 = vpop.eup %2070  ;;  %v972_v37 = vadd.f32 %v971_v36, %v970_v32  ;;  %v998_v32 = vsel %vm996_vm7, %v2285_v6, 0.0 }
 0x269   : > { %v730_v31 = vsel %vm232_vm8, %v2479_v30, 0.0  ;;  %v2073_v56 = vpop.eup %2072 }
 0x26a   : > { %731 = vadd.xlane.f32.xlu2 %v730_v31  ;;  %v1360_v58 = vmul.f32 %v2073_v56, %v1358_v53  ;;  %vm1366_vm4 = vweird.f32 %v2073_v56  ;;  %v973_v40 = vrot.slane %v972_v37, 2  ;;  %v1386_v53 = vadd.f32 %v1385_v50, %v1384_v49 }
 0x26b   : > { %vm1367_vm5 = vmor %vm1365_vm3, %vm1366_vm4  ;;  %v2534_v54 = vpop.eup %2074 }
 0x26c   : > { %v1361_v61 = vmul.f32 %v2073_v56, %v1360_v58  ;;  %v974_v43 = vadd.f32 %v973_v40, %v972_v37  ;;  %v414_v58 = vsel %vm232_vm8, %v2534_v54, 0.0  ;;  %v1000_v37 = vsel %vm996_vm7, %v2289_v7, 0.0 }
 0x26d   : > { %v1002_v40 = vsel %vm996_vm7, %v2296_v9, 0.0 }
 0x26e   : > { %v1362_v12 = vmul.f32 0.5, %v1361_v61  ;;  %v975_v45 = vrot.slane %v974_v43, 1 }
 0x270   : > { %v1363_v19 = vsub.f32 1.5, %v1362_v12  ;;  %v976_v48 = vadd.f32 %v975_v45, %v974_v43  ;;  %v1008_v45 = vsel %vm996_vm7, %v2328_v23, 0.0 }
 0x272   : > { %v1364_v22 = vmul.f32 %v2073_v56, %v1363_v19  ;;  %v977_v52 = vmax.f32 %v976_v48, 1e-24  ;;  %v2577_v48 = vpop.permute.xlu2 %756 }
 0x274   : > { %v2511_v31 = vsel %vm1367_vm5, %v2073_v56, %v1364_v22  ;;  %2076 = vrsqrt.f32 %v977_v52  ;;  %v1388_v56 = vadd.f32 %v1387_v55, %v1386_v53  ;;  %vm984_vm9 = vweird.f32 %v977_v52 }
 0x275   : > { %v1369_v34 = vmul.f32 %v2511_v31, %v2265_v0  ;;  %v1370_v39 = vmul.f32 %v2511_v31, %v2268_v1  ;;  %v1371_v51 = vmul.f32 %v2511_v31, %v2271_v2  ;;  %v1372_v15 = vmul.f32 %v2511_v31, %v2274_v3 }
 0x276   : > { %v1390_v59 = vadd.f32 %v1389_v57, %v1388_v56  ;;  %v1373_v29 = vmul.f32 %v2511_v31, %v2277_v4  ;;  %v1376_v56 = vmul.f32 %v2511_v31, %v2310_v14 }
 0x277   : > { %1426 = vrot.lane.b32.xlu0 %v1369_v34, %s2171_s23  ;;  %v997_v34 = vsel %vm996_vm7, %v2281_v5, 0.0  ;;  %v1374_v5 = vmul.f32 %v2511_v31, %v2292_v8 }
 0x278   : > { %v1392_v61 = vadd.f32 %v1391_v60, %v1390_v59  ;;  %v999_v35 = vadd.f32 %v998_v32, %v997_v34 }
 0x279   : > { %1436 = vrot.lane.b32.xlu1 %v1374_v5, %s2171_s23  ;;  %v2615_v5 = vld [vmem:[%s2262_s5 + $0x10] sm:$0xff] }
 0x27a   : > { %v2077_v63 = vpop.eup %2076  ;;  %v1393_v11 = vrot.slane %v1392_v61, 4 }
 0x27b   : > { %v979_v12 = vmul.f32 %v2077_v63, %v977_v52  ;;  %vm985_vm10 = vweird.f32 %v2077_v63 }
 0x27c   : > { %v1394_v18 = vadd.f32 %v1393_v11, %v1392_v61  ;;  %vm986_vm11 = vmor %vm984_vm9, %vm985_vm10 }
 0x27d   : > { %v980_v19 = vmul.f32 %v2077_v63, %v979_v12 }
 0x27e   : > { %v1395_v20 = vrot.slane %v1394_v18, 2 }
 0x27f   : > { %1428 = vrot.lane.b32.xlu0 %v1370_v39, %s2171_s23  ;;  %v981_v21 = vmul.f32 0.5, %v980_v19  ;;  %v1001_v39 = vadd.f32 %v1000_v37, %v999_v35 }
 0x280   : > { %v1396_v22 = vadd.f32 %v1395_v20, %v1394_v18 }
 0x281   : > { %v982_v28 = vsub.f32 1.5, %v981_v21  ;;  %v1003_v6 = vadd.f32 %v1002_v40, %v1001_v39  ;;  %452 = vrot.lane.b32.xlu1 %v2307_v13, %s2170_s22 }
 0x282   : > { %758 = vrot.lane.b32.xlu2 %v2292_v8, %s2169_s9  ;;  %v1397_v27 = vrot.slane %v1396_v22, 1 }
 0x283   : > { %v983_v38 = vmul.f32 %v2077_v63, %v982_v28  ;;  %v1005_v43 = vadd.f32 %v1004_v41, %v1003_v6  ;;  %v2627_v41 = vld [vmem:[%s2262_s5 + $0x18] sm:$0xff] }
 0x284   : > { %v1398_v33 = vadd.f32 %v1397_v27, %v1396_v22 }
 0x285   : > { %v2563_v42 = vsel %vm986_vm11, %v2077_v63, %v983_v38  ;;  %v1007_v16 = vadd.f32 %v1006_v44, %v1005_v43 }
 0x286   : > { %v1399_v36 = vmax.f32 %v1398_v33, 1e-24  ;;  %v994_v7 = vmul.f32 %v2563_v42, %v2307_v13  ;;  %v995_v50 = vmul.f32 %v2563_v42, %v2310_v14  ;;  %v988_v60 = vmul.f32 %v2563_v42, %v2265_v0 }
 0x287   : > { %1430 = vrot.lane.b32.xlu0 %v1371_v51, %s2171_s23  ;;  %v1009_v46 = vadd.f32 %v1008_v45, %v1007_v16  ;;  %v989_v27 = vmul.f32 %v2563_v42, %v2268_v1  ;;  %v991_v43 = vmul.f32 %v2627_v41, %v2563_v42  ;;  %v2637_v16 = vld [vmem:[%s2262_s5 + $0x8] sm:$0xff]  ;;  %v2646_v45 = vld [vmem:[%s2262_s5 + $0x20] sm:$0xff] }
 0x288   : > { %2078 = vrsqrt.f32 %v1399_v36  ;;  %vm1406_vm12 = vweird.f32 %v1399_v36 }
 0x289   : > { %v1011_v17 = vadd.f32 %v1010_v47, %v1009_v46  ;;  %1440 = vrot.lane.b32.xlu1 %v1376_v56, %s2171_s23  ;;  %v753_v46 = vpop.permute.xlu0 %752  ;;  %v2653_v47 = vld [vmem:[%s2262_s5 + $0x28] sm:$0xff] }
 0x28a   : > { %760 = vrot.lane.b32.xlu2 %v2307_v13, %s2169_s9 }
 0x28b   : > { %v1012_v23 = vrot.slane %v1011_v17, 4 }
 0x28d   : > { %v1013_v53 = vadd.f32 %v1012_v23, %v1011_v17 }
 0x28e   : > { %v2079_v9 = vpop.eup %2078 }
 0x28f   : > { %1432 = vrot.lane.b32.xlu0 %v1372_v15, %s2171_s23  ;;  %v1401_v10 = vmul.f32 %v2079_v9, %v1399_v36  ;;  %vm1407_vm13 = vweird.f32 %v2079_v9  ;;  %v1014_v55 = vrot.slane %v1013_v53, 2 }
 0x290   : > { %vm1408_vm14 = vmor %vm1406_vm12, %vm1407_vm13 }
 0x291   : > { %v1402_v49 = vmul.f32 %v2079_v9, %v1401_v10  ;;  %v1015_v59 = vadd.f32 %v1014_v55, %v1013_v53  ;;  %v992_v10 = vmul.f32 %v2646_v45, %v2563_v42  ;;  %v443_v17 = vpop.permute.xlu0 %442  ;;  %v2673_v55 = vpop.permute.xlu1 %448 }
 0x292   : > { %762 = vrot.lane.b32.xlu2 %v2310_v14, %s2169_s9 }
 0x293   : > { %v1403_v51 = vmul.f32 0.5, %v1402_v49  ;;  %v1016_v11 = vrot.slane %v1015_v59, 1  ;;  %v993_v49 = vmul.f32 %v2653_v47, %v2563_v42 }
 0x295   : > { %v1404_v52 = vsub.f32 1.5, %v1403_v51  ;;  %v1017_v15 = vadd.f32 %v1016_v11, %v1015_v59 }
 0x297   : > { %1434 = vrot.lane.b32.xlu0 %v1373_v29, %s2171_s23  ;;  %v1405_v24 = vmul.f32 %v2079_v9, %v1404_v52  ;;  %v1018_v18 = vmax.f32 %v1017_v15, 1e-24 }
 0x299   : > { %vm1025_vm4 = vweird.f32 %v1018_v18  ;;  %v2668_v23 = vpop.permute.xlu0 %446 }
 0x29f   : > { %1057 = vrot.lane.b32.xlu0 %v994_v7, %s2172_s29  ;;  %v2632_v7 = vld [vmem:[%s2262_s5] sm:$0xff] }
 0x2a7   : > { %1059 = vrot.lane.b32.xlu0 %v995_v50, %s2172_s29 }
 0x2bb   : > { %415 = vadd.xlane.f32.xlu2 %v414_v58  ;;  %v2588_v58 = vsel %vm1408_vm14, %v2079_v9, %v1405_v24 }
 0x2bc   : > { %v1416_v61 = vmul.f32 %v2588_v58, %v2307_v13  ;;  %v1417_v63 = vmul.f32 %v2588_v58, %v2310_v14  ;;  %v1415_v20 = vmul.f32 %v2588_v58, %v2292_v8  ;;  %v1412_v1 = vmul.f32 %v2588_v58, %v2271_v2 }
 0x2bd   : > { %v1413_v32 = vmul.f32 %v2588_v58, %v2274_v3 }
 0x2be   : > { %v2027_v12 = vpack.i.bf16 %v1416_v61, %v1417_v63 }
 0x2bf   : > { %v2047_v38 = vpack.i.bf16 %v1412_v1, %v1413_v32 }
 0x2c0   : > { %2028 = vrot.lane.b32.xlu0 %v2027_v12, %s2173_s30 }
 0x2c8   : > { %454 = vrot.lane.b32.xlu0 %v2310_v14, %s2170_s22  ;;  %v990_v14 = vmul.f32 %v2615_v5, %v2563_v42 }
 0x2d3   : > { %440 = vrot.lane.b32.xlu2 %v2265_v0, %s2170_s22  ;;  %v1414_v0 = vmul.f32 %v2588_v58, %v2277_v4 }
 0x2d5   : > { %v2037_v21 = vpack.i.bf16 %v1414_v0, %v1415_v20 }
 0x2d7   : > { %2038 = vrot.lane.b32.xlu1 %v2037_v21, %s2173_s30 }
 0x2db   : > { %444 = vrot.lane.b32.xlu2 %v2271_v2, %s2170_s22 }
 0x2dd   : > { %v732_v57 = vpop.xlane.xlu2 %731 }
 0x2de   : > { %2080 = vrcp.f32 %v732_v57  ;;  %v744_v28 = vand.u32 2147483648, %v732_v57  ;;  %v742_v33 = vand.u32 2147483647, %v732_v57  ;;  %vm738_vm1 = vweird.f32 %v732_v57 }
 0x2df   : > { %2082 = vrsqrt.f32 %v1018_v18  ;;  %2048 = vrot.lane.b32.xlu1 %v2047_v38, %s2173_s30 }
 0x2e0   : > { %v745_v8 = vor.u32 1.1754944e-38, %v744_v28  ;;  %vm743_vm3 = vcmp.eq.f32.partialorder %v742_v33, 8.507059e+37 }
 0x2e3   : > { %1045 = vrot.lane.b32.xlu2 %v988_v60, %s2172_s29  ;;  %v2675_v60 = vpop.permute.xlu1 %450 }
 0x2e4   : > { %v2081_v19 = vpop.eup %2080 }
 0x2e5   : > { %v734_v13 = vmul.f32 %v2081_v19, %v732_v57  ;;  %vm739_vm15 = vweird.f32 %v2081_v19  ;;  %v2083_v34 = vpop.eup %2082  ;;  %v759_v51 = vpop.permute.xlu2 %758 }
 0x2e6   : > { %vm740_vm2 = vmor %vm738_vm1, %vm739_vm15  ;;  %v1020_v35 = vmul.f32 %v2083_v34, %v1018_v18  ;;  %vm1026_vm5 = vweird.f32 %v2083_v34 }
 0x2e7   : > { %v735_v22 = vsub.f32 1.0, %v734_v13  ;;  %vm1027_vm6 = vmor %vm1025_vm4, %vm1026_vm5 }
 0x2e8   : > { %v1021_v39 = vmul.f32 %v2083_v34, %v1020_v35 }
 0x2e9   : > { %v736_v29 = vmul.f32 %v2081_v19, %v735_v22  ;;  %v1427_v52 = vpop.permute.xlu0 %1426 }
 0x2ea   : > { %v1022_v2 = vmul.f32 0.5, %v1021_v39 }
 0x2eb   : > { %v737_v4 = vadd.f32 %v2081_v19, %v736_v29  ;;  %1047 = vrot.lane.b32.xlu2 %v989_v27, %s2172_s29  ;;  %v1437_v22 = vpop.permute.xlu1 %1436 }
 0x2ec   : > { %v1023_v3 = vsub.f32 1.5, %v1022_v2 }
 0x2ed   : > { %v741_v36 = vsel %vm740_vm2, %v2081_v19, %v737_v4  ;;  %v761_v42 = vpop.permute.xlu2 %760 }
 0x2ee   : > { %v746_v37 = vsel %vm743_vm3, %v745_v8, %v741_v36  ;;  %v1024_v6 = vmul.f32 %v2083_v34, %v1023_v3 }
 0x2ef   : > { %v747_v40 = vmul.f32 %v2479_v30, %v746_v37  ;;  %v824_v37 = vld [vmem:[%s2937_s3 + $0x8] sm:$0xff] }
 0x2f0   : > { %v2624_v30 = vsel %vm1027_vm6, %v2083_v34, %v1024_v6  ;;  %864 = vmatpush.msra.mxu0 %v824_v37 }
 0x2f1   : > { %1852 = vmatpush.xpose.msk.msrb.mxu3 %vm232_vm8, %v747_v40  ;;  %v1029_v44 = vmul.f32 %v2632_v7, %v2624_v30  ;;  %v1034_v2 = vmul.f32 %v2653_v47, %v2624_v30 }
 0x2f3   : > { %1049 = vrot.lane.b32.xlu2 %v990_v14, %s2172_s29  ;;  %v453_v29 = vpop.permute.xlu1 %452  ;;  %v1033_v14 = vmul.f32 %v2646_v45, %v2624_v30 }
 0x2f4   : > { %1853 = vmatmul.msk.f32.vlgmr.msrb.gmra.mxu3 %vm232_vm8, %v2473_v62  ;;  %v1030_v62 = vmul.f32 %v2637_v16, %v2624_v30 }
 0x2f5   : > { %v763_v53 = vpop.permute.xlu2 %762  ;;  %v2032_v6 = vpack.i.bf16 %v1033_v14, %v1034_v2 }
 0x2f6   : > { %v2052_v9 = vpack.i.bf16 %v1029_v44, %v1030_v62  ;;  %v1031_v62 = vmul.f32 %v2615_v5, %v2624_v30 }
 0x2f8   : > { %2053 = vrot.lane.b32.xlu0 %v2052_v9, %s2174_s6  ;;  %v1032_v9 = vmul.f32 %v2627_v41, %v2624_v30 }
 0x2fb   : > { %1051 = vrot.lane.b32.xlu2 %v991_v43, %s2172_s29  ;;  %v1441_v4 = vpop.permute.xlu1 %1440 }
 0x2fc   : > { %1854 = vmatmul.msk.f32.gmra.mxu3 %vm232_vm8, %v2475_v25  ;;  %v2661_v25 = vld [vmem:[%s2262_s5 + $0x30] sm:$0xff] }
 0x2fd   : > { %v1375_v50 = vmul.f32 %v2661_v25, %v2511_v31  ;;  %v1035_v8 = vmul.f32 %v2661_v25, %v2624_v30 }
 0x303   : > { %1053 = vrot.lane.b32.xlu2 %v992_v10, %s2172_s29 }
 0x304   : > { %1855 = vmatmul.msk.f32.gmra.mxu3 %vm232_vm8, %v753_v46  ;;  %v2042_v46 = vpack.i.bf16 %v1031_v62, %v1032_v9 }
 0x30b   : > { %1055 = vrot.lane.b32.xlu2 %v993_v49, %s2172_s29 }
 0x30c   : > { %1856 = vmatmul.msk.f32.gmra.mxu3 %vm232_vm8, %v2477_v26  ;;  %v1429_v26 = vpop.permute.xlu0 %1428 }
 0x313   : > { %1438 = vrot.lane.b32.xlu2 %v1375_v50, %s2171_s23 }
 0x314   : > { %1857 = vmatmul.msk.f32.gmra.mxu3 %vm232_vm8, %v2577_v48  ;;  %v1431_v31 = vpop.permute.xlu0 %1430 }
 0x31a   : > { %1450 = vxpose.xlu0.b32.start [1/8] (short) (narrow) %v1427_v52, 8 }
 0x31c   : > { %1858 = vmatmul.msk.f32.gmra.mxu3 %vm232_vm8, %v759_v51  ;;  %v1433_v48 = vpop.permute.xlu0 %1432 }
 0x322   : > { %1451 = vxpose.xlu0.b32.cont [2/8] (short) (narrow) %v1429_v26, 8 }
 0x324   : > { %1859 = vmatmul.msk.f32.gmra.mxu3 %vm232_vm8, %v761_v42  ;;  %v1435_v18 = vpop.permute.xlu0 %1434 }
 0x32a   : > { %1452 = vxpose.xlu0.b32.cont [3/8] (short) (narrow) %v1431_v31, 8 }
 0x32c   : > { %1860 = vmatmul.msk.f32.gmra.mxu3 %vm232_vm8, %v763_v53  ;;  %v1058_v27 = vpop.permute.xlu0 %1057 }
 0x32e   : > { %v416_v24 = vpop.xlane.xlu2 %415 }
 0x32f   : > { %2084 = vrcp.f32 %v416_v24  ;;  %v428_v63 = vand.u32 2147483648, %v416_v24  ;;  %v426_v12 = vand.u32 2147483647, %v416_v24  ;;  %vm422_vm9 = vweird.f32 %v416_v24 }
 0x331   : > { %v429_v19 = vor.u32 1.1754944e-38, %v428_v63  ;;  %vm427_vm11 = vcmp.eq.f32.partialorder %v426_v12, 8.507059e+37 }
 0x332   : > { %1453 = vxpose.xlu0.b32.cont [4/8] (short) (narrow) %v1433_v48, 8 }
 0x334   : > { %v1060_v33 = vpop.permute.xlu0 %1059 }
 0x335   : > { %v2085_v56 = vpop.eup %2084 }
 0x336   : > { %v418_v57 = vmul.f32 %v2085_v56, %v416_v24  ;;  %v441_v59 = vpop.permute.xlu2 %440  ;;  %vm423_vm7 = vweird.f32 %v2085_v56 }
 0x337   : > { %vm424_vm10 = vmor %vm422_vm9, %vm423_vm7 }
 0x338   : > { %v419_v61 = vsub.f32 1.0, %v418_v57 }
 0x33a   : > { %v420_v11 = vmul.f32 %v2085_v56, %v419_v61  ;;  %1454 = vxpose.xlu0.b32.cont [5/8] (short) (narrow) %v1435_v18, 8 }
 0x33c   : > { %v421_v15 = vadd.f32 %v2085_v56, %v420_v11  ;;  %v2029_v36 = vpop.permute.xlu0 %2028 }
 0x33d   : > { %v2030_v38 = vunpack.i.l.bf16 %v2029_v36  ;;  %v2031_v39 = vunpack.i.h.bf16 %v2029_v36  ;;  %v1537_v36 = vld [vmem:[%s2936_s2 + $0x3] sm:$0x1] }
 0x33e   : > { %v445_v0 = vpop.permute.xlu2 %444  ;;  %v425_v20 = vsel %vm424_vm10, %v2085_v56, %v421_v15 }
 0x33f   : > { %v430_v13 = vsel %vm427_vm11, %v429_v19, %v425_v20  ;;  %1525 = vmatpush.msrb.mxu0 %v2030_v38 }
 0x340   : > { %v431_v21 = vmul.f32 %v2534_v54, %v430_v13  ;;  %v2684_v54 = vld [vmem:[%s2262_s5 + $0x38] sm:$0xff] }
 0x341   : > { %v1036_v1 = vmul.f32 %v2684_v54, %v2624_v30  ;;  %1526 = vmatpush.msrb.mxu0 %v2031_v39 }
 0x342   : > { %1842 = vmatpush.xpose.msk.msra.mxu1 %vm232_vm8, %v431_v21  ;;  %1455 = vxpose.xlu0.b32.cont [6/8] (short) (narrow) %v1437_v22, 8 }
 0x343   : > { %v2022_v32 = vpack.i.bf16 %v1035_v8, %v1036_v1 }
 0x344   : > { %v455_v42 = vpop.permute.xlu0 %454 }
 0x345   : > { %1843 = vmatmul.msk.f32.vlgmr.msra.gmra.mxu1 %vm232_vm8, %v441_v59  ;;  %2023 = vrot.lane.b32.xlu2 %v2022_v32, %s2174_s6  ;;  %v1156_v32 = vld [vmem:[%s2936_s2 + $0x2] sm:$0x1] }
 0x346   : > { %v1046_v28 = vpop.permute.xlu2 %1045  ;;  %1925 = vpush %v1156_v32 }
 0x347   : > { %1069 = vxpose.xlu1.b32.start [1/8] (short) (narrow) %v1046_v28, 8  ;;  %1927 = vpush %v1537_v36 }
 0x349   : > { %v2039_v40 = vpop.permute.xlu1 %2038 }
 0x34a   : > { %v2040_v3 = vunpack.i.l.bf16 %v2039_v40  ;;  %v2041_v43 = vunpack.i.h.bf16 %v2039_v40 }
 0x34c   : > { %1527 = vmatpush.msrb.mxu0 %v2040_v3 }
 0x34d   : > { %1844 = vmatmul.msk.f32.gmra.mxu1 %vm232_vm8, %v443_v17  ;;  %2033 = vrot.lane.b32.xlu2 %v2032_v6, %s2174_s6 }
 0x34e   : > { %v1048_v34 = vpop.permute.xlu2 %1047  ;;  %1528 = vmatpush.msrb.mxu0 %v2041_v43 }
 0x34f   : > { %1070 = vxpose.xlu1.b32.cont [2/8] (short) (narrow) %v1048_v34, 8 }
 0x351   : > { %v2049_v10 = vpop.permute.xlu1 %2048 }
 0x352   : > { %v2050_v49 = vunpack.i.l.bf16 %v2049_v10  ;;  %v2051_v17 = vunpack.i.h.bf16 %v2049_v10 }
 0x354   : > { %1529 = vmatpush.msrb.mxu0 %v2050_v49 }
 0x355   : > { %1845 = vmatmul.msk.f32.gmra.mxu1 %vm232_vm8, %v445_v0  ;;  %2043 = vrot.lane.b32.xlu2 %v2042_v46, %s2174_s6 }
 0x356   : > { %v1050_v35 = vpop.permute.xlu2 %1049  ;;  %1530 = vmatpush.msrb.mxu0 %v2051_v17 }
 0x357   : > { %1071 = vxpose.xlu1.b32.cont [3/8] (short) (narrow) %v1050_v35, 8 }
 0x35d   : > { %1846 = vmatmul.msk.f32.gmra.mxu1 %vm232_vm8, %v2668_v23 }
 0x35e   : > { %v1052_v44 = vpop.permute.xlu2 %1051 }
 0x35f   : > { %1072 = vxpose.xlu1.b32.cont [4/8] (short) (narrow) %v1052_v44, 8 }
 0x365   : > { %1847 = vmatmul.msk.f32.gmra.mxu1 %vm232_vm8, %v2673_v55  ;;  %v516_v55 = vld [vmem:[%s2937_s3] sm:$0xff] }
 0x366   : > { %v1054_v50 = vpop.permute.xlu2 %1053  ;;  %929 = vmatpush.msrb.mxu2 %v516_v55 }
 0x367   : > { %1073 = vxpose.xlu1.b32.cont [5/8] (short) (narrow) %v1054_v50, 8 }
 0x36a   : > { %v2054_v19 = vpop.permute.xlu0 %2053 }
 0x36b   : > { %v2055_v20 = vunpack.i.l.bf16 %v2054_v19  ;;  %v2056_v13 = vunpack.i.h.bf16 %v2054_v19 }
 0x36d   : > { %1848 = vmatmul.msk.f32.gmra.mxu1 %vm232_vm8, %v2675_v60 }
 0x36e   : > { %v1056_v51 = vpop.permute.xlu2 %1055 }
 0x36f   : > { %1074 = vxpose.xlu1.b32.cont [6/8] (short) (narrow) %v1056_v51, 8 }
 0x375   : > { %1849 = vmatmul.msk.f32.gmra.mxu1 %vm232_vm8, %v453_v29  ;;  %v1410_v29 = vmul.f32 %v2632_v7, %v2588_v58 }
 0x376   : > { %v1439_v30 = vpop.permute.xlu2 %1438 }
 0x377   : > { %v800_v23 = vpop.f32.mrf.mxu3  ;;  %1075 = vxpose.xlu1.b32.cont [7/8] (short) (narrow) %v1058_v27, 8  ;;  %1456 = vxpose.xlu0.b32.cont [7/8] (short) (narrow) %v1439_v30, 8  ;;  %s1926_s22 = spop %1925 }
 0x378   : > { %1861 = vmatmul.msk.f32.vlgmr.msra.gmra.mxu0 %vm232_vm8, %v800_v23  ;;  %v1159_v37 = vstv %s1926_s22  ;;  %s1928_s23 = spop %1927 }
 0x37d   : > { %1850 = vmatmul.msk.f32.gmra.mxu1 %vm232_vm8, %v455_v42 }
 0x37f   : > { %v803_v52 = vpop.f32.mrf.mxu3  ;;  %1076 = vxpose.xlu1.b32.end [8/8] (short) (narrow) %v1060_v33, 8  ;;  %1457 = vxpose.xlu0.b32.end [8/8] (short) (narrow) %v1441_v4, 8  ;;  %v1411_v33 = vmul.f32 %v2637_v16, %v2588_v58 }
 0x380   : > { %1862 = vmatmul.msk.f32.gmra.mxu0 %vm232_vm8, %v803_v52 }
 0x381   : > { %v2057_v34 = vpack.i.bf16 %v1410_v29, %v1411_v33 }
 0x383   : > { %2058 = vrot.lane.b32.xlu2 %v2057_v34, %s2173_s30 }
 0x387   : > { %v806_v26 = vpop.f32.mrf.mxu3 }
 0x388   : > { %1863 = vmatmul.msk.f32.gmra.mxu0 %vm232_vm8, %v806_v26  ;;  %v1540_v26 = vstv %s1928_s23 }
 0x38b   : > { %1186 = vrot.lane.b32.xlu2 %v2632_v7, %s2175_s10 }
 0x38f   : > { %v809_v53 = vpop.f32.mrf.mxu3 }
 0x390   : > { %1864 = vmatmul.msk.f32.gmra.mxu0 %vm232_vm8, %v809_v53 }
 0x393   : > { %1188 = vrot.lane.b32.xlu2 %v2637_v16, %s2175_s10 }
 0x397   : > { %v812_v31 = vpop.f32.mrf.mxu3 }
 0x398   : > { %1865 = vmatmul.msk.f32.gmra.mxu0 %vm232_vm8, %v812_v31 }
 0x39b   : > { %1569 = vrot.lane.b32.xlu2 %v2637_v16, %s2176_s11 }
 0x39f   : > { %v815_v24 = vpop.f32.mrf.mxu3  ;;  %v2024_v57 = vpop.permute.xlu2 %2023 }
 0x3a0   : > { %1866 = vmatmul.msk.f32.gmra.mxu0 %vm232_vm8, %v815_v24  ;;  %v2025_v59 = vunpack.i.l.bf16 %v2024_v57  ;;  %v2026_v60 = vunpack.i.h.bf16 %v2024_v57 }
 0x3a2   : > { %1144 = vmatpush.msrb.mxu1 %v2025_v59 }
 0x3a3   : > { %1571 = vrot.lane.b32.xlu2 %v2615_v5, %s2176_s11 }
 0x3a4   : > { %1145 = vmatpush.msrb.mxu1 %v2026_v60 }
 0x3a7   : > { %v818_v48 = vpop.f32.mrf.mxu3  ;;  %v2034_v61 = vpop.permute.xlu2 %2033 }
 0x3a8   : > { %1867 = vmatmul.msk.f32.gmra.mxu0 %vm232_vm8, %v818_v48  ;;  %v2035_v63 = vunpack.i.l.bf16 %v2034_v61  ;;  %v2036_v11 = vunpack.i.h.bf16 %v2034_v61 }
 0x3aa   : > { %1146 = vmatpush.msrb.mxu1 %v2035_v63 }
 0x3ab   : > { %1192 = vrot.lane.b32.xlu2 %v2627_v41, %s2175_s10 }
 0x3ac   : > { %1147 = vmatpush.msrb.mxu1 %v2036_v11 }
 0x3af   : > { %v821_v56 = vpop.f32.mrf.mxu3  ;;  %v2044_v12 = vpop.permute.xlu2 %2043 }
 0x3b0   : > { %1868 = vmatmul.msk.f32.gmra.mxu0 %vm232_vm8, %v821_v56  ;;  %v2045_v15 = vunpack.i.l.bf16 %v2044_v12  ;;  %v2046_v0 = vunpack.i.h.bf16 %v2044_v12 }
 0x3b2   : > { %1148 = vmatpush.msrb.mxu1 %v2045_v15 }
 0x3b3   : > { %1573 = vrot.lane.b32.xlu2 %v2627_v41, %s2176_s11 }
 0x3b4   : > { %1149 = vmatpush.msrb.mxu1 %v2046_v0 }
 0x3b6   : > { %1150 = vmatpush.msrb.mxu1 %v2055_v20 }
 0x3b8   : > { %1151 = vmatpush.msrb.mxu1 %v2056_v13 }
 0x3bb   : > { %1194 = vrot.lane.b32.xlu2 %v2646_v45, %s2175_s10 }
 0x3c2   : > { %v492_v18 = vpop.f32.mrf.mxu1 }
 0x3c3   : > { %1869 = vmatmul.msk.f32.vlgmr.msrb.gmra.mxu2 %vm232_vm8, %v492_v18 }
 0x3ca   : > { %v495_v21 = vpop.f32.mrf.mxu1 }
 0x3cb   : > { %1870 = vmatmul.msk.f32.gmra.mxu2 %vm232_vm8, %v495_v21 }
 0x3d2   : > { %v498_v22 = vpop.f32.mrf.mxu1 }
 0x3d3   : > { %1871 = vmatmul.msk.f32.gmra.mxu2 %vm232_vm8, %v498_v22 }
 0x3d9   : > { %1190 = vrot.lane.b32.xlu1 %v2615_v5, %s2175_s10 }
 0x3da   : > { %v501_v27 = vpop.f32.mrf.mxu1 }
 0x3db   : > { %1872 = vmatmul.msk.f32.gmra.mxu2 %vm232_vm8, %v501_v27  ;;  %v1262_v27 = vld [vmem:[%s2937_s3 + $0x10] sm:$0xff] }
 0x3dc   : > { %1302 = vmatpush.msra.mxu1 %v1262_v27 }
 0x3e2   : > { %v504_v28 = vpop.f32.mrf.mxu1 }
 0x3e3   : > { %1873 = vmatmul.msk.f32.gmra.mxu2 %vm232_vm8, %v504_v28 }
 0x3ea   : > { %v507_v4 = vpop.f32.mrf.mxu1 }
 0x3eb   : > { %1874 = vmatmul.msk.f32.gmra.mxu2 %vm232_vm8, %v507_v4  ;;  %v1085_v8 = vpop.trf.xlu1  ;;  %v1466_v5 = vpop.trf.xlu0 }
 0x3ec   : > { %1877 = vmatmul.msk.f32.vlgmr.msrb.gmra.mxu1 %vm378_vm0, %v1085_v8 }
 0x3ed   : > { %1567 = vrot.lane.b32.xlu0 %v2632_v7, %s2176_s11  ;;  %v2059_v7 = vpop.permute.xlu2 %2058 }
 0x3ee   : > { %v2060_v35 = vunpack.i.l.bf16 %v2059_v7  ;;  %v2061_v16 = vunpack.i.h.bf16 %v2059_v7 }
 0x3f0   : > { %1531 = vmatpush.msrb.mxu0 %v2060_v35 }
 0x3f2   : > { %v510_v1 = vpop.f32.mrf.mxu1  ;;  %1532 = vmatpush.msrb.mxu0 %v2061_v16 }
 0x3f3   : > { %1875 = vmatmul.msk.f32.gmra.mxu2 %vm232_vm8, %v510_v1  ;;  %1895 = vmatmul.msk.f32.vlgmr.msrb.gmra.mxu0 %vm378_vm0, %v1466_v5 }
 0x3f5   : > { %v1187_v40 = vpop.permute.xlu2 %1186  ;;  %v2762_v14 = vpop.f32.mrf.mxu0 }
 0x3fa   : > { %v513_v58 = vpop.f32.mrf.mxu1 }
 0x3fb   : > { %1876 = vmatmul.msk.f32.gmra.mxu2 %vm232_vm8, %v513_v58 }
 0x3fd   : > { %v1189_v2 = vpop.permute.xlu2 %1188  ;;  %v2764_v3 = vpop.f32.mrf.mxu0 }
 0x405   : > { %v2766_v6 = vpop.permute.xlu2 %1569  ;;  %v2768_v43 = vpop.f32.mrf.mxu0 }
 0x40d   : > { %v2770_v44 = vpop.permute.xlu2 %1571  ;;  %v2772_v62 = vpop.f32.mrf.mxu0 }
 0x415   : > { %v1193_v9 = vpop.permute.xlu2 %1192  ;;  %v2774_v10 = vpop.f32.mrf.mxu0 }
 0x41d   : > { %v2776_v46 = vpop.permute.xlu2 %1573  ;;  %v2778_v49 = vpop.f32.mrf.mxu0 }
 0x425   : > { %v1195_v17 = vpop.permute.xlu2 %1194  ;;  %v2780_v50 = vpop.f32.mrf.mxu0 }
 0x42d   : > { %v2782_v23 = vpop.f32.mrf.mxu0 }
 0x44b   : > { %v1191_v22 = vpop.permute.xlu1 %1190 }
 0x45f   : > { %v1568_v36 = vpop.permute.xlu0 %1567 }
 0x469   : > { %v1153_v38 = vpop.f32.mrf.mxu1 }
 0x46a   : > { %v1161_v41 = vmul.f32 %v1159_v37, %v1153_v38 }
 0x46c   : > { %v1162_v39 = vsel %vm232_vm8, %v1161_v41, -inf }
 0x46d   : > { %1163 = vmax.xlane.f32.xlu2 %v1162_v39 }
 0x470   : > { %v1534_v53 = vpop.f32.mrf.mxu0 }
 0x471   : > { %v1542_v24 = vmul.f32 %v1540_v26, %v1534_v53 }
 0x473   : > { %v1543_v55 = vsel %vm232_vm8, %v1542_v24, -inf }
 0x4e0   : > { %v1164_v51 = vpop.xlane.xlu2 %1163 }
 0x4e1   : > { %v1165_v30 = vsub.f32 %v1161_v41, %v1164_v51 }
 0x4e3   : > { %v1166_v42 = vmul.f32 1.442695, %v1165_v30 }
 0x4e5   : > { %2086 = vpow2.f32 %v1166_v42 }
 0x4eb   : > { %v2087_v52 = vpop.eup %2086 }
 0x4ec   : > { %v1168_v31 = vsel %vm232_vm8, %v2087_v52, 0.0 }
 0x4ed   : > { %1169 = vadd.xlane.f32.xlu2 %v1168_v31 }
 0x4f5   : > { %1544 = vmax.xlane.f32.xlu2 %v1543_v55 }
 0x50d   : > { %1575 = vrot.lane.b32.xlu2 %v2646_v45, %s2176_s11 }
 0x560   : > { %v1170_v48 = vpop.xlane.xlu2 %1169 }
 0x561   : > { %2088 = vrcp.f32 %v1170_v48  ;;  %v1182_v63 = vand.u32 2147483648, %v1170_v48  ;;  %v1180_v15 = vand.u32 2147483647, %v1170_v48  ;;  %vm1176_vm12 = vweird.f32 %v1170_v48 }
 0x563   : > { %v1183_v19 = vor.u32 1.1754944e-38, %v1182_v63  ;;  %vm1181_vm14 = vcmp.eq.f32.partialorder %v1180_v15, 8.507059e+37 }
 0x567   : > { %v2089_v56 = vpop.eup %2088 }
 0x568   : > { %v1172_v57 = vmul.f32 %v2089_v56, %v1170_v48  ;;  %v1545_v59 = vpop.xlane.xlu2 %1544  ;;  %vm1177_vm0 = vweird.f32 %v2089_v56 }
 0x569   : > { %v1546_v60 = vsub.f32 %v1542_v24, %v1545_v59  ;;  %vm1178_vm13 = vmor %vm1176_vm12, %vm1177_vm0 }
 0x56a   : > { %v1173_v61 = vsub.f32 1.0, %v1172_v57 }
 0x56b   : > { %v1547_v11 = vmul.f32 1.442695, %v1546_v60 }
 0x56c   : > { %v1174_v12 = vmul.f32 %v2089_v56, %v1173_v61 }
 0x56d   : > { %2090 = vpow2.f32 %v1547_v11 }
 0x56e   : > { %v1175_v18 = vadd.f32 %v2089_v56, %v1174_v12 }
 0x570   : > { %v1179_v0 = vsel %vm1178_vm13, %v2089_v56, %v1175_v18 }
 0x571   : > { %v1184_v45 = vsel %vm1181_vm14, %v1183_v19, %v1179_v0 }
 0x572   : > { %v1185_v20 = vmul.f32 %v2087_v52, %v1184_v45 }
 0x573   : > { %v2091_v13 = vpop.eup %2090 }
 0x574   : > { %1878 = vmatpush.xpose.msk.msra.mxu3 %vm232_vm8, %v1185_v20  ;;  %v1549_v21 = vsel %vm232_vm8, %v2091_v13, 0.0 }
 0x575   : > { %1550 = vadd.xlane.f32.xlu2 %v1549_v21 }
 0x577   : > { %1879 = vmatmul.msk.f32.vlgmr.msra.gmra.mxu3 %vm232_vm8, %v1187_v40 }
 0x57f   : > { %1880 = vmatmul.msk.f32.gmra.mxu3 %vm232_vm8, %v1189_v2 }
 0x587   : > { %1881 = vmatmul.msk.f32.gmra.mxu3 %vm232_vm8, %v1191_v22 }
 0x58d   : > { %1196 = vrot.lane.b32.xlu2 %v2653_v47, %s2175_s10 }
 0x58f   : > { %1882 = vmatmul.msk.f32.gmra.mxu3 %vm232_vm8, %v1193_v9 }
 0x595   : > { %1577 = vrot.lane.b32.xlu2 %v2653_v47, %s2176_s11  ;;  %v1576_v47 = vpop.permute.xlu2 %1575 }
 0x597   : > { %1883 = vmatmul.msk.f32.gmra.mxu3 %vm232_vm8, %v1195_v17 }
 0x59d   : > { %1198 = vrot.lane.b32.xlu2 %v2661_v25, %s2175_s10 }
 0x5a5   : > { %1579 = vrot.lane.b32.xlu2 %v2661_v25, %s2176_s11 }
 0x5ad   : > { %1200 = vrot.lane.b32.xlu2 %v2684_v54, %s2175_s10  ;;  %s2859_s10 = scalar_lea.vmem %s2935_s1, %s1918_s28  ;;  %s1920_s28 = sshll.u32 %s2225_s19, 6 }
 0x5ae   : > { %v1717_v45 = vld [vmem:[%s2859_s10] sm:$0xff]  ;;  %s1754_s14 = scalar_lea.hbm %s2938_s4, %s1920_s28  ;;  %s1743_s19 = scalar_lea.sflag [#allocation3], %s203_s8 }
 0x5af   : > { %s1757_s22 = sshll.u32 %s1754_s14, 4  ;;  %s1758_s22 = int_to_ptr.hbm [resolvable:$true] %s1757_s22 }
 0x5b0   : > { %s2116_s23 = sshra.s32 %s1758_s22, 4  ;;  %s2117_s23 = int_to_ptr.hbm [resolvable:$true] %s2116_s23 }
 0x5b1   : > { %s2118_s29 = scalar_lea.hbm %s2117_s23, 64  ;;  %p2123_p0 = scmp.lt.s32.totalorder %s2117_s23, %s2938_s4 }
 0x5b2   : > { %p2119_p11 = scmp.ne.s32.totalorder %s2117_s23, %s2118_s29  ;;  %p2124_p1 = scmp.lt.s32.totalorder %s2122_s7, %s2118_s29 }
 0x5b4   : > { %p2120_p12 = pnand %p2119_p11, %p2242_p5  ;;  %p2125_p2 = por %p2124_p1, %p2123_p0 }
 0x5b5   : > { %1581 = vrot.lane.b32.xlu2 %v2684_v54, %s2176_s11  ;;  %s1836_s11 = sshll.u32 %s203_s8, 6 }
 0x5b6   : > { %s2865_s27 = scalar_lea.vmem [#allocation2], %s1836_s11  ;;  %p2121_p13 = pneg %p2120_p12 }
 0x5b7   : > { %s1755_s20 = sshll.u32 %s2865_s27, 4  ;;  %s1756_s20 = int_to_ptr.vmem [resolvable:$true] %s1755_s20 }
 0x5b8   : > { %p2126_p3 = pnand %p2125_p2, %p2121_p13 }
 0x5e8   : > { %v1551_v28 = vpop.xlane.xlu2 %1550 }
 0x5e9   : > { %2092 = vrcp.f32 %v1551_v28  ;;  %v1563_v4 = vand.u32 2147483648, %v1551_v28  ;;  %v1561_v1 = vand.u32 2147483647, %v1551_v28  ;;  %vm1557_vm1 = vweird.f32 %v1551_v28 }
 0x5eb   : > { %v1564_v54 = vor.u32 1.1754944e-38, %v1563_v4  ;;  %vm1562_vm3 = vcmp.eq.f32.partialorder %v1561_v1, 8.507059e+37 }
 0x5ef   : > { %v2093_v29 = vpop.eup %2092 }
 0x5f0   : > { %v1553_v33 = vmul.f32 %v2093_v29, %v1551_v28  ;;  %v1197_v34 = vpop.permute.xlu2 %1196  ;;  %vm1558_vm15 = vweird.f32 %v2093_v29 }
 0x5f1   : > { %1884 = vmatmul.msk.f32.gmra.mxu3 %vm232_vm8, %v1197_v34  ;;  %vm1559_vm2 = vmor %vm1557_vm1, %vm1558_vm15 }
 0x5f2   : > { %v1554_v25 = vsub.f32 1.0, %v1553_v33 }
 0x5f4   : > { %v1555_v8 = vmul.f32 %v2093_v29, %v1554_v25  ;;  %v1719_v25 = vld [vmem:[%s2859_s10 + $0x10] sm:$0xff] }
 0x5f6   : > { %v1556_v58 = vadd.f32 %v2093_v29, %v1555_v8 }
 0x5f8   : > { %v1560_v32 = vsel %vm1559_vm2, %v2093_v29, %v1556_v58  ;;  %v1578_v7 = vpop.permute.xlu2 %1577 }
 0x5f9   : > { %v1565_v35 = vsel %vm1562_vm3, %v1564_v54, %v1560_v32 }
 0x5fa   : > { %v1238_v16 = vpop.f32.mrf.mxu3  ;;  %v1566_v5 = vmul.f32 %v2091_v13, %v1565_v35 }
 0x5fb   : > { %1887 = vmatmul.msk.f32.vlgmr.msra.gmra.mxu1 %vm232_vm8, %v1238_v16 }
 0x5fc   : > { %1896 = vmatpush.xpose.msk.msra.mxu2 %vm232_vm8, %v1566_v5 }
 0x5ff   : > { %1897 = vmatmul.msk.f32.vlgmr.msra.gmra.mxu2 %vm232_vm8, %v1568_v36 }
 0x600   : > { %v1199_v37 = vpop.permute.xlu2 %1198 }
 0x601   : > { %1885 = vmatmul.msk.f32.gmra.mxu3 %vm232_vm8, %v1199_v37 }
 0x602   : > { %v1241_v38 = vpop.f32.mrf.mxu3 }
 0x603   : > { %1888 = vmatmul.msk.f32.gmra.mxu1 %vm232_vm8, %v1241_v38  ;;  %v1721_v38 = vld [vmem:[%s2859_s10 + $0x20] sm:$0xff] }
 0x607   : > { %1898 = vmatmul.msk.f32.gmra.mxu2 %vm232_vm8, %v2766_v6  ;;  %v931_v6 = vpop.f32.mrf.mxu2 }
 0x608   : > { %v1580_v41 = vpop.permute.xlu2 %1579  ;;  %v932_v15 = vadd.f32 %v931_v6, %v2762_v14 }
 0x60a   : > { %v1244_v39 = vpop.f32.mrf.mxu3 }
 0x60b   : > { %1889 = vmatmul.msk.f32.gmra.mxu1 %vm232_vm8, %v1244_v39 }
 0x60f   : > { %1899 = vmatmul.msk.f32.gmra.mxu2 %vm232_vm8, %v2770_v44  ;;  %v934_v17 = vpop.f32.mrf.mxu2 }
 0x610   : > { %v1201_v40 = vpop.permute.xlu2 %1200  ;;  %v935_v14 = vadd.f32 %v934_v17, %v2764_v3 }
 0x611   : > { %1886 = vmatmul.msk.f32.gmra.mxu3 %vm232_vm8, %v1201_v40 }
 0x612   : > { %v1247_v2 = vpop.f32.mrf.mxu3 }
 0x613   : > { %1890 = vmatmul.msk.f32.gmra.mxu1 %vm232_vm8, %v1247_v2 }
 0x617   : > { %1900 = vmatmul.msk.f32.gmra.mxu2 %vm232_vm8, %v2776_v46  ;;  %v937_v51 = vpop.f32.mrf.mxu2  ;;  %v1643_v46 = vld [vmem:[%s2937_s3 + $0x18] sm:$0xff] }
 0x618   : > { %v1582_v44 = vpop.permute.xlu2 %1581  ;;  %1683 = vmatpush.msra.mxu0 %v1643_v46  ;;  %v938_v33 = vadd.f32 %v937_v51, %v2768_v43  ;;  %v1723_v46 = vld [vmem:[%s2859_s10 + $0x30] sm:$0xff] }
 0x61a   : > { %v1250_v9 = vpop.f32.mrf.mxu3 }
 0x61b   : > { %1891 = vmatmul.msk.f32.gmra.mxu1 %vm232_vm8, %v1250_v9 }
 0x61f   : > { %1901 = vmatmul.msk.f32.gmra.mxu2 %vm232_vm8, %v1576_v47  ;;  %v940_v30 = vpop.f32.mrf.mxu2  ;;  %v1718_v47 = vld [vmem:[%s2859_s10 + $0x8] sm:$0xff] }
 0x620   : > { %v941_v58 = vadd.f32 %v940_v30, %v2772_v62 }
 0x627   : > { %1902 = vmatmul.msk.f32.gmra.mxu2 %vm232_vm8, %v1578_v7  ;;  %v2830_v42 = vpop.f32.mrf.mxu2  ;;  %v1720_v7 = vld [vmem:[%s2859_s10 + $0x18] sm:$0xff] }
 0x628   : > { %v944_v5 = vadd.f32 %v2830_v42, %v2774_v10  ;;  %v1722_v10 = vld [vmem:[%s2859_s10 + $0x28] sm:$0xff] }
 0x62f   : > { %1903 = vmatmul.msk.f32.gmra.mxu2 %vm232_vm8, %v1580_v41  ;;  %v2835_v52 = vpop.f32.mrf.mxu2 }
 0x630   : > { %v947_v40 = vadd.f32 %v2835_v52, %v2778_v49 }
 0x637   : > { %1904 = vmatmul.msk.f32.gmra.mxu2 %vm232_vm8, %v1582_v44  ;;  %v2837_v26 = vpop.f32.mrf.mxu2 }
 0x638   : > { %v950_v51 = vadd.f32 %v2837_v26, %v2780_v50 }
 0x63f   : > { %v2840_v31 = vpop.f32.mrf.mxu2 }
 0x674   : > { %v1253_v53 = vpop.f32.mrf.mxu3 }
 0x675   : > { %1892 = vmatmul.msk.f32.gmra.mxu1 %vm232_vm8, %v1253_v53 }
 0x678   : > { %v1304_v12 = vpop.f32.mrf.mxu1 }
 0x679   : > { %v1328_v19 = vadd.f32 %v1304_v12, %v932_v15 }
 0x680   : > { %v1307_v18 = vpop.f32.mrf.mxu1 }
 0x681   : > { %v1329_v21 = vadd.f32 %v1307_v18, %v935_v14 }
 0x682   : > { %v1619_v24 = vpop.f32.mrf.mxu2 }
 0x683   : > { %1905 = vmatmul.msk.f32.vlgmr.msra.gmra.mxu0 %vm232_vm8, %v1619_v24  ;;  %v953_v24 = vadd.f32 %v2840_v31, %v2782_v23 }
 0x684   : > { %v1256_v55 = vpop.f32.mrf.mxu3 }
 0x685   : > { %1893 = vmatmul.msk.f32.gmra.mxu1 %vm232_vm8, %v1256_v55  ;;  %v1724_v55 = vld [vmem:[%s2859_s10 + $0x38] sm:$0xff] }
 0x688   : > { %v1310_v22 = vpop.f32.mrf.mxu1 }
 0x689   : > { %v1330_v3 = vadd.f32 %v1310_v22, %v938_v33 }
 0x68a   : > { %v1622_v48 = vpop.f32.mrf.mxu2 }
 0x68b   : > { %1906 = vmatmul.msk.f32.gmra.mxu0 %vm232_vm8, %v1622_v48 }
 0x690   : > { %v1313_v8 = vpop.f32.mrf.mxu1 }
 0x691   : > { %v1331_v54 = vadd.f32 %v1313_v8, %v941_v58 }
 0x692   : > { %v1625_v56 = vpop.f32.mrf.mxu2 }
 0x693   : > { %1907 = vmatmul.msk.f32.gmra.mxu0 %vm232_vm8, %v1625_v56 }
 0x694   : > { %v1259_v57 = vpop.f32.mrf.mxu3 }
 0x695   : > { %1894 = vmatmul.msk.f32.gmra.mxu1 %vm232_vm8, %v1259_v57 }
 0x698   : > { %v1316_v16 = vpop.f32.mrf.mxu1 }
 0x699   : > { %v1332_v36 = vadd.f32 %v1316_v16, %v944_v5 }
 0x69a   : > { %v1628_v59 = vpop.f32.mrf.mxu2 }
 0x69b   : > { %1908 = vmatmul.msk.f32.gmra.mxu0 %vm232_vm8, %v1628_v59 }
 0x6a2   : > { %v1631_v60 = vpop.f32.mrf.mxu2 }
 0x6a3   : > { %1909 = vmatmul.msk.f32.gmra.mxu0 %vm232_vm8, %v1631_v60 }
 0x6aa   : > { %v1634_v61 = vpop.f32.mrf.mxu2 }
 0x6ab   : > { %1910 = vmatmul.msk.f32.gmra.mxu0 %vm232_vm8, %v1634_v61 }
 0x6b2   : > { %v1637_v63 = vpop.f32.mrf.mxu2 }
 0x6b3   : > { %1911 = vmatmul.msk.f32.gmra.mxu0 %vm232_vm8, %v1637_v63 }
 0x6ba   : > { %v1640_v11 = vpop.f32.mrf.mxu2 }
 0x6bb   : > { %1912 = vmatmul.msk.f32.gmra.mxu0 %vm232_vm8, %v1640_v11  ;;  %vm1733_vm8 = vcmask 261120  }
 0x6f2   : > { %v1319_v39 = vpop.f32.mrf.mxu1 }
 0x6f3   : > { %v1333_v2 = vadd.f32 %v1319_v39, %v947_v40 }
 0x700   : > { %v1685_v0 = vpop.f32.mrf.mxu0 }
 0x701   : > { %v1709_v20 = vadd.f32 %v1685_v0, %v1328_v19 }
 0x702   : > { %v1322_v17 = vpop.f32.mrf.mxu1 }
 0x703   : > { %v1725_v13 = vadd.f32 %v1717_v45, %v1709_v20  ;;  %v1334_v30 = vadd.f32 %v1322_v17, %v950_v51 }
 0x705   : > { %1734 = vst.msk [vmem:[%s2865_s27] sm:$0xff] %vm1733_vm8, %v1725_v13 }
 0x708   : > { %v1688_v27 = vpop.f32.mrf.mxu0 }
 0x709   : > { %v1710_v28 = vadd.f32 %v1688_v27, %v1329_v21 }
 0x70b   : > { %v1726_v29 = vadd.f32 %v1718_v47, %v1710_v28 }
 0x70d   : > { %1735 = vst.msk [vmem:[%s2865_s27 + $0x8] sm:$0xff] %vm1733_vm8, %v1726_v29 }
 0x710   : > { %v1691_v34 = vpop.f32.mrf.mxu0 }
 0x711   : > { %v1711_v4 = vadd.f32 %v1691_v34, %v1330_v3 }
 0x712   : > { %v1325_v53 = vpop.f32.mrf.mxu1 }
 0x713   : > { %v1727_v1 = vadd.f32 %v1719_v25, %v1711_v4  ;;  %v1335_v50 = vadd.f32 %v1325_v53, %v953_v24 }
 0x715   : > { %1736 = vst.msk [vmem:[%s2865_s27 + $0x10] sm:$0xff] %vm1733_vm8, %v1727_v1 }
 0x718   : > { %v1694_v32 = vpop.f32.mrf.mxu0 }
 0x719   : > { %v1712_v43 = vadd.f32 %v1694_v32, %v1331_v54 }
 0x71b   : > { %v1728_v35 = vadd.f32 %v1720_v7, %v1712_v43 }
 0x71d   : > { %1737 = vst.msk [vmem:[%s2865_s27 + $0x18] sm:$0xff] %vm1733_vm8, %v1728_v35 }
 0x720   : > { %v1697_v37 = vpop.f32.mrf.mxu0 }
 0x721   : > { %v1713_v62 = vadd.f32 %v1697_v37, %v1332_v36 }
 0x723   : > { %v1729_v41 = vadd.f32 %v1721_v38, %v1713_v62 }
 0x725   : > { %1738 = vst.msk [vmem:[%s2865_s27 + $0x20] sm:$0xff] %vm1733_vm8, %v1729_v41 }
 0x728   : > { %v1700_v9 = vpop.f32.mrf.mxu0 }
 0x729   : > { %v1714_v6 = vadd.f32 %v1700_v9, %v1333_v2 }
 0x72b   : > { %v1730_v44 = vadd.f32 %v1722_v10, %v1714_v6 }
 0x72d   : > { %1739 = vst.msk [vmem:[%s2865_s27 + $0x28] sm:$0xff] %vm1733_vm8, %v1730_v44 }
 0x730   : > { %v1703_v42 = vpop.f32.mrf.mxu0 }
 0x731   : > { %v1715_v49 = vadd.f32 %v1703_v42, %v1334_v30 }
 0x733   : > { %v1731_v52 = vadd.f32 %v1723_v46, %v1715_v49 }
 0x735   : > { %1740 = vst.msk [vmem:[%s2865_s27 + $0x30] sm:$0xff] %vm1733_vm8, %v1731_v52 }
 0x738   : > { %v1706_v26 = vpop.f32.mrf.mxu0 }
 0x739   : > { %v1716_v48 = vadd.f32 %v1706_v26, %v1335_v50 }
 0x73b   : > { %v1732_v56 = vadd.f32 %v1724_v55, %v1716_v48 }
 0x73d   : > { %1741 = vst.msk [vmem:[%s2865_s27 + $0x38] sm:$0xff] %vm1733_vm8, %v1732_v56 }
 0x73e   : > { %2129 = shalt.err (!%p2126_p3)
}
 0x73f   : > { %s2177_s8 = smov 128   ;;  %s2178_s10 = smov 8  }
 0x740   : > { %1929 = dma.vmem_to_hbm [thread:$0]  (%p2242_p5), %s1756_s20, 1024, %s1758_s22, %s1743_s19, %s2177_s8, %s2177_s8, %s2178_s10  }
 0x741 PF: > { %p1935_p4 = scmp.ge.s32.totalorder %s2164_s18, 2  ;;  %s1772_s11 = sand.u32 1, %s2152_s15  }
 0x742   : > { %s1773_s27 = scalar_lea.sflag [#allocation3], %s1772_s11 }
 0x743   : > { %p1932_p7 = pnand %p1935_p4, %p2246_p6 }
 0x745   : > { %p1933_p8 = pneg %p1932_p7 }
 0x747   : > { %2147 = dma.done.wait (%p1933_p8), %s1773_s27, 1024  }
 0x748   : > { %2149 = vsyncadd (%p1933_p8), %s1773_s27, 4294966272  ;;  %p14_p9 = scmp.ge.s32.totalorder %s2229_s21, 4   ;;  %s2941_s15 = smov %s2156_s16 }
 0x749   : > { %s2942_s16 = smov %s2160_s17  ;;  %s2943_s17 = smov %s2240_s24 }
 0x74a   : > { %s2944_s18 = smov %s2229_s21  ;;  %16 = sbr.rel (!%p14_p9) target bundleno = 3 (0x3), region = 74 }
 0x74f   :  { %1779 = vsyncpa [#allocation3], 1 }
 0x750   :  { %1781 = vsyncpa [#allocation3 + $0x1], 1 }

</bundles_post_ra>
